<compile_context>
chip_gen: v7x
topology: tpu7x:2x2x1
jax: 0.10.0
libtpu: 0.0.40
codegen_flags: <defaults>
</compile_context>

<pallas_src>
import functools

import jax
import jax.numpy as jnp
from jax.experimental import pallas as pl
from jax.experimental.pallas import tpu as pltpu

LEAKY_SLOPE = 0.01  # default slope for F.leaky_relu / InPlaceABN


def _round_up(x, m):
    return ((x + m - 1) // m) * m


@functools.lru_cache(maxsize=None)
def _vmem_capacity_bytes():
    """Physical VMEM per TensorCore (64 MiB on v7x, 128 MiB on v5e/v6e)."""
    try:
        info = pltpu.get_tpu_info()
        return int(getattr(info, "vmem_capacity_bytes", 64 * 1024 * 1024))
    except Exception:  # pragma: no cover - conservative fallback
        return 64 * 1024 * 1024


def _compiler_params():
    cap = _vmem_capacity_bytes()
    # Leave headroom below physical VMEM (never request 128 MiB on a 64 MiB v7x core).
    limit = min(cap * 3 // 4, 96 * 1024 * 1024)
    return pltpu.CompilerParams(
        dimension_semantics=("parallel", "parallel", "arbitrary"),
        vmem_limit_bytes=limit,
    )


# ---------------------------------------------------------------------------
# Pallas kernels: tiled  patches @ W  with fused BN / residual / leaky_relu
# ---------------------------------------------------------------------------
def _conv_mm_kernel(p_ref, w_ref, s_ref, b_ref, o_ref, acc_ref, *, act):
    @pl.when(pl.program_id(2) == 0)
    def _():
        acc_ref[...] = jnp.zeros_like(acc_ref)

    acc_ref[...] += jnp.dot(p_ref[...], w_ref[...],
                            preferred_element_type=jnp.float32)

    @pl.when(pl.program_id(2) == pl.num_programs(2) - 1)
    def _():
        y = acc_ref[...] * s_ref[...] + b_ref[...]
        if act:
            y = jnp.where(y >= 0, y, LEAKY_SLOPE * y)
        o_ref[...] = y.astype(o_ref.dtype)


def _conv_mm_res_kernel(p_ref, w_ref, s_ref, b_ref, r_ref, o_ref, acc_ref, *, act):
    @pl.when(pl.program_id(2) == 0)
    def _():
        acc_ref[...] = jnp.zeros_like(acc_ref)

    acc_ref[...] += jnp.dot(p_ref[...], w_ref[...],
                            preferred_element_type=jnp.float32)

    @pl.when(pl.program_id(2) == pl.num_programs(2) - 1)
    def _():
        y = acc_ref[...] * s_ref[...] + b_ref[...] + r_ref[...].astype(jnp.float32)
        if act:
            y = jnp.where(y >= 0, y, LEAKY_SLOPE * y)
        o_ref[...] = y.astype(o_ref.dtype)


# ---------------------------------------------------------------------------
# Conv + BN (+ residual, + leaky_relu) wrapper
# ---------------------------------------------------------------------------
def _im2col(x, kh, kw, stride, pad):
    """x: NHWC (bf16) -> patches [B*OH*OW, KH*KW*C] ordered (kh, kw, c)."""
    # TODO(synk): build 3x3 patches in-kernel from an input row tile to avoid the
    # KH*KW HBM materialization; currently the patch matrix is written once and
    # streamed through the tiled grid exactly once.
    B, H, W, C = x.shape
    xp = jnp.pad(x, ((0, 0), (pad, pad), (pad, pad), (0, 0)))
    OH = (H + 2 * pad - kh) // stride + 1
    OW = (W + 2 * pad - kw) // stride + 1
    cols = []
    for i in range(kh):
        for j in range(kw):
            cols.append(xp[:, i:i + stride * OH:stride, j:j + stride * OW:stride, :])
    patches = jnp.stack(cols, axis=3)  # [B, OH, OW, KH*KW, C]
    return patches.reshape(B * OH * OW, kh * kw * C), OH, OW


def conv_bn(x, w, scale, bias, *, stride, pad, act, residual=None):
    """x: NHWC bf16, w: HWIO f32 params.  Returns NHWC bf16."""
    kh, kw, cin, cout = w.shape
    B = x.shape[0]
    patches, OH, OW = _im2col(x.astype(jnp.bfloat16), kh, kw, stride, pad)
    M, K = patches.shape
    N = cout

    # ---- tile selection (shape-robust, VMEM-aware) --------------------------
    tk_max = 512 if _vmem_capacity_bytes() <= 64 * 1024 * 1024 else 1024  # v7x
    tm = min(_round_up(M, 16), 256)          # bf16 sublane alignment
    Mp = _round_up(M, tm)
    Kp = _round_up(K, 128)                   # lane-aligned contraction dim
    q = Kp // 128
    nk = 1
    while (q % nk != 0) or (q // nk) * 128 > tk_max:
        nk += 1
    tk = (q // nk) * 128
    Np = _round_up(N, 128)                   # lane-dense output columns
    tn = Np if Np <= 256 else (256 if Np % 256 == 0 else 128)

    # ---- operand padding / dtypes (MXU operands in bf16, BN params in f32) ---
    if (Mp, Kp) != (M, K):
        patches = jnp.pad(patches, ((0, Mp - M), (0, Kp - K)))
    w2d = w.reshape(kh * kw * cin, N).astype(jnp.bfloat16)
    if (Kp, Np) != (K, N):
        w2d = jnp.pad(w2d, ((0, Kp - K), (0, Np - N)))
    s2d = jnp.pad(scale.reshape(1, N).astype(jnp.float32), ((0, 0), (0, Np - N)))
    b2d = jnp.pad(bias.reshape(1, N).astype(jnp.float32), ((0, 0), (0, Np - N)))

    in_specs = [
        pl.BlockSpec((tm, tk), lambda i, j, k: (i, k)),
        pl.BlockSpec((tk, tn), lambda i, j, k: (k, j)),
        pl.BlockSpec((1, tn), lambda i, j, k: (0, j)),
        pl.BlockSpec((1, tn), lambda i, j, k: (0, j)),
    ]
    args = [patches, w2d, s2d, b2d]

    if residual is not None:
        r2d = residual.astype(jnp.bfloat16).reshape(M, N)
        if (Mp, Np) != (M, N):
            r2d = jnp.pad(r2d, ((0, Mp - M), (0, Np - N)))
        in_specs.append(pl.BlockSpec((tm, tn), lambda i, j, k: (i, j)))
        args.append(r2d)
        kernel = functools.partial(_conv_mm_res_kernel, act=act)
    else:
        kernel = functools.partial(_conv_mm_kernel, act=act)

    out = pl.pallas_call(
        kernel,
        out_shape=jax.ShapeDtypeStruct((Mp, Np), jnp.bfloat16),
        grid=(Mp // tm, Np // tn, Kp // tk),
        in_specs=in_specs,
        out_specs=pl.BlockSpec((tm, tn), lambda i, j, k: (i, j)),
        scratch_shapes=[pltpu.VMEM((tm, tn), jnp.float32)],
        compiler_params=_compiler_params(),
    )(*args)
    return out[:M, :N].reshape(B, OH, OW, N)


def maxpool_3x3_s2_p1(x):
    """MaxPool2d(kernel_size=3, stride=2, padding=1) on NHWC input.

    Fused running max over the 9 strided taps in plain JAX (no 9x HBM stack),
    as recommended by the performance review for this purely mem-bound op.
    """
    B, H, W, C = x.shape
    OH = (H + 2 - 3) // 2 + 1
    OW = (W + 2 - 3) // 2 + 1
    xp = jnp.pad(x, ((0, 0), (1, 1), (1, 1), (0, 0)), constant_values=-jnp.inf)
    out = None
    for i in range(3):
        for j in range(3):
            tap = xp[:, i:i + 2 * OH:2, j:j + 2 * OW:2, :]
            out = tap if out is None else jnp.maximum(out, tap)
    return out


# ---------------------------------------------------------------------------
# Parameter initialization (deterministic, synthetic)
# ---------------------------------------------------------------------------
def _conv_w(key, kh, kw, cin, cout):
    fan_in = kh * kw * cin
    return jax.random.normal(key, (kh, kw, cin, cout), jnp.float32) * (2.0 / fan_in) ** 0.5


def _bn_params(key, c):
    k1, k2 = jax.random.split(key)
    scale = 1.0 + 0.1 * jax.random.normal(k1, (c,), jnp.float32)  # gamma/sqrt(var+eps)
    bias = 0.1 * jax.random.normal(k2, (c,), jnp.float32)         # beta - mean*scale
    return scale, bias


def init_params(key, layers=(2, 2, 2, 2), strides=(1, 2, 2, 2)):
    keys = iter(jax.random.split(key, 64))
    p = {}
    # Stem: Conv2d(4, 64, kernel_size=7, stride=2, padding=3, bias=False) + BN(leaky).
    # (The PyTorch module copies pretrained RGB filters + their mean into channel 3;
    #  here weights are synthetic/random with identical shapes.)
    p["conv1_w"] = _conv_w(next(keys), 7, 7, 4, 64)
    p["bn1_s"], p["bn1_b"] = _bn_params(next(keys), 64)

    inplanes = 64
    for li, (planes, n_blocks, stride) in enumerate(
            zip((64, 128, 256, 512), layers, strides), start=1):
        blocks = []
        for b in range(n_blocks):
            s = stride if b == 0 else 1
            bp = {
                "conv1_w": _conv_w(next(keys), 3, 3, inplanes, planes),
                "conv2_w": _conv_w(next(keys), 3, 3, planes, planes),
            }
            bp["bn1_s"], bp["bn1_b"] = _bn_params(next(keys), planes)
            bp["bn2_s"], bp["bn2_b"] = _bn_params(next(keys), planes)
            if s != 1 or inplanes != planes:
                bp["down_w"] = _conv_w(next(keys), 1, 1, inplanes, planes)
                bp["down_s"], bp["down_b"] = _bn_params(next(keys), planes)
            blocks.append(bp)
            inplanes = planes
        p[f"layer{li}"] = blocks
    return p


# ---------------------------------------------------------------------------
# Forward pass
# ---------------------------------------------------------------------------
def basic_block(x, bp, stride):
    out = conv_bn(x, bp["conv1_w"], bp["bn1_s"], bp["bn1_b"],
                  stride=stride, pad=1, act=True)
    if "down_w" in bp:
        shortcut = conv_bn(x, bp["down_w"], bp["down_s"], bp["down_b"],
                           stride=stride, pad=0, act=False)
    else:
        shortcut = x
    # conv2 + bn2 + residual add + final leaky_relu fused in one Pallas call.
    return conv_bn(out, bp["conv2_w"], bp["bn2_s"], bp["bn2_b"],
                   stride=1, pad=1, act=True, residual=shortcut)


def resnet_forward(params, x_nchw, strides=(1, 2, 2, 2)):
    x = jnp.transpose(x_nchw, (0, 2, 3, 1)).astype(jnp.bfloat16)  # NCHW -> NHWC, bf16
    x = conv_bn(x, params["conv1_w"], params["bn1_s"], params["bn1_b"],
                stride=2, pad=3, act=True)
    x = maxpool_3x3_s2_p1(x)
    feats = []
    for li in range(1, 5):
        for b, bp in enumerate(params[f"layer{li}"]):
            x = basic_block(x, bp, strides[li - 1] if b == 0 else 1)
        feats.append(jnp.transpose(x, (0, 3, 1, 2)).astype(jnp.float32))  # NCHW f32
    return tuple(feats)  # (feat4, feat8, feat16, feat32)


if __name__ == "__main__":
    key = jax.random.PRNGKey(0)
    pkey, xkey = jax.random.split(key)
    params = init_params(pkey)

    # Module's conv1 expects 4 input channels.
    x = jax.random.normal(xkey, (2, 4, 16, 16), jnp.float32)

    feat4, feat8, feat16, feat32 = jax.block_until_ready(
        jax.jit(resnet_forward)(params, x))

    assert feat4.shape == (2, 64, 4, 4), feat4.shape
    assert feat8.shape == (2, 128, 2, 2), feat8.shape
    assert feat16.shape == (2, 256, 1, 1), feat16.shape
    assert feat32.shape == (2, 512, 1, 1), feat32.shape
    assert all(jnp.isfinite(f).all() for f in (feat4, feat8, feat16, feat32))
    print("KERNEL_OK")
</pallas_src>

<mosaic_0001>
module attributes {stable_mosaic.version = 11 : i64} {
  func.func @_conv_mm_kernel(%arg0: i32, %arg1: i32, %arg2: i32, %arg3: memref<128x256xbf16, #tpu.memory_space<vmem>>, %arg4: memref<256x128xbf16, #tpu.memory_space<vmem>>, %arg5: memref<1x128xf32, #tpu.memory_space<vmem>>, %arg6: memref<1x128xf32, #tpu.memory_space<vmem>>, %arg7: memref<128x128xbf16, #tpu.memory_space<vmem>>, %arg8: memref<128x128xf32, #tpu.memory_space<vmem>>) attributes {dimension_semantics = [#tpu.dimension_semantics<parallel>, #tpu.dimension_semantics<parallel>, #tpu.dimension_semantics<arbitrary>], iteration_bounds = array<i64: 1, 1, 1>, scalar_prefetch = 0 : i64, scratch_operands = 1 : i64, tpu.core_type = #tpu.core_type<tc>, window_params = [{transform_indices = @transform_0, window_bounds = array<i64: 128, 256>}, {transform_indices = @transform_1, window_bounds = array<i64: 256, 128>}, {transform_indices = @transform_2, window_bounds = array<i64: 1, 128>}, {transform_indices = @transform_3, window_bounds = array<i64: 1, 128>}, {transform_indices = @transform_4, window_bounds = array<i64: 128, 128>}]} {
    %c0_i32 = arith.constant 0 : i32
    %0 = arith.cmpi eq, %arg2, %c0_i32 : i32
    %1 = arith.extui %0 : i1 to i32
    %c0_i32_0 = arith.constant 0 : i32
    %2 = arith.cmpi ne, %1, %c0_i32_0 : i32
    scf.if %2 {
      %cst_10 = arith.constant 0.000000e+00 : f32
      %12 = vector.broadcast %cst_10 : f32 to vector<128x128xf32>
      %c0_11 = arith.constant 0 : index
      %c0_12 = arith.constant 0 : index
      %13 = vector.load %arg8[%c0_11, %c0_12] : memref<128x128xf32, #tpu.memory_space<vmem>>, vector<128x128xf32>
      tpu.vector_store %arg8[%c0_11, %c0_12], %12 {strides = array<i32>} : memref<128x128xf32, #tpu.memory_space<vmem>>, vector<128x128xf32>,
    } else {
    }
    %c0 = arith.constant 0 : index
    %c0_1 = arith.constant 0 : index
    %3 = vector.load %arg8[%c0, %c0_1] : memref<128x128xf32, #tpu.memory_space<vmem>>, vector<128x128xf32>
    %c0_2 = arith.constant 0 : index
    %c0_3 = arith.constant 0 : index
    %4 = vector.load %arg3[%c0_2, %c0_3] : memref<128x256xbf16, #tpu.memory_space<vmem>>, vector<128x256xbf16>
    %c0_4 = arith.constant 0 : index
    %c0_5 = arith.constant 0 : index
    %5 = vector.load %arg4[%c0_4, %c0_5] : memref<256x128xbf16, #tpu.memory_space<vmem>>, vector<256x128xbf16>
    %cst = arith.constant dense<0.000000e+00> : vector<128x128xf32>
    %6 = tpu.matmul %4, %5, %cst {dimension_numbers = #tpu.dot_dimension_numbers<[1], [0], [0], [1], [0, 0, 1, 1], [], []>} : vector<128x256xbf16>, vector<256x128xbf16>, vector<128x128xf32> -> vector<128x128xf32>
    %7 = arith.addf %3, %6 : vector<128x128xf32>
    %c0_6 = arith.constant 0 : index
    %c0_7 = arith.constant 0 : index
    %8 = vector.load %arg8[%c0_6, %c0_7] : memref<128x128xf32, #tpu.memory_space<vmem>>, vector<128x128xf32>
    tpu.vector_store %arg8[%c0_6, %c0_7], %7 {strides = array<i32>} : memref<128x128xf32, #tpu.memory_space<vmem>>, vector<128x128xf32>,
    %c0_i32_8 = arith.constant 0 : i32
    %9 = arith.cmpi eq, %arg2, %c0_i32_8 : i32
    %10 = arith.extui %9 : i1 to i32
    %c0_i32_9 = arith.constant 0 : i32
    %11 = arith.cmpi ne, %10, %c0_i32_9 : i32
    scf.if %11 {
      %c0_10 = arith.constant 0 : index
      %c0_11 = arith.constant 0 : index
      %12 = vector.load %arg8[%c0_10, %c0_11] : memref<128x128xf32, #tpu.memory_space<vmem>>, vector<128x128xf32>
      %c0_12 = arith.constant 0 : index
      %c0_13 = arith.constant 0 : index
      %13 = vector.load %arg5[%c0_12, %c0_13] : memref<1x128xf32, #tpu.memory_space<vmem>>, vector<1x128xf32>
      %14 = vector.broadcast %13 : vector<1x128xf32> to vector<128x128xf32>
      %15 = arith.mulf %12, %14 : vector<128x128xf32>
      %c0_14 = arith.constant 0 : index
      %c0_15 = arith.constant 0 : index
      %16 = vector.load %arg6[%c0_14, %c0_15] : memref<1x128xf32, #tpu.memory_space<vmem>>, vector<1x128xf32>
      %17 = vector.broadcast %16 : vector<1x128xf32> to vector<128x128xf32>
      %18 = arith.addf %15, %17 : vector<128x128xf32>
      %cst_16 = arith.constant 0.000000e+00 : f32
      %19 = vector.broadcast %cst_16 : f32 to vector<128x128xf32>
      %20 = arith.cmpf oge, %18, %19 : vector<128x128xf32>
      %cst_17 = arith.constant 0.00999999977 : f32
      %21 = vector.broadcast %cst_17 : f32 to vector<128x128xf32>
      %22 = arith.mulf %21, %18 : vector<128x128xf32>
      %23 = arith.select %20, %18, %22 : vector<128x128xi1>, vector<128x128xf32>
      %24 = arith.truncf %23 : vector<128x128xf32> to vector<128x128xbf16>
      %c0_18 = arith.constant 0 : index
      %c0_19 = arith.constant 0 : index
      %25 = vector.load %arg7[%c0_18, %c0_19] : memref<128x128xbf16, #tpu.memory_space<vmem>>, vector<128x128xbf16>
      tpu.vector_store %arg7[%c0_18, %c0_19], %24 {strides = array<i32>} : memref<128x128xbf16, #tpu.memory_space<vmem>>, vector<128x128xbf16>,
    } else {
    }
    return
  }
  func.func @transform_0(%arg0: i32, %arg1: i32, %arg2: i32) -> (i32, i32) {
    %c0_i32 = arith.constant 0 : i32
    return %arg0, %arg2 : i32, i32
  }
  func.func @transform_1(%arg0: i32, %arg1: i32, %arg2: i32) -> (i32, i32) {
    %c0_i32 = arith.constant 0 : i32
    return %arg2, %arg1 : i32, i32
  }
  func.func @transform_2(%arg0: i32, %arg1: i32, %arg2: i32) -> (i32, i32) {
    %c0_i32 = arith.constant 0 : i32
    %c0_i32_0 = arith.constant 0 : i32
    return %c0_i32, %arg1 : i32, i32
  }
  func.func @transform_3(%arg0: i32, %arg1: i32, %arg2: i32) -> (i32, i32) {
    %c0_i32 = arith.constant 0 : i32
    %c0_i32_0 = arith.constant 0 : i32
    return %c0_i32, %arg1 : i32, i32
  }
  func.func @transform_4(%arg0: i32, %arg1: i32, %arg2: i32) -> (i32, i32) {
    %c0_i32 = arith.constant 0 : i32
    return %arg0, %arg1 : i32, i32
  }
}

module attributes {stable_mosaic.version = 11 : i64} {
  func.func @_conv_mm_kernel(%arg0: i32, %arg1: i32, %arg2: i32, %arg3: memref<32x128xbf16, #tpu.memory_space<vmem>>, %arg4: memref<128x128xbf16, #tpu.memory_space<vmem>>, %arg5: memref<1x128xf32, #tpu.memory_space<vmem>>, %arg6: memref<1x128xf32, #tpu.memory_space<vmem>>, %arg7: memref<32x128xbf16, #tpu.memory_space<vmem>>, %arg8: memref<32x128xf32, #tpu.memory_space<vmem>>) attributes {dimension_semantics = [#tpu.dimension_semantics<parallel>, #tpu.dimension_semantics<parallel>, #tpu.dimension_semantics<arbitrary>], iteration_bounds = array<i64: 1, 1, 5>, scalar_prefetch = 0 : i64, scratch_operands = 1 : i64, tpu.core_type = #tpu.core_type<tc>, window_params = [{transform_indices = @transform_0, window_bounds = array<i64: 32, 128>}, {transform_indices = @transform_1, window_bounds = array<i64: 128, 128>}, {transform_indices = @transform_2, window_bounds = array<i64: 1, 128>}, {transform_indices = @transform_3, window_bounds = array<i64: 1, 128>}, {transform_indices = @transform_4, window_bounds = array<i64: 32, 128>}]} {
    %c0_i32 = arith.constant 0 : i32
    %0 = arith.cmpi eq, %arg2, %c0_i32 : i32
    %1 = arith.extui %0 : i1 to i32
    %c0_i32_0 = arith.constant 0 : i32
    %2 = arith.cmpi ne, %1, %c0_i32_0 : i32
    scf.if %2 {
      %cst_9 = arith.constant 0.000000e+00 : f32
      %12 = vector.broadcast %cst_9 : f32 to vector<32x128xf32>
      %c0_10 = arith.constant 0 : index
      %c0_11 = arith.constant 0 : index
      %13 = vector.load %arg8[%c0_10, %c0_11] : memref<32x128xf32, #tpu.memory_space<vmem>>, vector<32x128xf32>
      tpu.vector_store %arg8[%c0_10, %c0_11], %12 {strides = array<i32>} : memref<32x128xf32, #tpu.memory_space<vmem>>, vector<32x128xf32>,
    } else {
    }
    %c0 = arith.constant 0 : index
    %c0_1 = arith.constant 0 : index
    %3 = vector.load %arg8[%c0, %c0_1] : memref<32x128xf32, #tpu.memory_space<vmem>>, vector<32x128xf32>
    %c0_2 = arith.constant 0 : index
    %c0_3 = arith.constant 0 : index
    %4 = vector.load %arg3[%c0_2, %c0_3] : memref<32x128xbf16, #tpu.memory_space<vmem>>, vector<32x128xbf16>
    %c0_4 = arith.constant 0 : index
    %c0_5 = arith.constant 0 : index
    %5 = vector.load %arg4[%c0_4, %c0_5] : memref<128x128xbf16, #tpu.memory_space<vmem>>, vector<128x128xbf16>
    %cst = arith.constant dense<0.000000e+00> : vector<32x128xf32>
    %6 = tpu.matmul %4, %5, %cst {dimension_numbers = #tpu.dot_dimension_numbers<[1], [0], [0], [1], [0, 0, 1, 1], [], []>} : vector<32x128xbf16>, vector<128x128xbf16>, vector<32x128xf32> -> vector<32x128xf32>
    %7 = arith.addf %3, %6 : vector<32x128xf32>
    %c0_6 = arith.constant 0 : index
    %c0_7 = arith.constant 0 : index
    %8 = vector.load %arg8[%c0_6, %c0_7] : memref<32x128xf32, #tpu.memory_space<vmem>>, vector<32x128xf32>
    tpu.vector_store %arg8[%c0_6, %c0_7], %7 {strides = array<i32>} : memref<32x128xf32, #tpu.memory_space<vmem>>, vector<32x128xf32>,
    %c4_i32 = arith.constant 4 : i32
    %9 = arith.cmpi eq, %arg2, %c4_i32 : i32
    %10 = arith.extui %9 : i1 to i32
    %c0_i32_8 = arith.constant 0 : i32
    %11 = arith.cmpi ne, %10, %c0_i32_8 : i32
    scf.if %11 {
      %c0_9 = arith.constant 0 : index
      %c0_10 = arith.constant 0 : index
      %12 = vector.load %arg8[%c0_9, %c0_10] : memref<32x128xf32, #tpu.memory_space<vmem>>, vector<32x128xf32>
      %c0_11 = arith.constant 0 : index
      %c0_12 = arith.constant 0 : index
      %13 = vector.load %arg5[%c0_11, %c0_12] : memref<1x128xf32, #tpu.memory_space<vmem>>, vector<1x128xf32>
      %14 = vector.broadcast %13 : vector<1x128xf32> to vector<32x128xf32>
      %15 = arith.mulf %12, %14 : vector<32x128xf32>
      %c0_13 = arith.constant 0 : index
      %c0_14 = arith.constant 0 : index
      %16 = vector.load %arg6[%c0_13, %c0_14] : memref<1x128xf32, #tpu.memory_space<vmem>>, vector<1x128xf32>
      %17 = vector.broadcast %16 : vector<1x128xf32> to vector<32x128xf32>
      %18 = arith.addf %15, %17 : vector<32x128xf32>
      %cst_15 = arith.constant 0.000000e+00 : f32
      %19 = vector.broadcast %cst_15 : f32 to vector<32x128xf32>
      %20 = arith.cmpf oge, %18, %19 : vector<32x128xf32>
      %cst_16 = arith.constant 0.00999999977 : f32
      %21 = vector.broadcast %cst_16 : f32 to vector<32x128xf32>
      %22 = arith.mulf %21, %18 : vector<32x128xf32>
      %23 = arith.select %20, %18, %22 : vector<32x128xi1>, vector<32x128xf32>
      %24 = arith.truncf %23 : vector<32x128xf32> to vector<32x128xbf16>
      %c0_17 = arith.constant 0 : index
      %c0_18 = arith.constant 0 : index
      %25 = vector.load %arg7[%c0_17, %c0_18] : memref<32x128xbf16, #tpu.memory_space<vmem>>, vector<32x128xbf16>
      tpu.vector_store %arg7[%c0_17, %c0_18], %24 {strides = array<i32>} : memref<32x128xbf16, #tpu.memory_space<vmem>>, vector<32x128xbf16>,
    } else {
    }
    return
  }
  func.func @transform_0(%arg0: i32, %arg1: i32, %arg2: i32) -> (i32, i32) {
    %c0_i32 = arith.constant 0 : i32
    return %arg0, %arg2 : i32, i32
  }
  func.func @transform_1(%arg0: i32, %arg1: i32, %arg2: i32) -> (i32, i32) {
    %c0_i32 = arith.constant 0 : i32
    return %arg2, %arg1 : i32, i32
  }
  func.func @transform_2(%arg0: i32, %arg1: i32, %arg2: i32) -> (i32, i32) {
    %c0_i32 = arith.constant 0 : i32
    %c0_i32_0 = arith.constant 0 : i32
    return %c0_i32, %arg1 : i32, i32
  }
  func.func @transform_3(%arg0: i32, %arg1: i32, %arg2: i32) -> (i32, i32) {
    %c0_i32 = arith.constant 0 : i32
    %c0_i32_0 = arith.constant 0 : i32
    return %c0_i32, %arg1 : i32, i32
  }
  func.func @transform_4(%arg0: i32, %arg1: i32, %arg2: i32) -> (i32, i32) {
    %c0_i32 = arith.constant 0 : i32
    return %arg0, %arg1 : i32, i32
  }
}

module attributes {stable_mosaic.version = 11 : i64} {
  func.func @_conv_mm_res_kernel(%arg0: i32, %arg1: i32, %arg2: i32, %arg3: memref<32x128xbf16, #tpu.memory_space<vmem>>, %arg4: memref<128x128xbf16, #tpu.memory_space<vmem>>, %arg5: memref<1x128xf32, #tpu.memory_space<vmem>>, %arg6: memref<1x128xf32, #tpu.memory_space<vmem>>, %arg7: memref<32x128xbf16, #tpu.memory_space<vmem>>, %arg8: memref<32x128xbf16, #tpu.memory_space<vmem>>, %arg9: memref<32x128xf32, #tpu.memory_space<vmem>>) attributes {dimension_semantics = [#tpu.dimension_semantics<parallel>, #tpu.dimension_semantics<parallel>, #tpu.dimension_semantics<arbitrary>], iteration_bounds = array<i64: 1, 1, 5>, scalar_prefetch = 0 : i64, scratch_operands = 1 : i64, tpu.core_type = #tpu.core_type<tc>, window_params = [{transform_indices = @transform_0, window_bounds = array<i64: 32, 128>}, {transform_indices = @transform_1, window_bounds = array<i64: 128, 128>}, {transform_indices = @transform_2, window_bounds = array<i64: 1, 128>}, {transform_indices = @transform_3, window_bounds = array<i64: 1, 128>}, {transform_indices = @transform_4, window_bounds = array<i64: 32, 128>}, {transform_indices = @transform_5, window_bounds = array<i64: 32, 128>}]} {
    %c0_i32 = arith.constant 0 : i32
    %0 = arith.cmpi eq, %arg2, %c0_i32 : i32
    %1 = arith.extui %0 : i1 to i32
    %c0_i32_0 = arith.constant 0 : i32
    %2 = arith.cmpi ne, %1, %c0_i32_0 : i32
    scf.if %2 {
      %cst_9 = arith.constant 0.000000e+00 : f32
      %12 = vector.broadcast %cst_9 : f32 to vector<32x128xf32>
      %c0_10 = arith.constant 0 : index
      %c0_11 = arith.constant 0 : index
      %13 = vector.load %arg9[%c0_10, %c0_11] : memref<32x128xf32, #tpu.memory_space<vmem>>, vector<32x128xf32>
      tpu.vector_store %arg9[%c0_10, %c0_11], %12 {strides = array<i32>} : memref<32x128xf32, #tpu.memory_space<vmem>>, vector<32x128xf32>,
    } else {
    }
    %c0 = arith.constant 0 : index
    %c0_1 = arith.constant 0 : index
    %3 = vector.load %arg9[%c0, %c0_1] : memref<32x128xf32, #tpu.memory_space<vmem>>, vector<32x128xf32>
    %c0_2 = arith.constant 0 : index
    %c0_3 = arith.constant 0 : index
    %4 = vector.load %arg3[%c0_2, %c0_3] : memref<32x128xbf16, #tpu.memory_space<vmem>>, vector<32x128xbf16>
    %c0_4 = arith.constant 0 : index
    %c0_5 = arith.constant 0 : index
    %5 = vector.load %arg4[%c0_4, %c0_5] : memref<128x128xbf16, #tpu.memory_space<vmem>>, vector<128x128xbf16>
    %cst = arith.constant dense<0.000000e+00> : vector<32x128xf32>
    %6 = tpu.matmul %4, %5, %cst {dimension_numbers = #tpu.dot_dimension_numbers<[1], [0], [0], [1], [0, 0, 1, 1], [], []>} : vector<32x128xbf16>, vector<128x128xbf16>, vector<32x128xf32> -> vector<32x128xf32>
    %7 = arith.addf %3, %6 : vector<32x128xf32>
    %c0_6 = arith.constant 0 : index
    %c0_7 = arith.constant 0 : index
    %8 = vector.load %arg9[%c0_6, %c0_7] : memref<32x128xf32, #tpu.memory_space<vmem>>, vector<32x128xf32>
    tpu.vector_store %arg9[%c0_6, %c0_7], %7 {strides = array<i32>} : memref<32x128xf32, #tpu.memory_space<vmem>>, vector<32x128xf32>,
    %c4_i32 = arith.constant 4 : i32
    %9 = arith.cmpi eq, %arg2, %c4_i32 : i32
    %10 = arith.extui %9 : i1 to i32
    %c0_i32_8 = arith.constant 0 : i32
    %11 = arith.cmpi ne, %10, %c0_i32_8 : i32
    scf.if %11 {
      %c0_9 = arith.constant 0 : index
      %c0_10 = arith.constant 0 : index
      %12 = vector.load %arg9[%c0_9, %c0_10] : memref<32x128xf32, #tpu.memory_space<vmem>>, vector<32x128xf32>
      %c0_11 = arith.constant 0 : index
      %c0_12 = arith.constant 0 : index
      %13 = vector.load %arg5[%c0_11, %c0_12] : memref<1x128xf32, #tpu.memory_space<vmem>>, vector<1x128xf32>
      %14 = vector.broadcast %13 : vector<1x128xf32> to vector<32x128xf32>
      %15 = arith.mulf %12, %14 : vector<32x128xf32>
      %c0_13 = arith.constant 0 : index
      %c0_14 = arith.constant 0 : index
      %16 = vector.load %arg6[%c0_13, %c0_14] : memref<1x128xf32, #tpu.memory_space<vmem>>, vector<1x128xf32>
      %17 = vector.broadcast %16 : vector<1x128xf32> to vector<32x128xf32>
      %18 = arith.addf %15, %17 : vector<32x128xf32>
      %c0_15 = arith.constant 0 : index
      %c0_16 = arith.constant 0 : index
      %19 = vector.load %arg7[%c0_15, %c0_16] : memref<32x128xbf16, #tpu.memory_space<vmem>>, vector<32x128xbf16>
      %20 = arith.extf %19 : vector<32x128xbf16> to vector<32x128xf32>
      %21 = arith.addf %18, %20 : vector<32x128xf32>
      %cst_17 = arith.constant 0.000000e+00 : f32
      %22 = vector.broadcast %cst_17 : f32 to vector<32x128xf32>
      %23 = arith.cmpf oge, %21, %22 : vector<32x128xf32>
      %cst_18 = arith.constant 0.00999999977 : f32
      %24 = vector.broadcast %cst_18 : f32 to vector<32x128xf32>
      %25 = arith.mulf %24, %21 : vector<32x128xf32>
      %26 = arith.select %23, %21, %25 : vector<32x128xi1>, vector<32x128xf32>
      %27 = arith.truncf %26 : vector<32x128xf32> to vector<32x128xbf16>
      %c0_19 = arith.constant 0 : index
      %c0_20 = arith.constant 0 : index
      %28 = vector.load %arg8[%c0_19, %c0_20] : memref<32x128xbf16, #tpu.memory_space<vmem>>, vector<32x128xbf16>
      tpu.vector_store %arg8[%c0_19, %c0_20], %27 {strides = array<i32>} : memref<32x128xbf16, #tpu.memory_space<vmem>>, vector<32x128xbf16>,
    } else {
    }
    return
  }
  func.func @transform_0(%arg0: i32, %arg1: i32, %arg2: i32) -> (i32, i32) {
    %c0_i32 = arith.constant 0 : i32
    return %arg0, %arg2 : i32, i32
  }
  func.func @transform_1(%arg0: i32, %arg1: i32, %arg2: i32) -> (i32, i32) {
    %c0_i32 = arith.constant 0 : i32
    return %arg2, %arg1 : i32, i32
  }
  func.func @transform_2(%arg0: i32, %arg1: i32, %arg2: i32) -> (i32, i32) {
    %c0_i32 = arith.constant 0 : i32
    %c0_i32_0 = arith.constant 0 : i32
    return %c0_i32, %arg1 : i32, i32
  }
  func.func @transform_3(%arg0: i32, %arg1: i32, %arg2: i32) -> (i32, i32) {
    %c0_i32 = arith.constant 0 : i32
    %c0_i32_0 = arith.constant 0 : i32
    return %c0_i32, %arg1 : i32, i32
  }
  func.func @transform_4(%arg0: i32, %arg1: i32, %arg2: i32) -> (i32, i32) {
    %c0_i32 = arith.constant 0 : i32
    return %arg0, %arg1 : i32, i32
  }
  func.func @transform_5(%arg0: i32, %arg1: i32, %arg2: i32) -> (i32, i32) {
    %c0_i32 = arith.constant 0 : i32
    return %arg0, %arg1 : i32, i32
  }
}

module attributes {stable_mosaic.version = 11 : i64} {
  func.func @_conv_mm_kernel(%arg0: i32, %arg1: i32, %arg2: i32, %arg3: memref<16x128xbf16, #tpu.memory_space<vmem>>, %arg4: memref<128x128xbf16, #tpu.memory_space<vmem>>, %arg5: memref<1x128xf32, #tpu.memory_space<vmem>>, %arg6: memref<1x128xf32, #tpu.memory_space<vmem>>, %arg7: memref<16x128xbf16, #tpu.memory_space<vmem>>, %arg8: memref<16x128xf32, #tpu.memory_space<vmem>>) attributes {dimension_semantics = [#tpu.dimension_semantics<parallel>, #tpu.dimension_semantics<parallel>, #tpu.dimension_semantics<arbitrary>], iteration_bounds = array<i64: 1, 1, 5>, scalar_prefetch = 0 : i64, scratch_operands = 1 : i64, tpu.core_type = #tpu.core_type<tc>, window_params = [{transform_indices = @transform_0, window_bounds = array<i64: 16, 128>}, {transform_indices = @transform_1, window_bounds = array<i64: 128, 128>}, {transform_indices = @transform_2, window_bounds = array<i64: 1, 128>}, {transform_indices = @transform_3, window_bounds = array<i64: 1, 128>}, {transform_indices = @transform_4, window_bounds = array<i64: 16, 128>}]} {
    %c0_i32 = arith.constant 0 : i32
    %0 = arith.cmpi eq, %arg2, %c0_i32 : i32
    %1 = arith.extui %0 : i1 to i32
    %c0_i32_0 = arith.constant 0 : i32
    %2 = arith.cmpi ne, %1, %c0_i32_0 : i32
    scf.if %2 {
      %cst_9 = arith.constant 0.000000e+00 : f32
      %12 = vector.broadcast %cst_9 : f32 to vector<16x128xf32>
      %c0_10 = arith.constant 0 : index
      %c0_11 = arith.constant 0 : index
      %13 = vector.load %arg8[%c0_10, %c0_11] : memref<16x128xf32, #tpu.memory_space<vmem>>, vector<16x128xf32>
      tpu.vector_store %arg8[%c0_10, %c0_11], %12 {strides = array<i32>} : memref<16x128xf32, #tpu.memory_space<vmem>>, vector<16x128xf32>,
    } else {
    }
    %c0 = arith.constant 0 : index
    %c0_1 = arith.constant 0 : index
    %3 = vector.load %arg8[%c0, %c0_1] : memref<16x128xf32, #tpu.memory_space<vmem>>, vector<16x128xf32>
    %c0_2 = arith.constant 0 : index
    %c0_3 = arith.constant 0 : index
    %4 = vector.load %arg3[%c0_2, %c0_3] : memref<16x128xbf16, #tpu.memory_space<vmem>>, vector<16x128xbf16>
    %c0_4 = arith.constant 0 : index
    %c0_5 = arith.constant 0 : index
    %5 = vector.load %arg4[%c0_4, %c0_5] : memref<128x128xbf16, #tpu.memory_space<vmem>>, vector<128x128xbf16>
    %cst = arith.constant dense<0.000000e+00> : vector<16x128xf32>
    %6 = tpu.matmul %4, %5, %cst {dimension_numbers = #tpu.dot_dimension_numbers<[1], [0], [0], [1], [0, 0, 1, 1], [], []>} : vector<16x128xbf16>, vector<128x128xbf16>, vector<16x128xf32> -> vector<16x128xf32>
    %7 = arith.addf %3, %6 : vector<16x128xf32>
    %c0_6 = arith.constant 0 : index
    %c0_7 = arith.constant 0 : index
    %8 = vector.load %arg8[%c0_6, %c0_7] : memref<16x128xf32, #tpu.memory_space<vmem>>, vector<16x128xf32>
    tpu.vector_store %arg8[%c0_6, %c0_7], %7 {strides = array<i32>} : memref<16x128xf32, #tpu.memory_space<vmem>>, vector<16x128xf32>,
    %c4_i32 = arith.constant 4 : i32
    %9 = arith.cmpi eq, %arg2, %c4_i32 : i32
    %10 = arith.extui %9 : i1 to i32
    %c0_i32_8 = arith.constant 0 : i32
    %11 = arith.cmpi ne, %10, %c0_i32_8 : i32
    scf.if %11 {
      %c0_9 = arith.constant 0 : index
      %c0_10 = arith.constant 0 : index
      %12 = vector.load %arg8[%c0_9, %c0_10] : memref<16x128xf32, #tpu.memory_space<vmem>>, vector<16x128xf32>
      %c0_11 = arith.constant 0 : index
      %c0_12 = arith.constant 0 : index
      %13 = vector.load %arg5[%c0_11, %c0_12] : memref<1x128xf32, #tpu.memory_space<vmem>>, vector<1x128xf32>
      %14 = vector.broadcast %13 : vector<1x128xf32> to vector<16x128xf32>
      %15 = arith.mulf %12, %14 : vector<16x128xf32>
      %c0_13 = arith.constant 0 : index
      %c0_14 = arith.constant 0 : index
      %16 = vector.load %arg6[%c0_13, %c0_14] : memref<1x128xf32, #tpu.memory_space<vmem>>, vector<1x128xf32>
      %17 = vector.broadcast %16 : vector<1x128xf32> to vector<16x128xf32>
      %18 = arith.addf %15, %17 : vector<16x128xf32>
      %cst_15 = arith.constant 0.000000e+00 : f32
      %19 = vector.broadcast %cst_15 : f32 to vector<16x128xf32>
      %20 = arith.cmpf oge, %18, %19 : vector<16x128xf32>
      %cst_16 = arith.constant 0.00999999977 : f32
      %21 = vector.broadcast %cst_16 : f32 to vector<16x128xf32>
      %22 = arith.mulf %21, %18 : vector<16x128xf32>
      %23 = arith.select %20, %18, %22 : vector<16x128xi1>, vector<16x128xf32>
      %24 = arith.truncf %23 : vector<16x128xf32> to vector<16x128xbf16>
      %c0_17 = arith.constant 0 : index
      %c0_18 = arith.constant 0 : index
      %25 = vector.load %arg7[%c0_17, %c0_18] : memref<16x128xbf16, #tpu.memory_space<vmem>>, vector<16x128xbf16>
      tpu.vector_store %arg7[%c0_17, %c0_18], %24 {strides = array<i32>} : memref<16x128xbf16, #tpu.memory_space<vmem>>, vector<16x128xbf16>,
    } else {
    }
    return
  }
  func.func @transform_0(%arg0: i32, %arg1: i32, %arg2: i32) -> (i32, i32) {
    %c0_i32 = arith.constant 0 : i32
    return %arg0, %arg2 : i32, i32
  }
  func.func @transform_1(%arg0: i32, %arg1: i32, %arg2: i32) -> (i32, i32) {
    %c0_i32 = arith.constant 0 : i32
    return %arg2, %arg1 : i32, i32
  }
  func.func @transform_2(%arg0: i32, %arg1: i32, %arg2: i32) -> (i32, i32) {
    %c0_i32 = arith.constant 0 : i32
    %c0_i32_0 = arith.constant 0 : i32
    return %c0_i32, %arg1 : i32, i32
  }
  func.func @transform_3(%arg0: i32, %arg1: i32, %arg2: i32) -> (i32, i32) {
    %c0_i32 = arith.constant 0 : i32
    %c0_i32_0 = arith.constant 0 : i32
    return %c0_i32, %arg1 : i32, i32
  }
  func.func @transform_4(%arg0: i32, %arg1: i32, %arg2: i32) -> (i32, i32) {
    %c0_i32 = arith.constant 0 : i32
    return %arg0, %arg1 : i32, i32
  }
}

module attributes {stable_mosaic.version = 11 : i64} {
  func.func @_conv_mm_kernel(%arg0: i32, %arg1: i32, %arg2: i32, %arg3: memref<16x128xbf16, #tpu.memory_space<vmem>>, %arg4: memref<128x128xbf16, #tpu.memory_space<vmem>>, %arg5: memref<1x128xf32, #tpu.memory_space<vmem>>, %arg6: memref<1x128xf32, #tpu.memory_space<vmem>>, %arg7: memref<16x128xbf16, #tpu.memory_space<vmem>>, %arg8: memref<16x128xf32, #tpu.memory_space<vmem>>) attributes {dimension_semantics = [#tpu.dimension_semantics<parallel>, #tpu.dimension_semantics<parallel>, #tpu.dimension_semantics<arbitrary>], iteration_bounds = array<i64: 1, 1, 1>, scalar_prefetch = 0 : i64, scratch_operands = 1 : i64, tpu.core_type = #tpu.core_type<tc>, window_params = [{transform_indices = @transform_0, window_bounds = array<i64: 16, 128>}, {transform_indices = @transform_1, window_bounds = array<i64: 128, 128>}, {transform_indices = @transform_2, window_bounds = array<i64: 1, 128>}, {transform_indices = @transform_3, window_bounds = array<i64: 1, 128>}, {transform_indices = @transform_4, window_bounds = array<i64: 16, 128>}]} {
    %c0_i32 = arith.constant 0 : i32
    %0 = arith.cmpi eq, %arg2, %c0_i32 : i32
    %1 = arith.extui %0 : i1 to i32
    %c0_i32_0 = arith.constant 0 : i32
    %2 = arith.cmpi ne, %1, %c0_i32_0 : i32
    scf.if %2 {
      %cst_10 = arith.constant 0.000000e+00 : f32
      %12 = vector.broadcast %cst_10 : f32 to vector<16x128xf32>
      %c0_11 = arith.constant 0 : index
      %c0_12 = arith.constant 0 : index
      %13 = vector.load %arg8[%c0_11, %c0_12] : memref<16x128xf32, #tpu.memory_space<vmem>>, vector<16x128xf32>
      tpu.vector_store %arg8[%c0_11, %c0_12], %12 {strides = array<i32>} : memref<16x128xf32, #tpu.memory_space<vmem>>, vector<16x128xf32>,
    } else {
    }
    %c0 = arith.constant 0 : index
    %c0_1 = arith.constant 0 : index
    %3 = vector.load %arg8[%c0, %c0_1] : memref<16x128xf32, #tpu.memory_space<vmem>>, vector<16x128xf32>
    %c0_2 = arith.constant 0 : index
    %c0_3 = arith.constant 0 : index
    %4 = vector.load %arg3[%c0_2, %c0_3] : memref<16x128xbf16, #tpu.memory_space<vmem>>, vector<16x128xbf16>
    %c0_4 = arith.constant 0 : index
    %c0_5 = arith.constant 0 : index
    %5 = vector.load %arg4[%c0_4, %c0_5] : memref<128x128xbf16, #tpu.memory_space<vmem>>, vector<128x128xbf16>
    %cst = arith.constant dense<0.000000e+00> : vector<16x128xf32>
    %6 = tpu.matmul %4, %5, %cst {dimension_numbers = #tpu.dot_dimension_numbers<[1], [0], [0], [1], [0, 0, 1, 1], [], []>} : vector<16x128xbf16>, vector<128x128xbf16>, vector<16x128xf32> -> vector<16x128xf32>
    %7 = arith.addf %3, %6 : vector<16x128xf32>
    %c0_6 = arith.constant 0 : index
    %c0_7 = arith.constant 0 : index
    %8 = vector.load %arg8[%c0_6, %c0_7] : memref<16x128xf32, #tpu.memory_space<vmem>>, vector<16x128xf32>
    tpu.vector_store %arg8[%c0_6, %c0_7], %7 {strides = array<i32>} : memref<16x128xf32, #tpu.memory_space<vmem>>, vector<16x128xf32>,
    %c0_i32_8 = arith.constant 0 : i32
    %9 = arith.cmpi eq, %arg2, %c0_i32_8 : i32
    %10 = arith.extui %9 : i1 to i32
    %c0_i32_9 = arith.constant 0 : i32
    %11 = arith.cmpi ne, %10, %c0_i32_9 : i32
    scf.if %11 {
      %c0_10 = arith.constant 0 : index
      %c0_11 = arith.constant 0 : index
      %12 = vector.load %arg8[%c0_10, %c0_11] : memref<16x128xf32, #tpu.memory_space<vmem>>, vector<16x128xf32>
      %c0_12 = arith.constant 0 : index
      %c0_13 = arith.constant 0 : index
      %13 = vector.load %arg5[%c0_12, %c0_13] : memref<1x128xf32, #tpu.memory_space<vmem>>, vector<1x128xf32>
      %14 = vector.broadcast %13 : vector<1x128xf32> to vector<16x128xf32>
      %15 = arith.mulf %12, %14 : vector<16x128xf32>
      %c0_14 = arith.constant 0 : index
      %c0_15 = arith.constant 0 : index
      %16 = vector.load %arg6[%c0_14, %c0_15] : memref<1x128xf32, #tpu.memory_space<vmem>>, vector<1x128xf32>
      %17 = vector.broadcast %16 : vector<1x128xf32> to vector<16x128xf32>
      %18 = arith.addf %15, %17 : vector<16x128xf32>
      %19 = arith.truncf %18 : vector<16x128xf32> to vector<16x128xbf16>
      %c0_16 = arith.constant 0 : index
      %c0_17 = arith.constant 0 : index
      %20 = vector.load %arg7[%c0_16, %c0_17] : memref<16x128xbf16, #tpu.memory_space<vmem>>, vector<16x128xbf16>
      tpu.vector_store %arg7[%c0_16, %c0_17], %19 {strides = array<i32>} : memref<16x128xbf16, #tpu.memory_space<vmem>>, vector<16x128xbf16>,
    } else {
    }
    return
  }
  func.func @transform_0(%arg0: i32, %arg1: i32, %arg2: i32) -> (i32, i32) {
    %c0_i32 = arith.constant 0 : i32
    return %arg0, %arg2 : i32, i32
  }
  func.func @transform_1(%arg0: i32, %arg1: i32, %arg2: i32) -> (i32, i32) {
    %c0_i32 = arith.constant 0 : i32
    return %arg2, %arg1 : i32, i32
  }
  func.func @transform_2(%arg0: i32, %arg1: i32, %arg2: i32) -> (i32, i32) {
    %c0_i32 = arith.constant 0 : i32
    %c0_i32_0 = arith.constant 0 : i32
    return %c0_i32, %arg1 : i32, i32
  }
  func.func @transform_3(%arg0: i32, %arg1: i32, %arg2: i32) -> (i32, i32) {
    %c0_i32 = arith.constant 0 : i32
    %c0_i32_0 = arith.constant 0 : i32
    return %c0_i32, %arg1 : i32, i32
  }
  func.func @transform_4(%arg0: i32, %arg1: i32, %arg2: i32) -> (i32, i32) {
    %c0_i32 = arith.constant 0 : i32
    return %arg0, %arg1 : i32, i32
  }
}

module attributes {stable_mosaic.version = 11 : i64} {
  func.func @_conv_mm_res_kernel(%arg0: i32, %arg1: i32, %arg2: i32, %arg3: memref<16x384xbf16, #tpu.memory_space<vmem>>, %arg4: memref<384x128xbf16, #tpu.memory_space<vmem>>, %arg5: memref<1x128xf32, #tpu.memory_space<vmem>>, %arg6: memref<1x128xf32, #tpu.memory_space<vmem>>, %arg7: memref<16x128xbf16, #tpu.memory_space<vmem>>, %arg8: memref<16x128xbf16, #tpu.memory_space<vmem>>, %arg9: memref<16x128xf32, #tpu.memory_space<vmem>>) attributes {dimension_semantics = [#tpu.dimension_semantics<parallel>, #tpu.dimension_semantics<parallel>, #tpu.dimension_semantics<arbitrary>], iteration_bounds = array<i64: 1, 1, 3>, scalar_prefetch = 0 : i64, scratch_operands = 1 : i64, tpu.core_type = #tpu.core_type<tc>, window_params = [{transform_indices = @transform_0, window_bounds = array<i64: 16, 384>}, {transform_indices = @transform_1, window_bounds = array<i64: 384, 128>}, {transform_indices = @transform_2, window_bounds = array<i64: 1, 128>}, {transform_indices = @transform_3, window_bounds = array<i64: 1, 128>}, {transform_indices = @transform_4, window_bounds = array<i64: 16, 128>}, {transform_indices = @transform_5, window_bounds = array<i64: 16, 128>}]} {
    %c0_i32 = arith.constant 0 : i32
    %0 = arith.cmpi eq, %arg2, %c0_i32 : i32
    %1 = arith.extui %0 : i1 to i32
    %c0_i32_0 = arith.constant 0 : i32
    %2 = arith.cmpi ne, %1, %c0_i32_0 : i32
    scf.if %2 {
      %cst_9 = arith.constant 0.000000e+00 : f32
      %12 = vector.broadcast %cst_9 : f32 to vector<16x128xf32>
      %c0_10 = arith.constant 0 : index
      %c0_11 = arith.constant 0 : index
      %13 = vector.load %arg9[%c0_10, %c0_11] : memref<16x128xf32, #tpu.memory_space<vmem>>, vector<16x128xf32>
      tpu.vector_store %arg9[%c0_10, %c0_11], %12 {strides = array<i32>} : memref<16x128xf32, #tpu.memory_space<vmem>>, vector<16x128xf32>,
    } else {
    }
    %c0 = arith.constant 0 : index
    %c0_1 = arith.constant 0 : index
    %3 = vector.load %arg9[%c0, %c0_1] : memref<16x128xf32, #tpu.memory_space<vmem>>, vector<16x128xf32>
    %c0_2 = arith.constant 0 : index
    %c0_3 = arith.constant 0 : index
    %4 = vector.load %arg3[%c0_2, %c0_3] : memref<16x384xbf16, #tpu.memory_space<vmem>>, vector<16x384xbf16>
    %c0_4 = arith.constant 0 : index
    %c0_5 = arith.constant 0 : index
    %5 = vector.load %arg4[%c0_4, %c0_5] : memref<384x128xbf16, #tpu.memory_space<vmem>>, vector<384x128xbf16>
    %cst = arith.constant dense<0.000000e+00> : vector<16x128xf32>
    %6 = tpu.matmul %4, %5, %cst {dimension_numbers = #tpu.dot_dimension_numbers<[1], [0], [0], [1], [0, 0, 1, 1], [], []>} : vector<16x384xbf16>, vector<384x128xbf16>, vector<16x128xf32> -> vector<16x128xf32>
    %7 = arith.addf %3, %6 : vector<16x128xf32>
    %c0_6 = arith.constant 0 : index
    %c0_7 = arith.constant 0 : index
    %8 = vector.load %arg9[%c0_6, %c0_7] : memref<16x128xf32, #tpu.memory_space<vmem>>, vector<16x128xf32>
    tpu.vector_store %arg9[%c0_6, %c0_7], %7 {strides = array<i32>} : memref<16x128xf32, #tpu.memory_space<vmem>>, vector<16x128xf32>,
    %c2_i32 = arith.constant 2 : i32
    %9 = arith.cmpi eq, %arg2, %c2_i32 : i32
    %10 = arith.extui %9 : i1 to i32
    %c0_i32_8 = arith.constant 0 : i32
    %11 = arith.cmpi ne, %10, %c0_i32_8 : i32
    scf.if %11 {
      %c0_9 = arith.constant 0 : index
      %c0_10 = arith.constant 0 : index
      %12 = vector.load %arg9[%c0_9, %c0_10] : memref<16x128xf32, #tpu.memory_space<vmem>>, vector<16x128xf32>
      %c0_11 = arith.constant 0 : index
      %c0_12 = arith.constant 0 : index
      %13 = vector.load %arg5[%c0_11, %c0_12] : memref<1x128xf32, #tpu.memory_space<vmem>>, vector<1x128xf32>
      %14 = vector.broadcast %13 : vector<1x128xf32> to vector<16x128xf32>
      %15 = arith.mulf %12, %14 : vector<16x128xf32>
      %c0_13 = arith.constant 0 : index
      %c0_14 = arith.constant 0 : index
      %16 = vector.load %arg6[%c0_13, %c0_14] : memref<1x128xf32, #tpu.memory_space<vmem>>, vector<1x128xf32>
      %17 = vector.broadcast %16 : vector<1x128xf32> to vector<16x128xf32>
      %18 = arith.addf %15, %17 : vector<16x128xf32>
      %c0_15 = arith.constant 0 : index
      %c0_16 = arith.constant 0 : index
      %19 = vector.load %arg7[%c0_15, %c0_16] : memref<16x128xbf16, #tpu.memory_space<vmem>>, vector<16x128xbf16>
      %20 = arith.extf %19 : vector<16x128xbf16> to vector<16x128xf32>
      %21 = arith.addf %18, %20 : vector<16x128xf32>
      %cst_17 = arith.constant 0.000000e+00 : f32
      %22 = vector.broadcast %cst_17 : f32 to vector<16x128xf32>
      %23 = arith.cmpf oge, %21, %22 : vector<16x128xf32>
      %cst_18 = arith.constant 0.00999999977 : f32
      %24 = vector.broadcast %cst_18 : f32 to vector<16x128xf32>
      %25 = arith.mulf %24, %21 : vector<16x128xf32>
      %26 = arith.select %23, %21, %25 : vector<16x128xi1>, vector<16x128xf32>
      %27 = arith.truncf %26 : vector<16x128xf32> to vector<16x128xbf16>
      %c0_19 = arith.constant 0 : index
      %c0_20 = arith.constant 0 : index
      %28 = vector.load %arg8[%c0_19, %c0_20] : memref<16x128xbf16, #tpu.memory_space<vmem>>, vector<16x128xbf16>
      tpu.vector_store %arg8[%c0_19, %c0_20], %27 {strides = array<i32>} : memref<16x128xbf16, #tpu.memory_space<vmem>>, vector<16x128xbf16>,
    } else {
    }
    return
  }
  func.func @transform_0(%arg0: i32, %arg1: i32, %arg2: i32) -> (i32, i32) {
    %c0_i32 = arith.constant 0 : i32
    return %arg0, %arg2 : i32, i32
  }
  func.func @transform_1(%arg0: i32, %arg1: i32, %arg2: i32) -> (i32, i32) {
    %c0_i32 = arith.constant 0 : i32
    return %arg2, %arg1 : i32, i32
  }
  func.func @transform_2(%arg0: i32, %arg1: i32, %arg2: i32) -> (i32, i32) {
    %c0_i32 = arith.constant 0 : i32
    %c0_i32_0 = arith.constant 0 : i32
    return %c0_i32, %arg1 : i32, i32
  }
  func.func @transform_3(%arg0: i32, %arg1: i32, %arg2: i32) -> (i32, i32) {
    %c0_i32 = arith.constant 0 : i32
    %c0_i32_0 = arith.constant 0 : i32
    return %c0_i32, %arg1 : i32, i32
  }
  func.func @transform_4(%arg0: i32, %arg1: i32, %arg2: i32) -> (i32, i32) {
    %c0_i32 = arith.constant 0 : i32
    return %arg0, %arg1 : i32, i32
  }
  func.func @transform_5(%arg0: i32, %arg1: i32, %arg2: i32) -> (i32, i32) {
    %c0_i32 = arith.constant 0 : i32
    return %arg0, %arg1 : i32, i32
  }
}

module attributes {stable_mosaic.version = 11 : i64} {
  func.func @_conv_mm_kernel(%arg0: i32, %arg1: i32, %arg2: i32, %arg3: memref<16x384xbf16, #tpu.memory_space<vmem>>, %arg4: memref<384x128xbf16, #tpu.memory_space<vmem>>, %arg5: memref<1x128xf32, #tpu.memory_space<vmem>>, %arg6: memref<1x128xf32, #tpu.memory_space<vmem>>, %arg7: memref<16x128xbf16, #tpu.memory_space<vmem>>, %arg8: memref<16x128xf32, #tpu.memory_space<vmem>>) attributes {dimension_semantics = [#tpu.dimension_semantics<parallel>, #tpu.dimension_semantics<parallel>, #tpu.dimension_semantics<arbitrary>], iteration_bounds = array<i64: 1, 1, 3>, scalar_prefetch = 0 : i64, scratch_operands = 1 : i64, tpu.core_type = #tpu.core_type<tc>, window_params = [{transform_indices = @transform_0, window_bounds = array<i64: 16, 384>}, {transform_indices = @transform_1, window_bounds = array<i64: 384, 128>}, {transform_indices = @transform_2, window_bounds = array<i64: 1, 128>}, {transform_indices = @transform_3, window_bounds = array<i64: 1, 128>}, {transform_indices = @transform_4, window_bounds = array<i64: 16, 128>}]} {
    %c0_i32 = arith.constant 0 : i32
    %0 = arith.cmpi eq, %arg2, %c0_i32 : i32
    %1 = arith.extui %0 : i1 to i32
    %c0_i32_0 = arith.constant 0 : i32
    %2 = arith.cmpi ne, %1, %c0_i32_0 : i32
    scf.if %2 {
      %cst_9 = arith.constant 0.000000e+00 : f32
      %12 = vector.broadcast %cst_9 : f32 to vector<16x128xf32>
      %c0_10 = arith.constant 0 : index
      %c0_11 = arith.constant 0 : index
      %13 = vector.load %arg8[%c0_10, %c0_11] : memref<16x128xf32, #tpu.memory_space<vmem>>, vector<16x128xf32>
      tpu.vector_store %arg8[%c0_10, %c0_11], %12 {strides = array<i32>} : memref<16x128xf32, #tpu.memory_space<vmem>>, vector<16x128xf32>,
    } else {
    }
    %c0 = arith.constant 0 : index
    %c0_1 = arith.constant 0 : index
    %3 = vector.load %arg8[%c0, %c0_1] : memref<16x128xf32, #tpu.memory_space<vmem>>, vector<16x128xf32>
    %c0_2 = arith.constant 0 : index
    %c0_3 = arith.constant 0 : index
    %4 = vector.load %arg3[%c0_2, %c0_3] : memref<16x384xbf16, #tpu.memory_space<vmem>>, vector<16x384xbf16>
    %c0_4 = arith.constant 0 : index
    %c0_5 = arith.constant 0 : index
    %5 = vector.load %arg4[%c0_4, %c0_5] : memref<384x128xbf16, #tpu.memory_space<vmem>>, vector<384x128xbf16>
    %cst = arith.constant dense<0.000000e+00> : vector<16x128xf32>
    %6 = tpu.matmul %4, %5, %cst {dimension_numbers = #tpu.dot_dimension_numbers<[1], [0], [0], [1], [0, 0, 1, 1], [], []>} : vector<16x384xbf16>, vector<384x128xbf16>, vector<16x128xf32> -> vector<16x128xf32>
    %7 = arith.addf %3, %6 : vector<16x128xf32>
    %c0_6 = arith.constant 0 : index
    %c0_7 = arith.constant 0 : index
    %8 = vector.load %arg8[%c0_6, %c0_7] : memref<16x128xf32, #tpu.memory_space<vmem>>, vector<16x128xf32>
    tpu.vector_store %arg8[%c0_6, %c0_7], %7 {strides = array<i32>} : memref<16x128xf32, #tpu.memory_space<vmem>>, vector<16x128xf32>,
    %c2_i32 = arith.constant 2 : i32
    %9 = arith.cmpi eq, %arg2, %c2_i32 : i32
    %10 = arith.extui %9 : i1 to i32
    %c0_i32_8 = arith.constant 0 : i32
    %11 = arith.cmpi ne, %10, %c0_i32_8 : i32
    scf.if %11 {
      %c0_9 = arith.constant 0 : index
      %c0_10 = arith.constant 0 : index
      %12 = vector.load %arg8[%c0_9, %c0_10] : memref<16x128xf32, #tpu.memory_space<vmem>>, vector<16x128xf32>
      %c0_11 = arith.constant 0 : index
      %c0_12 = arith.constant 0 : index
      %13 = vector.load %arg5[%c0_11, %c0_12] : memref<1x128xf32, #tpu.memory_space<vmem>>, vector<1x128xf32>
      %14 = vector.broadcast %13 : vector<1x128xf32> to vector<16x128xf32>
      %15 = arith.mulf %12, %14 : vector<16x128xf32>
      %c0_13 = arith.constant 0 : index
      %c0_14 = arith.constant 0 : index
      %16 = vector.load %arg6[%c0_13, %c0_14] : memref<1x128xf32, #tpu.memory_space<vmem>>, vector<1x128xf32>
      %17 = vector.broadcast %16 : vector<1x128xf32> to vector<16x128xf32>
      %18 = arith.addf %15, %17 : vector<16x128xf32>
      %cst_15 = arith.constant 0.000000e+00 : f32
      %19 = vector.broadcast %cst_15 : f32 to vector<16x128xf32>
      %20 = arith.cmpf oge, %18, %19 : vector<16x128xf32>
      %cst_16 = arith.constant 0.00999999977 : f32
      %21 = vector.broadcast %cst_16 : f32 to vector<16x128xf32>
      %22 = arith.mulf %21, %18 : vector<16x128xf32>
      %23 = arith.select %20, %18, %22 : vector<16x128xi1>, vector<16x128xf32>
      %24 = arith.truncf %23 : vector<16x128xf32> to vector<16x128xbf16>
      %c0_17 = arith.constant 0 : index
      %c0_18 = arith.constant 0 : index
      %25 = vector.load %arg7[%c0_17, %c0_18] : memref<16x128xbf16, #tpu.memory_space<vmem>>, vector<16x128xbf16>
      tpu.vector_store %arg7[%c0_17, %c0_18], %24 {strides = array<i32>} : memref<16x128xbf16, #tpu.memory_space<vmem>>, vector<16x128xbf16>,
    } else {
    }
    return
  }
  func.func @transform_0(%arg0: i32, %arg1: i32, %arg2: i32) -> (i32, i32) {
    %c0_i32 = arith.constant 0 : i32
    return %arg0, %arg2 : i32, i32
  }
  func.func @transform_1(%arg0: i32, %arg1: i32, %arg2: i32) -> (i32, i32) {
    %c0_i32 = arith.constant 0 : i32
    return %arg2, %arg1 : i32, i32
  }
  func.func @transform_2(%arg0: i32, %arg1: i32, %arg2: i32) -> (i32, i32) {
    %c0_i32 = arith.constant 0 : i32
    %c0_i32_0 = arith.constant 0 : i32
    return %c0_i32, %arg1 : i32, i32
  }
  func.func @transform_3(%arg0: i32, %arg1: i32, %arg2: i32) -> (i32, i32) {
    %c0_i32 = arith.constant 0 : i32
    %c0_i32_0 = arith.constant 0 : i32
    return %c0_i32, %arg1 : i32, i32
  }
  func.func @transform_4(%arg0: i32, %arg1: i32, %arg2: i32) -> (i32, i32) {
    %c0_i32 = arith.constant 0 : i32
    return %arg0, %arg1 : i32, i32
  }
}

module attributes {stable_mosaic.version = 11 : i64} {
  func.func @_conv_mm_kernel(%arg0: i32, %arg1: i32, %arg2: i32, %arg3: memref<16x384xbf16, #tpu.memory_space<vmem>>, %arg4: memref<384x256xbf16, #tpu.memory_space<vmem>>, %arg5: memref<1x256xf32, #tpu.memory_space<vmem>>, %arg6: memref<1x256xf32, #tpu.memory_space<vmem>>, %arg7: memref<16x256xbf16, #tpu.memory_space<vmem>>, %arg8: memref<16x256xf32, #tpu.memory_space<vmem>>) attributes {dimension_semantics = [#tpu.dimension_semantics<parallel>, #tpu.dimension_semantics<parallel>, #tpu.dimension_semantics<arbitrary>], iteration_bounds = array<i64: 1, 1, 3>, scalar_prefetch = 0 : i64, scratch_operands = 1 : i64, tpu.core_type = #tpu.core_type<tc>, window_params = [{transform_indices = @transform_0, window_bounds = array<i64: 16, 384>}, {transform_indices = @transform_1, window_bounds = array<i64: 384, 256>}, {transform_indices = @transform_2, window_bounds = array<i64: 1, 256>}, {transform_indices = @transform_3, window_bounds = array<i64: 1, 256>}, {transform_indices = @transform_4, window_bounds = array<i64: 16, 256>}]} {
    %c0_i32 = arith.constant 0 : i32
    %0 = arith.cmpi eq, %arg2, %c0_i32 : i32
    %1 = arith.extui %0 : i1 to i32
    %c0_i32_0 = arith.constant 0 : i32
    %2 = arith.cmpi ne, %1, %c0_i32_0 : i32
    scf.if %2 {
      %cst_9 = arith.constant 0.000000e+00 : f32
      %12 = vector.broadcast %cst_9 : f32 to vector<16x256xf32>
      %c0_10 = arith.constant 0 : index
      %c0_11 = arith.constant 0 : index
      %13 = vector.load %arg8[%c0_10, %c0_11] : memref<16x256xf32, #tpu.memory_space<vmem>>, vector<16x256xf32>
      tpu.vector_store %arg8[%c0_10, %c0_11], %12 {strides = array<i32>} : memref<16x256xf32, #tpu.memory_space<vmem>>, vector<16x256xf32>,
    } else {
    }
    %c0 = arith.constant 0 : index
    %c0_1 = arith.constant 0 : index
    %3 = vector.load %arg8[%c0, %c0_1] : memref<16x256xf32, #tpu.memory_space<vmem>>, vector<16x256xf32>
    %c0_2 = arith.constant 0 : index
    %c0_3 = arith.constant 0 : index
    %4 = vector.load %arg3[%c0_2, %c0_3] : memref<16x384xbf16, #tpu.memory_space<vmem>>, vector<16x384xbf16>
    %c0_4 = arith.constant 0 : index
    %c0_5 = arith.constant 0 : index
    %5 = vector.load %arg4[%c0_4, %c0_5] : memref<384x256xbf16, #tpu.memory_space<vmem>>, vector<384x256xbf16>
    %cst = arith.constant dense<0.000000e+00> : vector<16x256xf32>
    %6 = tpu.matmul %4, %5, %cst {dimension_numbers = #tpu.dot_dimension_numbers<[1], [0], [0], [1], [0, 0, 1, 1], [], []>} : vector<16x384xbf16>, vector<384x256xbf16>, vector<16x256xf32> -> vector<16x256xf32>
    %7 = arith.addf %3, %6 : vector<16x256xf32>
    %c0_6 = arith.constant 0 : index
    %c0_7 = arith.constant 0 : index
    %8 = vector.load %arg8[%c0_6, %c0_7] : memref<16x256xf32, #tpu.memory_space<vmem>>, vector<16x256xf32>
    tpu.vector_store %arg8[%c0_6, %c0_7], %7 {strides = array<i32>} : memref<16x256xf32, #tpu.memory_space<vmem>>, vector<16x256xf32>,
    %c2_i32 = arith.constant 2 : i32
    %9 = arith.cmpi eq, %arg2, %c2_i32 : i32
    %10 = arith.extui %9 : i1 to i32
    %c0_i32_8 = arith.constant 0 : i32
    %11 = arith.cmpi ne, %10, %c0_i32_8 : i32
    scf.if %11 {
      %c0_9 = arith.constant 0 : index
      %c0_10 = arith.constant 0 : index
      %12 = vector.load %arg8[%c0_9, %c0_10] : memref<16x256xf32, #tpu.memory_space<vmem>>, vector<16x256xf32>
      %c0_11 = arith.constant 0 : index
      %c0_12 = arith.constant 0 : index
      %13 = vector.load %arg5[%c0_11, %c0_12] : memref<1x256xf32, #tpu.memory_space<vmem>>, vector<1x256xf32>
      %14 = vector.broadcast %13 : vector<1x256xf32> to vector<16x256xf32>
      %15 = arith.mulf %12, %14 : vector<16x256xf32>
      %c0_13 = arith.constant 0 : index
      %c0_14 = arith.constant 0 : index
      %16 = vector.load %arg6[%c0_13, %c0_14] : memref<1x256xf32, #tpu.memory_space<vmem>>, vector<1x256xf32>
      %17 = vector.broadcast %16 : vector<1x256xf32> to vector<16x256xf32>
      %18 = arith.addf %15, %17 : vector<16x256xf32>
      %cst_15 = arith.constant 0.000000e+00 : f32
      %19 = vector.broadcast %cst_15 : f32 to vector<16x256xf32>
      %20 = arith.cmpf oge, %18, %19 : vector<16x256xf32>
      %cst_16 = arith.constant 0.00999999977 : f32
      %21 = vector.broadcast %cst_16 : f32 to vector<16x256xf32>
      %22 = arith.mulf %21, %18 : vector<16x256xf32>
      %23 = arith.select %20, %18, %22 : vector<16x256xi1>, vector<16x256xf32>
      %24 = arith.truncf %23 : vector<16x256xf32> to vector<16x256xbf16>
      %c0_17 = arith.constant 0 : index
      %c0_18 = arith.constant 0 : index
      %25 = vector.load %arg7[%c0_17, %c0_18] : memref<16x256xbf16, #tpu.memory_space<vmem>>, vector<16x256xbf16>
      tpu.vector_store %arg7[%c0_17, %c0_18], %24 {strides = array<i32>} : memref<16x256xbf16, #tpu.memory_space<vmem>>, vector<16x256xbf16>,
    } else {
    }
    return
  }
  func.func @transform_0(%arg0: i32, %arg1: i32, %arg2: i32) -> (i32, i32) {
    %c0_i32 = arith.constant 0 : i32
    return %arg0, %arg2 : i32, i32
  }
  func.func @transform_1(%arg0: i32, %arg1: i32, %arg2: i32) -> (i32, i32) {
    %c0_i32 = arith.constant 0 : i32
    return %arg2, %arg1 : i32, i32
  }
  func.func @transform_2(%arg0: i32, %arg1: i32, %arg2: i32) -> (i32, i32) {
    %c0_i32 = arith.constant 0 : i32
    %c0_i32_0 = arith.constant 0 : i32
    return %c0_i32, %arg1 : i32, i32
  }
  func.func @transform_3(%arg0: i32, %arg1: i32, %arg2: i32) -> (i32, i32) {
    %c0_i32 = arith.constant 0 : i32
    %c0_i32_0 = arith.constant 0 : i32
    return %c0_i32, %arg1 : i32, i32
  }
  func.func @transform_4(%arg0: i32, %arg1: i32, %arg2: i32) -> (i32, i32) {
    %c0_i32 = arith.constant 0 : i32
    return %arg0, %arg1 : i32, i32
  }
}

module attributes {stable_mosaic.version = 11 : i64} {
  func.func @_conv_mm_kernel(%arg0: i32, %arg1: i32, %arg2: i32, %arg3: memref<16x128xbf16, #tpu.memory_space<vmem>>, %arg4: memref<128x256xbf16, #tpu.memory_space<vmem>>, %arg5: memref<1x256xf32, #tpu.memory_space<vmem>>, %arg6: memref<1x256xf32, #tpu.memory_space<vmem>>, %arg7: memref<16x256xbf16, #tpu.memory_space<vmem>>, %arg8: memref<16x256xf32, #tpu.memory_space<vmem>>) attributes {dimension_semantics = [#tpu.dimension_semantics<parallel>, #tpu.dimension_semantics<parallel>, #tpu.dimension_semantics<arbitrary>], iteration_bounds = array<i64: 1, 1, 1>, scalar_prefetch = 0 : i64, scratch_operands = 1 : i64, tpu.core_type = #tpu.core_type<tc>, window_params = [{transform_indices = @transform_0, window_bounds = array<i64: 16, 128>}, {transform_indices = @transform_1, window_bounds = array<i64: 128, 256>}, {transform_indices = @transform_2, window_bounds = array<i64: 1, 256>}, {transform_indices = @transform_3, window_bounds = array<i64: 1, 256>}, {transform_indices = @transform_4, window_bounds = array<i64: 16, 256>}]} {
    %c0_i32 = arith.constant 0 : i32
    %0 = arith.cmpi eq, %arg2, %c0_i32 : i32
    %1 = arith.extui %0 : i1 to i32
    %c0_i32_0 = arith.constant 0 : i32
    %2 = arith.cmpi ne, %1, %c0_i32_0 : i32
    scf.if %2 {
      %cst_10 = arith.constant 0.000000e+00 : f32
      %12 = vector.broadcast %cst_10 : f32 to vector<16x256xf32>
      %c0_11 = arith.constant 0 : index
      %c0_12 = arith.constant 0 : index
      %13 = vector.load %arg8[%c0_11, %c0_12] : memref<16x256xf32, #tpu.memory_space<vmem>>, vector<16x256xf32>
      tpu.vector_store %arg8[%c0_11, %c0_12], %12 {strides = array<i32>} : memref<16x256xf32, #tpu.memory_space<vmem>>, vector<16x256xf32>,
    } else {
    }
    %c0 = arith.constant 0 : index
    %c0_1 = arith.constant 0 : index
    %3 = vector.load %arg8[%c0, %c0_1] : memref<16x256xf32, #tpu.memory_space<vmem>>, vector<16x256xf32>
    %c0_2 = arith.constant 0 : index
    %c0_3 = arith.constant 0 : index
    %4 = vector.load %arg3[%c0_2, %c0_3] : memref<16x128xbf16, #tpu.memory_space<vmem>>, vector<16x128xbf16>
    %c0_4 = arith.constant 0 : index
    %c0_5 = arith.constant 0 : index
    %5 = vector.load %arg4[%c0_4, %c0_5] : memref<128x256xbf16, #tpu.memory_space<vmem>>, vector<128x256xbf16>
    %cst = arith.constant dense<0.000000e+00> : vector<16x256xf32>
    %6 = tpu.matmul %4, %5, %cst {dimension_numbers = #tpu.dot_dimension_numbers<[1], [0], [0], [1], [0, 0, 1, 1], [], []>} : vector<16x128xbf16>, vector<128x256xbf16>, vector<16x256xf32> -> vector<16x256xf32>
    %7 = arith.addf %3, %6 : vector<16x256xf32>
    %c0_6 = arith.constant 0 : index
    %c0_7 = arith.constant 0 : index
    %8 = vector.load %arg8[%c0_6, %c0_7] : memref<16x256xf32, #tpu.memory_space<vmem>>, vector<16x256xf32>
    tpu.vector_store %arg8[%c0_6, %c0_7], %7 {strides = array<i32>} : memref<16x256xf32, #tpu.memory_space<vmem>>, vector<16x256xf32>,
    %c0_i32_8 = arith.constant 0 : i32
    %9 = arith.cmpi eq, %arg2, %c0_i32_8 : i32
    %10 = arith.extui %9 : i1 to i32
    %c0_i32_9 = arith.constant 0 : i32
    %11 = arith.cmpi ne, %10, %c0_i32_9 : i32
    scf.if %11 {
      %c0_10 = arith.constant 0 : index
      %c0_11 = arith.constant 0 : index
      %12 = vector.load %arg8[%c0_10, %c0_11] : memref<16x256xf32, #tpu.memory_space<vmem>>, vector<16x256xf32>
      %c0_12 = arith.constant 0 : index
      %c0_13 = arith.constant 0 : index
      %13 = vector.load %arg5[%c0_12, %c0_13] : memref<1x256xf32, #tpu.memory_space<vmem>>, vector<1x256xf32>
      %14 = vector.broadcast %13 : vector<1x256xf32> to vector<16x256xf32>
      %15 = arith.mulf %12, %14 : vector<16x256xf32>
      %c0_14 = arith.constant 0 : index
      %c0_15 = arith.constant 0 : index
      %16 = vector.load %arg6[%c0_14, %c0_15] : memref<1x256xf32, #tpu.memory_space<vmem>>, vector<1x256xf32>
      %17 = vector.broadcast %16 : vector<1x256xf32> to vector<16x256xf32>
      %18 = arith.addf %15, %17 : vector<16x256xf32>
      %19 = arith.truncf %18 : vector<16x256xf32> to vector<16x256xbf16>
      %c0_16 = arith.constant 0 : index
      %c0_17 = arith.constant 0 : index
      %20 = vector.load %arg7[%c0_16, %c0_17] : memref<16x256xbf16, #tpu.memory_space<vmem>>, vector<16x256xbf16>
      tpu.vector_store %arg7[%c0_16, %c0_17], %19 {strides = array<i32>} : memref<16x256xbf16, #tpu.memory_space<vmem>>, vector<16x256xbf16>,
    } else {
    }
    return
  }
  func.func @transform_0(%arg0: i32, %arg1: i32, %arg2: i32) -> (i32, i32) {
    %c0_i32 = arith.constant 0 : i32
    return %arg0, %arg2 : i32, i32
  }
  func.func @transform_1(%arg0: i32, %arg1: i32, %arg2: i32) -> (i32, i32) {
    %c0_i32 = arith.constant 0 : i32
    return %arg2, %arg1 : i32, i32
  }
  func.func @transform_2(%arg0: i32, %arg1: i32, %arg2: i32) -> (i32, i32) {
    %c0_i32 = arith.constant 0 : i32
    %c0_i32_0 = arith.constant 0 : i32
    return %c0_i32, %arg1 : i32, i32
  }
  func.func @transform_3(%arg0: i32, %arg1: i32, %arg2: i32) -> (i32, i32) {
    %c0_i32 = arith.constant 0 : i32
    %c0_i32_0 = arith.constant 0 : i32
    return %c0_i32, %arg1 : i32, i32
  }
  func.func @transform_4(%arg0: i32, %arg1: i32, %arg2: i32) -> (i32, i32) {
    %c0_i32 = arith.constant 0 : i32
    return %arg0, %arg1 : i32, i32
  }
}

module attributes {stable_mosaic.version = 11 : i64} {
  func.func @_conv_mm_kernel(%arg0: i32, %arg1: i32, %arg2: i32, %arg3: memref<16x384xbf16, #tpu.memory_space<vmem>>, %arg4: memref<384x256xbf16, #tpu.memory_space<vmem>>, %arg5: memref<1x256xf32, #tpu.memory_space<vmem>>, %arg6: memref<1x256xf32, #tpu.memory_space<vmem>>, %arg7: memref<16x256xbf16, #tpu.memory_space<vmem>>, %arg8: memref<16x256xf32, #tpu.memory_space<vmem>>) attributes {dimension_semantics = [#tpu.dimension_semantics<parallel>, #tpu.dimension_semantics<parallel>, #tpu.dimension_semantics<arbitrary>], iteration_bounds = array<i64: 1, 1, 6>, scalar_prefetch = 0 : i64, scratch_operands = 1 : i64, tpu.core_type = #tpu.core_type<tc>, window_params = [{transform_indices = @transform_0, window_bounds = array<i64: 16, 384>}, {transform_indices = @transform_1, window_bounds = array<i64: 384, 256>}, {transform_indices = @transform_2, window_bounds = array<i64: 1, 256>}, {transform_indices = @transform_3, window_bounds = array<i64: 1, 256>}, {transform_indices = @transform_4, window_bounds = array<i64: 16, 256>}]} {
    %c0_i32 = arith.constant 0 : i32
    %0 = arith.cmpi eq, %arg2, %c0_i32 : i32
    %1 = arith.extui %0 : i1 to i32
    %c0_i32_0 = arith.constant 0 : i32
    %2 = arith.cmpi ne, %1, %c0_i32_0 : i32
    scf.if %2 {
      %cst_9 = arith.constant 0.000000e+00 : f32
      %12 = vector.broadcast %cst_9 : f32 to vector<16x256xf32>
      %c0_10 = arith.constant 0 : index
      %c0_11 = arith.constant 0 : index
      %13 = vector.load %arg8[%c0_10, %c0_11] : memref<16x256xf32, #tpu.memory_space<vmem>>, vector<16x256xf32>
      tpu.vector_store %arg8[%c0_10, %c0_11], %12 {strides = array<i32>} : memref<16x256xf32, #tpu.memory_space<vmem>>, vector<16x256xf32>,
    } else {
    }
    %c0 = arith.constant 0 : index
    %c0_1 = arith.constant 0 : index
    %3 = vector.load %arg8[%c0, %c0_1] : memref<16x256xf32, #tpu.memory_space<vmem>>, vector<16x256xf32>
    %c0_2 = arith.constant 0 : index
    %c0_3 = arith.constant 0 : index
    %4 = vector.load %arg3[%c0_2, %c0_3] : memref<16x384xbf16, #tpu.memory_space<vmem>>, vector<16x384xbf16>
    %c0_4 = arith.constant 0 : index
    %c0_5 = arith.constant 0 : index
    %5 = vector.load %arg4[%c0_4, %c0_5] : memref<384x256xbf16, #tpu.memory_space<vmem>>, vector<384x256xbf16>
    %cst = arith.constant dense<0.000000e+00> : vector<16x256xf32>
    %6 = tpu.matmul %4, %5, %cst {dimension_numbers = #tpu.dot_dimension_numbers<[1], [0], [0], [1], [0, 0, 1, 1], [], []>} : vector<16x384xbf16>, vector<384x256xbf16>, vector<16x256xf32> -> vector<16x256xf32>
    %7 = arith.addf %3, %6 : vector<16x256xf32>
    %c0_6 = arith.constant 0 : index
    %c0_7 = arith.constant 0 : index
    %8 = vector.load %arg8[%c0_6, %c0_7] : memref<16x256xf32, #tpu.memory_space<vmem>>, vector<16x256xf32>
    tpu.vector_store %arg8[%c0_6, %c0_7], %7 {strides = array<i32>} : memref<16x256xf32, #tpu.memory_space<vmem>>, vector<16x256xf32>,
    %c5_i32 = arith.constant 5 : i32
    %9 = arith.cmpi eq, %arg2, %c5_i32 : i32
    %10 = arith.extui %9 : i1 to i32
    %c0_i32_8 = arith.constant 0 : i32
    %11 = arith.cmpi ne, %10, %c0_i32_8 : i32
    scf.if %11 {
      %c0_9 = arith.constant 0 : index
      %c0_10 = arith.constant 0 : index
      %12 = vector.load %arg8[%c0_9, %c0_10] : memref<16x256xf32, #tpu.memory_space<vmem>>, vector<16x256xf32>
      %c0_11 = arith.constant 0 : index
      %c0_12 = arith.constant 0 : index
      %13 = vector.load %arg5[%c0_11, %c0_12] : memref<1x256xf32, #tpu.memory_space<vmem>>, vector<1x256xf32>
      %14 = vector.broadcast %13 : vector<1x256xf32> to vector<16x256xf32>
      %15 = arith.mulf %12, %14 : vector<16x256xf32>
      %c0_13 = arith.constant 0 : index
      %c0_14 = arith.constant 0 : index
      %16 = vector.load %arg6[%c0_13, %c0_14] : memref<1x256xf32, #tpu.memory_space<vmem>>, vector<1x256xf32>
      %17 = vector.broadcast %16 : vector<1x256xf32> to vector<16x256xf32>
      %18 = arith.addf %15, %17 : vector<16x256xf32>
      %cst_15 = arith.constant 0.000000e+00 : f32
      %19 = vector.broadcast %cst_15 : f32 to vector<16x256xf32>
      %20 = arith.cmpf oge, %18, %19 : vector<16x256xf32>
      %cst_16 = arith.constant 0.00999999977 : f32
      %21 = vector.broadcast %cst_16 : f32 to vector<16x256xf32>
      %22 = arith.mulf %21, %18 : vector<16x256xf32>
      %23 = arith.select %20, %18, %22 : vector<16x256xi1>, vector<16x256xf32>
      %24 = arith.truncf %23 : vector<16x256xf32> to vector<16x256xbf16>
      %c0_17 = arith.constant 0 : index
      %c0_18 = arith.constant 0 : index
      %25 = vector.load %arg7[%c0_17, %c0_18] : memref<16x256xbf16, #tpu.memory_space<vmem>>, vector<16x256xbf16>
      tpu.vector_store %arg7[%c0_17, %c0_18], %24 {strides = array<i32>} : memref<16x256xbf16, #tpu.memory_space<vmem>>, vector<16x256xbf16>,
    } else {
    }
    return
  }
  func.func @transform_0(%arg0: i32, %arg1: i32, %arg2: i32) -> (i32, i32) {
    %c0_i32 = arith.constant 0 : i32
    return %arg0, %arg2 : i32, i32
  }
  func.func @transform_1(%arg0: i32, %arg1: i32, %arg2: i32) -> (i32, i32) {
    %c0_i32 = arith.constant 0 : i32
    return %arg2, %arg1 : i32, i32
  }
  func.func @transform_2(%arg0: i32, %arg1: i32, %arg2: i32) -> (i32, i32) {
    %c0_i32 = arith.constant 0 : i32
    %c0_i32_0 = arith.constant 0 : i32
    return %c0_i32, %arg1 : i32, i32
  }
  func.func @transform_3(%arg0: i32, %arg1: i32, %arg2: i32) -> (i32, i32) {
    %c0_i32 = arith.constant 0 : i32
    %c0_i32_0 = arith.constant 0 : i32
    return %c0_i32, %arg1 : i32, i32
  }
  func.func @transform_4(%arg0: i32, %arg1: i32, %arg2: i32) -> (i32, i32) {
    %c0_i32 = arith.constant 0 : i32
    return %arg0, %arg1 : i32, i32
  }
}

module attributes {stable_mosaic.version = 11 : i64} {
  func.func @_conv_mm_res_kernel(%arg0: i32, %arg1: i32, %arg2: i32, %arg3: memref<16x384xbf16, #tpu.memory_space<vmem>>, %arg4: memref<384x256xbf16, #tpu.memory_space<vmem>>, %arg5: memref<1x256xf32, #tpu.memory_space<vmem>>, %arg6: memref<1x256xf32, #tpu.memory_space<vmem>>, %arg7: memref<16x256xbf16, #tpu.memory_space<vmem>>, %arg8: memref<16x256xbf16, #tpu.memory_space<vmem>>, %arg9: memref<16x256xf32, #tpu.memory_space<vmem>>) attributes {dimension_semantics = [#tpu.dimension_semantics<parallel>, #tpu.dimension_semantics<parallel>, #tpu.dimension_semantics<arbitrary>], iteration_bounds = array<i64: 1, 1, 6>, scalar_prefetch = 0 : i64, scratch_operands = 1 : i64, tpu.core_type = #tpu.core_type<tc>, window_params = [{transform_indices = @transform_0, window_bounds = array<i64: 16, 384>}, {transform_indices = @transform_1, window_bounds = array<i64: 384, 256>}, {transform_indices = @transform_2, window_bounds = array<i64: 1, 256>}, {transform_indices = @transform_3, window_bounds = array<i64: 1, 256>}, {transform_indices = @transform_4, window_bounds = array<i64: 16, 256>}, {transform_indices = @transform_5, window_bounds = array<i64: 16, 256>}]} {
    %c0_i32 = arith.constant 0 : i32
    %0 = arith.cmpi eq, %arg2, %c0_i32 : i32
    %1 = arith.extui %0 : i1 to i32
    %c0_i32_0 = arith.constant 0 : i32
    %2 = arith.cmpi ne, %1, %c0_i32_0 : i32
    scf.if %2 {
      %cst_9 = arith.constant 0.000000e+00 : f32
      %12 = vector.broadcast %cst_9 : f32 to vector<16x256xf32>
      %c0_10 = arith.constant 0 : index
      %c0_11 = arith.constant 0 : index
      %13 = vector.load %arg9[%c0_10, %c0_11] : memref<16x256xf32, #tpu.memory_space<vmem>>, vector<16x256xf32>
      tpu.vector_store %arg9[%c0_10, %c0_11], %12 {strides = array<i32>} : memref<16x256xf32, #tpu.memory_space<vmem>>, vector<16x256xf32>,
    } else {
    }
    %c0 = arith.constant 0 : index
    %c0_1 = arith.constant 0 : index
    %3 = vector.load %arg9[%c0, %c0_1] : memref<16x256xf32, #tpu.memory_space<vmem>>, vector<16x256xf32>
    %c0_2 = arith.constant 0 : index
    %c0_3 = arith.constant 0 : index
    %4 = vector.load %arg3[%c0_2, %c0_3] : memref<16x384xbf16, #tpu.memory_space<vmem>>, vector<16x384xbf16>
    %c0_4 = arith.constant 0 : index
    %c0_5 = arith.constant 0 : index
    %5 = vector.load %arg4[%c0_4, %c0_5] : memref<384x256xbf16, #tpu.memory_space<vmem>>, vector<384x256xbf16>
    %cst = arith.constant dense<0.000000e+00> : vector<16x256xf32>
    %6 = tpu.matmul %4, %5, %cst {dimension_numbers = #tpu.dot_dimension_numbers<[1], [0], [0], [1], [0, 0, 1, 1], [], []>} : vector<16x384xbf16>, vector<384x256xbf16>, vector<16x256xf32> -> vector<16x256xf32>
    %7 = arith.addf %3, %6 : vector<16x256xf32>
    %c0_6 = arith.constant 0 : index
    %c0_7 = arith.constant 0 : index
    %8 = vector.load %arg9[%c0_6, %c0_7] : memref<16x256xf32, #tpu.memory_space<vmem>>, vector<16x256xf32>
    tpu.vector_store %arg9[%c0_6, %c0_7], %7 {strides = array<i32>} : memref<16x256xf32, #tpu.memory_space<vmem>>, vector<16x256xf32>,
    %c5_i32 = arith.constant 5 : i32
    %9 = arith.cmpi eq, %arg2, %c5_i32 : i32
    %10 = arith.extui %9 : i1 to i32
    %c0_i32_8 = arith.constant 0 : i32
    %11 = arith.cmpi ne, %10, %c0_i32_8 : i32
    scf.if %11 {
      %c0_9 = arith.constant 0 : index
      %c0_10 = arith.constant 0 : index
      %12 = vector.load %arg9[%c0_9, %c0_10] : memref<16x256xf32, #tpu.memory_space<vmem>>, vector<16x256xf32>
      %c0_11 = arith.constant 0 : index
      %c0_12 = arith.constant 0 : index
      %13 = vector.load %arg5[%c0_11, %c0_12] : memref<1x256xf32, #tpu.memory_space<vmem>>, vector<1x256xf32>
      %14 = vector.broadcast %13 : vector<1x256xf32> to vector<16x256xf32>
      %15 = arith.mulf %12, %14 : vector<16x256xf32>
      %c0_13 = arith.constant 0 : index
      %c0_14 = arith.constant 0 : index
      %16 = vector.load %arg6[%c0_13, %c0_14] : memref<1x256xf32, #tpu.memory_space<vmem>>, vector<1x256xf32>
      %17 = vector.broadcast %16 : vector<1x256xf32> to vector<16x256xf32>
      %18 = arith.addf %15, %17 : vector<16x256xf32>
      %c0_15 = arith.constant 0 : index
      %c0_16 = arith.constant 0 : index
      %19 = vector.load %arg7[%c0_15, %c0_16] : memref<16x256xbf16, #tpu.memory_space<vmem>>, vector<16x256xbf16>
      %20 = arith.extf %19 : vector<16x256xbf16> to vector<16x256xf32>
      %21 = arith.addf %18, %20 : vector<16x256xf32>
      %cst_17 = arith.constant 0.000000e+00 : f32
      %22 = vector.broadcast %cst_17 : f32 to vector<16x256xf32>
      %23 = arith.cmpf oge, %21, %22 : vector<16x256xf32>
      %cst_18 = arith.constant 0.00999999977 : f32
      %24 = vector.broadcast %cst_18 : f32 to vector<16x256xf32>
      %25 = arith.mulf %24, %21 : vector<16x256xf32>
      %26 = arith.select %23, %21, %25 : vector<16x256xi1>, vector<16x256xf32>
      %27 = arith.truncf %26 : vector<16x256xf32> to vector<16x256xbf16>
      %c0_19 = arith.constant 0 : index
      %c0_20 = arith.constant 0 : index
      %28 = vector.load %arg8[%c0_19, %c0_20] : memref<16x256xbf16, #tpu.memory_space<vmem>>, vector<16x256xbf16>
      tpu.vector_store %arg8[%c0_19, %c0_20], %27 {strides = array<i32>} : memref<16x256xbf16, #tpu.memory_space<vmem>>, vector<16x256xbf16>,
    } else {
    }
    return
  }
  func.func @transform_0(%arg0: i32, %arg1: i32, %arg2: i32) -> (i32, i32) {
    %c0_i32 = arith.constant 0 : i32
    return %arg0, %arg2 : i32, i32
  }
  func.func @transform_1(%arg0: i32, %arg1: i32, %arg2: i32) -> (i32, i32) {
    %c0_i32 = arith.constant 0 : i32
    return %arg2, %arg1 : i32, i32
  }
  func.func @transform_2(%arg0: i32, %arg1: i32, %arg2: i32) -> (i32, i32) {
    %c0_i32 = arith.constant 0 : i32
    %c0_i32_0 = arith.constant 0 : i32
    return %c0_i32, %arg1 : i32, i32
  }
  func.func @transform_3(%arg0: i32, %arg1: i32, %arg2: i32) -> (i32, i32) {
    %c0_i32 = arith.constant 0 : i32
    %c0_i32_0 = arith.constant 0 : i32
    return %c0_i32, %arg1 : i32, i32
  }
  func.func @transform_4(%arg0: i32, %arg1: i32, %arg2: i32) -> (i32, i32) {
    %c0_i32 = arith.constant 0 : i32
    return %arg0, %arg1 : i32, i32
  }
  func.func @transform_5(%arg0: i32, %arg1: i32, %arg2: i32) -> (i32, i32) {
    %c0_i32 = arith.constant 0 : i32
    return %arg0, %arg1 : i32, i32
  }
}

module attributes {stable_mosaic.version = 11 : i64} {
  func.func @_conv_mm_kernel(%arg0: i32, %arg1: i32, %arg2: i32, %arg3: memref<16x384xbf16, #tpu.memory_space<vmem>>, %arg4: memref<384x256xbf16, #tpu.memory_space<vmem>>, %arg5: memref<1x256xf32, #tpu.memory_space<vmem>>, %arg6: memref<1x256xf32, #tpu.memory_space<vmem>>, %arg7: memref<16x256xbf16, #tpu.memory_space<vmem>>, %arg8: memref<16x256xf32, #tpu.memory_space<vmem>>) attributes {dimension_semantics = [#tpu.dimension_semantics<parallel>, #tpu.dimension_semantics<parallel>, #tpu.dimension_semantics<arbitrary>], iteration_bounds = array<i64: 1, 2, 6>, scalar_prefetch = 0 : i64, scratch_operands = 1 : i64, tpu.core_type = #tpu.core_type<tc>, window_params = [{transform_indices = @transform_0, window_bounds = array<i64: 16, 384>}, {transform_indices = @transform_1, window_bounds = array<i64: 384, 256>}, {transform_indices = @transform_2, window_bounds = array<i64: 1, 256>}, {transform_indices = @transform_3, window_bounds = array<i64: 1, 256>}, {transform_indices = @transform_4, window_bounds = array<i64: 16, 256>}]} {
    %c0_i32 = arith.constant 0 : i32
    %0 = arith.cmpi eq, %arg2, %c0_i32 : i32
    %1 = arith.extui %0 : i1 to i32
    %c0_i32_0 = arith.constant 0 : i32
    %2 = arith.cmpi ne, %1, %c0_i32_0 : i32
    scf.if %2 {
      %cst_9 = arith.constant 0.000000e+00 : f32
      %12 = vector.broadcast %cst_9 : f32 to vector<16x256xf32>
      %c0_10 = arith.constant 0 : index
      %c0_11 = arith.constant 0 : index
      %13 = vector.load %arg8[%c0_10, %c0_11] : memref<16x256xf32, #tpu.memory_space<vmem>>, vector<16x256xf32>
      tpu.vector_store %arg8[%c0_10, %c0_11], %12 {strides = array<i32>} : memref<16x256xf32, #tpu.memory_space<vmem>>, vector<16x256xf32>,
    } else {
    }
    %c0 = arith.constant 0 : index
    %c0_1 = arith.constant 0 : index
    %3 = vector.load %arg8[%c0, %c0_1] : memref<16x256xf32, #tpu.memory_space<vmem>>, vector<16x256xf32>
    %c0_2 = arith.constant 0 : index
    %c0_3 = arith.constant 0 : index
    %4 = vector.load %arg3[%c0_2, %c0_3] : memref<16x384xbf16, #tpu.memory_space<vmem>>, vector<16x384xbf16>
    %c0_4 = arith.constant 0 : index
    %c0_5 = arith.constant 0 : index
    %5 = vector.load %arg4[%c0_4, %c0_5] : memref<384x256xbf16, #tpu.memory_space<vmem>>, vector<384x256xbf16>
    %cst = arith.constant dense<0.000000e+00> : vector<16x256xf32>
    %6 = tpu.matmul %4, %5, %cst {dimension_numbers = #tpu.dot_dimension_numbers<[1], [0], [0], [1], [0, 0, 1, 1], [], []>} : vector<16x384xbf16>, vector<384x256xbf16>, vector<16x256xf32> -> vector<16x256xf32>
    %7 = arith.addf %3, %6 : vector<16x256xf32>
    %c0_6 = arith.constant 0 : index
    %c0_7 = arith.constant 0 : index
    %8 = vector.load %arg8[%c0_6, %c0_7] : memref<16x256xf32, #tpu.memory_space<vmem>>, vector<16x256xf32>
    tpu.vector_store %arg8[%c0_6, %c0_7], %7 {strides = array<i32>} : memref<16x256xf32, #tpu.memory_space<vmem>>, vector<16x256xf32>,
    %c5_i32 = arith.constant 5 : i32
    %9 = arith.cmpi eq, %arg2, %c5_i32 : i32
    %10 = arith.extui %9 : i1 to i32
    %c0_i32_8 = arith.constant 0 : i32
    %11 = arith.cmpi ne, %10, %c0_i32_8 : i32
    scf.if %11 {
      %c0_9 = arith.constant 0 : index
      %c0_10 = arith.constant 0 : index
      %12 = vector.load %arg8[%c0_9, %c0_10] : memref<16x256xf32, #tpu.memory_space<vmem>>, vector<16x256xf32>
      %c0_11 = arith.constant 0 : index
      %c0_12 = arith.constant 0 : index
      %13 = vector.load %arg5[%c0_11, %c0_12] : memref<1x256xf32, #tpu.memory_space<vmem>>, vector<1x256xf32>
      %14 = vector.broadcast %13 : vector<1x256xf32> to vector<16x256xf32>
      %15 = arith.mulf %12, %14 : vector<16x256xf32>
      %c0_13 = arith.constant 0 : index
      %c0_14 = arith.constant 0 : index
      %16 = vector.load %arg6[%c0_13, %c0_14] : memref<1x256xf32, #tpu.memory_space<vmem>>, vector<1x256xf32>
      %17 = vector.broadcast %16 : vector<1x256xf32> to vector<16x256xf32>
      %18 = arith.addf %15, %17 : vector<16x256xf32>
      %cst_15 = arith.constant 0.000000e+00 : f32
      %19 = vector.broadcast %cst_15 : f32 to vector<16x256xf32>
      %20 = arith.cmpf oge, %18, %19 : vector<16x256xf32>
      %cst_16 = arith.constant 0.00999999977 : f32
      %21 = vector.broadcast %cst_16 : f32 to vector<16x256xf32>
      %22 = arith.mulf %21, %18 : vector<16x256xf32>
      %23 = arith.select %20, %18, %22 : vector<16x256xi1>, vector<16x256xf32>
      %24 = arith.truncf %23 : vector<16x256xf32> to vector<16x256xbf16>
      %c0_17 = arith.constant 0 : index
      %c0_18 = arith.constant 0 : index
      %25 = vector.load %arg7[%c0_17, %c0_18] : memref<16x256xbf16, #tpu.memory_space<vmem>>, vector<16x256xbf16>
      tpu.vector_store %arg7[%c0_17, %c0_18], %24 {strides = array<i32>} : memref<16x256xbf16, #tpu.memory_space<vmem>>, vector<16x256xbf16>,
    } else {
    }
    return
  }
  func.func @transform_0(%arg0: i32, %arg1: i32, %arg2: i32) -> (i32, i32) {
    %c0_i32 = arith.constant 0 : i32
    return %arg0, %arg2 : i32, i32
  }
  func.func @transform_1(%arg0: i32, %arg1: i32, %arg2: i32) -> (i32, i32) {
    %c0_i32 = arith.constant 0 : i32
    return %arg2, %arg1 : i32, i32
  }
  func.func @transform_2(%arg0: i32, %arg1: i32, %arg2: i32) -> (i32, i32) {
    %c0_i32 = arith.constant 0 : i32
    %c0_i32_0 = arith.constant 0 : i32
    return %c0_i32, %arg1 : i32, i32
  }
  func.func @transform_3(%arg0: i32, %arg1: i32, %arg2: i32) -> (i32, i32) {
    %c0_i32 = arith.constant 0 : i32
    %c0_i32_0 = arith.constant 0 : i32
    return %c0_i32, %arg1 : i32, i32
  }
  func.func @transform_4(%arg0: i32, %arg1: i32, %arg2: i32) -> (i32, i32) {
    %c0_i32 = arith.constant 0 : i32
    return %arg0, %arg1 : i32, i32
  }
}

module attributes {stable_mosaic.version = 11 : i64} {
  func.func @_conv_mm_kernel(%arg0: i32, %arg1: i32, %arg2: i32, %arg3: memref<16x256xbf16, #tpu.memory_space<vmem>>, %arg4: memref<256x256xbf16, #tpu.memory_space<vmem>>, %arg5: memref<1x256xf32, #tpu.memory_space<vmem>>, %arg6: memref<1x256xf32, #tpu.memory_space<vmem>>, %arg7: memref<16x256xbf16, #tpu.memory_space<vmem>>, %arg8: memref<16x256xf32, #tpu.memory_space<vmem>>) attributes {dimension_semantics = [#tpu.dimension_semantics<parallel>, #tpu.dimension_semantics<parallel>, #tpu.dimension_semantics<arbitrary>], iteration_bounds = array<i64: 1, 2, 1>, scalar_prefetch = 0 : i64, scratch_operands = 1 : i64, tpu.core_type = #tpu.core_type<tc>, window_params = [{transform_indices = @transform_0, window_bounds = array<i64: 16, 256>}, {transform_indices = @transform_1, window_bounds = array<i64: 256, 256>}, {transform_indices = @transform_2, window_bounds = array<i64: 1, 256>}, {transform_indices = @transform_3, window_bounds = array<i64: 1, 256>}, {transform_indices = @transform_4, window_bounds = array<i64: 16, 256>}]} {
    %c0_i32 = arith.constant 0 : i32
    %0 = arith.cmpi eq, %arg2, %c0_i32 : i32
    %1 = arith.extui %0 : i1 to i32
    %c0_i32_0 = arith.constant 0 : i32
    %2 = arith.cmpi ne, %1, %c0_i32_0 : i32
    scf.if %2 {
      %cst_10 = arith.constant 0.000000e+00 : f32
      %12 = vector.broadcast %cst_10 : f32 to vector<16x256xf32>
      %c0_11 = arith.constant 0 : index
      %c0_12 = arith.constant 0 : index
      %13 = vector.load %arg8[%c0_11, %c0_12] : memref<16x256xf32, #tpu.memory_space<vmem>>, vector<16x256xf32>
      tpu.vector_store %arg8[%c0_11, %c0_12], %12 {strides = array<i32>} : memref<16x256xf32, #tpu.memory_space<vmem>>, vector<16x256xf32>,
    } else {
    }
    %c0 = arith.constant 0 : index
    %c0_1 = arith.constant 0 : index
    %3 = vector.load %arg8[%c0, %c0_1] : memref<16x256xf32, #tpu.memory_space<vmem>>, vector<16x256xf32>
    %c0_2 = arith.constant 0 : index
    %c0_3 = arith.constant 0 : index
    %4 = vector.load %arg3[%c0_2, %c0_3] : memref<16x256xbf16, #tpu.memory_space<vmem>>, vector<16x256xbf16>
    %c0_4 = arith.constant 0 : index
    %c0_5 = arith.constant 0 : index
    %5 = vector.load %arg4[%c0_4, %c0_5] : memref<256x256xbf16, #tpu.memory_space<vmem>>, vector<256x256xbf16>
    %cst = arith.constant dense<0.000000e+00> : vector<16x256xf32>
    %6 = tpu.matmul %4, %5, %cst {dimension_numbers = #tpu.dot_dimension_numbers<[1], [0], [0], [1], [0, 0, 1, 1], [], []>} : vector<16x256xbf16>, vector<256x256xbf16>, vector<16x256xf32> -> vector<16x256xf32>
    %7 = arith.addf %3, %6 : vector<16x256xf32>
    %c0_6 = arith.constant 0 : index
    %c0_7 = arith.constant 0 : index
    %8 = vector.load %arg8[%c0_6, %c0_7] : memref<16x256xf32, #tpu.memory_space<vmem>>, vector<16x256xf32>
    tpu.vector_store %arg8[%c0_6, %c0_7], %7 {strides = array<i32>} : memref<16x256xf32, #tpu.memory_space<vmem>>, vector<16x256xf32>,
    %c0_i32_8 = arith.constant 0 : i32
    %9 = arith.cmpi eq, %arg2, %c0_i32_8 : i32
    %10 = arith.extui %9 : i1 to i32
    %c0_i32_9 = arith.constant 0 : i32
    %11 = arith.cmpi ne, %10, %c0_i32_9 : i32
    scf.if %11 {
      %c0_10 = arith.constant 0 : index
      %c0_11 = arith.constant 0 : index
      %12 = vector.load %arg8[%c0_10, %c0_11] : memref<16x256xf32, #tpu.memory_space<vmem>>, vector<16x256xf32>
      %c0_12 = arith.constant 0 : index
      %c0_13 = arith.constant 0 : index
      %13 = vector.load %arg5[%c0_12, %c0_13] : memref<1x256xf32, #tpu.memory_space<vmem>>, vector<1x256xf32>
      %14 = vector.broadcast %13 : vector<1x256xf32> to vector<16x256xf32>
      %15 = arith.mulf %12, %14 : vector<16x256xf32>
      %c0_14 = arith.constant 0 : index
      %c0_15 = arith.constant 0 : index
      %16 = vector.load %arg6[%c0_14, %c0_15] : memref<1x256xf32, #tpu.memory_space<vmem>>, vector<1x256xf32>
      %17 = vector.broadcast %16 : vector<1x256xf32> to vector<16x256xf32>
      %18 = arith.addf %15, %17 : vector<16x256xf32>
      %19 = arith.truncf %18 : vector<16x256xf32> to vector<16x256xbf16>
      %c0_16 = arith.constant 0 : index
      %c0_17 = arith.constant 0 : index
      %20 = vector.load %arg7[%c0_16, %c0_17] : memref<16x256xbf16, #tpu.memory_space<vmem>>, vector<16x256xbf16>
      tpu.vector_store %arg7[%c0_16, %c0_17], %19 {strides = array<i32>} : memref<16x256xbf16, #tpu.memory_space<vmem>>, vector<16x256xbf16>,
    } else {
    }
    return
  }
  func.func @transform_0(%arg0: i32, %arg1: i32, %arg2: i32) -> (i32, i32) {
    %c0_i32 = arith.constant 0 : i32
    return %arg0, %arg2 : i32, i32
  }
  func.func @transform_1(%arg0: i32, %arg1: i32, %arg2: i32) -> (i32, i32) {
    %c0_i32 = arith.constant 0 : i32
    return %arg2, %arg1 : i32, i32
  }
  func.func @transform_2(%arg0: i32, %arg1: i32, %arg2: i32) -> (i32, i32) {
    %c0_i32 = arith.constant 0 : i32
    %c0_i32_0 = arith.constant 0 : i32
    return %c0_i32, %arg1 : i32, i32
  }
  func.func @transform_3(%arg0: i32, %arg1: i32, %arg2: i32) -> (i32, i32) {
    %c0_i32 = arith.constant 0 : i32
    %c0_i32_0 = arith.constant 0 : i32
    return %c0_i32, %arg1 : i32, i32
  }
  func.func @transform_4(%arg0: i32, %arg1: i32, %arg2: i32) -> (i32, i32) {
    %c0_i32 = arith.constant 0 : i32
    return %arg0, %arg1 : i32, i32
  }
}

module attributes {stable_mosaic.version = 11 : i64} {
  func.func @_conv_mm_res_kernel(%arg0: i32, %arg1: i32, %arg2: i32, %arg3: memref<16x512xbf16, #tpu.memory_space<vmem>>, %arg4: memref<512x256xbf16, #tpu.memory_space<vmem>>, %arg5: memref<1x256xf32, #tpu.memory_space<vmem>>, %arg6: memref<1x256xf32, #tpu.memory_space<vmem>>, %arg7: memref<16x256xbf16, #tpu.memory_space<vmem>>, %arg8: memref<16x256xbf16, #tpu.memory_space<vmem>>, %arg9: memref<16x256xf32, #tpu.memory_space<vmem>>) attributes {dimension_semantics = [#tpu.dimension_semantics<parallel>, #tpu.dimension_semantics<parallel>, #tpu.dimension_semantics<arbitrary>], iteration_bounds = array<i64: 1, 2, 9>, scalar_prefetch = 0 : i64, scratch_operands = 1 : i64, tpu.core_type = #tpu.core_type<tc>, window_params = [{transform_indices = @transform_0, window_bounds = array<i64: 16, 512>}, {transform_indices = @transform_1, window_bounds = array<i64: 512, 256>}, {transform_indices = @transform_2, window_bounds = array<i64: 1, 256>}, {transform_indices = @transform_3, window_bounds = array<i64: 1, 256>}, {transform_indices = @transform_4, window_bounds = array<i64: 16, 256>}, {transform_indices = @transform_5, window_bounds = array<i64: 16, 256>}]} {
    %c0_i32 = arith.constant 0 : i32
    %0 = arith.cmpi eq, %arg2, %c0_i32 : i32
    %1 = arith.extui %0 : i1 to i32
    %c0_i32_0 = arith.constant 0 : i32
    %2 = arith.cmpi ne, %1, %c0_i32_0 : i32
    scf.if %2 {
      %cst_9 = arith.constant 0.000000e+00 : f32
      %12 = vector.broadcast %cst_9 : f32 to vector<16x256xf32>
      %c0_10 = arith.constant 0 : index
      %c0_11 = arith.constant 0 : index
      %13 = vector.load %arg9[%c0_10, %c0_11] : memref<16x256xf32, #tpu.memory_space<vmem>>, vector<16x256xf32>
      tpu.vector_store %arg9[%c0_10, %c0_11], %12 {strides = array<i32>} : memref<16x256xf32, #tpu.memory_space<vmem>>, vector<16x256xf32>,
    } else {
    }
    %c0 = arith.constant 0 : index
    %c0_1 = arith.constant 0 : index
    %3 = vector.load %arg9[%c0, %c0_1] : memref<16x256xf32, #tpu.memory_space<vmem>>, vector<16x256xf32>
    %c0_2 = arith.constant 0 : index
    %c0_3 = arith.constant 0 : index
    %4 = vector.load %arg3[%c0_2, %c0_3] : memref<16x512xbf16, #tpu.memory_space<vmem>>, vector<16x512xbf16>
    %c0_4 = arith.constant 0 : index
    %c0_5 = arith.constant 0 : index
    %5 = vector.load %arg4[%c0_4, %c0_5] : memref<512x256xbf16, #tpu.memory_space<vmem>>, vector<512x256xbf16>
    %cst = arith.constant dense<0.000000e+00> : vector<16x256xf32>
    %6 = tpu.matmul %4, %5, %cst {dimension_numbers = #tpu.dot_dimension_numbers<[1], [0], [0], [1], [0, 0, 1, 1], [], []>} : vector<16x512xbf16>, vector<512x256xbf16>, vector<16x256xf32> -> vector<16x256xf32>
    %7 = arith.addf %3, %6 : vector<16x256xf32>
    %c0_6 = arith.constant 0 : index
    %c0_7 = arith.constant 0 : index
    %8 = vector.load %arg9[%c0_6, %c0_7] : memref<16x256xf32, #tpu.memory_space<vmem>>, vector<16x256xf32>
    tpu.vector_store %arg9[%c0_6, %c0_7], %7 {strides = array<i32>} : memref<16x256xf32, #tpu.memory_space<vmem>>, vector<16x256xf32>,
    %c8_i32 = arith.constant 8 : i32
    %9 = arith.cmpi eq, %arg2, %c8_i32 : i32
    %10 = arith.extui %9 : i1 to i32
    %c0_i32_8 = arith.constant 0 : i32
    %11 = arith.cmpi ne, %10, %c0_i32_8 : i32
    scf.if %11 {
      %c0_9 = arith.constant 0 : index
      %c0_10 = arith.constant 0 : index
      %12 = vector.load %arg9[%c0_9, %c0_10] : memref<16x256xf32, #tpu.memory_space<vmem>>, vector<16x256xf32>
      %c0_11 = arith.constant 0 : index
      %c0_12 = arith.constant 0 : index
      %13 = vector.load %arg5[%c0_11, %c0_12] : memref<1x256xf32, #tpu.memory_space<vmem>>, vector<1x256xf32>
      %14 = vector.broadcast %13 : vector<1x256xf32> to vector<16x256xf32>
      %15 = arith.mulf %12, %14 : vector<16x256xf32>
      %c0_13 = arith.constant 0 : index
      %c0_14 = arith.constant 0 : index
      %16 = vector.load %arg6[%c0_13, %c0_14] : memref<1x256xf32, #tpu.memory_space<vmem>>, vector<1x256xf32>
      %17 = vector.broadcast %16 : vector<1x256xf32> to vector<16x256xf32>
      %18 = arith.addf %15, %17 : vector<16x256xf32>
      %c0_15 = arith.constant 0 : index
      %c0_16 = arith.constant 0 : index
      %19 = vector.load %arg7[%c0_15, %c0_16] : memref<16x256xbf16, #tpu.memory_space<vmem>>, vector<16x256xbf16>
      %20 = arith.extf %19 : vector<16x256xbf16> to vector<16x256xf32>
      %21 = arith.addf %18, %20 : vector<16x256xf32>
      %cst_17 = arith.constant 0.000000e+00 : f32
      %22 = vector.broadcast %cst_17 : f32 to vector<16x256xf32>
      %23 = arith.cmpf oge, %21, %22 : vector<16x256xf32>
      %cst_18 = arith.constant 0.00999999977 : f32
      %24 = vector.broadcast %cst_18 : f32 to vector<16x256xf32>
      %25 = arith.mulf %24, %21 : vector<16x256xf32>
      %26 = arith.select %23, %21, %25 : vector<16x256xi1>, vector<16x256xf32>
      %27 = arith.truncf %26 : vector<16x256xf32> to vector<16x256xbf16>
      %c0_19 = arith.constant 0 : index
      %c0_20 = arith.constant 0 : index
      %28 = vector.load %arg8[%c0_19, %c0_20] : memref<16x256xbf16, #tpu.memory_space<vmem>>, vector<16x256xbf16>
      tpu.vector_store %arg8[%c0_19, %c0_20], %27 {strides = array<i32>} : memref<16x256xbf16, #tpu.memory_space<vmem>>, vector<16x256xbf16>,
    } else {
    }
    return
  }
  func.func @transform_0(%arg0: i32, %arg1: i32, %arg2: i32) -> (i32, i32) {
    %c0_i32 = arith.constant 0 : i32
    return %arg0, %arg2 : i32, i32
  }
  func.func @transform_1(%arg0: i32, %arg1: i32, %arg2: i32) -> (i32, i32) {
    %c0_i32 = arith.constant 0 : i32
    return %arg2, %arg1 : i32, i32
  }
  func.func @transform_2(%arg0: i32, %arg1: i32, %arg2: i32) -> (i32, i32) {
    %c0_i32 = arith.constant 0 : i32
    %c0_i32_0 = arith.constant 0 : i32
    return %c0_i32, %arg1 : i32, i32
  }
  func.func @transform_3(%arg0: i32, %arg1: i32, %arg2: i32) -> (i32, i32) {
    %c0_i32 = arith.constant 0 : i32
    %c0_i32_0 = arith.constant 0 : i32
    return %c0_i32, %arg1 : i32, i32
  }
  func.func @transform_4(%arg0: i32, %arg1: i32, %arg2: i32) -> (i32, i32) {
    %c0_i32 = arith.constant 0 : i32
    return %arg0, %arg1 : i32, i32
  }
  func.func @transform_5(%arg0: i32, %arg1: i32, %arg2: i32) -> (i32, i32) {
    %c0_i32 = arith.constant 0 : i32
    return %arg0, %arg1 : i32, i32
  }
}

module attributes {stable_mosaic.version = 11 : i64} {
  func.func @_conv_mm_kernel(%arg0: i32, %arg1: i32, %arg2: i32, %arg3: memref<16x512xbf16, #tpu.memory_space<vmem>>, %arg4: memref<512x256xbf16, #tpu.memory_space<vmem>>, %arg5: memref<1x256xf32, #tpu.memory_space<vmem>>, %arg6: memref<1x256xf32, #tpu.memory_space<vmem>>, %arg7: memref<16x256xbf16, #tpu.memory_space<vmem>>, %arg8: memref<16x256xf32, #tpu.memory_space<vmem>>) attributes {dimension_semantics = [#tpu.dimension_semantics<parallel>, #tpu.dimension_semantics<parallel>, #tpu.dimension_semantics<arbitrary>], iteration_bounds = array<i64: 1, 2, 9>, scalar_prefetch = 0 : i64, scratch_operands = 1 : i64, tpu.core_type = #tpu.core_type<tc>, window_params = [{transform_indices = @transform_0, window_bounds = array<i64: 16, 512>}, {transform_indices = @transform_1, window_bounds = array<i64: 512, 256>}, {transform_indices = @transform_2, window_bounds = array<i64: 1, 256>}, {transform_indices = @transform_3, window_bounds = array<i64: 1, 256>}, {transform_indices = @transform_4, window_bounds = array<i64: 16, 256>}]} {
    %c0_i32 = arith.constant 0 : i32
    %0 = arith.cmpi eq, %arg2, %c0_i32 : i32
    %1 = arith.extui %0 : i1 to i32
    %c0_i32_0 = arith.constant 0 : i32
    %2 = arith.cmpi ne, %1, %c0_i32_0 : i32
    scf.if %2 {
      %cst_9 = arith.constant 0.000000e+00 : f32
      %12 = vector.broadcast %cst_9 : f32 to vector<16x256xf32>
      %c0_10 = arith.constant 0 : index
      %c0_11 = arith.constant 0 : index
      %13 = vector.load %arg8[%c0_10, %c0_11] : memref<16x256xf32, #tpu.memory_space<vmem>>, vector<16x256xf32>
      tpu.vector_store %arg8[%c0_10, %c0_11], %12 {strides = array<i32>} : memref<16x256xf32, #tpu.memory_space<vmem>>, vector<16x256xf32>,
    } else {
    }
    %c0 = arith.constant 0 : index
    %c0_1 = arith.constant 0 : index
    %3 = vector.load %arg8[%c0, %c0_1] : memref<16x256xf32, #tpu.memory_space<vmem>>, vector<16x256xf32>
    %c0_2 = arith.constant 0 : index
    %c0_3 = arith.constant 0 : index
    %4 = vector.load %arg3[%c0_2, %c0_3] : memref<16x512xbf16, #tpu.memory_space<vmem>>, vector<16x512xbf16>
    %c0_4 = arith.constant 0 : index
    %c0_5 = arith.constant 0 : index
    %5 = vector.load %arg4[%c0_4, %c0_5] : memref<512x256xbf16, #tpu.memory_space<vmem>>, vector<512x256xbf16>
    %cst = arith.constant dense<0.000000e+00> : vector<16x256xf32>
    %6 = tpu.matmul %4, %5, %cst {dimension_numbers = #tpu.dot_dimension_numbers<[1], [0], [0], [1], [0, 0, 1, 1], [], []>} : vector<16x512xbf16>, vector<512x256xbf16>, vector<16x256xf32> -> vector<16x256xf32>
    %7 = arith.addf %3, %6 : vector<16x256xf32>
    %c0_6 = arith.constant 0 : index
    %c0_7 = arith.constant 0 : index
    %8 = vector.load %arg8[%c0_6, %c0_7] : memref<16x256xf32, #tpu.memory_space<vmem>>, vector<16x256xf32>
    tpu.vector_store %arg8[%c0_6, %c0_7], %7 {strides = array<i32>} : memref<16x256xf32, #tpu.memory_space<vmem>>, vector<16x256xf32>,
    %c8_i32 = arith.constant 8 : i32
    %9 = arith.cmpi eq, %arg2, %c8_i32 : i32
    %10 = arith.extui %9 : i1 to i32
    %c0_i32_8 = arith.constant 0 : i32
    %11 = arith.cmpi ne, %10, %c0_i32_8 : i32
    scf.if %11 {
      %c0_9 = arith.constant 0 : index
      %c0_10 = arith.constant 0 : index
      %12 = vector.load %arg8[%c0_9, %c0_10] : memref<16x256xf32, #tpu.memory_space<vmem>>, vector<16x256xf32>
      %c0_11 = arith.constant 0 : index
      %c0_12 = arith.constant 0 : index
      %13 = vector.load %arg5[%c0_11, %c0_12] : memref<1x256xf32, #tpu.memory_space<vmem>>, vector<1x256xf32>
      %14 = vector.broadcast %13 : vector<1x256xf32> to vector<16x256xf32>
      %15 = arith.mulf %12, %14 : vector<16x256xf32>
      %c0_13 = arith.constant 0 : index
      %c0_14 = arith.constant 0 : index
      %16 = vector.load %arg6[%c0_13, %c0_14] : memref<1x256xf32, #tpu.memory_space<vmem>>, vector<1x256xf32>
      %17 = vector.broadcast %16 : vector<1x256xf32> to vector<16x256xf32>
      %18 = arith.addf %15, %17 : vector<16x256xf32>
      %cst_15 = arith.constant 0.000000e+00 : f32
      %19 = vector.broadcast %cst_15 : f32 to vector<16x256xf32>
      %20 = arith.cmpf oge, %18, %19 : vector<16x256xf32>
      %cst_16 = arith.constant 0.00999999977 : f32
      %21 = vector.broadcast %cst_16 : f32 to vector<16x256xf32>
      %22 = arith.mulf %21, %18 : vector<16x256xf32>
      %23 = arith.select %20, %18, %22 : vector<16x256xi1>, vector<16x256xf32>
      %24 = arith.truncf %23 : vector<16x256xf32> to vector<16x256xbf16>
      %c0_17 = arith.constant 0 : index
      %c0_18 = arith.constant 0 : index
      %25 = vector.load %arg7[%c0_17, %c0_18] : memref<16x256xbf16, #tpu.memory_space<vmem>>, vector<16x256xbf16>
      tpu.vector_store %arg7[%c0_17, %c0_18], %24 {strides = array<i32>} : memref<16x256xbf16, #tpu.memory_space<vmem>>, vector<16x256xbf16>,
    } else {
    }
    return
  }
  func.func @transform_0(%arg0: i32, %arg1: i32, %arg2: i32) -> (i32, i32) {
    %c0_i32 = arith.constant 0 : i32
    return %arg0, %arg2 : i32, i32
  }
  func.func @transform_1(%arg0: i32, %arg1: i32, %arg2: i32) -> (i32, i32) {
    %c0_i32 = arith.constant 0 : i32
    return %arg2, %arg1 : i32, i32
  }
  func.func @transform_2(%arg0: i32, %arg1: i32, %arg2: i32) -> (i32, i32) {
    %c0_i32 = arith.constant 0 : i32
    %c0_i32_0 = arith.constant 0 : i32
    return %c0_i32, %arg1 : i32, i32
  }
  func.func @transform_3(%arg0: i32, %arg1: i32, %arg2: i32) -> (i32, i32) {
    %c0_i32 = arith.constant 0 : i32
    %c0_i32_0 = arith.constant 0 : i32
    return %c0_i32, %arg1 : i32, i32
  }
  func.func @transform_4(%arg0: i32, %arg1: i32, %arg2: i32) -> (i32, i32) {
    %c0_i32 = arith.constant 0 : i32
    return %arg0, %arg1 : i32, i32
  }
}

</mosaic_0001>

<bundles_post_ra>
// kernel: resnet_forward.20
= control target key start
LH: loop header
LB: loop body
LE: loop exit
PB: predicated region body
PF: predicated region fallthrough
CT: control target
= control target key end

     0   :  { %s1024_s1 = inlined_call_operand.vmem [shape: bf16[256,128], index: 1, kind: input, shape index: {}]   ;;  %s1025_s0 = inlined_call_operand.vmem [shape: bf16[128,256], index: 0, kind: input, shape index: {}]   ;;  %s1026_s2 = inlined_call_operand.vmem [shape: f32[1,128], index: 2, kind: input, shape index: {}]   ;;  %s1027_s3 = inlined_call_operand.vmem [shape: f32[1,128], index: 3, kind: input, shape index: {}]   ;;  %s1028_s4 = inlined_call_operand.vmem [shape: bf16[128,128], index: 4, kind: output, shape index: {}]  }
   0x1   :  { %v797_v0 = vld [vmem:[%s1024_s1 + $0x40] sm:$0xff]   ;;  %v799_v2 = vld [vmem:[%s1024_s1 + $0x48] sm:$0xff]   ;;  %v801_v4 = vld [vmem:[%s1024_s1 + $0x50] sm:$0xff]  }
   0x2   :  { %v798_v1 = vld [vmem:[%s1024_s1] sm:$0xff]   ;;  %717 = vmatprep.subr.bf16.mxu0 %v797_v0  ;;  %781 = vmatprep.subr.bf16.mxu1 %v797_v0  ;;  %v800_v3 = vld [vmem:[%s1024_s1 + $0x8] sm:$0xff]   ;;  %v802_v5 = vld [vmem:[%s1024_s1 + $0x10] sm:$0xff]  }
   0x3   :  { %718 = vmatpush3.bf16.msra.mxu0 %v798_v1  ;;  %789 = vmatpush3.bf16.msra.mxu1 %v798_v1  ;;  %v803_v6 = vld [vmem:[%s1024_s1 + $0x58] sm:$0xff]   ;;  %v805_v8 = vld [vmem:[%s1024_s1 + $0x60] sm:$0xff]   ;;  %v807_v10 = vld [vmem:[%s1024_s1 + $0x68] sm:$0xff]  }
   0x4   :  { %719 = vmatprep.subr.bf16.mxu0 %v799_v2  ;;  %782 = vmatprep.subr.bf16.mxu1 %v799_v2  ;;  %v804_v7 = vld [vmem:[%s1024_s1 + $0x18] sm:$0xff]   ;;  %v806_v9 = vld [vmem:[%s1024_s1 + $0x20] sm:$0xff]   ;;  %v808_v13 = vld [vmem:[%s1024_s1 + $0x28] sm:$0xff]  }
   0x5   :  { %v815_v11 = vld [vmem:[%s1025_s0 + $0x4] ss:$8 sps:$4 sm:$0xff]   ;;  %v809_v14 = vld [vmem:[%s1024_s1 + $0x70] sm:$0xff]   ;;  %v811_v16 = vld [vmem:[%s1024_s1 + $0x78] sm:$0xff]  }
   0x6   :  { %v818_v12 = vld [vmem:[%s1025_s0 + $0x44] ss:$8 sps:$4 sm:$0xff]   ;;  %310 = vmatprep.mubr.bf16.mxu0 %v815_v11  ;;  %v810_v15 = vld [vmem:[%s1024_s1 + $0x30] sm:$0xff]   ;;  %v812_v17 = vld [vmem:[%s1024_s1 + $0x38] sm:$0xff]  }
   0x7   :  { %720 = vmatpush3.bf16.msra.mxu0 %v800_v3  ;;  %790 = vmatpush3.bf16.msra.mxu1 %v800_v3  ;;  %v813_v18 = vld [vmem:[%s1025_s0] ss:$8 sps:$4 sm:$0xff]   ;;  %v819_v20 = vld [vmem:[%s1025_s0 + $0x14] ss:$8 sps:$4 sm:$0xff]   ;;  %v823_v22 = vld [vmem:[%s1025_s0 + $0x10] ss:$8 sps:$4 sm:$0xff]  }
   0x8   :  { %721 = vmatprep.subr.bf16.mxu0 %v801_v4  ;;  %783 = vmatprep.subr.bf16.mxu1 %v801_v4  ;;  %v816_v19 = vld [vmem:[%s1025_s0 + $0x40] ss:$8 sps:$4 sm:$0xff]   ;;  %v821_v21 = vld [vmem:[%s1025_s0 + $0x54] ss:$8 sps:$4 sm:$0xff]   ;;  %v824_v23 = vld [vmem:[%s1025_s0 + $0x50] ss:$8 sps:$4 sm:$0xff]  }
   0x9   :  { %342 = vmatprep.mubr.bf16.mxu1 %v818_v12  ;;  %v825_v24 = vld [vmem:[%s1025_s0 + $0x24] ss:$8 sps:$4 sm:$0xff]   ;;  %v829_v26 = vld [vmem:[%s1025_s0 + $0x20] ss:$8 sps:$4 sm:$0xff]   ;;  %v831_v28 = vld [vmem:[%s1025_s0 + $0x34] ss:$8 sps:$4 sm:$0xff]  }
   0xa   :  { %v827_v25 = vld [vmem:[%s1025_s0 + $0x64] ss:$8 sps:$4 sm:$0xff]   ;;  %v830_v27 = vld [vmem:[%s1025_s0 + $0x60] ss:$8 sps:$4 sm:$0xff]   ;;  %v833_v29 = vld [vmem:[%s1025_s0 + $0x74] ss:$8 sps:$4 sm:$0xff]  }
   0xb   :  { %722 = vmatpush3.bf16.msra.mxu0 %v802_v5  ;;  %791 = vmatpush3.bf16.msra.mxu1 %v802_v5  ;;  %v835_v30 = vld [vmem:[%s1025_s0 + $0x30] ss:$8 sps:$4 sm:$0xff]   ;;  %v961_v35 = vld [vmem:[%s1026_s2] ss:$0 sm:$0xff] }
   0xc   :  { %723 = vmatprep.subr.bf16.mxu0 %v803_v6  ;;  %784 = vmatprep.subr.bf16.mxu1 %v803_v6  ;;  %v836_v31 = vld [vmem:[%s1025_s0 + $0x70] ss:$8 sps:$4 sm:$0xff]   ;;  %v966_v41 = vld [vmem:[%s1027_s3] ss:$0 sm:$0xff] }
   0xf   :  { %724 = vmatpush3.bf16.msra.mxu0 %v804_v7  ;;  %792 = vmatpush3.bf16.msra.mxu1 %v804_v7 }
  0x10   :  { %725 = vmatprep.subr.bf16.mxu0 %v805_v8  ;;  %785 = vmatprep.subr.bf16.mxu1 %v805_v8 }
  0x13   :  { %726 = vmatpush3.bf16.msra.mxu0 %v806_v9  ;;  %793 = vmatpush3.bf16.msra.mxu1 %v806_v9 }
  0x14   :  { %727 = vmatprep.subr.bf16.mxu0 %v807_v10  ;;  %786 = vmatprep.subr.bf16.mxu1 %v807_v10 }
  0x17   :  { %728 = vmatpush3.bf16.msra.mxu0 %v808_v13  ;;  %794 = vmatpush3.bf16.msra.mxu1 %v808_v13 }
  0x18   :  { %729 = vmatprep.subr.bf16.mxu0 %v809_v14  ;;  %787 = vmatprep.subr.bf16.mxu1 %v809_v14 }
  0x1b   :  { %730 = vmatpush3.bf16.msra.mxu0 %v810_v15  ;;  %795 = vmatpush3.bf16.msra.mxu1 %v810_v15 }
  0x1c   :  { %731 = vmatprep.subr.bf16.mxu0 %v811_v16  ;;  %788 = vmatprep.subr.bf16.mxu1 %v811_v16 }
  0x1f   :  { %732 = vmatpush3.bf16.msra.mxu0 %v812_v17  ;;  %796 = vmatpush3.bf16.msra.mxu1 %v812_v17 }
  0x22   :  { %311 = vmatmul.mubr.bf16.vlgmr.msra.gmra.mrb[0].mxu0 %v813_v18  ;;  %343 = vmatmul.mubr.bf16.vlgmr.msra.gmra.mrb[0].mxu1 %v816_v19 }
  0x23   :  { %318 = vmatprep.mubr.bf16.mxu0 %v819_v20  ;;  %350 = vmatprep.mubr.bf16.mxu1 %v821_v21 }
  0x2a   :  { %319 = vmatmul.mubr.bf16.gmra.mrb[4].mxu0 %v823_v22  ;;  %351 = vmatmul.mubr.bf16.gmra.mrb[4].mxu1 %v824_v23 }
  0x2b   :  { %326 = vmatprep.mubr.bf16.mxu0 %v825_v24  ;;  %358 = vmatprep.mubr.bf16.mxu1 %v827_v25 }
  0x32   :  { %327 = vmatmul.mubr.bf16.gmra.mrb[8].mxu0 %v829_v26  ;;  %359 = vmatmul.mubr.bf16.gmra.mrb[8].mxu1 %v830_v27 }
  0x33   :  { %334 = vmatprep.mubr.bf16.mxu0 %v831_v28  ;;  %366 = vmatprep.mubr.bf16.mxu1 %v833_v29 }
  0x3a   :  { %335 = vmatmul.mubr.bf16.gmra.mrb[12].mxu0 %v835_v30  ;;  %367 = vmatmul.mubr.bf16.gmra.mrb[12].mxu1 %v836_v31 }
  0xf5   :  { %v733_v32 = vpop.f32.mrb[0].mxu0  ;;  %v757_v33 = vpop.f32.mrb[0].mxu1 }
  0xf6   :  { %v734_v34 = vpop.f32.mrb[1].mxu0  ;;  %v758_v36 = vpop.f32.mrb[1].mxu1 }
  0xf7   :  { %v735_v37 = vadd.f32 %v734_v34, %v733_v32  ;;  %v759_v38 = vadd.f32 %v758_v36, %v757_v33  ;;  %v736_v39 = vpop.f32.mrb[2].mxu0  ;;  %v760_v40 = vpop.f32.mrb[2].mxu1 }
  0xf8   :  { %v737_v42 = vpop.f32.mrb[3].mxu0  ;;  %v761_v43 = vpop.f32.mrb[3].mxu1 }
  0xf9   :  { %v433_v44 = vmul.f32 %v735_v37, %v961_v35  ;;  %v441_v45 = vmul.f32 %v759_v38, %v961_v35  ;;  %v738_v46 = vadd.f32 %v737_v42, %v736_v39  ;;  %v762_v47 = vadd.f32 %v761_v43, %v760_v40 }
  0xfb   :  { %v456_v48 = vadd.f32 %v966_v41, %v433_v44  ;;  %v464_v49 = vadd.f32 %v966_v41, %v441_v45  ;;  %v434_v50 = vmul.f32 %v738_v46, %v961_v35  ;;  %v442_v51 = vmul.f32 %v762_v47, %v961_v35 }
  0xfd   :  { %v488_v52 = vmul.f32 0.01, %v456_v48  ;;  %v496_v53 = vmul.f32 0.01, %v464_v49  ;;  %v457_v54 = vadd.f32 %v966_v41, %v434_v50  ;;  %v465_v55 = vadd.f32 %v966_v41, %v442_v51  ;;  %v739_v56 = vpop.f32.mrb[4].mxu0  ;;  %v763_v57 = vpop.f32.mrb[4].mxu1 }
  0xfe   :  { %vm472_vm0 = vcmp.ge.f32.partialorder %v456_v48, 0.0  ;;  %vm480_vm1 = vcmp.ge.f32.partialorder %v464_v49, 0.0  ;;  %v740_v58 = vpop.f32.mrb[5].mxu0  ;;  %v764_v59 = vpop.f32.mrb[5].mxu1 }
  0xff   :  { %vm473_vm2 = vcmp.ge.f32.partialorder %v457_v54, 0.0  ;;  %v489_v60 = vmul.f32 0.01, %v457_v54  ;;  %vm481_vm3 = vcmp.ge.f32.partialorder %v465_v55, 0.0  ;;  %v497_v61 = vmul.f32 0.01, %v465_v55 }
 0x100   :  { %v741_v62 = vadd.f32 %v740_v58, %v739_v56  ;;  %v765_v63 = vadd.f32 %v764_v59, %v763_v57  ;;  %v742_v0 = vpop.f32.mrb[6].mxu0  ;;  %v766_v1 = vpop.f32.mrb[6].mxu1  ;;  %v504_v2 = vsel %vm472_vm0, %v456_v48, %v488_v52  ;;  %v512_v3 = vsel %vm480_vm1, %v464_v49, %v496_v53 }
 0x101   :  { %v505_v4 = vsel %vm473_vm2, %v457_v54, %v489_v60  ;;  %v513_v5 = vsel %vm481_vm3, %v465_v55, %v497_v61  ;;  %v743_v6 = vpop.f32.mrb[7].mxu0  ;;  %v767_v7 = vpop.f32.mrb[7].mxu1 }
 0x102   :  { %v673_v8 = vpack.c.bf16 %v505_v4, %v504_v2  ;;  %v693_v9 = vpack.c.bf16 %v513_v5, %v512_v3  ;;  %v435_v10 = vmul.f32 %v741_v62, %v961_v35  ;;  %v443_v11 = vmul.f32 %v765_v63, %v961_v35 }
 0x103   :  { %v744_v12 = vadd.f32 %v743_v6, %v742_v0  ;;  %v768_v13 = vadd.f32 %v767_v7, %v766_v1 }
 0x104   :  { %674 = vst [vmem:[%s1028_s4] sm:$0xff] %v673_v8   ;;  %713 = vst [vmem:[%s1028_s4 + $0x20] sm:$0xff] %v693_v9   ;;  %v458_v14 = vadd.f32 %v966_v41, %v435_v10  ;;  %v466_v15 = vadd.f32 %v966_v41, %v443_v11 }
 0x105   :  { %v745_v16 = vpop.f32.mrb[8].mxu0  ;;  %v769_v17 = vpop.f32.mrb[8].mxu1  ;;  %v436_v18 = vmul.f32 %v744_v12, %v961_v35  ;;  %v444_v19 = vmul.f32 %v768_v13, %v961_v35 }
 0x106   :  { %v746_v20 = vpop.f32.mrb[9].mxu0  ;;  %v770_v21 = vpop.f32.mrb[9].mxu1  ;;  %v490_v22 = vmul.f32 0.01, %v458_v14  ;;  %v498_v23 = vmul.f32 0.01, %v466_v15 }
 0x107   :  { %v459_v24 = vadd.f32 %v966_v41, %v436_v18  ;;  %v467_v25 = vadd.f32 %v966_v41, %v444_v19  ;;  %v747_v26 = vadd.f32 %v746_v20, %v745_v16  ;;  %v771_v27 = vadd.f32 %v770_v21, %v769_v17  ;;  %v748_v28 = vpop.f32.mrb[10].mxu0  ;;  %v772_v29 = vpop.f32.mrb[10].mxu1 }
 0x108   :  { %vm474_vm4 = vcmp.ge.f32.partialorder %v458_v14, 0.0  ;;  %vm482_vm5 = vcmp.ge.f32.partialorder %v466_v15, 0.0  ;;  %v749_v30 = vpop.f32.mrb[11].mxu0  ;;  %v773_v31 = vpop.f32.mrb[11].mxu1 }
 0x109   :  { %vm475_vm6 = vcmp.ge.f32.partialorder %v459_v24, 0.0  ;;  %v491_v32 = vmul.f32 0.01, %v459_v24  ;;  %vm483_vm7 = vcmp.ge.f32.partialorder %v467_v25, 0.0  ;;  %v499_v33 = vmul.f32 0.01, %v467_v25 }
 0x10a   :  { %v437_v34 = vmul.f32 %v747_v26, %v961_v35  ;;  %v445_v36 = vmul.f32 %v771_v27, %v961_v35  ;;  %v750_v37 = vadd.f32 %v749_v30, %v748_v28  ;;  %v774_v38 = vadd.f32 %v773_v31, %v772_v29 }
 0x10b   :  { %v506_v39 = vsel %vm474_vm4, %v458_v14, %v490_v22  ;;  %v514_v40 = vsel %vm482_vm5, %v466_v15, %v498_v23  ;;  %v507_v42 = vsel %vm475_vm6, %v459_v24, %v491_v32  ;;  %v515_v43 = vsel %vm483_vm7, %v467_v25, %v499_v33 }
 0x10c   :  { %v678_v44 = vpack.c.bf16 %v507_v42, %v506_v39  ;;  %v698_v45 = vpack.c.bf16 %v515_v43, %v514_v40  ;;  %v460_v46 = vadd.f32 %v966_v41, %v437_v34  ;;  %v468_v47 = vadd.f32 %v966_v41, %v445_v36 }
 0x10d   :  { %v751_v48 = vpop.f32.mrb[12].mxu0  ;;  %v775_v49 = vpop.f32.mrb[12].mxu1  ;;  %v438_v50 = vmul.f32 %v750_v37, %v961_v35  ;;  %v446_v51 = vmul.f32 %v774_v38, %v961_v35 }
 0x10e   :  { %v752_v52 = vpop.f32.mrb[13].mxu0  ;;  %v776_v53 = vpop.f32.mrb[13].mxu1  ;;  %710 = vst [vmem:[%s1028_s4 + $0x8] sm:$0xff] %v678_v44   ;;  %714 = vst [vmem:[%s1028_s4 + $0x28] sm:$0xff] %v698_v45   ;;  %v492_v54 = vmul.f32 0.01, %v460_v46 }
 0x10f   :  { %v500_v55 = vmul.f32 0.01, %v468_v47  ;;  %v461_v56 = vadd.f32 %v966_v41, %v438_v50  ;;  %v469_v57 = vadd.f32 %v966_v41, %v446_v51  ;;  %v753_v58 = vadd.f32 %v752_v52, %v751_v48  ;;  %v754_v60 = vpop.f32.mrb[14].mxu0  ;;  %v778_v61 = vpop.f32.mrb[14].mxu1 }
 0x110   :  { %v777_v59 = vadd.f32 %v776_v53, %v775_v49  ;;  %vm476_vm8 = vcmp.ge.f32.partialorder %v460_v46, 0.0  ;;  %vm484_vm9 = vcmp.ge.f32.partialorder %v468_v47, 0.0  ;;  %v755_v62 = vpop.f32.mrb[15].mxu0  ;;  %v779_v63 = vpop.f32.mrb[15].mxu1 }
 0x111   :  { %vm477_vm10 = vcmp.ge.f32.partialorder %v461_v56, 0.0  ;;  %v493_v0 = vmul.f32 0.01, %v461_v56  ;;  %vm485_vm11 = vcmp.ge.f32.partialorder %v469_v57, 0.0  ;;  %v501_v1 = vmul.f32 0.01, %v469_v57 }
 0x112   :  { %v439_v2 = vmul.f32 %v753_v58, %v961_v35  ;;  %v447_v3 = vmul.f32 %v777_v59, %v961_v35  ;;  %v756_v4 = vadd.f32 %v755_v62, %v754_v60  ;;  %v780_v5 = vadd.f32 %v779_v63, %v778_v61 }
 0x113   :  { %v508_v6 = vsel %vm476_vm8, %v460_v46, %v492_v54  ;;  %v516_v7 = vsel %vm484_vm9, %v468_v47, %v500_v55  ;;  %v509_v8 = vsel %vm477_vm10, %v461_v56, %v493_v0  ;;  %v517_v9 = vsel %vm485_vm11, %v469_v57, %v501_v1 }
 0x114   :  { %v683_v10 = vpack.c.bf16 %v509_v8, %v508_v6  ;;  %v703_v11 = vpack.c.bf16 %v517_v9, %v516_v7  ;;  %v462_v12 = vadd.f32 %v966_v41, %v439_v2  ;;  %v470_v13 = vadd.f32 %v966_v41, %v447_v3 }
 0x115   :  { %v440_v14 = vmul.f32 %v756_v4, %v961_v35  ;;  %v448_v15 = vmul.f32 %v780_v5, %v961_v35 }
 0x116   :  { %711 = vst [vmem:[%s1028_s4 + $0x10] sm:$0xff] %v683_v10   ;;  %715 = vst [vmem:[%s1028_s4 + $0x30] sm:$0xff] %v703_v11   ;;  %v494_v16 = vmul.f32 0.01, %v462_v12  ;;  %v502_v17 = vmul.f32 0.01, %v470_v13 }
 0x117   :  { %v463_v18 = vadd.f32 %v966_v41, %v440_v14  ;;  %v471_v19 = vadd.f32 %v966_v41, %v448_v15  ;;  %vm478_vm12 = vcmp.ge.f32.partialorder %v462_v12, 0.0  ;;  %vm486_vm13 = vcmp.ge.f32.partialorder %v470_v13, 0.0 }
 0x118   :  { %v510_v21 = vsel %vm478_vm12, %v462_v12, %v494_v16  ;;  %v518_v22 = vsel %vm486_vm13, %v470_v13, %v502_v17 }
 0x119   :  { %vm479_vm14 = vcmp.ge.f32.partialorder %v463_v18, 0.0  ;;  %v495_v20 = vmul.f32 0.01, %v463_v18  ;;  %vm487_vm15 = vcmp.ge.f32.partialorder %v471_v19, 0.0  ;;  %v503_v35 = vmul.f32 0.01, %v471_v19 }
 0x11b   :  { %v511_v23 = vsel %vm479_vm14, %v463_v18, %v495_v20  ;;  %v519_v24 = vsel %vm487_vm15, %v471_v19, %v503_v35 }
 0x11c   :  { %v688_v25 = vpack.c.bf16 %v511_v23, %v510_v21  ;;  %v708_v26 = vpack.c.bf16 %v519_v24, %v518_v22 }
 0x11e   :  { %712 = vst [vmem:[%s1028_s4 + $0x18] sm:$0xff] %v688_v25   ;;  %716 = vst [vmem:[%s1028_s4 + $0x38] sm:$0xff] %v708_v26  }

// kernel: resnet_forward.21
= control target key start
LH: loop header
LB: loop body
LE: loop exit
PB: predicated region body
PF: predicated region fallthrough
CT: control target
= control target key end

     0   :  { %s875_s15 = smov 0   ;;  %s877_s16 = smov 0   ;;  %s971_s0 = inlined_call_operand.vmem [shape: bf16[32,640], index: 0, kind: input, shape index: {}]   ;;  %s972_s1 = inlined_call_operand.vmem [shape: bf16[640,128], index: 1, kind: input, shape index: {}]   ;;  %s973_s2 = inlined_call_operand.vmem [shape: f32[1,128], index: 2, kind: input, shape index: {}]   ;;  %s974_s3 = inlined_call_operand.vmem [shape: f32[1,128], index: 3, kind: input, shape index: {}]   ;;  %s975_s4 = inlined_call_operand.vmem [shape: bf16[32,128], index: 4, kind: output, shape index: {}]  }
   0x1   :  { %s879_s17 = smov 0   ;;  %s881_s18 = smov 0  }
   0x2   :  { %s883_s19 = smov 0  }
   0x3 LB: > { %s26_s20 = sadd.s32 1, %s843_s18  ;;  %p49_p1 = scmp.ne.s32.totalorder %s835_s16, %s831_s15  ;;  %s847_s19 = sphi %s883_s19, %s14_s19   ;;  %s843_s18 = sphi %s881_s18, %s979_s18   ;;  %s839_s17 = sphi %s879_s17, %s978_s17   ;;  %s835_s16 = sphi %s877_s16, %s977_s16   ;;  %s831_s15 = sphi %s875_s15, %s976_s15  }
   0x4   : > { %p27_p0 = scmp.ge.s32.totalorder %s26_s20, 5  ;;  %p50_p2 = scmp.eq.s32.totalorder %s847_s19, 0 }
   0x5   : > { %s42_s22 = sadd.s32 1, %s835_s16  ;;  %p684_p5 = scmp.ge.s32.totalorder %s847_s19, 5 }
   0x6   : > { %s981_s20 = smov (%p27_p0, %s26_s20), 0  ;;  %p51_p3 = por %p50_p2, %p49_p1 }
   0x7   : > { %s38_s21 = ssub.s32 %s843_s18, %s981_s20  ;;  %195 = sbr.rel (%p684_p5) target bundleno = 21 (0x15), region = 24 }
   0x8   : > { %p40_p4 = scmp.eq.s32.totalorder %s38_s21, 0 }
   0xa   : > { %s910_s23 = scalar_select %p40_p4, %s835_s16, %s42_s22  }
   0xe   : > { %198 = sbr.rel (!%p51_p3) target bundleno = 21 (0x15), region = 28  ;;  %s200_s24 = sand.u32 (%p51_p3), 1, %s835_s16  }
   0xf   : > { %s686_s25 = sshll.u32 (%p51_p3), %s843_s18, 2  ;;  %s685_s26 = sshll.u32 (%p51_p3), %s200_s24, 4 }
  0x10   : > { %s207_s29 = scalar_lea.vmem (%p51_p3), %s971_s0, %s686_s25  ;;  %s202_s30 = scalar_lea.vmem (%p51_p3), [#allocation3], %s685_s26 }
  0x11   : > { %v223_v0 = vld [vmem:[%s207_s29] sm:$0xf] (%p51_p3)  ;;  %v225_v1 = vld [vmem:[%s207_s29 + $0x14] sm:$0xf] (%p51_p3)  ;;  %v227_v2 = vld [vmem:[%s207_s29 + $0x28] sm:$0xf] (%p51_p3) }
  0x12   : > { %224 = vst [vmem:[%s202_s30] sm:$0xf] (%p51_p3), %v223_v0  ;;  %226 = vst [vmem:[%s202_s30 + $0x4] sm:$0xf] (%p51_p3), %v225_v1  ;;  %v229_v3 = vld [vmem:[%s207_s29 + $0x3c] sm:$0xf] (%p51_p3) }
  0x13   : > { %228 = vst [vmem:[%s202_s30 + $0x8] sm:$0xf] (%p51_p3), %v227_v2  ;;  %230 = vst [vmem:[%s202_s30 + $0xc] sm:$0xf] (%p51_p3), %v229_v3 }
  0x15 PF: > { %p687_p6 = scmp.ge.s32.totalorder %s847_s19, 1  ;;  %p272_p7 = scmp.lt.s32.totalorder %s847_s19, 6 }
  0x17   : > { %p273_p8 = pnand %p687_p6, %p272_p7 }
  0x18   : > { %s279_s5 = sand.u32 (!%p273_p8), 1, %s831_s15   ;;  %s689_s6 = sshll.u32 (!%p273_p8), %s839_s17, 4 }
  0x19   : > { %276 = sbr.rel (%p273_p8) target bundleno = 307 (0x133), region = 73  ;;  %s922_s7 = sshll.u32 (!%p273_p8), %s279_s5, 4 }
  0x1a   : > { %p323_p9 = scmp.lt.s32.totalorder (!%p273_p8), %s689_s6, 79  ;;  %s281_s12 = scalar_lea.vmem (!%p273_p8), [#allocation3], %s922_s7 }
  0x1b   : > { %p691_p10 = scmp.ne.s32.totalorder (!%p273_p8), %s839_s17, 0 }
  0x20   : > { %s983_s6 = smov (!%p323_p9, %s689_s6), 79  ;;  %350 = sbr.rel (%p691_p10) target bundleno = 39 (0x27), region = 81 }
  0x21   : > { %s690_s8 = sshll.u32 %s983_s6, 2  ;;  %v849_v4 = vmov (!%p691_p10), 0.0  }
  0x22   : > { %s927_s11 = scalar_lea.vmem %s972_s1, %s690_s8  ;;  %351 = vst [vmem:[#allocation2] sm:$0xff] (!%p691_p10), %v849_v4  ;;  %352 = vst [vmem:[#allocation2 + $0x8] sm:$0xff] (!%p691_p10), %v849_v4 }
  0x23   : > { %353 = vst [vmem:[#allocation2 + $0x10] sm:$0xff] (!%p691_p10), %v849_v4  ;;  %354 = vst [vmem:[#allocation2 + $0x18] sm:$0xff] (!%p691_p10), %v849_v4 }
  0x27 PF: > { %v799_v5 = vld [vmem:[%s927_s11] sm:$0xff]   ;;  %v800_v6 = vld [vmem:[%s927_s11 + $0x8] sm:$0xff]   ;;  %v801_v7 = vld [vmem:[%s927_s11 + $0x10] sm:$0xff]   ;;  %p702_p11 = scmp.ne.s32.totalorder %s839_s17, 4 }
  0x28   : > { %738 = vmatprep.subr.bf16.mxu0 %v799_v5  ;;  %v802_v8 = vld [vmem:[%s927_s11 + $0x18] sm:$0xff]   ;;  %v807_v9 = vld [vmem:[%s281_s12] sm:$0xff]   ;;  %v804_v11 = vld [vmem:[%s927_s11 + $0x28] sm:$0xff]  }
  0x29   : > { %739 = vmatpush3.bf16.msra.mxu0 %v799_v5  ;;  %754 = vmatprep.mubr.bf16.mxu0 %v807_v9  ;;  %v803_v10 = vld [vmem:[%s927_s11 + $0x20] sm:$0xff]   ;;  %v805_v12 = vld [vmem:[%s927_s11 + $0x30] sm:$0xff]   ;;  %v806_v13 = vld [vmem:[%s927_s11 + $0x38] sm:$0xff]  }
  0x2a   : > { %740 = vmatprep.subr.bf16.mxu0 %v800_v6  ;;  %v808_v14 = vld [vmem:[%s281_s12 + $0x8] sm:$0xff]   ;;  %v357_v15 = vld [vmem:[#allocation2 + $0x10] sm:$0xff]  ;;  %v355_v16 = vld [vmem:[#allocation2] sm:$0xff] }
  0x2b   : > { %v358_v18 = vld [vmem:[#allocation2 + $0x18] sm:$0xff]  ;;  %v356_v21 = vld [vmem:[#allocation2 + $0x8] sm:$0xff]  ;;  %v703_v29 = vld [vmem:[%s973_s2] ss:$0 sm:$0xff] (!%p702_p11) }
  0x2c   : > { %v704_v32 = vld [vmem:[%s974_s3] ss:$0 sm:$0xff] (!%p702_p11) }
  0x2d   : > { %741 = vmatpush3.bf16.msra.mxu0 %v800_v6 }
  0x2e   : > { %742 = vmatprep.subr.bf16.mxu0 %v801_v7 }
  0x31   : > { %743 = vmatpush3.bf16.msra.mxu0 %v801_v7 }
  0x32   : > { %744 = vmatprep.subr.bf16.mxu0 %v802_v8 }
  0x35   : > { %745 = vmatpush3.bf16.msra.mxu0 %v802_v8 }
  0x36   : > { %746 = vmatprep.subr.bf16.mxu0 %v803_v10 }
  0x39   : > { %747 = vmatpush3.bf16.msra.mxu0 %v803_v10 }
  0x3a   : > { %748 = vmatprep.subr.bf16.mxu0 %v804_v11 }
  0x3d   : > { %749 = vmatpush3.bf16.msra.mxu0 %v804_v11 }
  0x3e   : > { %750 = vmatprep.subr.bf16.mxu0 %v805_v12 }
  0x41   : > { %751 = vmatpush3.bf16.msra.mxu0 %v805_v12 }
  0x42   : > { %752 = vmatprep.subr.bf16.mxu0 %v806_v13 }
  0x45   : > { %753 = vmatpush3.bf16.msra.mxu0 %v806_v13 }
  0x48   : > { %755 = vmatmul.mubr.bf16.vlgmr.msra.gmra.mrb[0].mxu0 %v808_v14 }
 0x11b   : > { %v756_v17 = vpop.f32.mrb[0].mxu0  ;;  %499 = sbr.rel (%p702_p11) target bundleno = 307 (0x133), region = 85 }
 0x11c   : > { %v490_v19 = vadd.f32 %v756_v17, %v357_v15  ;;  %v473_v20 = vpop.f32.mrb[1].mxu0 }
 0x11d   : > { %v488_v22 = vadd.f32 %v473_v20, %v355_v16  ;;  %v757_v23 = vpop.f32.mrb[2].mxu0 }
 0x11e   : > { %494 = vst [vmem:[#allocation2 + $0x10] sm:$0xff] %v490_v19  ;;  %v491_v24 = vadd.f32 %v757_v23, %v358_v18  ;;  %v476_v25 = vpop.f32.mrb[3].mxu0 }
 0x11f   : > { %492 = vst [vmem:[#allocation2] sm:$0xff] %v488_v22  ;;  %v489_v26 = vadd.f32 %v476_v25, %v356_v21 }
 0x120   : > { %495 = vst [vmem:[#allocation2 + $0x18] sm:$0xff] %v491_v24 }
 0x121   : > { %493 = vst [vmem:[#allocation2 + $0x8] sm:$0xff] %v489_v26 }
 0x125   : > { %v502_v33 = vld [vmem:[#allocation2 + $0x10] sm:$0xff] }
 0x126   : > { %v500_v27 = vld [vmem:[#allocation2] sm:$0xff]  ;;  %v513_v35 = vmul.f32 %v703_v29, %v502_v33 }
 0x127   : > { %v511_v30 = vmul.f32 %v703_v29, %v500_v27  ;;  %v503_v34 = vld [vmem:[#allocation2 + $0x18] sm:$0xff] }
 0x128   : > { %v501_v28 = vld [vmem:[#allocation2 + $0x8] sm:$0xff]  ;;  %v514_v36 = vmul.f32 %v703_v29, %v503_v34  ;;  %v524_v39 = vadd.f32 %v704_v32, %v513_v35 }
 0x129   : > { %v512_v31 = vmul.f32 %v703_v29, %v501_v28  ;;  %v522_v37 = vadd.f32 %v704_v32, %v511_v30 }
 0x12a   : > { %v525_v40 = vadd.f32 %v704_v32, %v514_v36  ;;  %vm528_vm2 = vcmp.ge.f32.partialorder %v524_v39, 0.0  ;;  %v532_v43 = vmul.f32 0.01, %v524_v39 }
 0x12b   : > { %v523_v38 = vadd.f32 %v704_v32, %v512_v31  ;;  %vm526_vm0 = vcmp.ge.f32.partialorder %v522_v37, 0.0  ;;  %v530_v41 = vmul.f32 0.01, %v522_v37 }
 0x12c   : > { %vm529_vm3 = vcmp.ge.f32.partialorder %v525_v40, 0.0  ;;  %v533_v44 = vmul.f32 0.01, %v525_v40  ;;  %v536_v48 = vsel %vm528_vm2, %v524_v39, %v532_v43 }
 0x12d   : > { %vm527_vm1 = vcmp.ge.f32.partialorder %v523_v38, 0.0  ;;  %v531_v42 = vmul.f32 0.01, %v523_v38  ;;  %v534_v45 = vsel %vm526_vm0, %v522_v37, %v530_v41 }
 0x12e   : > { %v537_v49 = vsel %vm529_vm3, %v525_v40, %v533_v44 }
 0x12f   : > { %v535_v46 = vsel %vm527_vm1, %v523_v38, %v531_v42  ;;  %v725_v50 = vpack.c.bf16 %v537_v49, %v536_v48 }
 0x130   : > { %v720_v47 = vpack.c.bf16 %v535_v46, %v534_v45 }
 0x131   : > { %727 = vst [vmem:[%s975_s4 + $0x8] sm:$0xff] %v725_v50  }
 0x132   : > { %721 = vst [vmem:[%s975_s4] sm:$0xff] %v720_v47  }
 0x133 PF: > { %s14_s19 = sadd.s32 1, %s847_s19   ;;  %s976_s15 = smov %s835_s16 }
 0x134   : > { %p11_p12 = scmp.ge.s32.totalorder %s14_s19, 7   ;;  %s977_s16 = smov %s910_s23 }
 0x135   : > { %s978_s17 = smov %s843_s18  ;;  %s979_s18 = smov %s981_s20 }
 0x136   :  { %13 = sbr.rel (!%p11_p12) target bundleno = 3 (0x3), region = 129 }

// kernel: resnet_forward.22
= control target key start
LH: loop header
LB: loop body
LE: loop exit
PB: predicated region body
PF: predicated region fallthrough
CT: control target
= control target key end

     0   :  { %s980_s18 = smov 0   ;;  %s982_s19 = smov 0   ;;  %s1082_s0 = inlined_call_operand.vmem [shape: bf16[32,640], index: 0, kind: input, shape index: {}]   ;;  %s1083_s1 = inlined_call_operand.vmem [shape: bf16[640,128], index: 1, kind: input, shape index: {}]   ;;  %s1084_s2 = inlined_call_operand.vmem [shape: f32[1,128], index: 2, kind: input, shape index: {}]   ;;  %s1085_s3 = inlined_call_operand.vmem [shape: f32[1,128], index: 3, kind: input, shape index: {}]   ;;  %s1086_s4 = inlined_call_operand.vmem [shape: bf16[32,128], index: 4, kind: input, shape index: {}]   ;;  %s1087_s5 = inlined_call_operand.vmem [shape: bf16[32,128], index: 5, kind: output, shape index: {}]  }
   0x1   :  { %s984_s20 = smov 0   ;;  %s986_s21 = smov 0  }
   0x2   :  { %s988_s22 = smov 0  }
   0x3 LB: > { %s27_s23 = sadd.s32 1, %s943_s21  ;;  %p50_p1 = scmp.ne.s32.totalorder %s935_s19, %s931_s18  ;;  %s947_s22 = sphi %s988_s22, %s15_s22   ;;  %s943_s21 = sphi %s986_s21, %s1091_s21   ;;  %s939_s20 = sphi %s984_s20, %s1090_s20   ;;  %s935_s19 = sphi %s982_s19, %s1089_s19   ;;  %s931_s18 = sphi %s980_s18, %s1088_s18  }
   0x4   : > { %p28_p0 = scmp.ge.s32.totalorder %s27_s23, 5  ;;  %p51_p2 = scmp.eq.s32.totalorder %s947_s22, 0 }
   0x5   : > { %s43_s25 = sadd.s32 1, %s935_s19  ;;  %p775_p5 = scmp.ge.s32.totalorder %s947_s22, 5 }
   0x6   : > { %s1093_s23 = smov (%p28_p0, %s27_s23), 0  ;;  %p52_p3 = por %p51_p2, %p50_p1 }
   0x7   : > { %s39_s24 = ssub.s32 %s943_s21, %s1093_s23  ;;  %236 = sbr.rel (%p775_p5) target bundleno = 21 (0x15), region = 28 }
   0x8   : > { %p41_p4 = scmp.eq.s32.totalorder %s39_s24, 0 }
   0xa   : > { %s1015_s26 = scalar_select %p41_p4, %s935_s19, %s43_s25  }
   0xe   : > { %239 = sbr.rel (!%p52_p3) target bundleno = 21 (0x15), region = 32  ;;  %s241_s27 = sand.u32 (%p52_p3), 1, %s935_s19  }
   0xf   : > { %s777_s28 = sshll.u32 (%p52_p3), %s943_s21, 2  ;;  %s776_s29 = sshll.u32 (%p52_p3), %s241_s27, 4 }
  0x10   : > { %s248_s7 = scalar_lea.vmem (%p52_p3), %s1082_s0, %s777_s28  ;;  %s243_s8 = scalar_lea.vmem (%p52_p3), [#allocation3], %s776_s29 }
  0x11   : > { %v264_v0 = vld [vmem:[%s248_s7] sm:$0xf] (%p52_p3)  ;;  %v266_v1 = vld [vmem:[%s248_s7 + $0x14] sm:$0xf] (%p52_p3)  ;;  %v268_v2 = vld [vmem:[%s248_s7 + $0x28] sm:$0xf] (%p52_p3) }
  0x12   : > { %265 = vst [vmem:[%s243_s8] sm:$0xf] (%p52_p3), %v264_v0  ;;  %267 = vst [vmem:[%s243_s8 + $0x4] sm:$0xf] (%p52_p3), %v266_v1  ;;  %v270_v3 = vld [vmem:[%s248_s7 + $0x3c] sm:$0xf] (%p52_p3) }
  0x13   : > { %269 = vst [vmem:[%s243_s8 + $0x8] sm:$0xf] (%p52_p3), %v268_v2  ;;  %271 = vst [vmem:[%s243_s8 + $0xc] sm:$0xf] (%p52_p3), %v270_v3 }
  0x15 PF: > { %p778_p6 = scmp.ge.s32.totalorder %s947_s22, 1  ;;  %p313_p7 = scmp.lt.s32.totalorder %s947_s22, 6 }
  0x17   : > { %p314_p8 = pnand %p778_p6, %p313_p7 }
  0x18   : > { %s320_s9 = sand.u32 (!%p314_p8), 1, %s931_s18   ;;  %s780_s10 = sshll.u32 (!%p314_p8), %s939_s20, 4 }
  0x19   : > { %317 = sbr.rel (%p314_p8) target bundleno = 309 (0x135), region = 77  ;;  %s1027_s11 = sshll.u32 (!%p314_p8), %s320_s9, 4 }
  0x1a   : > { %p374_p9 = scmp.lt.s32.totalorder (!%p314_p8), %s780_s10, 79  ;;  %s322_s16 = scalar_lea.vmem (!%p314_p8), [#allocation3], %s1027_s11 }
  0x1b   : > { %p782_p10 = scmp.ne.s32.totalorder (!%p314_p8), %s939_s20, 0 }
  0x20   : > { %s1095_s10 = smov (!%p374_p9, %s780_s10), 79  ;;  %410 = sbr.rel (%p782_p10) target bundleno = 39 (0x27), region = 85 }
  0x21   : > { %s781_s12 = sshll.u32 %s1095_s10, 2  ;;  %v949_v4 = vmov (!%p782_p10), 0.0  }
  0x22   : > { %s1032_s15 = scalar_lea.vmem %s1083_s1, %s781_s12  ;;  %411 = vst [vmem:[#allocation2] sm:$0xff] (!%p782_p10), %v949_v4  ;;  %412 = vst [vmem:[#allocation2 + $0x8] sm:$0xff] (!%p782_p10), %v949_v4 }
  0x23   : > { %413 = vst [vmem:[#allocation2 + $0x10] sm:$0xff] (!%p782_p10), %v949_v4  ;;  %414 = vst [vmem:[#allocation2 + $0x18] sm:$0xff] (!%p782_p10), %v949_v4 }
  0x27 PF: > { %v899_v5 = vld [vmem:[%s1032_s15] sm:$0xff]   ;;  %v900_v6 = vld [vmem:[%s1032_s15 + $0x8] sm:$0xff]   ;;  %v901_v7 = vld [vmem:[%s1032_s15 + $0x10] sm:$0xff]   ;;  %p793_p11 = scmp.ne.s32.totalorder %s939_s20, 4 }
  0x28   : > { %838 = vmatprep.subr.bf16.mxu0 %v899_v5  ;;  %v902_v8 = vld [vmem:[%s1032_s15 + $0x18] sm:$0xff]   ;;  %v907_v9 = vld [vmem:[%s322_s16] sm:$0xff]   ;;  %v904_v11 = vld [vmem:[%s1032_s15 + $0x28] sm:$0xff]  }
  0x29   : > { %839 = vmatpush3.bf16.msra.mxu0 %v899_v5  ;;  %854 = vmatprep.mubr.bf16.mxu0 %v907_v9  ;;  %v903_v10 = vld [vmem:[%s1032_s15 + $0x20] sm:$0xff]   ;;  %v905_v12 = vld [vmem:[%s1032_s15 + $0x30] sm:$0xff]   ;;  %v906_v13 = vld [vmem:[%s1032_s15 + $0x38] sm:$0xff]  }
  0x2a   : > { %840 = vmatprep.subr.bf16.mxu0 %v900_v6  ;;  %v908_v14 = vld [vmem:[%s322_s16 + $0x8] sm:$0xff]   ;;  %v417_v15 = vld [vmem:[#allocation2 + $0x10] sm:$0xff]  ;;  %v415_v16 = vld [vmem:[#allocation2] sm:$0xff] }
  0x2b   : > { %v418_v18 = vld [vmem:[#allocation2 + $0x18] sm:$0xff]  ;;  %v416_v21 = vld [vmem:[#allocation2 + $0x8] sm:$0xff]  ;;  %v794_v29 = vld [vmem:[%s1084_s2] ss:$0 sm:$0xff] (!%p793_p11) }
  0x2c   : > { %v795_v32 = vld [vmem:[%s1085_s3] ss:$0 sm:$0xff] (!%p793_p11)  ;;  %v826_v39 = vld [vmem:[%s1086_s4 + $0x8] sm:$0xff] (!%p793_p11)  }
  0x2d   : > { %841 = vmatpush3.bf16.msra.mxu0 %v900_v6  ;;  %v809_v33 = vld [vmem:[%s1086_s4] sm:$0xff] (!%p793_p11)   ;;  %v814_v43 = vunpack.c.l.bf16 (!%p793_p11), %v826_v39  ;;  %v815_v45 = vunpack.c.h.bf16 (!%p793_p11), %v826_v39 }
  0x2e   : > { %842 = vmatprep.subr.bf16.mxu0 %v901_v7  ;;  %v810_v35 = vunpack.c.l.bf16 (!%p793_p11), %v809_v33  ;;  %v811_v36 = vunpack.c.h.bf16 (!%p793_p11), %v809_v33 }
  0x31   : > { %843 = vmatpush3.bf16.msra.mxu0 %v901_v7 }
  0x32   : > { %844 = vmatprep.subr.bf16.mxu0 %v902_v8 }
  0x35   : > { %845 = vmatpush3.bf16.msra.mxu0 %v902_v8 }
  0x36   : > { %846 = vmatprep.subr.bf16.mxu0 %v903_v10 }
  0x39   : > { %847 = vmatpush3.bf16.msra.mxu0 %v903_v10 }
  0x3a   : > { %848 = vmatprep.subr.bf16.mxu0 %v904_v11 }
  0x3d   : > { %849 = vmatpush3.bf16.msra.mxu0 %v904_v11 }
  0x3e   : > { %850 = vmatprep.subr.bf16.mxu0 %v905_v12 }
  0x41   : > { %851 = vmatpush3.bf16.msra.mxu0 %v905_v12 }
  0x42   : > { %852 = vmatprep.subr.bf16.mxu0 %v906_v13 }
  0x45   : > { %853 = vmatpush3.bf16.msra.mxu0 %v906_v13 }
  0x48   : > { %855 = vmatmul.mubr.bf16.vlgmr.msra.gmra.mrb[0].mxu0 %v908_v14 }
 0x11b   : > { %v856_v17 = vpop.f32.mrb[0].mxu0  ;;  %559 = sbr.rel (%p793_p11) target bundleno = 309 (0x135), region = 89 }
 0x11c   : > { %v550_v19 = vadd.f32 %v856_v17, %v417_v15  ;;  %v533_v20 = vpop.f32.mrb[1].mxu0 }
 0x11d   : > { %v548_v22 = vadd.f32 %v533_v20, %v415_v16  ;;  %v857_v23 = vpop.f32.mrb[2].mxu0 }
 0x11e   : > { %554 = vst [vmem:[#allocation2 + $0x10] sm:$0xff] %v550_v19  ;;  %v551_v24 = vadd.f32 %v857_v23, %v418_v18  ;;  %v536_v25 = vpop.f32.mrb[3].mxu0 }
 0x11f   : > { %552 = vst [vmem:[#allocation2] sm:$0xff] %v548_v22  ;;  %v549_v26 = vadd.f32 %v536_v25, %v416_v21 }
 0x120   : > { %555 = vst [vmem:[#allocation2 + $0x18] sm:$0xff] %v551_v24 }
 0x121   : > { %553 = vst [vmem:[#allocation2 + $0x8] sm:$0xff] %v549_v26 }
 0x125   : > { %v562_v34 = vld [vmem:[#allocation2 + $0x10] sm:$0xff] }
 0x126   : > { %v560_v27 = vld [vmem:[#allocation2] sm:$0xff]  ;;  %v573_v38 = vmul.f32 %v794_v29, %v562_v34 }
 0x127   : > { %v571_v30 = vmul.f32 %v794_v29, %v560_v27  ;;  %v563_v37 = vld [vmem:[#allocation2 + $0x18] sm:$0xff] }
 0x128   : > { %v561_v28 = vld [vmem:[#allocation2 + $0x8] sm:$0xff]  ;;  %v574_v42 = vmul.f32 %v794_v29, %v563_v37  ;;  %v584_v44 = vadd.f32 %v795_v32, %v573_v38 }
 0x129   : > { %v572_v31 = vmul.f32 %v794_v29, %v561_v28  ;;  %v582_v40 = vadd.f32 %v795_v32, %v571_v30 }
 0x12a   : > { %v585_v48 = vadd.f32 %v795_v32, %v574_v42  ;;  %v596_v49 = vadd.f32 %v814_v43, %v584_v44 }
 0x12b   : > { %v583_v41 = vadd.f32 %v795_v32, %v572_v31  ;;  %v594_v46 = vadd.f32 %v810_v35, %v582_v40 }
 0x12c   : > { %v597_v52 = vadd.f32 %v815_v45, %v585_v48  ;;  %vm600_vm2 = vcmp.ge.f32.partialorder %v596_v49, 0.0  ;;  %v604_v53 = vmul.f32 0.01, %v596_v49 }
 0x12d   : > { %v595_v47 = vadd.f32 %v811_v36, %v583_v41  ;;  %vm598_vm0 = vcmp.ge.f32.partialorder %v594_v46, 0.0  ;;  %v602_v50 = vmul.f32 0.01, %v594_v46 }
 0x12e   : > { %vm601_vm3 = vcmp.ge.f32.partialorder %v597_v52, 0.0  ;;  %v605_v57 = vmul.f32 0.01, %v597_v52  ;;  %v608_v58 = vsel %vm600_vm2, %v596_v49, %v604_v53 }
 0x12f   : > { %vm599_vm1 = vcmp.ge.f32.partialorder %v595_v47, 0.0  ;;  %v603_v51 = vmul.f32 0.01, %v595_v47  ;;  %v606_v54 = vsel %vm598_vm0, %v594_v46, %v602_v50 }
 0x130   : > { %v609_v59 = vsel %vm601_vm3, %v597_v52, %v605_v57 }
 0x131   : > { %v607_v55 = vsel %vm599_vm1, %v595_v47, %v603_v51  ;;  %v824_v60 = vpack.c.bf16 %v609_v59, %v608_v58 }
 0x132   : > { %v819_v56 = vpack.c.bf16 %v607_v55, %v606_v54 }
 0x133   : > { %827 = vst [vmem:[%s1087_s5 + $0x8] sm:$0xff] %v824_v60  }
 0x134   : > { %820 = vst [vmem:[%s1087_s5] sm:$0xff] %v819_v56  }
 0x135 PF: > { %s15_s22 = sadd.s32 1, %s947_s22   ;;  %s1088_s18 = smov %s935_s19 }
 0x136   : > { %p12_p12 = scmp.ge.s32.totalorder %s15_s22, 7   ;;  %s1089_s19 = smov %s1015_s26 }
 0x137   : > { %s1090_s20 = smov %s943_s21  ;;  %s1091_s21 = smov %s1093_s23 }
 0x138   :  { %14 = sbr.rel (!%p12_p12) target bundleno = 3 (0x3), region = 136 }

// kernel: resnet_forward.25
= control target key start
LH: loop header
LB: loop body
LE: loop exit
PB: predicated region body
PF: predicated region fallthrough
CT: control target
= control target key end

     0   :  { %s812_s15 = smov 0   ;;  %s814_s16 = smov 0   ;;  %s903_s0 = inlined_call_operand.vmem [shape: bf16[16,640], index: 0, kind: input, shape index: {}]   ;;  %s904_s1 = inlined_call_operand.vmem [shape: bf16[640,128], index: 1, kind: input, shape index: {}]   ;;  %s905_s2 = inlined_call_operand.vmem [shape: f32[1,128], index: 2, kind: input, shape index: {}]   ;;  %s906_s3 = inlined_call_operand.vmem [shape: f32[1,128], index: 3, kind: input, shape index: {}]   ;;  %s907_s4 = inlined_call_operand.vmem [shape: bf16[16,128], index: 4, kind: output, shape index: {}]  }
   0x1   :  { %s816_s17 = smov 0   ;;  %s818_s18 = smov 0  }
   0x2   :  { %s820_s19 = smov 0  }
   0x3 LB: > { %s26_s20 = sadd.s32 1, %s778_s18  ;;  %p49_p1 = scmp.ne.s32.totalorder %s770_s16, %s766_s15  ;;  %s782_s19 = sphi %s820_s19, %s14_s19   ;;  %s778_s18 = sphi %s818_s18, %s911_s18   ;;  %s774_s17 = sphi %s816_s17, %s910_s17   ;;  %s770_s16 = sphi %s814_s16, %s909_s16   ;;  %s766_s15 = sphi %s812_s15, %s908_s15  }
   0x4   : > { %p27_p0 = scmp.ge.s32.totalorder %s26_s20, 5  ;;  %p50_p2 = scmp.eq.s32.totalorder %s782_s19, 0 }
   0x5   : > { %s42_s22 = sadd.s32 1, %s770_s16  ;;  %p630_p5 = scmp.ge.s32.totalorder %s782_s19, 5 }
   0x6   : > { %s913_s20 = smov (%p27_p0, %s26_s20), 0  ;;  %p51_p3 = por %p50_p2, %p49_p1 }
   0x7   : > { %s38_s21 = ssub.s32 %s778_s18, %s913_s20  ;;  %195 = sbr.rel (%p630_p5) target bundleno = 21 (0x15), region = 24 }
   0x8   : > { %p40_p4 = scmp.eq.s32.totalorder %s38_s21, 0 }
   0xa   : > { %s847_s23 = scalar_select %p40_p4, %s770_s16, %s42_s22  }
   0xe   : > { %198 = sbr.rel (!%p51_p3) target bundleno = 21 (0x15), region = 28  ;;  %s200_s24 = sand.u32 (%p51_p3), 1, %s770_s16  }
   0xf   : > { %s632_s25 = sshll.u32 (%p51_p3), %s778_s18, 2  ;;  %s631_s26 = sshll.u32 (%p51_p3), %s200_s24, 3 }
  0x10   : > { %s207_s29 = scalar_lea.vmem (%p51_p3), %s903_s0, %s632_s25  ;;  %s202_s30 = scalar_lea.vmem (%p51_p3), [#allocation3], %s631_s26 }
  0x11   : > { %v223_v0 = vld [vmem:[%s207_s29] sm:$0xf] (%p51_p3)  ;;  %v225_v1 = vld [vmem:[%s207_s29 + $0x14] sm:$0xf] (%p51_p3) }
  0x12   : > { %224 = vst [vmem:[%s202_s30] sm:$0xf] (%p51_p3), %v223_v0  ;;  %226 = vst [vmem:[%s202_s30 + $0x4] sm:$0xf] (%p51_p3), %v225_v1 }
  0x15 PF: > { %p633_p6 = scmp.ge.s32.totalorder %s782_s19, 1  ;;  %p264_p7 = scmp.lt.s32.totalorder %s782_s19, 6 }
  0x17   : > { %p265_p8 = pnand %p633_p6, %p264_p7 }
  0x18   : > { %s271_s5 = sand.u32 (!%p265_p8), 1, %s766_s15   ;;  %s635_s6 = sshll.u32 (!%p265_p8), %s774_s17, 4 }
  0x19   : > { %268 = sbr.rel (%p265_p8) target bundleno = 306 (0x132), region = 73  ;;  %s859_s7 = sshll.u32 (!%p265_p8), %s271_s5, 3 }
  0x1a   : > { %p315_p9 = scmp.lt.s32.totalorder (!%p265_p8), %s635_s6, 79  ;;  %s273_s12 = scalar_lea.vmem (!%p265_p8), [#allocation3], %s859_s7 }
  0x1b   : > { %p637_p10 = scmp.ne.s32.totalorder (!%p265_p8), %s774_s17, 0 }
  0x20   : > { %s915_s6 = smov (!%p315_p9, %s635_s6), 79  ;;  %342 = sbr.rel (%p637_p10) target bundleno = 39 (0x27), region = 81 }
  0x21   : > { %s636_s8 = sshll.u32 %s915_s6, 2  ;;  %v784_v2 = vmov (!%p637_p10), 0.0  }
  0x22   : > { %s864_s11 = scalar_lea.vmem %s904_s1, %s636_s8  ;;  %343 = vst [vmem:[#allocation2] sm:$0xff] (!%p637_p10), %v784_v2  ;;  %344 = vst [vmem:[#allocation2 + $0x8] sm:$0xff] (!%p637_p10), %v784_v2 }
  0x27 PF: > { %v735_v3 = vld [vmem:[%s864_s11] sm:$0xff]   ;;  %v785_v4 = vmov 0.0   ;;  %v736_v5 = vld [vmem:[%s864_s11 + $0x8] sm:$0xff]   ;;  %vm786_vm0 = vmmov 0   ;;  %v737_v6 = vld [vmem:[%s864_s11 + $0x10] sm:$0xff]   ;;  %p647_p11 = scmp.ne.s32.totalorder %s774_s17, 4 }
  0x28   : > { %672 = vmatprep.subr.bf16.mxu0 %v785_v4  ;;  %688 = vmatprep.mubr.msk.bf16.mxu0 %vm786_vm0, %v785_v4  ;;  %v738_v7 = vld [vmem:[%s864_s11 + $0x18] sm:$0xff]   ;;  %v739_v8 = vld [vmem:[%s864_s11 + $0x20] sm:$0xff]   ;;  %v740_v9 = vld [vmem:[%s864_s11 + $0x28] sm:$0xff]  }
  0x29   : > { %673 = vmatpush3.bf16.msra.mxu0 %v735_v3  ;;  %v741_v10 = vld [vmem:[%s864_s11 + $0x30] sm:$0xff]   ;;  %v742_v11 = vld [vmem:[%s864_s11 + $0x38] sm:$0xff]   ;;  %v345_v13 = vld [vmem:[#allocation2] sm:$0xff] }
  0x2a   : > { %674 = vmatprep.subr.bf16.mxu0 %v785_v4  ;;  %v743_v12 = vld [vmem:[%s273_s12] sm:$0xff]   ;;  %v346_v15 = vld [vmem:[#allocation2 + $0x8] sm:$0xff]  ;;  %v648_v23 = vld [vmem:[%s905_s2] ss:$0 sm:$0xff] (!%p647_p11) }
  0x2b   : > { %v649_v26 = vld [vmem:[%s906_s3] ss:$0 sm:$0xff] (!%p647_p11) }
  0x2d   : > { %675 = vmatpush3.bf16.msra.mxu0 %v736_v5 }
  0x2e   : > { %676 = vmatprep.subr.bf16.mxu0 %v785_v4 }
  0x31   : > { %677 = vmatpush3.bf16.msra.mxu0 %v737_v6 }
  0x32   : > { %678 = vmatprep.subr.bf16.mxu0 %v785_v4 }
  0x35   : > { %679 = vmatpush3.bf16.msra.mxu0 %v738_v7 }
  0x36   : > { %680 = vmatprep.subr.bf16.mxu0 %v785_v4 }
  0x39   : > { %681 = vmatpush3.bf16.msra.mxu0 %v739_v8 }
  0x3a   : > { %682 = vmatprep.subr.bf16.mxu0 %v785_v4 }
  0x3d   : > { %683 = vmatpush3.bf16.msra.mxu0 %v740_v9 }
  0x3e   : > { %684 = vmatprep.subr.bf16.mxu0 %v785_v4 }
  0x41   : > { %685 = vmatpush3.bf16.msra.mxu0 %v741_v10 }
  0x42   : > { %686 = vmatprep.subr.bf16.mxu0 %v785_v4 }
  0x45   : > { %687 = vmatpush3.bf16.msra.mxu0 %v742_v11 }
  0x48   : > { %689 = vmatmul.mubr.bf16.vlgmr.msra.gmra.mrb[0].mxu0 %v743_v12 }
 0x11a   : > { %467 = sbr.rel (%p647_p11) target bundleno = 306 (0x132), region = 85 }
 0x11b   : > { %v453_v14 = vpop.f32.mrb[0].mxu0 }
 0x11c   : > { %v460_v16 = vadd.f32 %v453_v14, %v345_v13  ;;  %v690_v17 = vpop.f32.mrb[1].mxu0 }
 0x11d   : > { %v456_v18 = vpop.f32.mrb[2].mxu0 }
 0x11e   : > { %462 = vst [vmem:[#allocation2] sm:$0xff] %v460_v16  ;;  %v461_v19 = vadd.f32 %v456_v18, %v346_v15  ;;  %v691_v20 = vpop.f32.mrb[3].mxu0 }
 0x120   : > { %463 = vst [vmem:[#allocation2 + $0x8] sm:$0xff] %v461_v19 }
 0x125   : > { %v468_v21 = vld [vmem:[#allocation2] sm:$0xff] }
 0x126   : > { %v477_v24 = vmul.f32 %v648_v23, %v468_v21 }
 0x127   : > { %v469_v22 = vld [vmem:[#allocation2 + $0x8] sm:$0xff] }
 0x128   : > { %v478_v25 = vmul.f32 %v648_v23, %v469_v22  ;;  %v486_v27 = vadd.f32 %v649_v26, %v477_v24 }
 0x12a   : > { %v487_v28 = vadd.f32 %v649_v26, %v478_v25  ;;  %vm488_vm1 = vcmp.ge.f32.partialorder %v486_v27, 0.0  ;;  %v490_v29 = vmul.f32 0.01, %v486_v27 }
 0x12c   : > { %vm489_vm2 = vcmp.ge.f32.partialorder %v487_v28, 0.0  ;;  %v491_v30 = vmul.f32 0.01, %v487_v28  ;;  %v492_v31 = vsel %vm488_vm1, %v486_v27, %v490_v29 }
 0x12e   : > { %v493_v32 = vsel %vm489_vm2, %v487_v28, %v491_v30 }
 0x12f   : > { %v661_v33 = vpack.c.bf16 %v493_v32, %v492_v31 }
 0x131   : > { %662 = vst [vmem:[%s907_s4] sm:$0xff] %v661_v33  }
 0x132 PF: > { %s14_s19 = sadd.s32 1, %s782_s19   ;;  %s908_s15 = smov %s770_s16 }
 0x133   : > { %p11_p12 = scmp.ge.s32.totalorder %s14_s19, 7   ;;  %s909_s16 = smov %s847_s23 }
 0x134   : > { %s910_s17 = smov %s778_s18  ;;  %s911_s18 = smov %s913_s20 }
 0x135   :  { %13 = sbr.rel (!%p11_p12) target bundleno = 3 (0x3), region = 129 }

// kernel: resnet_forward.26
= control target key start
LH: loop header
LB: loop body
LE: loop exit
PB: predicated region body
PF: predicated region fallthrough
CT: control target
= control target key end

     0   :  { %v240_v0 = vmov 0.0   ;;  %vm241_vm0 = vmmov 0   ;;  %s303_s1 = inlined_call_operand.vmem [shape: bf16[128,128], index: 1, kind: input, shape index: {}]   ;;  %s304_s0 = inlined_call_operand.vmem [shape: bf16[16,128], index: 0, kind: input, shape index: {}]   ;;  %s305_s2 = inlined_call_operand.vmem [shape: f32[1,128], index: 2, kind: input, shape index: {}]   ;;  %s306_s3 = inlined_call_operand.vmem [shape: f32[1,128], index: 3, kind: input, shape index: {}]   ;;  %s307_s4 = inlined_call_operand.vmem [shape: bf16[16,128], index: 4, kind: output, shape index: {}]  }
   0x1   :  { %209 = vmatprep.subr.bf16.mxu0 %v240_v0  ;;  %v231_v1 = vld [vmem:[%s303_s1] sm:$0xff]   ;;  %225 = vmatprep.mubr.msk.bf16.mxu0 %vm241_vm0, %v240_v0  ;;  %v232_v2 = vld [vmem:[%s303_s1 + $0x8] sm:$0xff]   ;;  %v233_v3 = vld [vmem:[%s303_s1 + $0x10] sm:$0xff]  }
   0x2   :  { %210 = vmatpush3.bf16.msra.mxu0 %v231_v1  ;;  %v234_v4 = vld [vmem:[%s303_s1 + $0x18] sm:$0xff]   ;;  %v235_v5 = vld [vmem:[%s303_s1 + $0x20] sm:$0xff]   ;;  %v236_v6 = vld [vmem:[%s303_s1 + $0x28] sm:$0xff]  }
   0x3   :  { %211 = vmatprep.subr.bf16.mxu0 %v240_v0  ;;  %v237_v7 = vld [vmem:[%s303_s1 + $0x30] sm:$0xff]   ;;  %v238_v8 = vld [vmem:[%s303_s1 + $0x38] sm:$0xff]   ;;  %v239_v9 = vld [vmem:[%s304_s0] sm:$0xff]  }
   0x4   :  { %v189_v10 = vld [vmem:[%s305_s2] ss:$0 sm:$0xff] }
   0x5   :  { %v190_v14 = vld [vmem:[%s306_s3] ss:$0 sm:$0xff] }
   0x6   :  { %212 = vmatpush3.bf16.msra.mxu0 %v232_v2 }
   0x7   :  { %213 = vmatprep.subr.bf16.mxu0 %v240_v0 }
   0xa   :  { %214 = vmatpush3.bf16.msra.mxu0 %v233_v3 }
   0xb   :  { %215 = vmatprep.subr.bf16.mxu0 %v240_v0 }
   0xe   :  { %216 = vmatpush3.bf16.msra.mxu0 %v234_v4 }
   0xf   :  { %217 = vmatprep.subr.bf16.mxu0 %v240_v0 }
  0x12   :  { %218 = vmatpush3.bf16.msra.mxu0 %v235_v5 }
  0x13   :  { %219 = vmatprep.subr.bf16.mxu0 %v240_v0 }
  0x16   :  { %220 = vmatpush3.bf16.msra.mxu0 %v236_v6 }
  0x17   :  { %221 = vmatprep.subr.bf16.mxu0 %v240_v0 }
  0x1a   :  { %222 = vmatpush3.bf16.msra.mxu0 %v237_v7 }
  0x1b   :  { %223 = vmatprep.subr.bf16.mxu0 %v240_v0 }
  0x1e   :  { %224 = vmatpush3.bf16.msra.mxu0 %v238_v8 }
  0x21   :  { %226 = vmatmul.mubr.bf16.vlgmr.msra.gmra.mrb[0].mxu0 %v239_v9 }
  0xf4   :  { %v132_v11 = vpop.f32.mrb[0].mxu0 }
  0xf5   :  { %v155_v12 = vmul.f32 %v189_v10, %v132_v11  ;;  %v227_v13 = vpop.f32.mrb[1].mxu0 }
  0xf6   :  { %v135_v15 = vpop.f32.mrb[2].mxu0 }
  0xf7   :  { %v156_v16 = vmul.f32 %v189_v10, %v135_v15  ;;  %v228_v17 = vpop.f32.mrb[3].mxu0  ;;  %v164_v18 = vadd.f32 %v190_v14, %v155_v12 }
  0xf9   :  { %v165_v19 = vadd.f32 %v190_v14, %v156_v16 }
  0xfb   :  { %v198_v20 = vpack.c.bf16 %v165_v19, %v164_v18 }
  0xfd   :  { %199 = vst [vmem:[%s307_s4] sm:$0xff] %v198_v20  }

// kernel: resnet_forward.27
= control target key start
LH: loop header
LB: loop body
LE: loop exit
PB: predicated region body
PF: predicated region fallthrough
CT: control target
= control target key end

     0   :  { %s1146_s18 = smov 0   ;;  %s1148_s19 = smov 0   ;;  %s1256_s0 = inlined_call_operand.vmem [shape: bf16[16,1152], index: 0, kind: input, shape index: {}]   ;;  %s1257_s1 = inlined_call_operand.vmem [shape: bf16[1152,128], index: 1, kind: input, shape index: {}]   ;;  %s1258_s2 = inlined_call_operand.vmem [shape: f32[1,128], index: 2, kind: input, shape index: {}]   ;;  %s1259_s3 = inlined_call_operand.vmem [shape: f32[1,128], index: 3, kind: input, shape index: {}]   ;;  %s1260_s4 = inlined_call_operand.vmem [shape: bf16[16,128], index: 4, kind: input, shape index: {}]   ;;  %s1261_s5 = inlined_call_operand.vmem [shape: bf16[16,128], index: 5, kind: output, shape index: {}]  }
   0x1   :  { %s1150_s20 = smov 0   ;;  %s1152_s21 = smov 0  }
   0x2   :  { %s1154_s22 = smov 0  }
   0x3 LB: > { %s27_s23 = sadd.s32 1, %s1107_s21  ;;  %p50_p1 = scmp.ne.s32.totalorder %s1099_s19, %s1095_s18  ;;  %s1111_s22 = sphi %s1154_s22, %s15_s22   ;;  %s1107_s21 = sphi %s1152_s21, %s1265_s21   ;;  %s1103_s20 = sphi %s1150_s20, %s1264_s20   ;;  %s1099_s19 = sphi %s1148_s19, %s1263_s19   ;;  %s1095_s18 = sphi %s1146_s18, %s1262_s18  }
   0x4   : > { %p28_p0 = scmp.ge.s32.totalorder %s27_s23, 3  ;;  %p51_p2 = scmp.eq.s32.totalorder %s1111_s22, 0 }
   0x5   : > { %s43_s25 = sadd.s32 1, %s1099_s19  ;;  %p892_p5 = scmp.ge.s32.totalorder %s1111_s22, 3 }
   0x6   : > { %s1267_s23 = smov (%p28_p0, %s27_s23), 0  ;;  %p52_p3 = por %p51_p2, %p50_p1 }
   0x7   : > { %s39_s24 = ssub.s32 %s1107_s21, %s1267_s23  ;;  %236 = sbr.rel (%p892_p5) target bundleno = 21 (0x15), region = 28 }
   0x8   : > { %p41_p4 = scmp.eq.s32.totalorder %s39_s24, 0 }
   0xa   : > { %s1181_s26 = scalar_select %p41_p4, %s1099_s19, %s43_s25  }
   0xe   : > { %239 = sbr.rel (!%p52_p3) target bundleno = 21 (0x15), region = 32  ;;  %s241_s27 = sand.u32 (%p52_p3), 1, %s1099_s19  }
   0xf   : > { %s937_s28 = smul.u32 (%p52_p3), 12, %s1107_s21 }
  0x10   : > { %s1000_s29 = smul.u32 (%p52_p3), 24, %s241_s27 }
  0x11   : > { %s249_s7 = scalar_lea.vmem (%p52_p3), %s1256_s0, %s937_s28 }
  0x12   : > { %v264_v0 = vld [vmem:[%s249_s7] sm:$0xff] (%p52_p3)  ;;  %v894_v2 = vld [vmem:[%s249_s7 + $0x8] sm:$0xf] (%p52_p3)  ;;  %s243_s8 = scalar_lea.vmem (%p52_p3), [#allocation3], %s1000_s29  ;;  %v896_v3 = vld [vmem:[%s249_s7 + $0x2c] sm:$0xf] (%p52_p3) }
  0x13   : > { %v266_v1 = vld [vmem:[%s249_s7 + $0x24] sm:$0xff] (%p52_p3)  ;;  %265 = vst [vmem:[%s243_s8] sm:$0xff] (%p52_p3), %v264_v0  ;;  %895 = vst [vmem:[%s243_s8 + $0x8] sm:$0xf] (%p52_p3), %v894_v2 }
  0x14   : > { %267 = vst [vmem:[%s243_s8 + $0xc] sm:$0xff] (%p52_p3), %v266_v1  ;;  %897 = vst [vmem:[%s243_s8 + $0x14] sm:$0xf] (%p52_p3), %v896_v3 }
  0x15 PF: > { %p898_p6 = scmp.ge.s32.totalorder %s1111_s22, 1  ;;  %p295_p7 = scmp.lt.s32.totalorder %s1111_s22, 4 }
  0x17   : > { %p296_p8 = pnand %p898_p6, %p295_p7 }
  0x18   : > { %s302_s9 = sand.u32 (!%p296_p8), 1, %s1095_s18   ;;  %s356_s10 = smul.u32 (!%p296_p8), 48, %s1103_s20 }
  0x19   : > { %299 = sbr.rel (%p296_p8) target bundleno = 313 (0x139), region = 62  ;;  %p900_p10 = scmp.ne.s32.totalorder (!%p296_p8), %s1103_s20, 0 }
  0x1a   : > { %s1001_s11 = smul.u32 (!%p296_p8), 24, %s302_s9  ;;  %p357_p9 = scmp.lt.s32.totalorder (!%p296_p8), %s356_s10, 143 }
  0x1c   : > { %s1198_s16 = scalar_lea.vmem (!%p296_p8), [#allocation3], %s1001_s11 }
  0x20   : > { %s1269_s10 = smov (!%p357_p9, %s356_s10), 143  ;;  %393 = sbr.rel (%p900_p10) target bundleno = 39 (0x27), region = 70 }
  0x21   : > { %s899_s12 = sshll.u32 %s1269_s10, 2  ;;  %v1113_v4 = vmov (!%p900_p10), 0.0  }
  0x22   : > { %s1196_s15 = scalar_lea.vmem %s1257_s1, %s899_s12  ;;  %394 = vst [vmem:[#allocation2] sm:$0xff] (!%p900_p10), %v1113_v4  ;;  %395 = vst [vmem:[#allocation2 + $0x8] sm:$0xff] (!%p900_p10), %v1113_v4 }
  0x27 PF: > { %v1045_v5 = vld [vmem:[%s1196_s15 + $0x40] sm:$0xff]   ;;  %v1114_v6 = vmov 0.0   ;;  %vm1115_vm0 = vmmov 0   ;;  %v1048_v9 = vld [vmem:[%s1196_s15 + $0x48] sm:$0xff]   ;;  %v1051_v12 = vld [vmem:[%s1196_s15 + $0x50] sm:$0xff]   ;;  %p928_p11 = scmp.ne.s32.totalorder %s1103_s20, 2 }
  0x28   : > { %980 = vmatprep.subr.bf16.mxu1 %v1114_v6  ;;  %v1046_v7 = vld [vmem:[%s1196_s15] sm:$0xff]   ;;  %949 = vmatprep.subr.bf16.mxu0 %v1045_v5  ;;  %v1049_v10 = vld [vmem:[%s1196_s15 + $0x8] sm:$0xff]   ;;  %v1052_v13 = vld [vmem:[%s1196_s15 + $0x10] sm:$0xff]  }
  0x29   : > { %v1047_v8 = vld [vmem:[%s1196_s15 + $0x80] sm:$0xff]   ;;  %996 = vmatprep.mubr.msk.bf16.mxu1 %vm1115_vm0, %v1114_v6  ;;  %950 = vmatpush3.bf16.msra.mxu0 %v1046_v7  ;;  %v1050_v11 = vld [vmem:[%s1196_s15 + $0x88] sm:$0xff]   ;;  %v1053_v14 = vld [vmem:[%s1196_s15 + $0x90] sm:$0xff]  }
  0x2a   : > { %981 = vmatpush3.bf16.msra.mxu1 %v1047_v8  ;;  %951 = vmatprep.subr.bf16.mxu0 %v1048_v9  ;;  %v1054_v15 = vld [vmem:[%s1196_s15 + $0x58] sm:$0xff]   ;;  %v1057_v18 = vld [vmem:[%s1196_s15 + $0x60] sm:$0xff]   ;;  %v1060_v21 = vld [vmem:[%s1196_s15 + $0x68] sm:$0xff]  }
  0x2b   : > { %982 = vmatprep.subr.bf16.mxu1 %v1114_v6  ;;  %v1055_v16 = vld [vmem:[%s1196_s15 + $0x18] sm:$0xff]   ;;  %v1058_v19 = vld [vmem:[%s1196_s15 + $0x20] sm:$0xff]   ;;  %v1061_v22 = vld [vmem:[%s1196_s15 + $0x28] sm:$0xff]  }
  0x2c   : > { %v1056_v17 = vld [vmem:[%s1196_s15 + $0x98] sm:$0xff]   ;;  %v1059_v20 = vld [vmem:[%s1196_s15 + $0xa0] sm:$0xff]   ;;  %v1062_v23 = vld [vmem:[%s1196_s15 + $0xa8] sm:$0xff]  }
  0x2d   : > { %952 = vmatpush3.bf16.msra.mxu0 %v1049_v10  ;;  %v1063_v24 = vld [vmem:[%s1196_s15 + $0x70] sm:$0xff]   ;;  %v1066_v27 = vld [vmem:[%s1196_s15 + $0x78] sm:$0xff]   ;;  %v396_v39 = vld [vmem:[#allocation2] sm:$0xff] }
  0x2e   : > { %983 = vmatpush3.bf16.msra.mxu1 %v1050_v11  ;;  %953 = vmatprep.subr.bf16.mxu0 %v1051_v12  ;;  %v1064_v25 = vld [vmem:[%s1196_s15 + $0x30] sm:$0xff]   ;;  %v1067_v29 = vld [vmem:[%s1196_s15 + $0x38] sm:$0xff]   ;;  %v397_v45 = vld [vmem:[#allocation2 + $0x8] sm:$0xff] }
  0x2f   : > { %984 = vmatprep.subr.bf16.mxu1 %v1114_v6  ;;  %v1065_v26 = vld [vmem:[%s1196_s15 + $0xb0] sm:$0xff]   ;;  %v1068_v30 = vld [vmem:[%s1196_s15 + $0xb8] sm:$0xff]   ;;  %v929_v51 = vld [vmem:[%s1258_s2] ss:$0 sm:$0xff] (!%p928_p11) }
  0x30   : > { %v1071_v28 = vld [vmem:[%s1198_s16 + $0x4] ss:$12 sps:$4 sm:$0xff]   ;;  %v1069_v31 = vld [vmem:[%s1198_s16] ss:$12 sps:$4 sm:$0xff]   ;;  %v1072_v32 = vld [vmem:[%s1198_s16 + $0x8] ss:$12 sps:$4 sm:$0xff]  }
  0x31   : > { %954 = vmatpush3.bf16.msra.mxu0 %v1052_v13  ;;  %642 = vmatprep.mubr.bf16.mxu0 %v1071_v28  ;;  %v930_v54 = vld [vmem:[%s1259_s3] ss:$0 sm:$0xff] (!%p928_p11) }
  0x32   : > { %985 = vmatpush3.bf16.msra.mxu1 %v1053_v14  ;;  %955 = vmatprep.subr.bf16.mxu0 %v1054_v15  ;;  %v941_v55 = vld [vmem:[%s1260_s4] sm:$0xff] (!%p928_p11)  }
  0x33   : > { %986 = vmatprep.subr.bf16.mxu1 %v1114_v6  ;;  %v942_v56 = vunpack.c.l.bf16 (!%p928_p11), %v941_v55  ;;  %v943_v57 = vunpack.c.h.bf16 (!%p928_p11), %v941_v55 }
  0x35   : > { %956 = vmatpush3.bf16.msra.mxu0 %v1055_v16 }
  0x36   : > { %987 = vmatpush3.bf16.msra.mxu1 %v1056_v17  ;;  %957 = vmatprep.subr.bf16.mxu0 %v1057_v18 }
  0x37   : > { %988 = vmatprep.subr.bf16.mxu1 %v1114_v6 }
  0x39   : > { %958 = vmatpush3.bf16.msra.mxu0 %v1058_v19 }
  0x3a   : > { %989 = vmatpush3.bf16.msra.mxu1 %v1059_v20  ;;  %959 = vmatprep.subr.bf16.mxu0 %v1060_v21 }
  0x3b   : > { %990 = vmatprep.subr.bf16.mxu1 %v1114_v6 }
  0x3d   : > { %960 = vmatpush3.bf16.msra.mxu0 %v1061_v22 }
  0x3e   : > { %991 = vmatpush3.bf16.msra.mxu1 %v1062_v23  ;;  %961 = vmatprep.subr.bf16.mxu0 %v1063_v24 }
  0x3f   : > { %992 = vmatprep.subr.bf16.mxu1 %v1114_v6 }
  0x41   : > { %962 = vmatpush3.bf16.msra.mxu0 %v1064_v25 }
  0x42   : > { %993 = vmatpush3.bf16.msra.mxu1 %v1065_v26  ;;  %963 = vmatprep.subr.bf16.mxu0 %v1066_v27 }
  0x43   : > { %994 = vmatprep.subr.bf16.mxu1 %v1114_v6 }
  0x45   : > { %964 = vmatpush3.bf16.msra.mxu0 %v1067_v29 }
  0x46   : > { %995 = vmatpush3.bf16.msra.mxu1 %v1068_v30 }
  0x48   : > { %643 = vmatmul.mubr.bf16.vlgmr.msra.gmra.mrb[0].mxu0 %v1069_v31 }
  0x49   : > { %997 = vmatmul.mubr.bf16.vlgmr.msra.gmra.mrb[0].mxu1 %v1072_v32 }
 0x11b   : > { %v965_v33 = vpop.f32.mrb[0].mxu0 }
 0x11c   : > { %v685_v34 = vpop.f32.mrb[0].mxu1  ;;  %v966_v35 = vpop.f32.mrb[1].mxu0 }
 0x11d   : > { %v967_v36 = vadd.f32 %v966_v35, %v965_v33  ;;  %v998_v37 = vpop.f32.mrb[1].mxu1  ;;  %v968_v38 = vpop.f32.mrb[2].mxu0 }
 0x11e   : > { %v688_v40 = vpop.f32.mrb[2].mxu1  ;;  %v969_v41 = vpop.f32.mrb[3].mxu0 }
 0x11f   : > { %v686_v42 = vadd.f32 %v967_v36, %v685_v34  ;;  %v970_v43 = vadd.f32 %v969_v41, %v968_v38  ;;  %v999_v44 = vpop.f32.mrb[3].mxu1  ;;  %699 = sbr.rel (%p928_p11) target bundleno = 313 (0x139), region = 74 }
 0x121   : > { %v692_v46 = vadd.f32 %v686_v42, %v396_v39  ;;  %v689_v47 = vadd.f32 %v970_v43, %v688_v40 }
 0x123   : > { %694 = vst [vmem:[#allocation2] sm:$0xff] %v692_v46  ;;  %v693_v48 = vadd.f32 %v689_v47, %v397_v45 }
 0x125   : > { %695 = vst [vmem:[#allocation2 + $0x8] sm:$0xff] %v693_v48 }
 0x12a   : > { %v700_v49 = vld [vmem:[#allocation2] sm:$0xff] }
 0x12b   : > { %v709_v52 = vmul.f32 %v929_v51, %v700_v49 }
 0x12c   : > { %v701_v50 = vld [vmem:[#allocation2 + $0x8] sm:$0xff] }
 0x12d   : > { %v710_v53 = vmul.f32 %v929_v51, %v701_v50  ;;  %v718_v58 = vadd.f32 %v930_v54, %v709_v52 }
 0x12f   : > { %v719_v59 = vadd.f32 %v930_v54, %v710_v53  ;;  %v724_v60 = vadd.f32 %v942_v56, %v718_v58 }
 0x131   : > { %v725_v61 = vadd.f32 %v943_v57, %v719_v59  ;;  %vm726_vm1 = vcmp.ge.f32.partialorder %v724_v60, 0.0  ;;  %v728_v62 = vmul.f32 0.01, %v724_v60 }
 0x133   : > { %vm727_vm2 = vcmp.ge.f32.partialorder %v725_v61, 0.0  ;;  %v729_v63 = vmul.f32 0.01, %v725_v61  ;;  %v730_v0 = vsel %vm726_vm1, %v724_v60, %v728_v62 }
 0x135   : > { %v731_v1 = vsel %vm727_vm2, %v725_v61, %v729_v63 }
 0x136   : > { %v947_v2 = vpack.c.bf16 %v731_v1, %v730_v0 }
 0x138   : > { %948 = vst [vmem:[%s1261_s5] sm:$0xff] %v947_v2  }
 0x139 PF: > { %s15_s22 = sadd.s32 1, %s1111_s22   ;;  %s1262_s18 = smov %s1099_s19 }
 0x13a   : > { %p12_p12 = scmp.ge.s32.totalorder %s15_s22, 5   ;;  %s1263_s19 = smov %s1181_s26 }
 0x13b   : > { %s1264_s20 = smov %s1107_s21  ;;  %s1265_s21 = smov %s1267_s23 }
 0x13c   :  { %14 = sbr.rel (!%p12_p12) target bundleno = 3 (0x3), region = 127 }

// kernel: resnet_forward.28
= control target key start
LH: loop header
LB: loop body
LE: loop exit
PB: predicated region body
PF: predicated region fallthrough
CT: control target
= control target key end

     0   :  { %s1052_s15 = smov 0   ;;  %s1054_s16 = smov 0   ;;  %s1159_s0 = inlined_call_operand.vmem [shape: bf16[16,1152], index: 0, kind: input, shape index: {}]   ;;  %s1160_s1 = inlined_call_operand.vmem [shape: bf16[1152,128], index: 1, kind: input, shape index: {}]   ;;  %s1161_s2 = inlined_call_operand.vmem [shape: f32[1,128], index: 2, kind: input, shape index: {}]   ;;  %s1162_s3 = inlined_call_operand.vmem [shape: f32[1,128], index: 3, kind: input, shape index: {}]   ;;  %s1163_s4 = inlined_call_operand.vmem [shape: bf16[16,128], index: 4, kind: output, shape index: {}]  }
   0x1   :  { %s1056_s17 = smov 0   ;;  %s1058_s18 = smov 0  }
   0x2   :  { %s1060_s19 = smov 0  }
   0x3 LB: > { %s26_s20 = sadd.s32 1, %s1018_s18  ;;  %p49_p1 = scmp.ne.s32.totalorder %s1010_s16, %s1006_s15  ;;  %s1022_s19 = sphi %s1060_s19, %s14_s19   ;;  %s1018_s18 = sphi %s1058_s18, %s1167_s18   ;;  %s1014_s17 = sphi %s1056_s17, %s1166_s17   ;;  %s1010_s16 = sphi %s1054_s16, %s1165_s16   ;;  %s1006_s15 = sphi %s1052_s15, %s1164_s15  }
   0x4   : > { %p27_p0 = scmp.ge.s32.totalorder %s26_s20, 3  ;;  %p50_p2 = scmp.eq.s32.totalorder %s1022_s19, 0 }
   0x5   : > { %s42_s22 = sadd.s32 1, %s1010_s16  ;;  %p807_p5 = scmp.ge.s32.totalorder %s1022_s19, 3 }
   0x6   : > { %s1169_s20 = smov (%p27_p0, %s26_s20), 0  ;;  %p51_p3 = por %p50_p2, %p49_p1 }
   0x7   : > { %s38_s21 = ssub.s32 %s1018_s18, %s1169_s20  ;;  %195 = sbr.rel (%p807_p5) target bundleno = 21 (0x15), region = 24 }
   0x8   : > { %p40_p4 = scmp.eq.s32.totalorder %s38_s21, 0 }
   0xa   : > { %s1087_s23 = scalar_select %p40_p4, %s1010_s16, %s42_s22  }
   0xe   : > { %198 = sbr.rel (!%p51_p3) target bundleno = 21 (0x15), region = 28  ;;  %s200_s24 = sand.u32 (%p51_p3), 1, %s1010_s16  }
   0xf   : > { %s852_s25 = smul.u32 (%p51_p3), 12, %s1018_s18 }
  0x10   : > { %s911_s26 = smul.u32 (%p51_p3), 24, %s200_s24 }
  0x11   : > { %s208_s29 = scalar_lea.vmem (%p51_p3), %s1159_s0, %s852_s25 }
  0x12   : > { %v223_v0 = vld [vmem:[%s208_s29] sm:$0xff] (%p51_p3)  ;;  %v809_v2 = vld [vmem:[%s208_s29 + $0x8] sm:$0xf] (%p51_p3)  ;;  %s202_s30 = scalar_lea.vmem (%p51_p3), [#allocation3], %s911_s26  ;;  %v811_v3 = vld [vmem:[%s208_s29 + $0x2c] sm:$0xf] (%p51_p3) }
  0x13   : > { %v225_v1 = vld [vmem:[%s208_s29 + $0x24] sm:$0xff] (%p51_p3)  ;;  %224 = vst [vmem:[%s202_s30] sm:$0xff] (%p51_p3), %v223_v0  ;;  %810 = vst [vmem:[%s202_s30 + $0x8] sm:$0xf] (%p51_p3), %v809_v2 }
  0x14   : > { %226 = vst [vmem:[%s202_s30 + $0xc] sm:$0xff] (%p51_p3), %v225_v1  ;;  %812 = vst [vmem:[%s202_s30 + $0x14] sm:$0xf] (%p51_p3), %v811_v3 }
  0x15 PF: > { %p813_p6 = scmp.ge.s32.totalorder %s1022_s19, 1  ;;  %p254_p7 = scmp.lt.s32.totalorder %s1022_s19, 4 }
  0x17   : > { %p255_p8 = pnand %p813_p6, %p254_p7 }
  0x18   : > { %s261_s5 = sand.u32 (!%p255_p8), 1, %s1006_s15   ;;  %s305_s6 = smul.u32 (!%p255_p8), 48, %s1014_s17 }
  0x19   : > { %258 = sbr.rel (%p255_p8) target bundleno = 311 (0x137), region = 58  ;;  %p815_p10 = scmp.ne.s32.totalorder (!%p255_p8), %s1014_s17, 0 }
  0x1a   : > { %s912_s7 = smul.u32 (!%p255_p8), 24, %s261_s5  ;;  %p306_p9 = scmp.lt.s32.totalorder (!%p255_p8), %s305_s6, 143 }
  0x1c   : > { %s1104_s12 = scalar_lea.vmem (!%p255_p8), [#allocation3], %s912_s7 }
  0x20   : > { %s1171_s6 = smov (!%p306_p9, %s305_s6), 143  ;;  %333 = sbr.rel (%p815_p10) target bundleno = 39 (0x27), region = 66 }
  0x21   : > { %s814_s8 = sshll.u32 %s1171_s6, 2  ;;  %v1024_v4 = vmov (!%p815_p10), 0.0  }
  0x22   : > { %s1102_s11 = scalar_lea.vmem %s1160_s1, %s814_s8  ;;  %334 = vst [vmem:[#allocation2] sm:$0xff] (!%p815_p10), %v1024_v4  ;;  %335 = vst [vmem:[#allocation2 + $0x8] sm:$0xff] (!%p815_p10), %v1024_v4 }
  0x27 PF: > { %v956_v5 = vld [vmem:[%s1102_s11 + $0x40] sm:$0xff]   ;;  %v1025_v6 = vmov 0.0   ;;  %vm1026_vm0 = vmmov 0   ;;  %v959_v9 = vld [vmem:[%s1102_s11 + $0x48] sm:$0xff]   ;;  %v962_v12 = vld [vmem:[%s1102_s11 + $0x50] sm:$0xff]   ;;  %p843_p11 = scmp.ne.s32.totalorder %s1014_s17, 2 }
  0x28   : > { %891 = vmatprep.subr.bf16.mxu1 %v1025_v6  ;;  %v957_v7 = vld [vmem:[%s1102_s11] sm:$0xff]   ;;  %860 = vmatprep.subr.bf16.mxu0 %v956_v5  ;;  %v960_v10 = vld [vmem:[%s1102_s11 + $0x8] sm:$0xff]   ;;  %v963_v13 = vld [vmem:[%s1102_s11 + $0x10] sm:$0xff]  }
  0x29   : > { %v958_v8 = vld [vmem:[%s1102_s11 + $0x80] sm:$0xff]   ;;  %907 = vmatprep.mubr.msk.bf16.mxu1 %vm1026_vm0, %v1025_v6  ;;  %861 = vmatpush3.bf16.msra.mxu0 %v957_v7  ;;  %v961_v11 = vld [vmem:[%s1102_s11 + $0x88] sm:$0xff]   ;;  %v964_v14 = vld [vmem:[%s1102_s11 + $0x90] sm:$0xff]  }
  0x2a   : > { %892 = vmatpush3.bf16.msra.mxu1 %v958_v8  ;;  %862 = vmatprep.subr.bf16.mxu0 %v959_v9  ;;  %v965_v15 = vld [vmem:[%s1102_s11 + $0x58] sm:$0xff]   ;;  %v968_v18 = vld [vmem:[%s1102_s11 + $0x60] sm:$0xff]   ;;  %v971_v21 = vld [vmem:[%s1102_s11 + $0x68] sm:$0xff]  }
  0x2b   : > { %893 = vmatprep.subr.bf16.mxu1 %v1025_v6  ;;  %v966_v16 = vld [vmem:[%s1102_s11 + $0x18] sm:$0xff]   ;;  %v969_v19 = vld [vmem:[%s1102_s11 + $0x20] sm:$0xff]   ;;  %v972_v22 = vld [vmem:[%s1102_s11 + $0x28] sm:$0xff]  }
  0x2c   : > { %v967_v17 = vld [vmem:[%s1102_s11 + $0x98] sm:$0xff]   ;;  %v970_v20 = vld [vmem:[%s1102_s11 + $0xa0] sm:$0xff]   ;;  %v973_v23 = vld [vmem:[%s1102_s11 + $0xa8] sm:$0xff]  }
  0x2d   : > { %863 = vmatpush3.bf16.msra.mxu0 %v960_v10  ;;  %v974_v24 = vld [vmem:[%s1102_s11 + $0x70] sm:$0xff]   ;;  %v977_v27 = vld [vmem:[%s1102_s11 + $0x78] sm:$0xff]   ;;  %v336_v39 = vld [vmem:[#allocation2] sm:$0xff] }
  0x2e   : > { %894 = vmatpush3.bf16.msra.mxu1 %v961_v11  ;;  %864 = vmatprep.subr.bf16.mxu0 %v962_v12  ;;  %v975_v25 = vld [vmem:[%s1102_s11 + $0x30] sm:$0xff]   ;;  %v978_v29 = vld [vmem:[%s1102_s11 + $0x38] sm:$0xff]   ;;  %v337_v45 = vld [vmem:[#allocation2 + $0x8] sm:$0xff] }
  0x2f   : > { %895 = vmatprep.subr.bf16.mxu1 %v1025_v6  ;;  %v976_v26 = vld [vmem:[%s1102_s11 + $0xb0] sm:$0xff]   ;;  %v979_v30 = vld [vmem:[%s1102_s11 + $0xb8] sm:$0xff]   ;;  %v844_v51 = vld [vmem:[%s1161_s2] ss:$0 sm:$0xff] (!%p843_p11) }
  0x30   : > { %v982_v28 = vld [vmem:[%s1104_s12 + $0x4] ss:$12 sps:$4 sm:$0xff]   ;;  %v980_v31 = vld [vmem:[%s1104_s12] ss:$12 sps:$4 sm:$0xff]   ;;  %v983_v32 = vld [vmem:[%s1104_s12 + $0x8] ss:$12 sps:$4 sm:$0xff]  }
  0x31   : > { %865 = vmatpush3.bf16.msra.mxu0 %v963_v13  ;;  %582 = vmatprep.mubr.bf16.mxu0 %v982_v28  ;;  %v845_v54 = vld [vmem:[%s1162_s3] ss:$0 sm:$0xff] (!%p843_p11) }
  0x32   : > { %896 = vmatpush3.bf16.msra.mxu1 %v964_v14  ;;  %866 = vmatprep.subr.bf16.mxu0 %v965_v15 }
  0x33   : > { %897 = vmatprep.subr.bf16.mxu1 %v1025_v6 }
  0x35   : > { %867 = vmatpush3.bf16.msra.mxu0 %v966_v16 }
  0x36   : > { %898 = vmatpush3.bf16.msra.mxu1 %v967_v17  ;;  %868 = vmatprep.subr.bf16.mxu0 %v968_v18 }
  0x37   : > { %899 = vmatprep.subr.bf16.mxu1 %v1025_v6 }
  0x39   : > { %869 = vmatpush3.bf16.msra.mxu0 %v969_v19 }
  0x3a   : > { %900 = vmatpush3.bf16.msra.mxu1 %v970_v20  ;;  %870 = vmatprep.subr.bf16.mxu0 %v971_v21 }
  0x3b   : > { %901 = vmatprep.subr.bf16.mxu1 %v1025_v6 }
  0x3d   : > { %871 = vmatpush3.bf16.msra.mxu0 %v972_v22 }
  0x3e   : > { %902 = vmatpush3.bf16.msra.mxu1 %v973_v23  ;;  %872 = vmatprep.subr.bf16.mxu0 %v974_v24 }
  0x3f   : > { %903 = vmatprep.subr.bf16.mxu1 %v1025_v6 }
  0x41   : > { %873 = vmatpush3.bf16.msra.mxu0 %v975_v25 }
  0x42   : > { %904 = vmatpush3.bf16.msra.mxu1 %v976_v26  ;;  %874 = vmatprep.subr.bf16.mxu0 %v977_v27 }
  0x43   : > { %905 = vmatprep.subr.bf16.mxu1 %v1025_v6 }
  0x45   : > { %875 = vmatpush3.bf16.msra.mxu0 %v978_v29 }
  0x46   : > { %906 = vmatpush3.bf16.msra.mxu1 %v979_v30 }
  0x48   : > { %583 = vmatmul.mubr.bf16.vlgmr.msra.gmra.mrb[0].mxu0 %v980_v31 }
  0x49   : > { %908 = vmatmul.mubr.bf16.vlgmr.msra.gmra.mrb[0].mxu1 %v983_v32 }
 0x11b   : > { %v876_v33 = vpop.f32.mrb[0].mxu0 }
 0x11c   : > { %v625_v34 = vpop.f32.mrb[0].mxu1  ;;  %v877_v35 = vpop.f32.mrb[1].mxu0 }
 0x11d   : > { %v878_v36 = vadd.f32 %v877_v35, %v876_v33  ;;  %v909_v37 = vpop.f32.mrb[1].mxu1  ;;  %v879_v38 = vpop.f32.mrb[2].mxu0 }
 0x11e   : > { %v628_v40 = vpop.f32.mrb[2].mxu1  ;;  %v880_v41 = vpop.f32.mrb[3].mxu0 }
 0x11f   : > { %v626_v42 = vadd.f32 %v878_v36, %v625_v34  ;;  %v881_v43 = vadd.f32 %v880_v41, %v879_v38  ;;  %v910_v44 = vpop.f32.mrb[3].mxu1  ;;  %639 = sbr.rel (%p843_p11) target bundleno = 311 (0x137), region = 70 }
 0x121   : > { %v632_v46 = vadd.f32 %v626_v42, %v336_v39  ;;  %v629_v47 = vadd.f32 %v881_v43, %v628_v40 }
 0x123   : > { %634 = vst [vmem:[#allocation2] sm:$0xff] %v632_v46  ;;  %v633_v48 = vadd.f32 %v629_v47, %v337_v45 }
 0x125   : > { %635 = vst [vmem:[#allocation2 + $0x8] sm:$0xff] %v633_v48 }
 0x12a   : > { %v640_v49 = vld [vmem:[#allocation2] sm:$0xff] }
 0x12b   : > { %v649_v52 = vmul.f32 %v844_v51, %v640_v49 }
 0x12c   : > { %v641_v50 = vld [vmem:[#allocation2 + $0x8] sm:$0xff] }
 0x12d   : > { %v650_v53 = vmul.f32 %v844_v51, %v641_v50  ;;  %v658_v55 = vadd.f32 %v845_v54, %v649_v52 }
 0x12f   : > { %v659_v56 = vadd.f32 %v845_v54, %v650_v53  ;;  %vm660_vm1 = vcmp.ge.f32.partialorder %v658_v55, 0.0  ;;  %v662_v57 = vmul.f32 0.01, %v658_v55 }
 0x131   : > { %vm661_vm2 = vcmp.ge.f32.partialorder %v659_v56, 0.0  ;;  %v663_v58 = vmul.f32 0.01, %v659_v56  ;;  %v664_v59 = vsel %vm660_vm1, %v658_v55, %v662_v57 }
 0x133   : > { %v665_v60 = vsel %vm661_vm2, %v659_v56, %v663_v58 }
 0x134   : > { %v858_v61 = vpack.c.bf16 %v665_v60, %v664_v59 }
 0x136   : > { %859 = vst [vmem:[%s1163_s4] sm:$0xff] %v858_v61  }
 0x137 PF: > { %s14_s19 = sadd.s32 1, %s1022_s19   ;;  %s1164_s15 = smov %s1010_s16 }
 0x138   : > { %p11_p12 = scmp.ge.s32.totalorder %s14_s19, 5   ;;  %s1165_s16 = smov %s1087_s23 }
 0x139   : > { %s1166_s17 = smov %s1018_s18  ;;  %s1167_s18 = smov %s1169_s20 }
 0x13a   :  { %13 = sbr.rel (!%p11_p12) target bundleno = 3 (0x3), region = 120 }

// kernel: resnet_forward.30
= control target key start
LH: loop header
LB: loop body
LE: loop exit
PB: predicated region body
PF: predicated region fallthrough
CT: control target
= control target key end

     0   :  { %s1239_s15 = smov 0   ;;  %s1241_s16 = smov 0   ;;  %s1373_s0 = inlined_call_operand.vmem [shape: bf16[16,1152], index: 0, kind: input, shape index: {}]   ;;  %s1374_s1 = inlined_call_operand.vmem [shape: bf16[1152,256], index: 1, kind: input, shape index: {}]   ;;  %s1375_s2 = inlined_call_operand.vmem [shape: f32[1,256], index: 2, kind: input, shape index: {}]   ;;  %s1376_s3 = inlined_call_operand.vmem [shape: f32[1,256], index: 3, kind: input, shape index: {}]   ;;  %s1377_s4 = inlined_call_operand.vmem [shape: bf16[16,256], index: 4, kind: output, shape index: {}]  }
   0x1   :  { %s1243_s17 = smov 0   ;;  %s1245_s18 = smov 0  }
   0x2   :  { %s1247_s19 = smov 0  }
   0x3 LB: > { %s26_s20 = sadd.s32 1, %s1206_s18  ;;  %p49_p1 = scmp.ne.s32.totalorder %s1198_s16, %s1194_s15  ;;  %s1210_s19 = sphi %s1247_s19, %s14_s19   ;;  %s1206_s18 = sphi %s1245_s18, %s1381_s18   ;;  %s1202_s17 = sphi %s1243_s17, %s1380_s17   ;;  %s1198_s16 = sphi %s1241_s16, %s1379_s16   ;;  %s1194_s15 = sphi %s1239_s15, %s1378_s15  }
   0x4   : > { %p27_p0 = scmp.ge.s32.totalorder %s26_s20, 3  ;;  %p50_p2 = scmp.eq.s32.totalorder %s1210_s19, 0 }
   0x5   : > { %s42_s22 = sadd.s32 1, %s1198_s16  ;;  %p976_p5 = scmp.ge.s32.totalorder %s1210_s19, 3 }
   0x6   : > { %s1383_s20 = smov (%p27_p0, %s26_s20), 0  ;;  %p51_p3 = por %p50_p2, %p49_p1 }
   0x7   : > { %s38_s21 = ssub.s32 %s1206_s18, %s1383_s20  ;;  %199 = sbr.rel (%p976_p5) target bundleno = 21 (0x15), region = 24 }
   0x8   : > { %p40_p4 = scmp.eq.s32.totalorder %s38_s21, 0 }
   0xa   : > { %s1274_s23 = scalar_select %p40_p4, %s1198_s16, %s42_s22  }
   0xe   : > { %202 = sbr.rel (!%p51_p3) target bundleno = 21 (0x15), region = 28  ;;  %s204_s24 = sand.u32 (%p51_p3), 1, %s1198_s16  }
   0xf   : > { %s1044_s25 = smul.u32 (%p51_p3), 12, %s1206_s18 }
  0x10   : > { %s1052_s26 = smul.u32 (%p51_p3), 24, %s204_s24 }
  0x11   : > { %s212_s29 = scalar_lea.vmem (%p51_p3), %s1373_s0, %s1044_s25 }
  0x12   : > { %v227_v0 = vld [vmem:[%s212_s29] sm:$0xff] (%p51_p3)  ;;  %v978_v2 = vld [vmem:[%s212_s29 + $0x8] sm:$0xf] (%p51_p3)  ;;  %s206_s30 = scalar_lea.vmem (%p51_p3), [#allocation3], %s1052_s26  ;;  %v980_v3 = vld [vmem:[%s212_s29 + $0x2c] sm:$0xf] (%p51_p3) }
  0x13   : > { %v229_v1 = vld [vmem:[%s212_s29 + $0x24] sm:$0xff] (%p51_p3)  ;;  %228 = vst [vmem:[%s206_s30] sm:$0xff] (%p51_p3), %v227_v0  ;;  %979 = vst [vmem:[%s206_s30 + $0x8] sm:$0xf] (%p51_p3), %v978_v2 }
  0x14   : > { %230 = vst [vmem:[%s206_s30 + $0xc] sm:$0xff] (%p51_p3), %v229_v1  ;;  %981 = vst [vmem:[%s206_s30 + $0x14] sm:$0xf] (%p51_p3), %v980_v3 }
  0x15 PF: > { %p982_p6 = scmp.ge.s32.totalorder %s1210_s19, 1  ;;  %p261_p7 = scmp.lt.s32.totalorder %s1210_s19, 4 }
  0x17   : > { %p262_p8 = pnand %p982_p6, %p261_p7 }
  0x18   : > { %s268_s5 = sand.u32 (!%p262_p8), 1, %s1194_s15   ;;  %s318_s6 = smul.u32 (!%p262_p8), 48, %s1202_s17 }
  0x19   : > { %265 = sbr.rel (%p262_p8) target bundleno = 341 (0x155), region = 58  ;;  %p985_p10 = scmp.ne.s32.totalorder (!%p262_p8), %s1202_s17, 0 }
  0x1a   : > { %s1053_s7 = smul.u32 (!%p262_p8), 24, %s268_s5  ;;  %p320_p9 = scmp.lt.s32.totalorder (!%p262_p8), %s318_s6, 143 }
  0x1c   : > { %s1291_s12 = scalar_lea.vmem (!%p262_p8), [#allocation3], %s1053_s7 }
  0x20   : > { %s1385_s6 = smov (!%p320_p9, %s318_s6), 143  ;;  %356 = sbr.rel (%p985_p10) target bundleno = 39 (0x27), region = 66 }
  0x21   : > { %s1045_s8 = sshll.u32 %s1385_s6, 3  ;;  %v1212_v4 = vmov (!%p985_p10), 0.0  }
  0x22   : > { %s1289_s11 = scalar_lea.vmem %s1374_s1, %s1045_s8  ;;  %357 = vst [vmem:[#allocation2] sm:$0xff] (!%p985_p10), %v1212_v4  ;;  %358 = vst [vmem:[#allocation2 + $0x8] sm:$0xff] (!%p985_p10), %v1212_v4 }
  0x23   : > { %359 = vst [vmem:[#allocation2 + $0x10] sm:$0xff] (!%p985_p10), %v1212_v4  ;;  %360 = vst [vmem:[#allocation2 + $0x18] sm:$0xff] (!%p985_p10), %v1212_v4 }
  0x27 PF: > { %v1096_v5 = vld [vmem:[%s1289_s11 + $0x4] ss:$8 sps:$4 sm:$0xff]   ;;  %v1098_v6 = vld [vmem:[%s1289_s11] ss:$8 sps:$4 sm:$0xff]   ;;  %v1213_v7 = vmov 0   ;;  %p1037_p11 = scmp.ne.s32.totalorder %s1202_s17, 2 }
  0x28   : > { %748 = vmatprep.mubr.bf16.mxu0 %v1213_v7  ;;  %673 = vmatprep.subr.bf16.mxu1 %v1096_v5  ;;  %v1099_v8 = vld [vmem:[%s1289_s11 + $0x14] ss:$8 sps:$4 sm:$0xff]   ;;  %v1101_v9 = vld [vmem:[%s1289_s11 + $0x10] ss:$8 sps:$4 sm:$0xff]   ;;  %v1102_v10 = vld [vmem:[%s1289_s11 + $0x24] ss:$8 sps:$4 sm:$0xff]  }
  0x29   : > { %674 = vmatpush1.bf16.msra.mxu1 %v1098_v6  ;;  %v1104_v11 = vld [vmem:[%s1289_s11 + $0x20] ss:$8 sps:$4 sm:$0xff]   ;;  %v1105_v12 = vld [vmem:[%s1289_s11 + $0x34] ss:$8 sps:$4 sm:$0xff]   ;;  %v1107_v13 = vld [vmem:[%s1289_s11 + $0x30] ss:$8 sps:$4 sm:$0xff]  }
  0x2a   : > { %675 = vmatprep.subr.bf16.mxu1 %v1099_v8  ;;  %v1120_v14 = vld [vmem:[%s1289_s11 + $0x104] ss:$8 sps:$4 sm:$0xff]   ;;  %v1122_v15 = vld [vmem:[%s1289_s11 + $0x100] ss:$8 sps:$4 sm:$0xff]   ;;  %v1126_v17 = vld [vmem:[%s1289_s11 + $0x114] ss:$8 sps:$4 sm:$0xff]  }
  0x2b   : > { %v1108_v16 = vld [vmem:[%s1289_s11 + $0x44] ss:$8 sps:$4 sm:$0xff]   ;;  %716 = vmatprep.subr.bf16.mxu0 %v1120_v14  ;;  %v1128_v18 = vld [vmem:[%s1289_s11 + $0x110] ss:$8 sps:$4 sm:$0xff]   ;;  %v1110_v19 = vld [vmem:[%s1289_s11 + $0x40] ss:$8 sps:$4 sm:$0xff]  }
  0x2c   : > { %717 = vmatpush1.bf16.msra.mxu0 %v1122_v15  ;;  %v1111_v20 = vld [vmem:[%s1289_s11 + $0x54] ss:$8 sps:$4 sm:$0xff]   ;;  %v1132_v21 = vld [vmem:[%s1289_s11 + $0x124] ss:$8 sps:$4 sm:$0xff]   ;;  %v1134_v22 = vld [vmem:[%s1289_s11 + $0x120] ss:$8 sps:$4 sm:$0xff]  }
  0x2d   : > { %676 = vmatpush1.bf16.msra.mxu1 %v1101_v9  ;;  %718 = vmatprep.subr.bf16.mxu0 %v1126_v17  ;;  %v1113_v23 = vld [vmem:[%s1289_s11 + $0x50] ss:$8 sps:$4 sm:$0xff]   ;;  %v1138_v24 = vld [vmem:[%s1289_s11 + $0x134] ss:$8 sps:$4 sm:$0xff]   ;;  %v1114_v25 = vld [vmem:[%s1289_s11 + $0x64] ss:$8 sps:$4 sm:$0xff]  }
  0x2e   : > { %677 = vmatprep.subr.bf16.mxu1 %v1102_v10  ;;  %v1140_v26 = vld [vmem:[%s1289_s11 + $0x130] ss:$8 sps:$4 sm:$0xff]   ;;  %v1116_v27 = vld [vmem:[%s1289_s11 + $0x60] ss:$8 sps:$4 sm:$0xff]   ;;  %v1144_v28 = vld [vmem:[%s1289_s11 + $0x144] ss:$8 sps:$4 sm:$0xff]  }
  0x2f   : > { %v1117_v29 = vld [vmem:[%s1289_s11 + $0x74] ss:$8 sps:$4 sm:$0xff]   ;;  %v1146_v30 = vld [vmem:[%s1289_s11 + $0x140] ss:$8 sps:$4 sm:$0xff]   ;;  %v1119_v31 = vld [vmem:[%s1289_s11 + $0x70] ss:$8 sps:$4 sm:$0xff]  }
  0x30   : > { %719 = vmatpush1.bf16.msra.mxu0 %v1128_v18  ;;  %v1150_v32 = vld [vmem:[%s1289_s11 + $0x154] ss:$8 sps:$4 sm:$0xff]   ;;  %v1123_v33 = vld [vmem:[%s1289_s11 + $0x84] ss:$8 sps:$4 sm:$0xff]   ;;  %v1152_v34 = vld [vmem:[%s1289_s11 + $0x150] ss:$8 sps:$4 sm:$0xff]  }
  0x31   : > { %678 = vmatpush1.bf16.msra.mxu1 %v1104_v11  ;;  %720 = vmatprep.subr.bf16.mxu0 %v1132_v21  ;;  %v1125_v35 = vld [vmem:[%s1289_s11 + $0x80] ss:$8 sps:$4 sm:$0xff]   ;;  %v1156_v36 = vld [vmem:[%s1289_s11 + $0x164] ss:$8 sps:$4 sm:$0xff]   ;;  %v1129_v37 = vld [vmem:[%s1289_s11 + $0x94] ss:$8 sps:$4 sm:$0xff]  }
  0x32   : > { %679 = vmatprep.subr.bf16.mxu1 %v1105_v12  ;;  %v1158_v38 = vld [vmem:[%s1289_s11 + $0x160] ss:$8 sps:$4 sm:$0xff]   ;;  %v1131_v40 = vld [vmem:[%s1289_s11 + $0x90] ss:$8 sps:$4 sm:$0xff]   ;;  %v1162_v41 = vld [vmem:[%s1289_s11 + $0x174] ss:$8 sps:$4 sm:$0xff]  }
  0x33   : > { %v1171_v39 = vld [vmem:[%s1291_s12 + $0x4] ss:$12 sps:$4 sm:$0xff]   ;;  %v1168_v46 = vld [vmem:[%s1291_s12 + $0x8] ss:$12 sps:$4 sm:$0xff]   ;;  %v1169_v56 = vld [vmem:[%s1291_s12] ss:$12 sps:$4 sm:$0xff]  }
  0x34   : > { %721 = vmatpush1.bf16.msra.mxu0 %v1134_v22  ;;  %v1135_v42 = vld [vmem:[%s1289_s11 + $0xa4] ss:$8 sps:$4 sm:$0xff]   ;;  %705 = vmatprep.mubr.bf16.mxu1 %v1171_v39  ;;  %v1164_v43 = vld [vmem:[%s1289_s11 + $0x170] ss:$8 sps:$4 sm:$0xff]   ;;  %v1137_v44 = vld [vmem:[%s1289_s11 + $0xa0] ss:$8 sps:$4 sm:$0xff]  }
  0x35   : > { %680 = vmatpush1.bf16.msra.mxu1 %v1107_v13  ;;  %722 = vmatprep.subr.bf16.mxu0 %v1138_v24  ;;  %v1141_v45 = vld [vmem:[%s1289_s11 + $0xb4] ss:$8 sps:$4 sm:$0xff]   ;;  %v1143_v47 = vld [vmem:[%s1289_s11 + $0xb0] ss:$8 sps:$4 sm:$0xff]   ;;  %v1147_v48 = vld [vmem:[%s1289_s11 + $0xc4] ss:$8 sps:$4 sm:$0xff]   ;;  %v777_v13 = vlaneseq (!%p1037_p11) }
  0x36   : > { %681 = vmatprep.subr.bf16.mxu1 %v1108_v16  ;;  %v1149_v49 = vld [vmem:[%s1289_s11 + $0xc0] ss:$8 sps:$4 sm:$0xff]   ;;  %v1153_v50 = vld [vmem:[%s1289_s11 + $0xd4] ss:$8 sps:$4 sm:$0xff]   ;;  %v1155_v51 = vld [vmem:[%s1289_s11 + $0xd0] ss:$8 sps:$4 sm:$0xff]  }
  0x37   : > { %v1159_v52 = vld [vmem:[%s1289_s11 + $0xe4] ss:$8 sps:$4 sm:$0xff]   ;;  %v1161_v53 = vld [vmem:[%s1289_s11 + $0xe0] ss:$8 sps:$4 sm:$0xff]   ;;  %v1165_v54 = vld [vmem:[%s1289_s11 + $0xf4] ss:$8 sps:$4 sm:$0xff]  }
  0x38   : > { %723 = vmatpush1.bf16.msra.mxu0 %v1140_v26  ;;  %v1167_v55 = vld [vmem:[%s1289_s11 + $0xf0] ss:$8 sps:$4 sm:$0xff]   ;;  %v361_v61 = vld [vmem:[#allocation2] sm:$0xff]  ;;  %v362_v0 = vld [vmem:[#allocation2 + $0x8] sm:$0xff]  ;;  %v778_v14 = vshrl.u32 (!%p1037_p11), %v777_v13, 7 }
  0x39   : > { %682 = vmatpush1.bf16.msra.mxu1 %v1110_v19  ;;  %724 = vmatprep.subr.bf16.mxu0 %v1144_v28  ;;  %v363_v3 = vld [vmem:[#allocation2 + $0x10] sm:$0xff]  ;;  %v364_v7 = vld [vmem:[#allocation2 + $0x18] sm:$0xff]  ;;  %v775_v15 = vld [vmem:[%s1375_s2] sm:$0x3] (!%p1037_p11) }
  0x3a   : > { %683 = vmatprep.subr.bf16.mxu1 %v1111_v20  ;;  %v791_v16 = vld [vmem:[%s1376_s3] sm:$0x3] (!%p1037_p11)  ;;  %v779_v18 = vsub.s32 (!%p1037_p11), 0, %v778_v14  ;;  %v783_v19 = vsub.s32 (!%p1037_p11), 1, %v778_v14 }
  0x3c   : > { %725 = vmatpush1.bf16.msra.mxu0 %v1146_v30  ;;  %v784_v24 = vrot.slane (!%p1037_p11), %v775_v15, %v783_v19  ;;  %v800_v26 = vrot.slane (!%p1037_p11), %v791_v16, %v783_v19 }
  0x3d   : > { %684 = vmatpush1.bf16.msra.mxu1 %v1113_v23  ;;  %726 = vmatprep.subr.bf16.mxu0 %v1150_v32  ;;  %v780_v23 = vrot.slane (!%p1037_p11), %v775_v15, %v779_v18 }
  0x3e   : > { %685 = vmatprep.subr.bf16.mxu1 %v1114_v25  ;;  %v796_v25 = vrot.slane (!%p1037_p11), %v791_v16, %v779_v18 }
  0x40   : > { %727 = vmatpush1.bf16.msra.mxu0 %v1152_v34 }
  0x41   : > { %686 = vmatpush1.bf16.msra.mxu1 %v1116_v27  ;;  %728 = vmatprep.subr.bf16.mxu0 %v1156_v36 }
  0x42   : > { %687 = vmatprep.subr.bf16.mxu1 %v1117_v29 }
  0x44   : > { %729 = vmatpush1.bf16.msra.mxu0 %v1158_v38 }
  0x45   : > { %688 = vmatpush1.bf16.msra.mxu1 %v1119_v31  ;;  %730 = vmatprep.subr.bf16.mxu0 %v1162_v41 }
  0x46   : > { %689 = vmatprep.subr.bf16.mxu1 %v1123_v33 }
  0x48   : > { %731 = vmatpush1.bf16.msra.mxu0 %v1164_v43 }
  0x49   : > { %690 = vmatpush1.bf16.msra.mxu1 %v1125_v35 }
  0x4a   : > { %691 = vmatprep.subr.bf16.mxu1 %v1129_v37 }
  0x4b   : > { %749 = vmatmul.mubr.bf16.vlgmr.msra.gmra.mrb[0].mxu0 %v1168_v46 }
  0x4d   : > { %692 = vmatpush1.bf16.msra.mxu1 %v1131_v40 }
  0x4e   : > { %693 = vmatprep.subr.bf16.mxu1 %v1135_v42 }
  0x51   : > { %694 = vmatpush1.bf16.msra.mxu1 %v1137_v44 }
  0x52   : > { %695 = vmatprep.subr.bf16.mxu1 %v1141_v45 }
  0x55   : > { %696 = vmatpush1.bf16.msra.mxu1 %v1143_v47 }
  0x56   : > { %697 = vmatprep.subr.bf16.mxu1 %v1147_v48 }
  0x59   : > { %698 = vmatpush1.bf16.msra.mxu1 %v1149_v49 }
  0x5a   : > { %699 = vmatprep.subr.bf16.mxu1 %v1153_v50 }
  0x5d   : > { %700 = vmatpush1.bf16.msra.mxu1 %v1155_v51 }
  0x5e   : > { %701 = vmatprep.subr.bf16.mxu1 %v1159_v52 }
  0x61   : > { %702 = vmatpush1.bf16.msra.mxu1 %v1161_v53 }
  0x62   : > { %703 = vmatprep.subr.bf16.mxu1 %v1165_v54 }
  0x65   : > { %704 = vmatpush1.bf16.msra.mxu1 %v1167_v55 }
  0x68   : > { %706 = vmatmul.mubr.bf16.vlgmr.msra.gmra.mrb[0].mxu1 %v1169_v56 }
 0x11e   : > { %v750_v57 = vpop.f32.mrb[0].mxu0 }
 0x11f   : > { %v752_v58 = vpop.f32.mrb[1].mxu0 }
 0x120   : > { %v754_v59 = vpop.f32.mrb[2].mxu0 }
 0x121   : > { %v756_v60 = vpop.f32.mrb[3].mxu0 }
 0x13b   : > { %v707_v62 = vpop.f32.mrb[0].mxu1 }
 0x13c   : > { %v751_v63 = vadd.f32 %v750_v57, %v707_v62  ;;  %v709_v1 = vpop.f32.mrb[1].mxu1 }
 0x13d   : > { %v753_v2 = vadd.f32 %v752_v58, %v709_v1  ;;  %v711_v4 = vpop.f32.mrb[2].mxu1  ;;  %770 = sbr.rel (%p1037_p11) target bundleno = 341 (0x155), region = 70 }
 0x13e   : > { %v759_v5 = vadd.f32 %v751_v63, %v361_v61  ;;  %v755_v6 = vadd.f32 %v754_v59, %v711_v4  ;;  %v713_v8 = vpop.f32.mrb[3].mxu1 }
 0x13f   : > { %v760_v9 = vadd.f32 %v753_v2, %v362_v0  ;;  %v757_v10 = vadd.f32 %v756_v60, %v713_v8 }
 0x140   : > { %763 = vst [vmem:[#allocation2] sm:$0xff] %v759_v5  ;;  %v761_v11 = vadd.f32 %v755_v6, %v363_v3 }
 0x141   : > { %764 = vst [vmem:[#allocation2 + $0x8] sm:$0xff] %v760_v9  ;;  %v762_v12 = vadd.f32 %v757_v10, %v364_v7 }
 0x142   : > { %765 = vst [vmem:[#allocation2 + $0x10] sm:$0xff] %v761_v11 }
 0x143   : > { %766 = vst [vmem:[#allocation2 + $0x18] sm:$0xff] %v762_v12 }
 0x147   : > { %v771_v17 = vld [vmem:[#allocation2] sm:$0xff] }
 0x148   : > { %v772_v20 = vld [vmem:[#allocation2 + $0x8] sm:$0xff]  ;;  %v787_v27 = vmul.f32 %v780_v23, %v771_v17 }
 0x149   : > { %v773_v21 = vld [vmem:[#allocation2 + $0x10] sm:$0xff]  ;;  %v788_v28 = vmul.f32 %v784_v24, %v772_v20 }
 0x14a   : > { %v774_v22 = vld [vmem:[#allocation2 + $0x18] sm:$0xff]  ;;  %v789_v29 = vmul.f32 %v780_v23, %v773_v21  ;;  %v803_v31 = vadd.f32 %v796_v25, %v787_v27 }
 0x14b   : > { %v790_v30 = vmul.f32 %v784_v24, %v774_v22  ;;  %v804_v32 = vadd.f32 %v800_v26, %v788_v28 }
 0x14c   : > { %v805_v33 = vadd.f32 %v796_v25, %v789_v29  ;;  %vm807_vm0 = vcmp.ge.f32.partialorder %v803_v31, 0.0  ;;  %v811_v35 = vmul.f32 0.01, %v803_v31 }
 0x14d   : > { %v806_v34 = vadd.f32 %v800_v26, %v790_v30  ;;  %vm808_vm1 = vcmp.ge.f32.partialorder %v804_v32, 0.0  ;;  %v812_v36 = vmul.f32 0.01, %v804_v32 }
 0x14e   : > { %vm809_vm2 = vcmp.ge.f32.partialorder %v805_v33, 0.0  ;;  %v813_v37 = vmul.f32 0.01, %v805_v33  ;;  %v815_v39 = vsel %vm807_vm0, %v803_v31, %v811_v35 }
 0x14f   : > { %vm810_vm3 = vcmp.ge.f32.partialorder %v806_v34, 0.0  ;;  %v814_v38 = vmul.f32 0.01, %v806_v34  ;;  %v816_v40 = vsel %vm808_vm1, %v804_v32, %v812_v36 }
 0x150   : > { %v1046_v41 = vpack.c.bf16 %v816_v40, %v815_v39  ;;  %v817_v42 = vsel %vm809_vm2, %v805_v33, %v813_v37 }
 0x151   : > { %v818_v43 = vsel %vm810_vm3, %v806_v34, %v814_v38 }
 0x152   : > { %v1047_v44 = vpack.c.bf16 %v818_v43, %v817_v42  ;;  %831 = vst [vmem:[%s1377_s4] sm:$0xff] %v1046_v41 }
 0x154   : > { %832 = vst [vmem:[%s1377_s4 + $0x8] sm:$0xff] %v1047_v44 }
 0x155 PF: > { %s14_s19 = sadd.s32 1, %s1210_s19   ;;  %s1378_s15 = smov %s1198_s16 }
 0x156   : > { %p11_p12 = scmp.ge.s32.totalorder %s14_s19, 5   ;;  %s1379_s16 = smov %s1274_s23 }
 0x157   : > { %s1380_s17 = smov %s1206_s18  ;;  %s1381_s18 = smov %s1383_s20 }
 0x158   :  { %13 = sbr.rel (!%p11_p12) target bundleno = 3 (0x3), region = 120 }

// kernel: resnet_forward.31
= control target key start
LH: loop header
LB: loop body
LE: loop exit
PB: predicated region body
PF: predicated region fallthrough
CT: control target
= control target key end

     0   :  { %v289_v1 = vmov 0   ;;  %v194_v18 = vlaneseq  ;;  %s378_s1 = inlined_call_operand.vmem [shape: bf16[128,256], index: 1, kind: input, shape index: {}]   ;;  %s379_s0 = inlined_call_operand.vmem [shape: bf16[16,128], index: 0, kind: input, shape index: {}]   ;;  %s380_s2 = inlined_call_operand.vmem [shape: f32[1,256], index: 2, kind: input, shape index: {}]   ;;  %s381_s3 = inlined_call_operand.vmem [shape: f32[1,256], index: 3, kind: input, shape index: {}]   ;;  %s382_s4 = inlined_call_operand.vmem [shape: bf16[16,256], index: 4, kind: output, shape index: {}]  }
   0x1   :  { %v264_v0 = vld [vmem:[%s378_s1 + $0x4] ss:$8 sps:$4 sm:$0xff]   ;;  %166 = vmatprep.mubr.bf16.mxu0 %v289_v1  ;;  %v266_v2 = vld [vmem:[%s378_s1] ss:$8 sps:$4 sm:$0xff]   ;;  %v267_v3 = vld [vmem:[%s378_s1 + $0x14] ss:$8 sps:$4 sm:$0xff]  }
   0x2   :  { %134 = vmatprep.subr.bf16.mxu0 %v264_v0  ;;  %v269_v4 = vld [vmem:[%s378_s1 + $0x10] ss:$8 sps:$4 sm:$0xff]   ;;  %v270_v5 = vld [vmem:[%s378_s1 + $0x24] ss:$8 sps:$4 sm:$0xff]   ;;  %v272_v6 = vld [vmem:[%s378_s1 + $0x20] ss:$8 sps:$4 sm:$0xff]  }
   0x3   :  { %135 = vmatpush1.bf16.msra.mxu0 %v266_v2  ;;  %v273_v7 = vld [vmem:[%s378_s1 + $0x34] ss:$8 sps:$4 sm:$0xff]   ;;  %v275_v8 = vld [vmem:[%s378_s1 + $0x30] ss:$8 sps:$4 sm:$0xff]   ;;  %v276_v9 = vld [vmem:[%s378_s1 + $0x44] ss:$8 sps:$4 sm:$0xff]  }
   0x4   :  { %136 = vmatprep.subr.bf16.mxu0 %v267_v3  ;;  %v278_v10 = vld [vmem:[%s378_s1 + $0x40] ss:$8 sps:$4 sm:$0xff]   ;;  %v279_v11 = vld [vmem:[%s378_s1 + $0x54] ss:$8 sps:$4 sm:$0xff]   ;;  %v281_v12 = vld [vmem:[%s378_s1 + $0x50] ss:$8 sps:$4 sm:$0xff]  }
   0x5   :  { %v282_v13 = vld [vmem:[%s378_s1 + $0x64] ss:$8 sps:$4 sm:$0xff]   ;;  %v284_v14 = vld [vmem:[%s378_s1 + $0x60] ss:$8 sps:$4 sm:$0xff]   ;;  %v285_v15 = vld [vmem:[%s378_s1 + $0x74] ss:$8 sps:$4 sm:$0xff]  }
   0x6   :  { %v287_v16 = vld [vmem:[%s378_s1 + $0x70] ss:$8 sps:$4 sm:$0xff]   ;;  %v288_v17 = vld [vmem:[%s379_s0] sm:$0xff]   ;;  %v195_v19 = vshrl.u32 %v194_v18, 7 }
   0x7   :  { %137 = vmatpush1.bf16.msra.mxu0 %v269_v4  ;;  %v192_v21 = vld [vmem:[%s380_s2] sm:$0x3] }
   0x8   :  { %138 = vmatprep.subr.bf16.mxu0 %v270_v5  ;;  %v196_v20 = vsub.s32 0, %v195_v19  ;;  %v200_v22 = vsub.s32 1, %v195_v19  ;;  %v208_v23 = vld [vmem:[%s381_s3] sm:$0x3] }
   0xa   :  { %v197_v24 = vrot.slane %v192_v21, %v196_v20  ;;  %v201_v25 = vrot.slane %v192_v21, %v200_v22  ;;  %v213_v26 = vrot.slane %v208_v23, %v196_v20  ;;  %v217_v28 = vrot.slane %v208_v23, %v200_v22 }
   0xb   :  { %139 = vmatpush1.bf16.msra.mxu0 %v272_v6 }
   0xc   :  { %140 = vmatprep.subr.bf16.mxu0 %v273_v7 }
   0xf   :  { %141 = vmatpush1.bf16.msra.mxu0 %v275_v8 }
  0x10   :  { %142 = vmatprep.subr.bf16.mxu0 %v276_v9 }
  0x13   :  { %143 = vmatpush1.bf16.msra.mxu0 %v278_v10 }
  0x14   :  { %144 = vmatprep.subr.bf16.mxu0 %v279_v11 }
  0x17   :  { %145 = vmatpush1.bf16.msra.mxu0 %v281_v12 }
  0x18   :  { %146 = vmatprep.subr.bf16.mxu0 %v282_v13 }
  0x1b   :  { %147 = vmatpush1.bf16.msra.mxu0 %v284_v14 }
  0x1c   :  { %148 = vmatprep.subr.bf16.mxu0 %v285_v15 }
  0x1f   :  { %149 = vmatpush1.bf16.msra.mxu0 %v287_v16 }
  0x22   :  { %167 = vmatmul.mubr.bf16.vlgmr.msra.gmra.mrb[0].mxu0 %v288_v17 }
  0xf5   :  { %v168_v27 = vpop.f32.mrb[0].mxu0 }
  0xf6   :  { %v204_v29 = vmul.f32 %v197_v24, %v168_v27  ;;  %v170_v30 = vpop.f32.mrb[1].mxu0 }
  0xf7   :  { %v205_v31 = vmul.f32 %v201_v25, %v170_v30  ;;  %v172_v32 = vpop.f32.mrb[2].mxu0 }
  0xf8   :  { %v220_v33 = vadd.f32 %v213_v26, %v204_v29  ;;  %v206_v34 = vmul.f32 %v197_v24, %v172_v32  ;;  %v174_v35 = vpop.f32.mrb[3].mxu0 }
  0xf9   :  { %v221_v36 = vadd.f32 %v217_v28, %v205_v31  ;;  %v207_v37 = vmul.f32 %v201_v25, %v174_v35 }
  0xfa   :  { %v222_v38 = vadd.f32 %v213_v26, %v206_v34 }
  0xfb   :  { %v261_v39 = vpack.c.bf16 %v221_v36, %v220_v33  ;;  %v223_v40 = vadd.f32 %v217_v28, %v207_v37 }
  0xfd   :  { %236 = vst [vmem:[%s382_s4] sm:$0xff] %v261_v39  ;;  %v262_v41 = vpack.c.bf16 %v223_v40, %v222_v38 }
  0xff   :  { %237 = vst [vmem:[%s382_s4 + $0x8] sm:$0xff] %v262_v41 }

// kernel: resnet_forward.33
= control target key start
LH: loop header
LB: loop body
LE: loop exit
PB: predicated region body
PF: predicated region fallthrough
CT: control target
= control target key end

     0   :  { %s1239_s15 = smov 0   ;;  %s1241_s16 = smov 0   ;;  %s1373_s0 = inlined_call_operand.vmem [shape: bf16[16,2304], index: 0, kind: input, shape index: {}]   ;;  %s1374_s1 = inlined_call_operand.vmem [shape: bf16[2304,256], index: 1, kind: input, shape index: {}]   ;;  %s1375_s2 = inlined_call_operand.vmem [shape: f32[1,256], index: 2, kind: input, shape index: {}]   ;;  %s1376_s3 = inlined_call_operand.vmem [shape: f32[1,256], index: 3, kind: input, shape index: {}]   ;;  %s1377_s4 = inlined_call_operand.vmem [shape: bf16[16,256], index: 4, kind: output, shape index: {}]  }
   0x1   :  { %s1243_s17 = smov 0   ;;  %s1245_s18 = smov 0  }
   0x2   :  { %s1247_s19 = smov 0  }
   0x3 LB: > { %s26_s20 = sadd.s32 1, %s1206_s18  ;;  %p49_p1 = scmp.ne.s32.totalorder %s1198_s16, %s1194_s15  ;;  %s1210_s19 = sphi %s1247_s19, %s14_s19   ;;  %s1206_s18 = sphi %s1245_s18, %s1381_s18   ;;  %s1202_s17 = sphi %s1243_s17, %s1380_s17   ;;  %s1198_s16 = sphi %s1241_s16, %s1379_s16   ;;  %s1194_s15 = sphi %s1239_s15, %s1378_s15  }
   0x4   : > { %p27_p0 = scmp.ge.s32.totalorder %s26_s20, 6  ;;  %p50_p2 = scmp.eq.s32.totalorder %s1210_s19, 0 }
   0x5   : > { %s42_s22 = sadd.s32 1, %s1198_s16  ;;  %p976_p5 = scmp.ge.s32.totalorder %s1210_s19, 6 }
   0x6   : > { %s1383_s20 = smov (%p27_p0, %s26_s20), 0  ;;  %p51_p3 = por %p50_p2, %p49_p1 }
   0x7   : > { %s38_s21 = ssub.s32 %s1206_s18, %s1383_s20  ;;  %199 = sbr.rel (%p976_p5) target bundleno = 21 (0x15), region = 24 }
   0x8   : > { %p40_p4 = scmp.eq.s32.totalorder %s38_s21, 0 }
   0xa   : > { %s1274_s23 = scalar_select %p40_p4, %s1198_s16, %s42_s22  }
   0xe   : > { %202 = sbr.rel (!%p51_p3) target bundleno = 21 (0x15), region = 28  ;;  %s204_s24 = sand.u32 (%p51_p3), 1, %s1198_s16  }
   0xf   : > { %s1044_s25 = smul.u32 (%p51_p3), 12, %s1206_s18 }
  0x10   : > { %s1052_s26 = smul.u32 (%p51_p3), 24, %s204_s24 }
  0x11   : > { %s212_s29 = scalar_lea.vmem (%p51_p3), %s1373_s0, %s1044_s25 }
  0x12   : > { %v227_v0 = vld [vmem:[%s212_s29] sm:$0xff] (%p51_p3)  ;;  %v229_v1 = vld [vmem:[%s212_s29 + $0x48] sm:$0xff] (%p51_p3)  ;;  %s206_s30 = scalar_lea.vmem (%p51_p3), [#allocation3], %s1052_s26  ;;  %v980_v3 = vld [vmem:[%s212_s29 + $0x50] sm:$0xf] (%p51_p3) }
  0x13   : > { %v978_v2 = vld [vmem:[%s212_s29 + $0x8] sm:$0xf] (%p51_p3)  ;;  %228 = vst [vmem:[%s206_s30] sm:$0xff] (%p51_p3), %v227_v0  ;;  %230 = vst [vmem:[%s206_s30 + $0xc] sm:$0xff] (%p51_p3), %v229_v1 }
  0x14   : > { %979 = vst [vmem:[%s206_s30 + $0x8] sm:$0xf] (%p51_p3), %v978_v2  ;;  %981 = vst [vmem:[%s206_s30 + $0x14] sm:$0xf] (%p51_p3), %v980_v3 }
  0x15 PF: > { %p982_p6 = scmp.ge.s32.totalorder %s1210_s19, 1  ;;  %p261_p7 = scmp.lt.s32.totalorder %s1210_s19, 7 }
  0x17   : > { %p262_p8 = pnand %p982_p6, %p261_p7 }
  0x18   : > { %s268_s5 = sand.u32 (!%p262_p8), 1, %s1194_s15   ;;  %s318_s6 = smul.u32 (!%p262_p8), 48, %s1202_s17 }
  0x19   : > { %265 = sbr.rel (%p262_p8) target bundleno = 341 (0x155), region = 58  ;;  %p985_p10 = scmp.ne.s32.totalorder (!%p262_p8), %s1202_s17, 0 }
  0x1a   : > { %s1053_s7 = smul.u32 (!%p262_p8), 24, %s268_s5  ;;  %p320_p9 = scmp.lt.s32.totalorder (!%p262_p8), %s318_s6, 287 }
  0x1c   : > { %s1291_s12 = scalar_lea.vmem (!%p262_p8), [#allocation3], %s1053_s7 }
  0x20   : > { %s1385_s6 = smov (!%p320_p9, %s318_s6), 287  ;;  %356 = sbr.rel (%p985_p10) target bundleno = 39 (0x27), region = 66 }
  0x21   : > { %s1045_s8 = sshll.u32 %s1385_s6, 3  ;;  %v1212_v4 = vmov (!%p985_p10), 0.0  }
  0x22   : > { %s1289_s11 = scalar_lea.vmem %s1374_s1, %s1045_s8  ;;  %357 = vst [vmem:[#allocation2] sm:$0xff] (!%p985_p10), %v1212_v4  ;;  %358 = vst [vmem:[#allocation2 + $0x8] sm:$0xff] (!%p985_p10), %v1212_v4 }
  0x23   : > { %359 = vst [vmem:[#allocation2 + $0x10] sm:$0xff] (!%p985_p10), %v1212_v4  ;;  %360 = vst [vmem:[#allocation2 + $0x18] sm:$0xff] (!%p985_p10), %v1212_v4 }
  0x27 PF: > { %v1096_v5 = vld [vmem:[%s1289_s11 + $0x4] ss:$8 sps:$4 sm:$0xff]   ;;  %v1098_v6 = vld [vmem:[%s1289_s11] ss:$8 sps:$4 sm:$0xff]   ;;  %v1213_v7 = vmov 0   ;;  %p1037_p11 = scmp.ne.s32.totalorder %s1202_s17, 5 }
  0x28   : > { %748 = vmatprep.mubr.bf16.mxu0 %v1213_v7  ;;  %673 = vmatprep.subr.bf16.mxu1 %v1096_v5  ;;  %v1099_v8 = vld [vmem:[%s1289_s11 + $0x14] ss:$8 sps:$4 sm:$0xff]   ;;  %v1101_v9 = vld [vmem:[%s1289_s11 + $0x10] ss:$8 sps:$4 sm:$0xff]   ;;  %v1102_v10 = vld [vmem:[%s1289_s11 + $0x24] ss:$8 sps:$4 sm:$0xff]  }
  0x29   : > { %674 = vmatpush1.bf16.msra.mxu1 %v1098_v6  ;;  %v1104_v11 = vld [vmem:[%s1289_s11 + $0x20] ss:$8 sps:$4 sm:$0xff]   ;;  %v1105_v12 = vld [vmem:[%s1289_s11 + $0x34] ss:$8 sps:$4 sm:$0xff]   ;;  %v1107_v13 = vld [vmem:[%s1289_s11 + $0x30] ss:$8 sps:$4 sm:$0xff]  }
  0x2a   : > { %675 = vmatprep.subr.bf16.mxu1 %v1099_v8  ;;  %v1120_v14 = vld [vmem:[%s1289_s11 + $0x104] ss:$8 sps:$4 sm:$0xff]   ;;  %v1122_v15 = vld [vmem:[%s1289_s11 + $0x100] ss:$8 sps:$4 sm:$0xff]   ;;  %v1126_v17 = vld [vmem:[%s1289_s11 + $0x114] ss:$8 sps:$4 sm:$0xff]  }
  0x2b   : > { %v1108_v16 = vld [vmem:[%s1289_s11 + $0x44] ss:$8 sps:$4 sm:$0xff]   ;;  %716 = vmatprep.subr.bf16.mxu0 %v1120_v14  ;;  %v1128_v18 = vld [vmem:[%s1289_s11 + $0x110] ss:$8 sps:$4 sm:$0xff]   ;;  %v1110_v19 = vld [vmem:[%s1289_s11 + $0x40] ss:$8 sps:$4 sm:$0xff]  }
  0x2c   : > { %717 = vmatpush1.bf16.msra.mxu0 %v1122_v15  ;;  %v1111_v20 = vld [vmem:[%s1289_s11 + $0x54] ss:$8 sps:$4 sm:$0xff]   ;;  %v1132_v21 = vld [vmem:[%s1289_s11 + $0x124] ss:$8 sps:$4 sm:$0xff]   ;;  %v1134_v22 = vld [vmem:[%s1289_s11 + $0x120] ss:$8 sps:$4 sm:$0xff]  }
  0x2d   : > { %676 = vmatpush1.bf16.msra.mxu1 %v1101_v9  ;;  %718 = vmatprep.subr.bf16.mxu0 %v1126_v17  ;;  %v1113_v23 = vld [vmem:[%s1289_s11 + $0x50] ss:$8 sps:$4 sm:$0xff]   ;;  %v1138_v24 = vld [vmem:[%s1289_s11 + $0x134] ss:$8 sps:$4 sm:$0xff]   ;;  %v1114_v25 = vld [vmem:[%s1289_s11 + $0x64] ss:$8 sps:$4 sm:$0xff]  }
  0x2e   : > { %677 = vmatprep.subr.bf16.mxu1 %v1102_v10  ;;  %v1140_v26 = vld [vmem:[%s1289_s11 + $0x130] ss:$8 sps:$4 sm:$0xff]   ;;  %v1116_v27 = vld [vmem:[%s1289_s11 + $0x60] ss:$8 sps:$4 sm:$0xff]   ;;  %v1144_v28 = vld [vmem:[%s1289_s11 + $0x144] ss:$8 sps:$4 sm:$0xff]  }
  0x2f   : > { %v1117_v29 = vld [vmem:[%s1289_s11 + $0x74] ss:$8 sps:$4 sm:$0xff]   ;;  %v1146_v30 = vld [vmem:[%s1289_s11 + $0x140] ss:$8 sps:$4 sm:$0xff]   ;;  %v1119_v31 = vld [vmem:[%s1289_s11 + $0x70] ss:$8 sps:$4 sm:$0xff]  }
  0x30   : > { %719 = vmatpush1.bf16.msra.mxu0 %v1128_v18  ;;  %v1150_v32 = vld [vmem:[%s1289_s11 + $0x154] ss:$8 sps:$4 sm:$0xff]   ;;  %v1123_v33 = vld [vmem:[%s1289_s11 + $0x84] ss:$8 sps:$4 sm:$0xff]   ;;  %v1152_v34 = vld [vmem:[%s1289_s11 + $0x150] ss:$8 sps:$4 sm:$0xff]  }
  0x31   : > { %678 = vmatpush1.bf16.msra.mxu1 %v1104_v11  ;;  %720 = vmatprep.subr.bf16.mxu0 %v1132_v21  ;;  %v1125_v35 = vld [vmem:[%s1289_s11 + $0x80] ss:$8 sps:$4 sm:$0xff]   ;;  %v1156_v36 = vld [vmem:[%s1289_s11 + $0x164] ss:$8 sps:$4 sm:$0xff]   ;;  %v1129_v37 = vld [vmem:[%s1289_s11 + $0x94] ss:$8 sps:$4 sm:$0xff]  }
  0x32   : > { %679 = vmatprep.subr.bf16.mxu1 %v1105_v12  ;;  %v1158_v38 = vld [vmem:[%s1289_s11 + $0x160] ss:$8 sps:$4 sm:$0xff]   ;;  %v1131_v40 = vld [vmem:[%s1289_s11 + $0x90] ss:$8 sps:$4 sm:$0xff]   ;;  %v1162_v41 = vld [vmem:[%s1289_s11 + $0x174] ss:$8 sps:$4 sm:$0xff]  }
  0x33   : > { %v1171_v39 = vld [vmem:[%s1291_s12 + $0x4] ss:$12 sps:$4 sm:$0xff]   ;;  %v1168_v46 = vld [vmem:[%s1291_s12 + $0x8] ss:$12 sps:$4 sm:$0xff]   ;;  %v1169_v56 = vld [vmem:[%s1291_s12] ss:$12 sps:$4 sm:$0xff]  }
  0x34   : > { %721 = vmatpush1.bf16.msra.mxu0 %v1134_v22  ;;  %v1135_v42 = vld [vmem:[%s1289_s11 + $0xa4] ss:$8 sps:$4 sm:$0xff]   ;;  %705 = vmatprep.mubr.bf16.mxu1 %v1171_v39  ;;  %v1164_v43 = vld [vmem:[%s1289_s11 + $0x170] ss:$8 sps:$4 sm:$0xff]   ;;  %v1137_v44 = vld [vmem:[%s1289_s11 + $0xa0] ss:$8 sps:$4 sm:$0xff]  }
  0x35   : > { %680 = vmatpush1.bf16.msra.mxu1 %v1107_v13  ;;  %722 = vmatprep.subr.bf16.mxu0 %v1138_v24  ;;  %v1141_v45 = vld [vmem:[%s1289_s11 + $0xb4] ss:$8 sps:$4 sm:$0xff]   ;;  %v1143_v47 = vld [vmem:[%s1289_s11 + $0xb0] ss:$8 sps:$4 sm:$0xff]   ;;  %v1147_v48 = vld [vmem:[%s1289_s11 + $0xc4] ss:$8 sps:$4 sm:$0xff]   ;;  %v777_v13 = vlaneseq (!%p1037_p11) }
  0x36   : > { %681 = vmatprep.subr.bf16.mxu1 %v1108_v16  ;;  %v1149_v49 = vld [vmem:[%s1289_s11 + $0xc0] ss:$8 sps:$4 sm:$0xff]   ;;  %v1153_v50 = vld [vmem:[%s1289_s11 + $0xd4] ss:$8 sps:$4 sm:$0xff]   ;;  %v1155_v51 = vld [vmem:[%s1289_s11 + $0xd0] ss:$8 sps:$4 sm:$0xff]  }
  0x37   : > { %v1159_v52 = vld [vmem:[%s1289_s11 + $0xe4] ss:$8 sps:$4 sm:$0xff]   ;;  %v1161_v53 = vld [vmem:[%s1289_s11 + $0xe0] ss:$8 sps:$4 sm:$0xff]   ;;  %v1165_v54 = vld [vmem:[%s1289_s11 + $0xf4] ss:$8 sps:$4 sm:$0xff]  }
  0x38   : > { %723 = vmatpush1.bf16.msra.mxu0 %v1140_v26  ;;  %v1167_v55 = vld [vmem:[%s1289_s11 + $0xf0] ss:$8 sps:$4 sm:$0xff]   ;;  %v361_v61 = vld [vmem:[#allocation2] sm:$0xff]  ;;  %v362_v0 = vld [vmem:[#allocation2 + $0x8] sm:$0xff]  ;;  %v778_v14 = vshrl.u32 (!%p1037_p11), %v777_v13, 7 }
  0x39   : > { %682 = vmatpush1.bf16.msra.mxu1 %v1110_v19  ;;  %724 = vmatprep.subr.bf16.mxu0 %v1144_v28  ;;  %v363_v3 = vld [vmem:[#allocation2 + $0x10] sm:$0xff]  ;;  %v364_v7 = vld [vmem:[#allocation2 + $0x18] sm:$0xff]  ;;  %v775_v15 = vld [vmem:[%s1375_s2] sm:$0x3] (!%p1037_p11) }
  0x3a   : > { %683 = vmatprep.subr.bf16.mxu1 %v1111_v20  ;;  %v791_v16 = vld [vmem:[%s1376_s3] sm:$0x3] (!%p1037_p11)  ;;  %v779_v18 = vsub.s32 (!%p1037_p11), 0, %v778_v14  ;;  %v783_v19 = vsub.s32 (!%p1037_p11), 1, %v778_v14 }
  0x3c   : > { %725 = vmatpush1.bf16.msra.mxu0 %v1146_v30  ;;  %v784_v24 = vrot.slane (!%p1037_p11), %v775_v15, %v783_v19  ;;  %v800_v26 = vrot.slane (!%p1037_p11), %v791_v16, %v783_v19 }
  0x3d   : > { %684 = vmatpush1.bf16.msra.mxu1 %v1113_v23  ;;  %726 = vmatprep.subr.bf16.mxu0 %v1150_v32  ;;  %v780_v23 = vrot.slane (!%p1037_p11), %v775_v15, %v779_v18 }
  0x3e   : > { %685 = vmatprep.subr.bf16.mxu1 %v1114_v25  ;;  %v796_v25 = vrot.slane (!%p1037_p11), %v791_v16, %v779_v18 }
  0x40   : > { %727 = vmatpush1.bf16.msra.mxu0 %v1152_v34 }
  0x41   : > { %686 = vmatpush1.bf16.msra.mxu1 %v1116_v27  ;;  %728 = vmatprep.subr.bf16.mxu0 %v1156_v36 }
  0x42   : > { %687 = vmatprep.subr.bf16.mxu1 %v1117_v29 }
  0x44   : > { %729 = vmatpush1.bf16.msra.mxu0 %v1158_v38 }
  0x45   : > { %688 = vmatpush1.bf16.msra.mxu1 %v1119_v31  ;;  %730 = vmatprep.subr.bf16.mxu0 %v1162_v41 }
  0x46   : > { %689 = vmatprep.subr.bf16.mxu1 %v1123_v33 }
  0x48   : > { %731 = vmatpush1.bf16.msra.mxu0 %v1164_v43 }
  0x49   : > { %690 = vmatpush1.bf16.msra.mxu1 %v1125_v35 }
  0x4a   : > { %691 = vmatprep.subr.bf16.mxu1 %v1129_v37 }
  0x4b   : > { %749 = vmatmul.mubr.bf16.vlgmr.msra.gmra.mrb[0].mxu0 %v1168_v46 }
  0x4d   : > { %692 = vmatpush1.bf16.msra.mxu1 %v1131_v40 }
  0x4e   : > { %693 = vmatprep.subr.bf16.mxu1 %v1135_v42 }
  0x51   : > { %694 = vmatpush1.bf16.msra.mxu1 %v1137_v44 }
  0x52   : > { %695 = vmatprep.subr.bf16.mxu1 %v1141_v45 }
  0x55   : > { %696 = vmatpush1.bf16.msra.mxu1 %v1143_v47 }
  0x56   : > { %697 = vmatprep.subr.bf16.mxu1 %v1147_v48 }
  0x59   : > { %698 = vmatpush1.bf16.msra.mxu1 %v1149_v49 }
  0x5a   : > { %699 = vmatprep.subr.bf16.mxu1 %v1153_v50 }
  0x5d   : > { %700 = vmatpush1.bf16.msra.mxu1 %v1155_v51 }
  0x5e   : > { %701 = vmatprep.subr.bf16.mxu1 %v1159_v52 }
  0x61   : > { %702 = vmatpush1.bf16.msra.mxu1 %v1161_v53 }
  0x62   : > { %703 = vmatprep.subr.bf16.mxu1 %v1165_v54 }
  0x65   : > { %704 = vmatpush1.bf16.msra.mxu1 %v1167_v55 }
  0x68   : > { %706 = vmatmul.mubr.bf16.vlgmr.msra.gmra.mrb[0].mxu1 %v1169_v56 }
 0x11e   : > { %v750_v57 = vpop.f32.mrb[0].mxu0 }
 0x11f   : > { %v752_v58 = vpop.f32.mrb[1].mxu0 }
 0x120   : > { %v754_v59 = vpop.f32.mrb[2].mxu0 }
 0x121   : > { %v756_v60 = vpop.f32.mrb[3].mxu0 }
 0x13b   : > { %v707_v62 = vpop.f32.mrb[0].mxu1 }
 0x13c   : > { %v751_v63 = vadd.f32 %v750_v57, %v707_v62  ;;  %v709_v1 = vpop.f32.mrb[1].mxu1 }
 0x13d   : > { %v753_v2 = vadd.f32 %v752_v58, %v709_v1  ;;  %v711_v4 = vpop.f32.mrb[2].mxu1  ;;  %770 = sbr.rel (%p1037_p11) target bundleno = 341 (0x155), region = 70 }
 0x13e   : > { %v759_v5 = vadd.f32 %v751_v63, %v361_v61  ;;  %v755_v6 = vadd.f32 %v754_v59, %v711_v4  ;;  %v713_v8 = vpop.f32.mrb[3].mxu1 }
 0x13f   : > { %v760_v9 = vadd.f32 %v753_v2, %v362_v0  ;;  %v757_v10 = vadd.f32 %v756_v60, %v713_v8 }
 0x140   : > { %763 = vst [vmem:[#allocation2] sm:$0xff] %v759_v5  ;;  %v761_v11 = vadd.f32 %v755_v6, %v363_v3 }
 0x141   : > { %764 = vst [vmem:[#allocation2 + $0x8] sm:$0xff] %v760_v9  ;;  %v762_v12 = vadd.f32 %v757_v10, %v364_v7 }
 0x142   : > { %765 = vst [vmem:[#allocation2 + $0x10] sm:$0xff] %v761_v11 }
 0x143   : > { %766 = vst [vmem:[#allocation2 + $0x18] sm:$0xff] %v762_v12 }
 0x147   : > { %v771_v17 = vld [vmem:[#allocation2] sm:$0xff] }
 0x148   : > { %v772_v20 = vld [vmem:[#allocation2 + $0x8] sm:$0xff]  ;;  %v787_v27 = vmul.f32 %v780_v23, %v771_v17 }
 0x149   : > { %v773_v21 = vld [vmem:[#allocation2 + $0x10] sm:$0xff]  ;;  %v788_v28 = vmul.f32 %v784_v24, %v772_v20 }
 0x14a   : > { %v774_v22 = vld [vmem:[#allocation2 + $0x18] sm:$0xff]  ;;  %v789_v29 = vmul.f32 %v780_v23, %v773_v21  ;;  %v803_v31 = vadd.f32 %v796_v25, %v787_v27 }
 0x14b   : > { %v790_v30 = vmul.f32 %v784_v24, %v774_v22  ;;  %v804_v32 = vadd.f32 %v800_v26, %v788_v28 }
 0x14c   : > { %v805_v33 = vadd.f32 %v796_v25, %v789_v29  ;;  %vm807_vm0 = vcmp.ge.f32.partialorder %v803_v31, 0.0  ;;  %v811_v35 = vmul.f32 0.01, %v803_v31 }
 0x14d   : > { %v806_v34 = vadd.f32 %v800_v26, %v790_v30  ;;  %vm808_vm1 = vcmp.ge.f32.partialorder %v804_v32, 0.0  ;;  %v812_v36 = vmul.f32 0.01, %v804_v32 }
 0x14e   : > { %vm809_vm2 = vcmp.ge.f32.partialorder %v805_v33, 0.0  ;;  %v813_v37 = vmul.f32 0.01, %v805_v33  ;;  %v815_v39 = vsel %vm807_vm0, %v803_v31, %v811_v35 }
 0x14f   : > { %vm810_vm3 = vcmp.ge.f32.partialorder %v806_v34, 0.0  ;;  %v814_v38 = vmul.f32 0.01, %v806_v34  ;;  %v816_v40 = vsel %vm808_vm1, %v804_v32, %v812_v36 }
 0x150   : > { %v1046_v41 = vpack.c.bf16 %v816_v40, %v815_v39  ;;  %v817_v42 = vsel %vm809_vm2, %v805_v33, %v813_v37 }
 0x151   : > { %v818_v43 = vsel %vm810_vm3, %v806_v34, %v814_v38 }
 0x152   : > { %v1047_v44 = vpack.c.bf16 %v818_v43, %v817_v42  ;;  %831 = vst [vmem:[%s1377_s4] sm:$0xff] %v1046_v41 }
 0x154   : > { %832 = vst [vmem:[%s1377_s4 + $0x8] sm:$0xff] %v1047_v44 }
 0x155 PF: > { %s14_s19 = sadd.s32 1, %s1210_s19   ;;  %s1378_s15 = smov %s1198_s16 }
 0x156   : > { %p11_p12 = scmp.ge.s32.totalorder %s14_s19, 8   ;;  %s1379_s16 = smov %s1274_s23 }
 0x157   : > { %s1380_s17 = smov %s1206_s18  ;;  %s1381_s18 = smov %s1383_s20 }
 0x158   :  { %13 = sbr.rel (!%p11_p12) target bundleno = 3 (0x3), region = 120 }

// kernel: resnet_forward.32
= control target key start
LH: loop header
LB: loop body
LE: loop exit
PB: predicated region body
PF: predicated region fallthrough
CT: control target
= control target key end

     0   :  { %s1344_s18 = smov 0   ;;  %s1346_s19 = smov 0   ;;  %s1484_s0 = inlined_call_operand.vmem [shape: bf16[16,2304], index: 0, kind: input, shape index: {}]   ;;  %s1485_s1 = inlined_call_operand.vmem [shape: bf16[2304,256], index: 1, kind: input, shape index: {}]   ;;  %s1486_s2 = inlined_call_operand.vmem [shape: f32[1,256], index: 2, kind: input, shape index: {}]   ;;  %s1487_s3 = inlined_call_operand.vmem [shape: f32[1,256], index: 3, kind: input, shape index: {}]   ;;  %s1488_s4 = inlined_call_operand.vmem [shape: bf16[16,256], index: 4, kind: input, shape index: {}]   ;;  %s1489_s5 = inlined_call_operand.vmem [shape: bf16[16,256], index: 5, kind: output, shape index: {}]  }
   0x1   :  { %s1348_s20 = smov 0   ;;  %s1350_s21 = smov 0  }
   0x2   :  { %s1352_s22 = smov 0  }
   0x3 LB: > { %s27_s23 = sadd.s32 1, %s1306_s21  ;;  %p50_p1 = scmp.ne.s32.totalorder %s1298_s19, %s1294_s18  ;;  %s1310_s22 = sphi %s1352_s22, %s15_s22   ;;  %s1306_s21 = sphi %s1350_s21, %s1493_s21   ;;  %s1302_s20 = sphi %s1348_s20, %s1492_s20   ;;  %s1298_s19 = sphi %s1346_s19, %s1491_s19   ;;  %s1294_s18 = sphi %s1344_s18, %s1490_s18  }
   0x4   : > { %p28_p0 = scmp.ge.s32.totalorder %s27_s23, 6  ;;  %p51_p2 = scmp.eq.s32.totalorder %s1310_s22, 0 }
   0x5   : > { %s43_s25 = sadd.s32 1, %s1298_s19  ;;  %p1076_p5 = scmp.ge.s32.totalorder %s1310_s22, 6 }
   0x6   : > { %s1495_s23 = smov (%p28_p0, %s27_s23), 0  ;;  %p52_p3 = por %p51_p2, %p50_p1 }
   0x7   : > { %s39_s24 = ssub.s32 %s1306_s21, %s1495_s23  ;;  %243 = sbr.rel (%p1076_p5) target bundleno = 21 (0x15), region = 28 }
   0x8   : > { %p41_p4 = scmp.eq.s32.totalorder %s39_s24, 0 }
   0xa   : > { %s1379_s26 = scalar_select %p41_p4, %s1298_s19, %s43_s25  }
   0xe   : > { %246 = sbr.rel (!%p52_p3) target bundleno = 21 (0x15), region = 32  ;;  %s248_s27 = sand.u32 (%p52_p3), 1, %s1298_s19  }
   0xf   : > { %s1144_s28 = smul.u32 (%p52_p3), 12, %s1306_s21 }
  0x10   : > { %s1152_s29 = smul.u32 (%p52_p3), 24, %s248_s27 }
  0x11   : > { %s256_s7 = scalar_lea.vmem (%p52_p3), %s1484_s0, %s1144_s28 }
  0x12   : > { %v271_v0 = vld [vmem:[%s256_s7] sm:$0xff] (%p52_p3)  ;;  %v273_v1 = vld [vmem:[%s256_s7 + $0x48] sm:$0xff] (%p52_p3)  ;;  %s250_s8 = scalar_lea.vmem (%p52_p3), [#allocation3], %s1152_s29  ;;  %v1080_v3 = vld [vmem:[%s256_s7 + $0x50] sm:$0xf] (%p52_p3) }
  0x13   : > { %v1078_v2 = vld [vmem:[%s256_s7 + $0x8] sm:$0xf] (%p52_p3)  ;;  %272 = vst [vmem:[%s250_s8] sm:$0xff] (%p52_p3), %v271_v0  ;;  %274 = vst [vmem:[%s250_s8 + $0xc] sm:$0xff] (%p52_p3), %v273_v1 }
  0x14   : > { %1079 = vst [vmem:[%s250_s8 + $0x8] sm:$0xf] (%p52_p3), %v1078_v2  ;;  %1081 = vst [vmem:[%s250_s8 + $0x14] sm:$0xf] (%p52_p3), %v1080_v3 }
  0x15 PF: > { %p1082_p6 = scmp.ge.s32.totalorder %s1310_s22, 1  ;;  %p305_p7 = scmp.lt.s32.totalorder %s1310_s22, 7 }
  0x17   : > { %p306_p8 = pnand %p1082_p6, %p305_p7 }
  0x18   : > { %s312_s9 = sand.u32 (!%p306_p8), 1, %s1294_s18   ;;  %s374_s10 = smul.u32 (!%p306_p8), 48, %s1302_s20 }
  0x19   : > { %309 = sbr.rel (%p306_p8) target bundleno = 343 (0x157), region = 62  ;;  %p1085_p10 = scmp.ne.s32.totalorder (!%p306_p8), %s1302_s20, 0 }
  0x1a   : > { %s1153_s11 = smul.u32 (!%p306_p8), 24, %s312_s9  ;;  %p376_p9 = scmp.lt.s32.totalorder (!%p306_p8), %s374_s10, 287 }
  0x1c   : > { %s1396_s16 = scalar_lea.vmem (!%p306_p8), [#allocation3], %s1153_s11 }
  0x20   : > { %s1497_s10 = smov (!%p376_p9, %s374_s10), 287  ;;  %424 = sbr.rel (%p1085_p10) target bundleno = 39 (0x27), region = 70 }
  0x21   : > { %s1145_s12 = sshll.u32 %s1497_s10, 3  ;;  %v1312_v4 = vmov (!%p1085_p10), 0.0  }
  0x22   : > { %s1394_s15 = scalar_lea.vmem %s1485_s1, %s1145_s12  ;;  %425 = vst [vmem:[#allocation2] sm:$0xff] (!%p1085_p10), %v1312_v4  ;;  %426 = vst [vmem:[#allocation2 + $0x8] sm:$0xff] (!%p1085_p10), %v1312_v4 }
  0x23   : > { %427 = vst [vmem:[#allocation2 + $0x10] sm:$0xff] (!%p1085_p10), %v1312_v4  ;;  %428 = vst [vmem:[#allocation2 + $0x18] sm:$0xff] (!%p1085_p10), %v1312_v4 }
  0x27 PF: > { %v1196_v5 = vld [vmem:[%s1394_s15 + $0x4] ss:$8 sps:$4 sm:$0xff]   ;;  %v1198_v6 = vld [vmem:[%s1394_s15] ss:$8 sps:$4 sm:$0xff]   ;;  %v1313_v7 = vmov 0   ;;  %p1137_p11 = scmp.ne.s32.totalorder %s1302_s20, 5 }
  0x28   : > { %816 = vmatprep.mubr.bf16.mxu0 %v1313_v7  ;;  %741 = vmatprep.subr.bf16.mxu1 %v1196_v5  ;;  %v1199_v8 = vld [vmem:[%s1394_s15 + $0x14] ss:$8 sps:$4 sm:$0xff]   ;;  %v1201_v9 = vld [vmem:[%s1394_s15 + $0x10] ss:$8 sps:$4 sm:$0xff]   ;;  %v1202_v10 = vld [vmem:[%s1394_s15 + $0x24] ss:$8 sps:$4 sm:$0xff]  }
  0x29   : > { %742 = vmatpush1.bf16.msra.mxu1 %v1198_v6  ;;  %v1204_v11 = vld [vmem:[%s1394_s15 + $0x20] ss:$8 sps:$4 sm:$0xff]   ;;  %v1205_v12 = vld [vmem:[%s1394_s15 + $0x34] ss:$8 sps:$4 sm:$0xff]   ;;  %v1207_v13 = vld [vmem:[%s1394_s15 + $0x30] ss:$8 sps:$4 sm:$0xff]  }
  0x2a   : > { %743 = vmatprep.subr.bf16.mxu1 %v1199_v8  ;;  %v1220_v14 = vld [vmem:[%s1394_s15 + $0x104] ss:$8 sps:$4 sm:$0xff]   ;;  %v1222_v15 = vld [vmem:[%s1394_s15 + $0x100] ss:$8 sps:$4 sm:$0xff]   ;;  %v1226_v17 = vld [vmem:[%s1394_s15 + $0x114] ss:$8 sps:$4 sm:$0xff]  }
  0x2b   : > { %v1208_v16 = vld [vmem:[%s1394_s15 + $0x44] ss:$8 sps:$4 sm:$0xff]   ;;  %784 = vmatprep.subr.bf16.mxu0 %v1220_v14  ;;  %v1228_v18 = vld [vmem:[%s1394_s15 + $0x110] ss:$8 sps:$4 sm:$0xff]   ;;  %v1210_v19 = vld [vmem:[%s1394_s15 + $0x40] ss:$8 sps:$4 sm:$0xff]  }
  0x2c   : > { %785 = vmatpush1.bf16.msra.mxu0 %v1222_v15  ;;  %v1211_v20 = vld [vmem:[%s1394_s15 + $0x54] ss:$8 sps:$4 sm:$0xff]   ;;  %v1232_v21 = vld [vmem:[%s1394_s15 + $0x124] ss:$8 sps:$4 sm:$0xff]   ;;  %v1234_v22 = vld [vmem:[%s1394_s15 + $0x120] ss:$8 sps:$4 sm:$0xff]  }
  0x2d   : > { %744 = vmatpush1.bf16.msra.mxu1 %v1201_v9  ;;  %786 = vmatprep.subr.bf16.mxu0 %v1226_v17  ;;  %v1213_v23 = vld [vmem:[%s1394_s15 + $0x50] ss:$8 sps:$4 sm:$0xff]   ;;  %v1238_v24 = vld [vmem:[%s1394_s15 + $0x134] ss:$8 sps:$4 sm:$0xff]   ;;  %v1214_v25 = vld [vmem:[%s1394_s15 + $0x64] ss:$8 sps:$4 sm:$0xff]  }
  0x2e   : > { %745 = vmatprep.subr.bf16.mxu1 %v1202_v10  ;;  %v1240_v26 = vld [vmem:[%s1394_s15 + $0x130] ss:$8 sps:$4 sm:$0xff]   ;;  %v1216_v27 = vld [vmem:[%s1394_s15 + $0x60] ss:$8 sps:$4 sm:$0xff]   ;;  %v1244_v28 = vld [vmem:[%s1394_s15 + $0x144] ss:$8 sps:$4 sm:$0xff]  }
  0x2f   : > { %v1217_v29 = vld [vmem:[%s1394_s15 + $0x74] ss:$8 sps:$4 sm:$0xff]   ;;  %v1246_v30 = vld [vmem:[%s1394_s15 + $0x140] ss:$8 sps:$4 sm:$0xff]   ;;  %v1219_v31 = vld [vmem:[%s1394_s15 + $0x70] ss:$8 sps:$4 sm:$0xff]  }
  0x30   : > { %787 = vmatpush1.bf16.msra.mxu0 %v1228_v18  ;;  %v1250_v32 = vld [vmem:[%s1394_s15 + $0x154] ss:$8 sps:$4 sm:$0xff]   ;;  %v1223_v33 = vld [vmem:[%s1394_s15 + $0x84] ss:$8 sps:$4 sm:$0xff]   ;;  %v1252_v34 = vld [vmem:[%s1394_s15 + $0x150] ss:$8 sps:$4 sm:$0xff]  }
  0x31   : > { %746 = vmatpush1.bf16.msra.mxu1 %v1204_v11  ;;  %788 = vmatprep.subr.bf16.mxu0 %v1232_v21  ;;  %v1225_v35 = vld [vmem:[%s1394_s15 + $0x80] ss:$8 sps:$4 sm:$0xff]   ;;  %v1256_v36 = vld [vmem:[%s1394_s15 + $0x164] ss:$8 sps:$4 sm:$0xff]   ;;  %v1229_v37 = vld [vmem:[%s1394_s15 + $0x94] ss:$8 sps:$4 sm:$0xff]  }
  0x32   : > { %747 = vmatprep.subr.bf16.mxu1 %v1205_v12  ;;  %v1258_v38 = vld [vmem:[%s1394_s15 + $0x160] ss:$8 sps:$4 sm:$0xff]   ;;  %v1231_v40 = vld [vmem:[%s1394_s15 + $0x90] ss:$8 sps:$4 sm:$0xff]   ;;  %v1262_v41 = vld [vmem:[%s1394_s15 + $0x174] ss:$8 sps:$4 sm:$0xff]  }
  0x33   : > { %v1271_v39 = vld [vmem:[%s1396_s16 + $0x4] ss:$12 sps:$4 sm:$0xff]   ;;  %v1268_v46 = vld [vmem:[%s1396_s16 + $0x8] ss:$12 sps:$4 sm:$0xff]   ;;  %v1269_v56 = vld [vmem:[%s1396_s16] ss:$12 sps:$4 sm:$0xff]  }
  0x34   : > { %789 = vmatpush1.bf16.msra.mxu0 %v1234_v22  ;;  %v1235_v42 = vld [vmem:[%s1394_s15 + $0xa4] ss:$8 sps:$4 sm:$0xff]   ;;  %773 = vmatprep.mubr.bf16.mxu1 %v1271_v39  ;;  %v1264_v43 = vld [vmem:[%s1394_s15 + $0x170] ss:$8 sps:$4 sm:$0xff]   ;;  %v1237_v44 = vld [vmem:[%s1394_s15 + $0xa0] ss:$8 sps:$4 sm:$0xff]  }
  0x35   : > { %748 = vmatpush1.bf16.msra.mxu1 %v1207_v13  ;;  %790 = vmatprep.subr.bf16.mxu0 %v1238_v24  ;;  %v1241_v45 = vld [vmem:[%s1394_s15 + $0xb4] ss:$8 sps:$4 sm:$0xff]   ;;  %v1243_v47 = vld [vmem:[%s1394_s15 + $0xb0] ss:$8 sps:$4 sm:$0xff]   ;;  %v1247_v48 = vld [vmem:[%s1394_s15 + $0xc4] ss:$8 sps:$4 sm:$0xff]   ;;  %v845_v13 = vlaneseq (!%p1137_p11) }
  0x36   : > { %749 = vmatprep.subr.bf16.mxu1 %v1208_v16  ;;  %v1249_v49 = vld [vmem:[%s1394_s15 + $0xc0] ss:$8 sps:$4 sm:$0xff]   ;;  %v1253_v50 = vld [vmem:[%s1394_s15 + $0xd4] ss:$8 sps:$4 sm:$0xff]   ;;  %v1255_v51 = vld [vmem:[%s1394_s15 + $0xd0] ss:$8 sps:$4 sm:$0xff]  }
  0x37   : > { %v1259_v52 = vld [vmem:[%s1394_s15 + $0xe4] ss:$8 sps:$4 sm:$0xff]   ;;  %v1261_v53 = vld [vmem:[%s1394_s15 + $0xe0] ss:$8 sps:$4 sm:$0xff]   ;;  %v1265_v54 = vld [vmem:[%s1394_s15 + $0xf4] ss:$8 sps:$4 sm:$0xff]  }
  0x38   : > { %791 = vmatpush1.bf16.msra.mxu0 %v1240_v26  ;;  %v1267_v55 = vld [vmem:[%s1394_s15 + $0xf0] ss:$8 sps:$4 sm:$0xff]   ;;  %v429_v61 = vld [vmem:[#allocation2] sm:$0xff]  ;;  %v430_v0 = vld [vmem:[#allocation2 + $0x8] sm:$0xff]  ;;  %v846_v14 = vshrl.u32 (!%p1137_p11), %v845_v13, 7 }
  0x39   : > { %750 = vmatpush1.bf16.msra.mxu1 %v1210_v19  ;;  %792 = vmatprep.subr.bf16.mxu0 %v1244_v28  ;;  %v431_v3 = vld [vmem:[#allocation2 + $0x10] sm:$0xff]  ;;  %v432_v7 = vld [vmem:[#allocation2 + $0x18] sm:$0xff]  ;;  %v843_v15 = vld [vmem:[%s1486_s2] sm:$0x3] (!%p1137_p11) }
  0x3a   : > { %751 = vmatprep.subr.bf16.mxu1 %v1211_v20  ;;  %v859_v16 = vld [vmem:[%s1487_s3] sm:$0x3] (!%p1137_p11)  ;;  %v847_v18 = vsub.s32 (!%p1137_p11), 0, %v846_v14  ;;  %v851_v19 = vsub.s32 (!%p1137_p11), 1, %v846_v14  ;;  %v876_v21 = vld [vmem:[%s1488_s4 + $0x8] sm:$0xff] (!%p1137_p11) }
  0x3b   : > { %v875_v20 = vld [vmem:[%s1488_s4] sm:$0xff] (!%p1137_p11) }
  0x3c   : > { %793 = vmatpush1.bf16.msra.mxu0 %v1246_v30  ;;  %v852_v26 = vrot.slane (!%p1137_p11), %v843_v15, %v851_v19  ;;  %v868_v28 = vrot.slane (!%p1137_p11), %v859_v16, %v851_v19  ;;  %v878_v30 = vunpack.c.h.bf16 (!%p1137_p11), %v875_v20 }
  0x3d   : > { %752 = vmatpush1.bf16.msra.mxu1 %v1213_v23  ;;  %794 = vmatprep.subr.bf16.mxu0 %v1250_v32  ;;  %v880_v32 = vunpack.c.h.bf16 (!%p1137_p11), %v876_v21 }
  0x3e   : > { %753 = vmatprep.subr.bf16.mxu1 %v1214_v25  ;;  %v848_v25 = vrot.slane (!%p1137_p11), %v843_v15, %v847_v18 }
  0x40   : > { %795 = vmatpush1.bf16.msra.mxu0 %v1252_v34 }
  0x41   : > { %754 = vmatpush1.bf16.msra.mxu1 %v1216_v27  ;;  %796 = vmatprep.subr.bf16.mxu0 %v1256_v36  ;;  %v864_v27 = vrot.slane (!%p1137_p11), %v859_v16, %v847_v18 }
  0x42   : > { %755 = vmatprep.subr.bf16.mxu1 %v1217_v29  ;;  %v877_v29 = vunpack.c.l.bf16 (!%p1137_p11), %v875_v20 }
  0x44   : > { %797 = vmatpush1.bf16.msra.mxu0 %v1258_v38 }
  0x45   : > { %756 = vmatpush1.bf16.msra.mxu1 %v1219_v31  ;;  %798 = vmatprep.subr.bf16.mxu0 %v1262_v41  ;;  %v879_v31 = vunpack.c.l.bf16 (!%p1137_p11), %v876_v21 }
  0x46   : > { %757 = vmatprep.subr.bf16.mxu1 %v1223_v33 }
  0x48   : > { %799 = vmatpush1.bf16.msra.mxu0 %v1264_v43 }
  0x49   : > { %758 = vmatpush1.bf16.msra.mxu1 %v1225_v35 }
  0x4a   : > { %759 = vmatprep.subr.bf16.mxu1 %v1229_v37 }
  0x4b   : > { %817 = vmatmul.mubr.bf16.vlgmr.msra.gmra.mrb[0].mxu0 %v1268_v46 }
  0x4d   : > { %760 = vmatpush1.bf16.msra.mxu1 %v1231_v40 }
  0x4e   : > { %761 = vmatprep.subr.bf16.mxu1 %v1235_v42 }
  0x51   : > { %762 = vmatpush1.bf16.msra.mxu1 %v1237_v44 }
  0x52   : > { %763 = vmatprep.subr.bf16.mxu1 %v1241_v45 }
  0x55   : > { %764 = vmatpush1.bf16.msra.mxu1 %v1243_v47 }
  0x56   : > { %765 = vmatprep.subr.bf16.mxu1 %v1247_v48 }
  0x59   : > { %766 = vmatpush1.bf16.msra.mxu1 %v1249_v49 }
  0x5a   : > { %767 = vmatprep.subr.bf16.mxu1 %v1253_v50 }
  0x5d   : > { %768 = vmatpush1.bf16.msra.mxu1 %v1255_v51 }
  0x5e   : > { %769 = vmatprep.subr.bf16.mxu1 %v1259_v52 }
  0x61   : > { %770 = vmatpush1.bf16.msra.mxu1 %v1261_v53 }
  0x62   : > { %771 = vmatprep.subr.bf16.mxu1 %v1265_v54 }
  0x65   : > { %772 = vmatpush1.bf16.msra.mxu1 %v1267_v55 }
  0x68   : > { %774 = vmatmul.mubr.bf16.vlgmr.msra.gmra.mrb[0].mxu1 %v1269_v56 }
 0x11e   : > { %v818_v57 = vpop.f32.mrb[0].mxu0 }
 0x11f   : > { %v820_v58 = vpop.f32.mrb[1].mxu0 }
 0x120   : > { %v822_v59 = vpop.f32.mrb[2].mxu0 }
 0x121   : > { %v824_v60 = vpop.f32.mrb[3].mxu0 }
 0x13b   : > { %v775_v62 = vpop.f32.mrb[0].mxu1 }
 0x13c   : > { %v819_v63 = vadd.f32 %v818_v57, %v775_v62  ;;  %v777_v1 = vpop.f32.mrb[1].mxu1 }
 0x13d   : > { %v821_v2 = vadd.f32 %v820_v58, %v777_v1  ;;  %v779_v4 = vpop.f32.mrb[2].mxu1  ;;  %838 = sbr.rel (%p1137_p11) target bundleno = 343 (0x157), region = 74 }
 0x13e   : > { %v827_v5 = vadd.f32 %v819_v63, %v429_v61  ;;  %v823_v6 = vadd.f32 %v822_v59, %v779_v4  ;;  %v781_v8 = vpop.f32.mrb[3].mxu1 }
 0x13f   : > { %v828_v9 = vadd.f32 %v821_v2, %v430_v0  ;;  %v825_v10 = vadd.f32 %v824_v60, %v781_v8 }
 0x140   : > { %831 = vst [vmem:[#allocation2] sm:$0xff] %v827_v5  ;;  %v829_v11 = vadd.f32 %v823_v6, %v431_v3 }
 0x141   : > { %832 = vst [vmem:[#allocation2 + $0x8] sm:$0xff] %v828_v9  ;;  %v830_v12 = vadd.f32 %v825_v10, %v432_v7 }
 0x142   : > { %833 = vst [vmem:[#allocation2 + $0x10] sm:$0xff] %v829_v11 }
 0x143   : > { %834 = vst [vmem:[#allocation2 + $0x18] sm:$0xff] %v830_v12 }
 0x147   : > { %v839_v17 = vld [vmem:[#allocation2] sm:$0xff] }
 0x148   : > { %v840_v22 = vld [vmem:[#allocation2 + $0x8] sm:$0xff]  ;;  %v855_v33 = vmul.f32 %v848_v25, %v839_v17 }
 0x149   : > { %v841_v23 = vld [vmem:[#allocation2 + $0x10] sm:$0xff]  ;;  %v856_v34 = vmul.f32 %v852_v26, %v840_v22 }
 0x14a   : > { %v842_v24 = vld [vmem:[#allocation2 + $0x18] sm:$0xff]  ;;  %v857_v35 = vmul.f32 %v848_v25, %v841_v23  ;;  %v871_v37 = vadd.f32 %v864_v27, %v855_v33 }
 0x14b   : > { %v858_v36 = vmul.f32 %v852_v26, %v842_v24  ;;  %v872_v38 = vadd.f32 %v868_v28, %v856_v34 }
 0x14c   : > { %v873_v39 = vadd.f32 %v864_v27, %v857_v35  ;;  %v881_v41 = vadd.f32 %v877_v29, %v871_v37 }
 0x14d   : > { %v874_v40 = vadd.f32 %v868_v28, %v858_v36  ;;  %v882_v42 = vadd.f32 %v878_v30, %v872_v38 }
 0x14e   : > { %v883_v43 = vadd.f32 %v879_v31, %v873_v39  ;;  %vm885_vm0 = vcmp.ge.f32.partialorder %v881_v41, 0.0  ;;  %v889_v45 = vmul.f32 0.01, %v881_v41 }
 0x14f   : > { %v884_v44 = vadd.f32 %v880_v32, %v874_v40  ;;  %vm886_vm1 = vcmp.ge.f32.partialorder %v882_v42, 0.0  ;;  %v890_v46 = vmul.f32 0.01, %v882_v42 }
 0x150   : > { %vm887_vm2 = vcmp.ge.f32.partialorder %v883_v43, 0.0  ;;  %v891_v47 = vmul.f32 0.01, %v883_v43  ;;  %v893_v49 = vsel %vm885_vm0, %v881_v41, %v889_v45 }
 0x151   : > { %vm888_vm3 = vcmp.ge.f32.partialorder %v884_v44, 0.0  ;;  %v892_v48 = vmul.f32 0.01, %v884_v44  ;;  %v894_v50 = vsel %vm886_vm1, %v882_v42, %v890_v46 }
 0x152   : > { %v1146_v51 = vpack.c.bf16 %v894_v50, %v893_v49  ;;  %v895_v52 = vsel %vm887_vm2, %v883_v43, %v891_v47 }
 0x153   : > { %v896_v53 = vsel %vm888_vm3, %v884_v44, %v892_v48 }
 0x154   : > { %v1147_v54 = vpack.c.bf16 %v896_v53, %v895_v52  ;;  %909 = vst [vmem:[%s1489_s5] sm:$0xff] %v1146_v51 }
 0x156   : > { %910 = vst [vmem:[%s1489_s5 + $0x8] sm:$0xff] %v1147_v54 }
 0x157 PF: > { %s15_s22 = sadd.s32 1, %s1310_s22   ;;  %s1490_s18 = smov %s1298_s19 }
 0x158   : > { %p12_p12 = scmp.ge.s32.totalorder %s15_s22, 8   ;;  %s1491_s19 = smov %s1379_s26 }
 0x159   : > { %s1492_s20 = smov %s1306_s21  ;;  %s1493_s21 = smov %s1495_s23 }
 0x15a   :  { %14 = sbr.rel (!%p12_p12) target bundleno = 3 (0x3), region = 127 }

// kernel: resnet_forward.35
= control target key start
LH: loop header
LB: loop body
LE: loop exit
PB: predicated region body
PF: predicated region fallthrough
CT: control target
= control target key end

     0   :  { %s1907_s0 = inlined_call_operand.vmem [shape: bf16[16,2304], index: 0, kind: input, shape index: {}]   ;;  %s1908_s1 = inlined_call_operand.vmem [shape: bf16[2304,512], index: 1, kind: input, shape index: {}]   ;;  %s1909_s2 = inlined_call_operand.vmem [shape: f32[1,512], index: 2, kind: input, shape index: {}]   ;;  %s1910_s3 = inlined_call_operand.vmem [shape: f32[1,512], index: 3, kind: input, shape index: {}]   ;;  %s1911_s4 = inlined_call_operand.vmem [shape: bf16[16,512], index: 4, kind: output, shape index: {}]  }
   0x1   :  { %1914 = sst [smem:[#allocation8_spill]] %s1907_s0 }
   0x2   :  { %1915 = sst [smem:[#allocation9_spill]] %s1908_s1 }
   0x3   :  { %s1565_s15 = smov 0   ;;  %s1567_s16 = smov 0  }
   0x4   :  { %s1569_s17 = smov 0   ;;  %s1571_s18 = smov 0  }
   0x5   :  { %s1573_s19 = smov 0   ;;  %s1575_s20 = smov 0  }
   0x6   :  { %s1577_s21 = smov 0   ;;  %s1579_s22 = smov 0  }
   0x7   :  { %s1581_s23 = smov 0   ;;  %s1583_s24 = smov 0  }
   0x8   :  { %s1585_s25 = smov 0  }
   0x9 LB: > { %s1195_s26 = sadd.s32 4294967295, %s1536_s25   ;;  %s26_s27 = sadd.s32 1, %s1528_s23  ;;  %s1536_s25 = sphi %s1585_s25, %s14_s25   ;;  %s1532_s24 = sphi %s1583_s24, %s1934_s24   ;;  %s1528_s23 = sphi %s1581_s23, %s1933_s23   ;;  %s1524_s22 = sphi %s1579_s22, %s1932_s22   ;;  %s1520_s21 = sphi %s1577_s21, %s1931_s21   ;;  %s1516_s20 = sphi %s1575_s20, %s1930_s20   ;;  %s1512_s19 = sphi %s1573_s19, %s1929_s19   ;;  %s1508_s18 = sphi %s1571_s18, %s1928_s18   ;;  %s1504_s17 = sphi %s1569_s17, %s1927_s17   ;;  %s1500_s16 = sphi %s1567_s16, %s1926_s16   ;;  %s1496_s15 = sphi %s1565_s15, %s1925_s15  }
   0xa   : > { %p27_p0 = scmp.ge.s32.totalorder %s26_s27, 6  ;;  %s29_s28 = sadd.s32 1, %s1532_s24 }
   0xb   : > { %s42_s29 = sadd.s32 1, %s1516_s20  ;;  %p49_p1 = scmp.ne.s32.totalorder %s1516_s20, %s1512_s19 }
   0xc   : > { %s1936_s27 = smov (%p27_p0, %s26_s27), 0  ;;  %s1938_s28 = smov (!%p27_p0, %s29_s28), %s1532_s24 }
   0xd   : > { %1916 = sst [smem:[#allocation6_spill]] %s1936_s27  ;;  %s38_s30 = ssub.s32 %s1528_s23, %s1936_s27 }
   0xe   : > { %p50_p2 = scmp.eq.s32.totalorder %s1536_s25, 0  ;;  %p31_p3 = scmp.ge.s32.totalorder %s1938_s28, 2 }
   0xf   : > { %p40_p4 = scmp.eq.s32.totalorder %s38_s30, 0  ;;  %s70_s6 = sadd.s32 1, %s1508_s18 }
  0x10   : > { %p1632_p5 = por %p50_p2, %p49_p1  ;;  %s1940_s28 = smov (%p31_p3, %s1938_s28), 0 }
  0x11   : > { %1918 = sst [smem:[#allocation7_spill]] %s1940_s28  ;;  %s66_s8 = ssub.s32 %s1532_s24, %s1940_s28 }
  0x12   : > { %s1640_s7 = scalar_select %p40_p4, %s1516_s20, %s42_s29  }
  0x13   : > { %p77_p6 = scmp.ne.s32.totalorder %s1508_s18, %s1504_s17  ;;  %s67_s9 = sor.u32 %s66_s8, %s38_s30 }
  0x14   : > { %p148_p7 = scmp.eq.s32.totalorder %s66_s8, 0  ;;  %p68_p8 = scmp.eq.s32.totalorder %s67_s9, 0 }
  0x15   : > { %p1646_p9 = por %p77_p6, %p50_p2  ;;  %s150_s11 = sadd.s32 1, %s1500_s16 }
  0x16   : > { %p160_p10 = scmp.ne.s32.totalorder %s1500_s16, %s1496_s15  ;;  %p161_p11 = scmp.eq.s32.totalorder %s1195_s26, 11 }
  0x17   : > { %s1654_s12 = scalar_select %p68_p8, %s1508_s18, %s70_s6  }
  0x18   : > { %s1657_s13 = scalar_select %p148_p7, %s1500_s16, %s150_s11  }
  0x19   : > { %p1659_p12 = por %p161_p11, %p160_p10  ;;  %p1198_p13 = scmp.ge.s32.totalorder %s1536_s25, 12 }
  0x1b   : > { %183 = sbr.rel (%p1198_p13) target bundleno = 79 (0x4f), region = 16 }
  0x22   : > { %186 = sbr.rel (!%p1632_p5) target bundleno = 45 (0x2d), region = 20  ;;  %s188_s29 = sand.u32 (%p1632_p5), 1, %s1516_s20  }
  0x23   : > { %s1271_s30 = smul.u32 (%p1632_p5), 12, %s1528_s23  ;;  %s1921_s0 = sld [smem:[#allocation8_spill]] (%p1632_p5) }
  0x24   : > { %s1280_s8 = smul.u32 (%p1632_p5), 24, %s188_s29 }
  0x26   : > { %s190_s26 = scalar_lea.vmem (%p1632_p5), [#allocation3], %s1280_s8 }
  0x29   : > { %s196_s11 = scalar_lea.vmem %s1921_s0, %s1271_s30 }
  0x2a   : > { %v211_v0 = vld [vmem:[%s196_s11] sm:$0xff]  ;;  %v213_v1 = vld [vmem:[%s196_s11 + $0x48] sm:$0xff]  ;;  %v1202_v3 = vld [vmem:[%s196_s11 + $0x50] sm:$0xf] }
  0x2b   : > { %v1200_v2 = vld [vmem:[%s196_s11 + $0x8] sm:$0xf]  ;;  %212 = vst [vmem:[%s190_s26] sm:$0xff] %v211_v0  ;;  %214 = vst [vmem:[%s190_s26 + $0xc] sm:$0xff] %v213_v1 }
  0x2c   : > { %1201 = vst [vmem:[%s190_s26 + $0x8] sm:$0xf] %v1200_v2  ;;  %1203 = vst [vmem:[%s190_s26 + $0x14] sm:$0xf] %v1202_v3 }
  0x2d PF: > { %231 = sbr.rel (!%p1646_p9) target bundleno = 79 (0x4f), region = 46  ;;  %s233_s5 = sand.u32 (%p1646_p9), 1, %s1508_s18  }
  0x2e   : > { %s1281_s29 = smul.u32 (%p1646_p9), 384, %s233_s5  ;;  %s1204_s6 = sshll.u32 (%p1646_p9), %s1532_s24, 1 }
  0x2f   : > { %s1272_s30 = smul.u32 (%p1646_p9), 192, %s1528_s23  ;;  %s1922_s1 = sld [smem:[#allocation9_spill]] (%p1646_p9) }
  0x30   : > { %s1684_s10 = scalar_lea.vmem (%p1646_p9), [#allocation4], %s1281_s29 }
  0x31   : > { %s239_s9 = sadd.s32 (%p1646_p9), %s1272_s30, %s1204_s6 }
  0x32   : > { %s1206_s0 = sshll.u32 (%p1646_p9), %s239_s9, 2 }
  0x35   : > { %s1679_s27 = scalar_lea.vmem %s1922_s1, %s1206_s0 }
  0x36   : > { %v363_v4 = vld [vmem:[%s1679_s27] sm:$0xff]  ;;  %v365_v5 = vld [vmem:[%s1679_s27 + $0x10] sm:$0xff] }
  0x37   : > { %v367_v6 = vld [vmem:[%s1679_s27 + $0x20] sm:$0xff]  ;;  %364 = vst [vmem:[%s1684_s10] sm:$0xff] %v363_v4  ;;  %366 = vst [vmem:[%s1684_s10 + $0x8] sm:$0xff] %v365_v5  ;;  %v369_v7 = vld [vmem:[%s1679_s27 + $0x30] sm:$0xff] }
  0x38   : > { %368 = vst [vmem:[%s1684_s10 + $0x10] sm:$0xff] %v367_v6  ;;  %v371_v8 = vld [vmem:[%s1679_s27 + $0x40] sm:$0xff]  ;;  %v373_v9 = vld [vmem:[%s1679_s27 + $0x50] sm:$0xff]  ;;  %370 = vst [vmem:[%s1684_s10 + $0x18] sm:$0xff] %v369_v7 }
  0x39   : > { %372 = vst [vmem:[%s1684_s10 + $0x20] sm:$0xff] %v371_v8  ;;  %374 = vst [vmem:[%s1684_s10 + $0x28] sm:$0xff] %v373_v9  ;;  %v375_v10 = vld [vmem:[%s1679_s27 + $0x60] sm:$0xff]  ;;  %v377_v11 = vld [vmem:[%s1679_s27 + $0x70] sm:$0xff] }
  0x3a   : > { %v379_v12 = vld [vmem:[%s1679_s27 + $0x80] sm:$0xff]  ;;  %376 = vst [vmem:[%s1684_s10 + $0x30] sm:$0xff] %v375_v10  ;;  %378 = vst [vmem:[%s1684_s10 + $0x38] sm:$0xff] %v377_v11  ;;  %v381_v13 = vld [vmem:[%s1679_s27 + $0x90] sm:$0xff] }
  0x3b   : > { %380 = vst [vmem:[%s1684_s10 + $0x40] sm:$0xff] %v379_v12  ;;  %v383_v14 = vld [vmem:[%s1679_s27 + $0xa0] sm:$0xff]  ;;  %v385_v15 = vld [vmem:[%s1679_s27 + $0xb0] sm:$0xff]  ;;  %382 = vst [vmem:[%s1684_s10 + $0x48] sm:$0xff] %v381_v13 }
  0x3c   : > { %384 = vst [vmem:[%s1684_s10 + $0x50] sm:$0xff] %v383_v14  ;;  %386 = vst [vmem:[%s1684_s10 + $0x58] sm:$0xff] %v385_v15  ;;  %v387_v16 = vld [vmem:[%s1679_s27 + $0xc0] sm:$0xff]  ;;  %v389_v17 = vld [vmem:[%s1679_s27 + $0xd0] sm:$0xff] }
  0x3d   : > { %v391_v18 = vld [vmem:[%s1679_s27 + $0xe0] sm:$0xff]  ;;  %388 = vst [vmem:[%s1684_s10 + $0x60] sm:$0xff] %v387_v16  ;;  %390 = vst [vmem:[%s1684_s10 + $0x68] sm:$0xff] %v389_v17  ;;  %v393_v19 = vld [vmem:[%s1679_s27 + $0xf0] sm:$0xff] }
  0x3e   : > { %392 = vst [vmem:[%s1684_s10 + $0x70] sm:$0xff] %v391_v18  ;;  %v395_v20 = vld [vmem:[%s1679_s27 + $0x100] sm:$0xff]  ;;  %v397_v21 = vld [vmem:[%s1679_s27 + $0x110] sm:$0xff]  ;;  %394 = vst [vmem:[%s1684_s10 + $0x78] sm:$0xff] %v393_v19 }
  0x3f   : > { %396 = vst [vmem:[%s1684_s10 + $0x80] sm:$0xff] %v395_v20  ;;  %398 = vst [vmem:[%s1684_s10 + $0x88] sm:$0xff] %v397_v21  ;;  %v399_v22 = vld [vmem:[%s1679_s27 + $0x120] sm:$0xff]  ;;  %v401_v23 = vld [vmem:[%s1679_s27 + $0x130] sm:$0xff] }
  0x40   : > { %v403_v24 = vld [vmem:[%s1679_s27 + $0x140] sm:$0xff]  ;;  %400 = vst [vmem:[%s1684_s10 + $0x90] sm:$0xff] %v399_v22  ;;  %402 = vst [vmem:[%s1684_s10 + $0x98] sm:$0xff] %v401_v23  ;;  %v405_v25 = vld [vmem:[%s1679_s27 + $0x150] sm:$0xff] }
  0x41   : > { %404 = vst [vmem:[%s1684_s10 + $0xa0] sm:$0xff] %v403_v24  ;;  %v407_v26 = vld [vmem:[%s1679_s27 + $0x160] sm:$0xff]  ;;  %v409_v27 = vld [vmem:[%s1679_s27 + $0x170] sm:$0xff]  ;;  %406 = vst [vmem:[%s1684_s10 + $0xa8] sm:$0xff] %v405_v25 }
  0x42   : > { %408 = vst [vmem:[%s1684_s10 + $0xb0] sm:$0xff] %v407_v26  ;;  %410 = vst [vmem:[%s1684_s10 + $0xb8] sm:$0xff] %v409_v27  ;;  %v411_v28 = vld [vmem:[%s1679_s27 + $0x180] sm:$0xff]  ;;  %v413_v29 = vld [vmem:[%s1679_s27 + $0x190] sm:$0xff] }
  0x43   : > { %v415_v30 = vld [vmem:[%s1679_s27 + $0x1a0] sm:$0xff]  ;;  %412 = vst [vmem:[%s1684_s10 + $0xc0] sm:$0xff] %v411_v28  ;;  %414 = vst [vmem:[%s1684_s10 + $0xc8] sm:$0xff] %v413_v29  ;;  %v417_v31 = vld [vmem:[%s1679_s27 + $0x1b0] sm:$0xff] }
  0x44   : > { %416 = vst [vmem:[%s1684_s10 + $0xd0] sm:$0xff] %v415_v30  ;;  %v419_v32 = vld [vmem:[%s1679_s27 + $0x1c0] sm:$0xff]  ;;  %v421_v33 = vld [vmem:[%s1679_s27 + $0x1d0] sm:$0xff]  ;;  %418 = vst [vmem:[%s1684_s10 + $0xd8] sm:$0xff] %v417_v31 }
  0x45   : > { %420 = vst [vmem:[%s1684_s10 + $0xe0] sm:$0xff] %v419_v32  ;;  %422 = vst [vmem:[%s1684_s10 + $0xe8] sm:$0xff] %v421_v33  ;;  %v423_v34 = vld [vmem:[%s1679_s27 + $0x1e0] sm:$0xff]  ;;  %v425_v35 = vld [vmem:[%s1679_s27 + $0x1f0] sm:$0xff] }
  0x46   : > { %v427_v36 = vld [vmem:[%s1679_s27 + $0x200] sm:$0xff]  ;;  %424 = vst [vmem:[%s1684_s10 + $0xf0] sm:$0xff] %v423_v34  ;;  %426 = vst [vmem:[%s1684_s10 + $0xf8] sm:$0xff] %v425_v35  ;;  %v429_v37 = vld [vmem:[%s1679_s27 + $0x210] sm:$0xff] }
  0x47   : > { %428 = vst [vmem:[%s1684_s10 + $0x100] sm:$0xff] %v427_v36  ;;  %v431_v38 = vld [vmem:[%s1679_s27 + $0x220] sm:$0xff]  ;;  %v433_v39 = vld [vmem:[%s1679_s27 + $0x230] sm:$0xff]  ;;  %430 = vst [vmem:[%s1684_s10 + $0x108] sm:$0xff] %v429_v37 }
  0x48   : > { %432 = vst [vmem:[%s1684_s10 + $0x110] sm:$0xff] %v431_v38  ;;  %434 = vst [vmem:[%s1684_s10 + $0x118] sm:$0xff] %v433_v39  ;;  %v435_v40 = vld [vmem:[%s1679_s27 + $0x240] sm:$0xff]  ;;  %v437_v41 = vld [vmem:[%s1679_s27 + $0x250] sm:$0xff] }
  0x49   : > { %v439_v42 = vld [vmem:[%s1679_s27 + $0x260] sm:$0xff]  ;;  %436 = vst [vmem:[%s1684_s10 + $0x120] sm:$0xff] %v435_v40  ;;  %438 = vst [vmem:[%s1684_s10 + $0x128] sm:$0xff] %v437_v41  ;;  %v441_v43 = vld [vmem:[%s1679_s27 + $0x270] sm:$0xff] }
  0x4a   : > { %440 = vst [vmem:[%s1684_s10 + $0x130] sm:$0xff] %v439_v42  ;;  %v443_v44 = vld [vmem:[%s1679_s27 + $0x280] sm:$0xff]  ;;  %v445_v45 = vld [vmem:[%s1679_s27 + $0x290] sm:$0xff]  ;;  %442 = vst [vmem:[%s1684_s10 + $0x138] sm:$0xff] %v441_v43 }
  0x4b   : > { %444 = vst [vmem:[%s1684_s10 + $0x140] sm:$0xff] %v443_v44  ;;  %446 = vst [vmem:[%s1684_s10 + $0x148] sm:$0xff] %v445_v45  ;;  %v447_v46 = vld [vmem:[%s1679_s27 + $0x2a0] sm:$0xff]  ;;  %v449_v47 = vld [vmem:[%s1679_s27 + $0x2b0] sm:$0xff] }
  0x4c   : > { %v451_v48 = vld [vmem:[%s1679_s27 + $0x2c0] sm:$0xff]  ;;  %448 = vst [vmem:[%s1684_s10 + $0x150] sm:$0xff] %v447_v46  ;;  %450 = vst [vmem:[%s1684_s10 + $0x158] sm:$0xff] %v449_v47  ;;  %v453_v49 = vld [vmem:[%s1679_s27 + $0x2d0] sm:$0xff] }
  0x4d   : > { %452 = vst [vmem:[%s1684_s10 + $0x160] sm:$0xff] %v451_v48  ;;  %v455_v50 = vld [vmem:[%s1679_s27 + $0x2e0] sm:$0xff]  ;;  %v457_v51 = vld [vmem:[%s1679_s27 + $0x2f0] sm:$0xff]  ;;  %454 = vst [vmem:[%s1684_s10 + $0x168] sm:$0xff] %v453_v49 }
  0x4e   : > { %456 = vst [vmem:[%s1684_s10 + $0x170] sm:$0xff] %v455_v50  ;;  %458 = vst [vmem:[%s1684_s10 + $0x178] sm:$0xff] %v457_v51 }
  0x4f PF: > { %p1207_p0 = scmp.ge.s32.totalorder %s1536_s25, 1  ;;  %p479_p1 = scmp.lt.s32.totalorder %s1536_s25, 13 }
  0x51   : > { %p480_p2 = pnand %p1207_p0, %p479_p1 }
  0x52   : > { %s486_s0 = sand.u32 (!%p480_p2), 1, %s1512_s19   ;;  %s493_s28 = sand.u32 (!%p480_p2), 1, %s1504_s17  }
  0x53   : > { %483 = sbr.rel (%p480_p2) target bundleno = 407 (0x197), region = 92  ;;  %s526_s26 = sand.u32 (!%p480_p2), 1, %s1496_s15  }
  0x54   : > { %s1282_s11 = smul.u32 (!%p480_p2), 24, %s486_s0  ;;  %s1208_s5 = sshll.u32 (!%p480_p2), %s526_s26, 4 }
  0x55   : > { %s1283_s27 = smul.u32 (!%p480_p2), 384, %s493_s28  ;;  %s1209_s29 = sshll.u32 (!%p480_p2), %s1524_s22, 1 }
  0x56   : > { %p534_p3 = scmp.lt.s32.totalorder (!%p480_p2), %s1209_s29, 3  ;;  %s1795_s19 = scalar_lea.vmem (!%p480_p2), [#allocation3], %s1282_s11 }
  0x57   : > { %s1797_s17 = scalar_lea.vmem (!%p480_p2), [#allocation4], %s1283_s27  ;;  %s1799_s15 = scalar_lea.vmem (!%p480_p2), [#allocation5], %s1208_s5 }
  0x58   : > { %p1211_p4 = scmp.ne.s32.totalorder (!%p480_p2), %s1520_s21, 0 }
  0x5a   : > { %s1942_s29 = smov (!%p534_p3, %s1209_s29), 3  ;;  %549 = sbr.rel (%p1211_p4) target bundleno = 97 (0x61), region = 104 }
  0x5b   : > { %s536_s9 = scalar_lea.vmem %s1909_s2, %s1942_s29  ;;  %s541_s1 = scalar_lea.vmem %s1910_s3, %s1942_s29  ;;  %v1538_v52 = vmov (!%p1211_p4), 0.0  }
  0x5c   : > { %550 = vst [vmem:[#allocation2] sm:$0xff] (!%p1211_p4), %v1538_v52  ;;  %551 = vst [vmem:[#allocation2 + $0x8] sm:$0xff] (!%p1211_p4), %v1538_v52 }
  0x5d   : > { %552 = vst [vmem:[#allocation2 + $0x10] sm:$0xff] (!%p1211_p4), %v1538_v52  ;;  %553 = vst [vmem:[#allocation2 + $0x18] sm:$0xff] (!%p1211_p4), %v1538_v52 }
  0x61 PF: > { %v1374_v53 = vld [vmem:[%s1797_s17 + $0x4] ss:$8 sps:$4 sm:$0xff]   ;;  %v1376_v54 = vld [vmem:[%s1797_s17] ss:$8 sps:$4 sm:$0xff]   ;;  %v1539_v55 = vmov 0   ;;  %p1263_p5 = scmp.ne.s32.totalorder %s1520_s21, 5 }
  0x62   : > { %941 = vmatprep.mubr.bf16.mxu0 %v1539_v55  ;;  %866 = vmatprep.subr.bf16.mxu1 %v1374_v53  ;;  %v1377_v56 = vld [vmem:[%s1797_s17 + $0x14] ss:$8 sps:$4 sm:$0xff]   ;;  %v1379_v57 = vld [vmem:[%s1797_s17 + $0x10] ss:$8 sps:$4 sm:$0xff]   ;;  %v1380_v58 = vld [vmem:[%s1797_s17 + $0x24] ss:$8 sps:$4 sm:$0xff]  }
  0x63   : > { %867 = vmatpush1.bf16.msra.mxu1 %v1376_v54  ;;  %v1382_v59 = vld [vmem:[%s1797_s17 + $0x20] ss:$8 sps:$4 sm:$0xff]   ;;  %v1383_v60 = vld [vmem:[%s1797_s17 + $0x34] ss:$8 sps:$4 sm:$0xff]   ;;  %v1385_v61 = vld [vmem:[%s1797_s17 + $0x30] ss:$8 sps:$4 sm:$0xff]  }
  0x64   : > { %868 = vmatprep.subr.bf16.mxu1 %v1377_v56  ;;  %v1398_v62 = vld [vmem:[%s1797_s17 + $0x104] ss:$8 sps:$4 sm:$0xff]   ;;  %v1400_v63 = vld [vmem:[%s1797_s17 + $0x100] ss:$8 sps:$4 sm:$0xff]   ;;  %v1404_v1 = vld [vmem:[%s1797_s17 + $0x114] ss:$8 sps:$4 sm:$0xff]  }
  0x65   : > { %v1386_v0 = vld [vmem:[%s1797_s17 + $0x44] ss:$8 sps:$4 sm:$0xff]   ;;  %909 = vmatprep.subr.bf16.mxu0 %v1398_v62  ;;  %v1406_v2 = vld [vmem:[%s1797_s17 + $0x110] ss:$8 sps:$4 sm:$0xff]   ;;  %v1388_v3 = vld [vmem:[%s1797_s17 + $0x40] ss:$8 sps:$4 sm:$0xff]  }
  0x66   : > { %910 = vmatpush1.bf16.msra.mxu0 %v1400_v63  ;;  %v1389_v4 = vld [vmem:[%s1797_s17 + $0x54] ss:$8 sps:$4 sm:$0xff]   ;;  %v1410_v5 = vld [vmem:[%s1797_s17 + $0x124] ss:$8 sps:$4 sm:$0xff]   ;;  %v1412_v6 = vld [vmem:[%s1797_s17 + $0x120] ss:$8 sps:$4 sm:$0xff]  }
  0x67   : > { %869 = vmatpush1.bf16.msra.mxu1 %v1379_v57  ;;  %911 = vmatprep.subr.bf16.mxu0 %v1404_v1  ;;  %v1391_v7 = vld [vmem:[%s1797_s17 + $0x50] ss:$8 sps:$4 sm:$0xff]   ;;  %v1416_v8 = vld [vmem:[%s1797_s17 + $0x134] ss:$8 sps:$4 sm:$0xff]   ;;  %v1392_v9 = vld [vmem:[%s1797_s17 + $0x64] ss:$8 sps:$4 sm:$0xff]  }
  0x68   : > { %870 = vmatprep.subr.bf16.mxu1 %v1380_v58  ;;  %v1418_v10 = vld [vmem:[%s1797_s17 + $0x130] ss:$8 sps:$4 sm:$0xff]   ;;  %v1394_v11 = vld [vmem:[%s1797_s17 + $0x60] ss:$8 sps:$4 sm:$0xff]   ;;  %v1422_v12 = vld [vmem:[%s1797_s17 + $0x144] ss:$8 sps:$4 sm:$0xff]  }
  0x69   : > { %v1395_v13 = vld [vmem:[%s1797_s17 + $0x74] ss:$8 sps:$4 sm:$0xff]   ;;  %v1424_v14 = vld [vmem:[%s1797_s17 + $0x140] ss:$8 sps:$4 sm:$0xff]   ;;  %v1397_v15 = vld [vmem:[%s1797_s17 + $0x70] ss:$8 sps:$4 sm:$0xff]  }
  0x6a   : > { %912 = vmatpush1.bf16.msra.mxu0 %v1406_v2  ;;  %v1428_v16 = vld [vmem:[%s1797_s17 + $0x154] ss:$8 sps:$4 sm:$0xff]   ;;  %v1401_v17 = vld [vmem:[%s1797_s17 + $0x84] ss:$8 sps:$4 sm:$0xff]   ;;  %v1430_v18 = vld [vmem:[%s1797_s17 + $0x150] ss:$8 sps:$4 sm:$0xff]  }
  0x6b   : > { %871 = vmatpush1.bf16.msra.mxu1 %v1382_v59  ;;  %913 = vmatprep.subr.bf16.mxu0 %v1410_v5  ;;  %v1403_v19 = vld [vmem:[%s1797_s17 + $0x80] ss:$8 sps:$4 sm:$0xff]   ;;  %v1434_v20 = vld [vmem:[%s1797_s17 + $0x164] ss:$8 sps:$4 sm:$0xff]   ;;  %v1407_v21 = vld [vmem:[%s1797_s17 + $0x94] ss:$8 sps:$4 sm:$0xff]  }
  0x6c   : > { %872 = vmatprep.subr.bf16.mxu1 %v1383_v60  ;;  %v1436_v22 = vld [vmem:[%s1797_s17 + $0x160] ss:$8 sps:$4 sm:$0xff]   ;;  %v1409_v24 = vld [vmem:[%s1797_s17 + $0x90] ss:$8 sps:$4 sm:$0xff]   ;;  %v1440_v25 = vld [vmem:[%s1797_s17 + $0x174] ss:$8 sps:$4 sm:$0xff]  }
  0x6d   : > { %v1449_v23 = vld [vmem:[%s1795_s19 + $0x4] ss:$12 sps:$4 sm:$0xff]   ;;  %v1446_v30 = vld [vmem:[%s1795_s19 + $0x8] ss:$12 sps:$4 sm:$0xff]   ;;  %v1447_v40 = vld [vmem:[%s1795_s19] ss:$12 sps:$4 sm:$0xff]  }
  0x6e   : > { %914 = vmatpush1.bf16.msra.mxu0 %v1412_v6  ;;  %v1413_v26 = vld [vmem:[%s1797_s17 + $0xa4] ss:$8 sps:$4 sm:$0xff]   ;;  %898 = vmatprep.mubr.bf16.mxu1 %v1449_v23  ;;  %v1442_v27 = vld [vmem:[%s1797_s17 + $0x170] ss:$8 sps:$4 sm:$0xff]   ;;  %v1415_v28 = vld [vmem:[%s1797_s17 + $0xa0] ss:$8 sps:$4 sm:$0xff]  }
  0x6f   : > { %873 = vmatpush1.bf16.msra.mxu1 %v1385_v61  ;;  %915 = vmatprep.subr.bf16.mxu0 %v1416_v8  ;;  %v1419_v29 = vld [vmem:[%s1797_s17 + $0xb4] ss:$8 sps:$4 sm:$0xff]   ;;  %v1421_v31 = vld [vmem:[%s1797_s17 + $0xb0] ss:$8 sps:$4 sm:$0xff]   ;;  %v1425_v32 = vld [vmem:[%s1797_s17 + $0xc4] ss:$8 sps:$4 sm:$0xff]   ;;  %v970_v61 = vlaneseq (!%p1263_p5) }
  0x70   : > { %874 = vmatprep.subr.bf16.mxu1 %v1386_v0  ;;  %v1427_v33 = vld [vmem:[%s1797_s17 + $0xc0] ss:$8 sps:$4 sm:$0xff]   ;;  %v1431_v34 = vld [vmem:[%s1797_s17 + $0xd4] ss:$8 sps:$4 sm:$0xff]   ;;  %v1433_v35 = vld [vmem:[%s1797_s17 + $0xd0] ss:$8 sps:$4 sm:$0xff]  }
  0x71   : > { %v1437_v36 = vld [vmem:[%s1797_s17 + $0xe4] ss:$8 sps:$4 sm:$0xff]   ;;  %v1439_v37 = vld [vmem:[%s1797_s17 + $0xe0] ss:$8 sps:$4 sm:$0xff]   ;;  %v1443_v38 = vld [vmem:[%s1797_s17 + $0xf4] ss:$8 sps:$4 sm:$0xff]  }
  0x72   : > { %916 = vmatpush1.bf16.msra.mxu0 %v1418_v10  ;;  %v1445_v39 = vld [vmem:[%s1797_s17 + $0xf0] ss:$8 sps:$4 sm:$0xff]   ;;  %v556_v51 = vld [vmem:[#allocation2 + $0x10] sm:$0xff]  ;;  %v557_v55 = vld [vmem:[#allocation2 + $0x18] sm:$0xff]  ;;  %v971_v62 = vshrl.u32 (!%p1263_p5), %v970_v61, 7 }
  0x73   : > { %875 = vmatpush1.bf16.msra.mxu1 %v1388_v3  ;;  %917 = vmatprep.subr.bf16.mxu0 %v1422_v12  ;;  %v554_v45 = vld [vmem:[#allocation2] sm:$0xff]  ;;  %v555_v48 = vld [vmem:[#allocation2 + $0x8] sm:$0xff] }
  0x74   : > { %876 = vmatprep.subr.bf16.mxu1 %v1389_v4  ;;  %v968_v63 = vld [vmem:[%s536_s9] sm:$0x3] (!%p1263_p5)  ;;  %v972_v2 = vsub.s32 (!%p1263_p5), 0, %v971_v62  ;;  %v976_v3 = vsub.s32 (!%p1263_p5), 1, %v971_v62 }
  0x75   : > { %v984_v0 = vld [vmem:[%s541_s1] sm:$0x3] (!%p1263_p5) }
  0x76   : > { %918 = vmatpush1.bf16.msra.mxu0 %v1424_v14  ;;  %v977_v8 = vrot.slane (!%p1263_p5), %v968_v63, %v976_v3  ;;  %v993_v10 = vrot.slane (!%p1263_p5), %v984_v0, %v976_v3 }
  0x77   : > { %877 = vmatpush1.bf16.msra.mxu1 %v1391_v7  ;;  %919 = vmatprep.subr.bf16.mxu0 %v1428_v16  ;;  %v973_v7 = vrot.slane (!%p1263_p5), %v968_v63, %v972_v2 }
  0x78   : > { %878 = vmatprep.subr.bf16.mxu1 %v1392_v9  ;;  %v989_v9 = vrot.slane (!%p1263_p5), %v984_v0, %v972_v2 }
  0x7a   : > { %920 = vmatpush1.bf16.msra.mxu0 %v1430_v18 }
  0x7b   : > { %879 = vmatpush1.bf16.msra.mxu1 %v1394_v11  ;;  %921 = vmatprep.subr.bf16.mxu0 %v1434_v20 }
  0x7c   : > { %880 = vmatprep.subr.bf16.mxu1 %v1395_v13 }
  0x7e   : > { %922 = vmatpush1.bf16.msra.mxu0 %v1436_v22 }
  0x7f   : > { %881 = vmatpush1.bf16.msra.mxu1 %v1397_v15  ;;  %923 = vmatprep.subr.bf16.mxu0 %v1440_v25 }
  0x80   : > { %882 = vmatprep.subr.bf16.mxu1 %v1401_v17 }
  0x82   : > { %924 = vmatpush1.bf16.msra.mxu0 %v1442_v27 }
  0x83   : > { %883 = vmatpush1.bf16.msra.mxu1 %v1403_v19 }
  0x84   : > { %884 = vmatprep.subr.bf16.mxu1 %v1407_v21 }
  0x85   : > { %942 = vmatmul.mubr.bf16.vlgmr.msra.gmra.mrb[0].mxu0 %v1446_v30 }
  0x87   : > { %885 = vmatpush1.bf16.msra.mxu1 %v1409_v24 }
  0x88   : > { %886 = vmatprep.subr.bf16.mxu1 %v1413_v26 }
  0x8b   : > { %887 = vmatpush1.bf16.msra.mxu1 %v1415_v28 }
  0x8c   : > { %888 = vmatprep.subr.bf16.mxu1 %v1419_v29 }
  0x8f   : > { %889 = vmatpush1.bf16.msra.mxu1 %v1421_v31 }
  0x90   : > { %890 = vmatprep.subr.bf16.mxu1 %v1425_v32 }
  0x93   : > { %891 = vmatpush1.bf16.msra.mxu1 %v1427_v33 }
  0x94   : > { %892 = vmatprep.subr.bf16.mxu1 %v1431_v34 }
  0x97   : > { %893 = vmatpush1.bf16.msra.mxu1 %v1433_v35 }
  0x98   : > { %894 = vmatprep.subr.bf16.mxu1 %v1437_v36 }
  0x9b   : > { %895 = vmatpush1.bf16.msra.mxu1 %v1439_v37 }
  0x9c   : > { %896 = vmatprep.subr.bf16.mxu1 %v1443_v38 }
  0x9f   : > { %897 = vmatpush1.bf16.msra.mxu1 %v1445_v39 }
  0xa2   : > { %899 = vmatmul.mubr.bf16.vlgmr.msra.gmra.mrb[0].mxu1 %v1447_v40 }
 0x158   : > { %v943_v41 = vpop.f32.mrb[0].mxu0 }
 0x159   : > { %v945_v42 = vpop.f32.mrb[1].mxu0 }
 0x15a   : > { %v947_v43 = vpop.f32.mrb[2].mxu0 }
 0x15b   : > { %v949_v44 = vpop.f32.mrb[3].mxu0 }
 0x175   : > { %v900_v46 = vpop.f32.mrb[0].mxu1 }
 0x176   : > { %v944_v47 = vadd.f32 %v943_v41, %v900_v46  ;;  %v902_v49 = vpop.f32.mrb[1].mxu1 }
 0x177   : > { %v946_v50 = vadd.f32 %v945_v42, %v902_v49  ;;  %v904_v52 = vpop.f32.mrb[2].mxu1  ;;  %963 = sbr.rel (%p1263_p5) target bundleno = 399 (0x18f), region = 108 }
 0x178   : > { %v952_v53 = vadd.f32 %v944_v47, %v554_v45  ;;  %v948_v54 = vadd.f32 %v947_v43, %v904_v52  ;;  %v906_v56 = vpop.f32.mrb[3].mxu1 }
 0x179   : > { %v953_v57 = vadd.f32 %v946_v50, %v555_v48  ;;  %v950_v58 = vadd.f32 %v949_v44, %v906_v56 }
 0x17a   : > { %956 = vst [vmem:[#allocation2] sm:$0xff] %v952_v53  ;;  %v954_v59 = vadd.f32 %v948_v54, %v556_v51 }
 0x17b   : > { %957 = vst [vmem:[#allocation2 + $0x8] sm:$0xff] %v953_v57  ;;  %v955_v60 = vadd.f32 %v950_v58, %v557_v55 }
 0x17c   : > { %958 = vst [vmem:[#allocation2 + $0x10] sm:$0xff] %v954_v59 }
 0x17d   : > { %959 = vst [vmem:[#allocation2 + $0x18] sm:$0xff] %v955_v60 }
 0x181   : > { %v964_v1 = vld [vmem:[#allocation2] sm:$0xff] }
 0x182   : > { %v965_v4 = vld [vmem:[#allocation2 + $0x8] sm:$0xff]  ;;  %v980_v11 = vmul.f32 %v973_v7, %v964_v1 }
 0x183   : > { %v966_v5 = vld [vmem:[#allocation2 + $0x10] sm:$0xff]  ;;  %v981_v12 = vmul.f32 %v977_v8, %v965_v4 }
 0x184   : > { %v967_v6 = vld [vmem:[#allocation2 + $0x18] sm:$0xff]  ;;  %v982_v13 = vmul.f32 %v973_v7, %v966_v5  ;;  %v996_v15 = vadd.f32 %v989_v9, %v980_v11 }
 0x185   : > { %v983_v14 = vmul.f32 %v977_v8, %v967_v6  ;;  %v997_v16 = vadd.f32 %v993_v10, %v981_v12 }
 0x186   : > { %v998_v17 = vadd.f32 %v989_v9, %v982_v13  ;;  %vm1000_vm0 = vcmp.ge.f32.partialorder %v996_v15, 0.0  ;;  %v1004_v19 = vmul.f32 0.01, %v996_v15 }
 0x187   : > { %v999_v18 = vadd.f32 %v993_v10, %v983_v14  ;;  %vm1001_vm1 = vcmp.ge.f32.partialorder %v997_v16, 0.0  ;;  %v1005_v20 = vmul.f32 0.01, %v997_v16 }
 0x188   : > { %vm1002_vm2 = vcmp.ge.f32.partialorder %v998_v17, 0.0  ;;  %v1006_v21 = vmul.f32 0.01, %v998_v17  ;;  %v1008_v23 = vsel %vm1000_vm0, %v996_v15, %v1004_v19 }
 0x189   : > { %vm1003_vm3 = vcmp.ge.f32.partialorder %v999_v18, 0.0  ;;  %v1007_v22 = vmul.f32 0.01, %v999_v18  ;;  %v1009_v24 = vsel %vm1001_vm1, %v997_v16, %v1005_v20 }
 0x18a   : > { %v1273_v25 = vpack.c.bf16 %v1009_v24, %v1008_v23  ;;  %v1010_v26 = vsel %vm1002_vm2, %v998_v17, %v1006_v21 }
 0x18b   : > { %v1011_v27 = vsel %vm1003_vm3, %v999_v18, %v1007_v22 }
 0x18c   : > { %v1274_v28 = vpack.c.bf16 %v1011_v27, %v1010_v26  ;;  %1024 = vst [vmem:[%s1799_s15] sm:$0xff] %v1273_v25 }
 0x18e   : > { %1025 = vst [vmem:[%s1799_s15 + $0x8] sm:$0xff] %v1274_v28 }
 0x18f PF: > { %1032 = sbr.rel (!%p1659_p12) target bundleno = 407 (0x197), region = 112  ;;  %s1275_s1 = sshll.u32 (%p1659_p12), %s1524_s22, 3 }
 0x190   : > { %s1038_s5 = scalar_lea.vmem (%p1659_p12), %s1911_s4, %s1275_s1 }
 0x193   : > { %v1068_v29 = vld [vmem:[%s1799_s15] sm:$0xff] (%p1659_p12) }
 0x194   : > { %1069 = vst [vmem:[%s1038_s5] sm:$0xff] (%p1659_p12), %v1068_v29 }
 0x195   : > { %v1070_v30 = vld [vmem:[%s1799_s15 + $0x8] sm:$0xff] (%p1659_p12) }
 0x196   : > { %1071 = vst [vmem:[%s1038_s5 + $0x10] sm:$0xff] %v1070_v30 }
 0x197 PF: > { %s14_s25 = sadd.s32 1, %s1536_s25   ;;  %s1923_s14 = sld [smem:[#allocation6_spill]] }
 0x198   : > { %p11_p6 = scmp.ge.s32.totalorder %s14_s25, 14   ;;  %s1924_s29 = sld [smem:[#allocation7_spill]] }
 0x199   : > { %s1925_s15 = smov %s1500_s16  ;;  %s1926_s16 = smov %s1657_s13 }
 0x19a   : > { %s1927_s17 = smov %s1508_s18  ;;  %s1928_s18 = smov %s1654_s12 }
 0x19b   : > { %s1929_s19 = smov %s1516_s20  ;;  %s1930_s20 = smov %s1640_s7 }
 0x19c   : > { %s1931_s21 = smov %s1528_s23  ;;  %s1932_s22 = smov %s1532_s24 }
 0x19d   : > { %s1933_s23 = smov %s1923_s14  ;;  %13 = sbr.rel (!%p11_p6) target bundleno = 9 (0x9), region = 201 }
 0x19e   : > { %s1934_s24 = smov %s1924_s29 }

// kernel: resnet_forward.36
= control target key start
LH: loop header
LB: loop body
LE: loop exit
PB: predicated region body
PF: predicated region fallthrough
CT: control target
= control target key end

     0   :  { %s1156_s15 = smov 0   ;;  %s1158_s16 = smov 0   ;;  %s1347_s0 = inlined_call_operand.vmem [shape: bf16[16,256], index: 0, kind: input, shape index: {}]   ;;  %s1348_s1 = inlined_call_operand.vmem [shape: bf16[256,512], index: 1, kind: input, shape index: {}]   ;;  %s1349_s2 = inlined_call_operand.vmem [shape: f32[1,512], index: 2, kind: input, shape index: {}]   ;;  %s1350_s3 = inlined_call_operand.vmem [shape: f32[1,512], index: 3, kind: input, shape index: {}]   ;;  %s1351_s4 = inlined_call_operand.vmem [shape: bf16[16,512], index: 4, kind: output, shape index: {}]  }
   0x1   :  { %s1160_s17 = smov 0   ;;  %s1162_s18 = smov 0  }
   0x2   :  { %s1164_s19 = smov 0  }
   0x3 LB: > { %s29_s20 = sadd.s32 1, %s1125_s18  ;;  %s942_s21 = sadd.s32 4294967295, %s1129_s19   ;;  %s1129_s19 = sphi %s1164_s19, %s14_s19   ;;  %s1125_s18 = sphi %s1162_s18, %s1356_s18   ;;  %s1121_s17 = sphi %s1160_s17, %s1355_s17   ;;  %s1117_s16 = sphi %s1158_s16, %s1354_s16   ;;  %s1113_s15 = sphi %s1156_s15, %s1353_s15  }
   0x4   : > { %p31_p0 = scmp.ge.s32.totalorder %s29_s20, 2  ;;  %p77_p1 = scmp.ne.s32.totalorder %s1117_s16, %s1113_s15 }
   0x5   : > { %p78_p2 = scmp.eq.s32.totalorder %s1129_s19, 0  ;;  %p161_p4 = scmp.eq.s32.totalorder %s942_s21, 1 }
   0x6   : > { %s1358_s20 = smov (%p31_p0, %s29_s20), 0  ;;  %s70_s23 = sadd.s32 1, %s1117_s16 }
   0x7   : > { %p79_p3 = por %p78_p2, %p77_p1  ;;  %s66_s22 = ssub.s32 %s1125_s18, %s1358_s20 }
   0x8   : > { %p68_p5 = scmp.eq.s32.totalorder %s66_s22, 0  ;;  %p1191_p6 = por %p161_p4, %p77_p1 }
   0x9   : > { %p946_p7 = scmp.ge.s32.totalorder %s1129_s19, 2 }
   0xa   : > { %s1196_s25 = scalar_select %p68_p5, %s1117_s16, %s70_s23  }
   0xb   : > { %198 = sbr.rel (%p946_p7) target bundleno = 38 (0x26), region = 20 }
  0x12   : > { %201 = sbr.rel (!%p79_p3) target bundleno = 38 (0x26), region = 24  ;;  %s203_s26 = sand.u32 (%p79_p3), 1, %s1117_s16  }
  0x13   : > { %s996_s27 = sshll.u32 (%p79_p3), %s1125_s18, 3  ;;  %s947_s28 = sshll.u32 (%p79_p3), %s203_s26, 8 }
  0x14   : > { %s1204_s5 = scalar_lea.vmem (%p79_p3), %s1348_s1, %s996_s27  ;;  %s1209_s6 = scalar_lea.vmem (%p79_p3), [#allocation3], %s947_s28 }
  0x15   : > { %v301_v0 = vld [vmem:[%s1204_s5] sm:$0xff] (%p79_p3)  ;;  %v303_v1 = vld [vmem:[%s1204_s5 + $0x10] sm:$0xff] (%p79_p3) }
  0x16   : > { %v305_v2 = vld [vmem:[%s1204_s5 + $0x20] sm:$0xff] (%p79_p3)  ;;  %302 = vst [vmem:[%s1209_s6] sm:$0xff] (%p79_p3), %v301_v0  ;;  %304 = vst [vmem:[%s1209_s6 + $0x8] sm:$0xff] (%p79_p3), %v303_v1  ;;  %v307_v3 = vld [vmem:[%s1204_s5 + $0x30] sm:$0xff] (%p79_p3) }
  0x17   : > { %306 = vst [vmem:[%s1209_s6 + $0x10] sm:$0xff] (%p79_p3), %v305_v2  ;;  %v309_v4 = vld [vmem:[%s1204_s5 + $0x40] sm:$0xff] (%p79_p3)  ;;  %v311_v5 = vld [vmem:[%s1204_s5 + $0x50] sm:$0xff] (%p79_p3)  ;;  %308 = vst [vmem:[%s1209_s6 + $0x18] sm:$0xff] (%p79_p3), %v307_v3 }
  0x18   : > { %310 = vst [vmem:[%s1209_s6 + $0x20] sm:$0xff] (%p79_p3), %v309_v4  ;;  %312 = vst [vmem:[%s1209_s6 + $0x28] sm:$0xff] (%p79_p3), %v311_v5  ;;  %v313_v6 = vld [vmem:[%s1204_s5 + $0x60] sm:$0xff] (%p79_p3)  ;;  %v315_v7 = vld [vmem:[%s1204_s5 + $0x70] sm:$0xff] (%p79_p3) }
  0x19   : > { %v317_v8 = vld [vmem:[%s1204_s5 + $0x80] sm:$0xff]  ;;  %314 = vst [vmem:[%s1209_s6 + $0x30] sm:$0xff] %v313_v6  ;;  %316 = vst [vmem:[%s1209_s6 + $0x38] sm:$0xff] %v315_v7  ;;  %v319_v9 = vld [vmem:[%s1204_s5 + $0x90] sm:$0xff] }
  0x1a   : > { %318 = vst [vmem:[%s1209_s6 + $0x40] sm:$0xff] %v317_v8  ;;  %v321_v10 = vld [vmem:[%s1204_s5 + $0xa0] sm:$0xff]  ;;  %v323_v11 = vld [vmem:[%s1204_s5 + $0xb0] sm:$0xff]  ;;  %320 = vst [vmem:[%s1209_s6 + $0x48] sm:$0xff] %v319_v9 }
  0x1b   : > { %322 = vst [vmem:[%s1209_s6 + $0x50] sm:$0xff] %v321_v10  ;;  %324 = vst [vmem:[%s1209_s6 + $0x58] sm:$0xff] %v323_v11  ;;  %v325_v12 = vld [vmem:[%s1204_s5 + $0xc0] sm:$0xff]  ;;  %v327_v13 = vld [vmem:[%s1204_s5 + $0xd0] sm:$0xff] }
  0x1c   : > { %v329_v14 = vld [vmem:[%s1204_s5 + $0xe0] sm:$0xff]  ;;  %326 = vst [vmem:[%s1209_s6 + $0x60] sm:$0xff] %v325_v12  ;;  %328 = vst [vmem:[%s1209_s6 + $0x68] sm:$0xff] %v327_v13  ;;  %v331_v15 = vld [vmem:[%s1204_s5 + $0xf0] sm:$0xff] }
  0x1d   : > { %330 = vst [vmem:[%s1209_s6 + $0x70] sm:$0xff] %v329_v14  ;;  %v333_v16 = vld [vmem:[%s1204_s5 + $0x100] sm:$0xff]  ;;  %v335_v17 = vld [vmem:[%s1204_s5 + $0x110] sm:$0xff]  ;;  %332 = vst [vmem:[%s1209_s6 + $0x78] sm:$0xff] %v331_v15 }
  0x1e   : > { %334 = vst [vmem:[%s1209_s6 + $0x80] sm:$0xff] %v333_v16  ;;  %336 = vst [vmem:[%s1209_s6 + $0x88] sm:$0xff] %v335_v17  ;;  %v337_v18 = vld [vmem:[%s1204_s5 + $0x120] sm:$0xff]  ;;  %v339_v19 = vld [vmem:[%s1204_s5 + $0x130] sm:$0xff] }
  0x1f   : > { %v341_v20 = vld [vmem:[%s1204_s5 + $0x140] sm:$0xff]  ;;  %338 = vst [vmem:[%s1209_s6 + $0x90] sm:$0xff] %v337_v18  ;;  %340 = vst [vmem:[%s1209_s6 + $0x98] sm:$0xff] %v339_v19  ;;  %v343_v21 = vld [vmem:[%s1204_s5 + $0x150] sm:$0xff] }
  0x20   : > { %342 = vst [vmem:[%s1209_s6 + $0xa0] sm:$0xff] %v341_v20  ;;  %v345_v22 = vld [vmem:[%s1204_s5 + $0x160] sm:$0xff]  ;;  %v347_v23 = vld [vmem:[%s1204_s5 + $0x170] sm:$0xff]  ;;  %344 = vst [vmem:[%s1209_s6 + $0xa8] sm:$0xff] %v343_v21 }
  0x21   : > { %346 = vst [vmem:[%s1209_s6 + $0xb0] sm:$0xff] %v345_v22  ;;  %348 = vst [vmem:[%s1209_s6 + $0xb8] sm:$0xff] %v347_v23  ;;  %v349_v24 = vld [vmem:[%s1204_s5 + $0x180] sm:$0xff]  ;;  %v351_v25 = vld [vmem:[%s1204_s5 + $0x190] sm:$0xff] }
  0x22   : > { %v353_v26 = vld [vmem:[%s1204_s5 + $0x1a0] sm:$0xff]  ;;  %350 = vst [vmem:[%s1209_s6 + $0xc0] sm:$0xff] %v349_v24  ;;  %352 = vst [vmem:[%s1209_s6 + $0xc8] sm:$0xff] %v351_v25  ;;  %v355_v27 = vld [vmem:[%s1204_s5 + $0x1b0] sm:$0xff] }
  0x23   : > { %354 = vst [vmem:[%s1209_s6 + $0xd0] sm:$0xff] %v353_v26  ;;  %v357_v28 = vld [vmem:[%s1204_s5 + $0x1c0] sm:$0xff]  ;;  %v359_v29 = vld [vmem:[%s1204_s5 + $0x1d0] sm:$0xff]  ;;  %356 = vst [vmem:[%s1209_s6 + $0xd8] sm:$0xff] %v355_v27 }
  0x24   : > { %358 = vst [vmem:[%s1209_s6 + $0xe0] sm:$0xff] %v357_v28  ;;  %360 = vst [vmem:[%s1209_s6 + $0xe8] sm:$0xff] %v359_v29  ;;  %v361_v30 = vld [vmem:[%s1204_s5 + $0x1e0] sm:$0xff]  ;;  %v363_v31 = vld [vmem:[%s1204_s5 + $0x1f0] sm:$0xff] }
  0x25   : > { %362 = vst [vmem:[%s1209_s6 + $0xf0] sm:$0xff] %v361_v30  ;;  %364 = vst [vmem:[%s1209_s6 + $0xf8] sm:$0xff] %v363_v31 }
  0x26 PF: > { %p950_p8 = scmp.ge.s32.totalorder %s1129_s19, 1  ;;  %p385_p9 = scmp.lt.s32.totalorder %s1129_s19, 3 }
  0x28   : > { %p386_p10 = pnand %p950_p8, %p385_p9 }
  0x29   : > { %s392_s7 = sand.u32 (!%p386_p10), 1, %s1113_s15   ;;  %v1090_v32 = vld [vmem:[%s1347_s0 + $0x4] ss:$8 sps:$4 sm:$0xff] (!%p386_p10)   ;;  %v1088_v1 = vld [vmem:[%s1347_s0] ss:$8 sps:$4 sm:$0xff] (!%p386_p10)   ;;  %s953_s14 = sshll.u32 (!%p386_p10), %s1121_s17, 1  ;;  %v736_v2 = vlaneseq (!%p386_p10) }
  0x2a   : > { %389 = sbr.rel (%p386_p10) target bundleno = 339 (0x153), region = 70  ;;  %s951_s8 = sshll.u32 (!%p386_p10), %s392_s7, 8  ;;  %708 = vmatprep.mubr.bf16.mxu0 (!%p386_p10), %v1090_v32 }
  0x2b   : > { %s1280_s11 = scalar_lea.vmem (!%p386_p10), [#allocation3], %s951_s8  ;;  %p449_p11 = scmp.lt.s32.totalorder (!%p386_p10), %s953_s14, 3  ;;  %v737_v3 = vshrl.u32 (!%p386_p10), %v736_v2, 7 }
  0x2c   : > { %v1040_v33 = vld [vmem:[%s1280_s11 + $0x4] ss:$8 sps:$4 sm:$0xff] (!%p386_p10)   ;;  %v1042_v34 = vld [vmem:[%s1280_s11] ss:$8 sps:$4 sm:$0xff] (!%p386_p10)   ;;  %v1043_v35 = vld [vmem:[%s1280_s11 + $0x14] ss:$8 sps:$4 sm:$0xff] (!%p386_p10)  }
  0x2d   : > { %676 = vmatprep.subr.bf16.mxu0 (!%p386_p10), %v1040_v33  ;;  %v1045_v36 = vld [vmem:[%s1280_s11 + $0x10] ss:$8 sps:$4 sm:$0xff] (!%p386_p10)   ;;  %v1046_v37 = vld [vmem:[%s1280_s11 + $0x24] ss:$8 sps:$4 sm:$0xff] (!%p386_p10)   ;;  %v1048_v38 = vld [vmem:[%s1280_s11 + $0x20] ss:$8 sps:$4 sm:$0xff] (!%p386_p10)  }
  0x2e   : > { %677 = vmatpush1.bf16.msra.mxu0 (!%p386_p10), %v1042_v34  ;;  %v1049_v39 = vld [vmem:[%s1280_s11 + $0x34] ss:$8 sps:$4 sm:$0xff] (!%p386_p10)   ;;  %v1051_v40 = vld [vmem:[%s1280_s11 + $0x30] ss:$8 sps:$4 sm:$0xff] (!%p386_p10)   ;;  %v1052_v41 = vld [vmem:[%s1280_s11 + $0x44] ss:$8 sps:$4 sm:$0xff] (!%p386_p10)  }
  0x2f   : > { %678 = vmatprep.subr.bf16.mxu0 (!%p386_p10), %v1043_v35  ;;  %v1054_v42 = vld [vmem:[%s1280_s11 + $0x40] ss:$8 sps:$4 sm:$0xff] (!%p386_p10)   ;;  %v1055_v43 = vld [vmem:[%s1280_s11 + $0x54] ss:$8 sps:$4 sm:$0xff] (!%p386_p10)   ;;  %v1057_v44 = vld [vmem:[%s1280_s11 + $0x50] ss:$8 sps:$4 sm:$0xff] (!%p386_p10)  }
  0x30   : > { %v1058_v45 = vld [vmem:[%s1280_s11 + $0x64] ss:$8 sps:$4 sm:$0xff] (!%p386_p10)   ;;  %v1060_v46 = vld [vmem:[%s1280_s11 + $0x60] ss:$8 sps:$4 sm:$0xff] (!%p386_p10)   ;;  %v1061_v47 = vld [vmem:[%s1280_s11 + $0x74] ss:$8 sps:$4 sm:$0xff] (!%p386_p10)  }
  0x31   : > { %v1063_v48 = vld [vmem:[%s1280_s11 + $0x70] ss:$8 sps:$4 sm:$0xff]   ;;  %v1064_v49 = vld [vmem:[%s1280_s11 + $0x84] ss:$8 sps:$4 sm:$0xff]   ;;  %v1066_v50 = vld [vmem:[%s1280_s11 + $0x80] ss:$8 sps:$4 sm:$0xff]  }
  0x32   : > { %679 = vmatpush1.bf16.msra.mxu0 %v1045_v36  ;;  %v1067_v51 = vld [vmem:[%s1280_s11 + $0x94] ss:$8 sps:$4 sm:$0xff]   ;;  %v1069_v52 = vld [vmem:[%s1280_s11 + $0x90] ss:$8 sps:$4 sm:$0xff]   ;;  %v1070_v53 = vld [vmem:[%s1280_s11 + $0xa4] ss:$8 sps:$4 sm:$0xff]  }
  0x33   : > { %680 = vmatprep.subr.bf16.mxu0 %v1046_v37  ;;  %v1072_v54 = vld [vmem:[%s1280_s11 + $0xa0] ss:$8 sps:$4 sm:$0xff]   ;;  %v1073_v55 = vld [vmem:[%s1280_s11 + $0xb4] ss:$8 sps:$4 sm:$0xff]   ;;  %v1075_v56 = vld [vmem:[%s1280_s11 + $0xb0] ss:$8 sps:$4 sm:$0xff]  }
  0x34   : > { %v1076_v57 = vld [vmem:[%s1280_s11 + $0xc4] ss:$8 sps:$4 sm:$0xff]   ;;  %v1078_v58 = vld [vmem:[%s1280_s11 + $0xc0] ss:$8 sps:$4 sm:$0xff]   ;;  %v1079_v59 = vld [vmem:[%s1280_s11 + $0xd4] ss:$8 sps:$4 sm:$0xff]  }
  0x35   : > { %v1081_v60 = vld [vmem:[%s1280_s11 + $0xd0] ss:$8 sps:$4 sm:$0xff]   ;;  %v1082_v61 = vld [vmem:[%s1280_s11 + $0xe4] ss:$8 sps:$4 sm:$0xff]   ;;  %v1084_v62 = vld [vmem:[%s1280_s11 + $0xe0] ss:$8 sps:$4 sm:$0xff]  }
  0x36   : > { %681 = vmatpush1.bf16.msra.mxu0 %v1048_v38  ;;  %v1085_v63 = vld [vmem:[%s1280_s11 + $0xf4] ss:$8 sps:$4 sm:$0xff]   ;;  %v1087_v0 = vld [vmem:[%s1280_s11 + $0xf0] ss:$8 sps:$4 sm:$0xff]   ;;  %s1360_s14 = smov (!%p449_p11, %s953_s14), 3  ;;  %v738_v4 = vsub.s32 0, %v737_v3 }
  0x37   : > { %682 = vmatprep.subr.bf16.mxu0 %v1049_v39  ;;  %s451_s23 = scalar_lea.vmem %s1349_s2, %s1360_s14  ;;  %s456_s28 = scalar_lea.vmem %s1350_s3, %s1360_s14  ;;  %v742_v6 = vsub.s32 1, %v737_v3 }
  0x38   : > { %v734_v5 = vld [vmem:[%s451_s23] sm:$0x3]  ;;  %s952_s29 = sshll.u32 %s392_s7, 4  ;;  %s999_s15 = sshll.u32 (%p1191_p6), %s1121_s17, 3 }
  0x39   : > { %v750_v7 = vld [vmem:[%s456_s28] sm:$0x3]  ;;  %v739_v8 = vrot.slane %v734_v5, %v738_v4  ;;  %v743_v9 = vrot.slane %v734_v5, %v742_v6  ;;  %s433_s30 = scalar_lea.vmem [#allocation4], %s952_s29  ;;  %s792_s7 = scalar_lea.vmem (%p1191_p6), %s1351_s4, %s999_s15 }
  0x3a   : > { %683 = vmatpush1.bf16.msra.mxu0 %v1051_v40  ;;  %v755_v10 = vrot.slane %v750_v7, %v738_v4  ;;  %v759_v12 = vrot.slane %v750_v7, %v742_v6 }
  0x3b   : > { %684 = vmatprep.subr.bf16.mxu0 %v1052_v41 }
  0x3e   : > { %685 = vmatpush1.bf16.msra.mxu0 %v1054_v42 }
  0x3f   : > { %686 = vmatprep.subr.bf16.mxu0 %v1055_v43 }
  0x42   : > { %687 = vmatpush1.bf16.msra.mxu0 %v1057_v44 }
  0x43   : > { %688 = vmatprep.subr.bf16.mxu0 %v1058_v45 }
  0x46   : > { %689 = vmatpush1.bf16.msra.mxu0 %v1060_v46 }
  0x47   : > { %690 = vmatprep.subr.bf16.mxu0 %v1061_v47 }
  0x4a   : > { %691 = vmatpush1.bf16.msra.mxu0 %v1063_v48 }
  0x4b   : > { %692 = vmatprep.subr.bf16.mxu0 %v1064_v49 }
  0x4e   : > { %693 = vmatpush1.bf16.msra.mxu0 %v1066_v50 }
  0x4f   : > { %694 = vmatprep.subr.bf16.mxu0 %v1067_v51 }
  0x52   : > { %695 = vmatpush1.bf16.msra.mxu0 %v1069_v52 }
  0x53   : > { %696 = vmatprep.subr.bf16.mxu0 %v1070_v53 }
  0x56   : > { %697 = vmatpush1.bf16.msra.mxu0 %v1072_v54 }
  0x57   : > { %698 = vmatprep.subr.bf16.mxu0 %v1073_v55 }
  0x5a   : > { %699 = vmatpush1.bf16.msra.mxu0 %v1075_v56 }
  0x5b   : > { %700 = vmatprep.subr.bf16.mxu0 %v1076_v57 }
  0x5e   : > { %701 = vmatpush1.bf16.msra.mxu0 %v1078_v58 }
  0x5f   : > { %702 = vmatprep.subr.bf16.mxu0 %v1079_v59 }
  0x62   : > { %703 = vmatpush1.bf16.msra.mxu0 %v1081_v60 }
  0x63   : > { %704 = vmatprep.subr.bf16.mxu0 %v1082_v61 }
  0x66   : > { %705 = vmatpush1.bf16.msra.mxu0 %v1084_v62 }
  0x67   : > { %706 = vmatprep.subr.bf16.mxu0 %v1085_v63 }
  0x6a   : > { %707 = vmatpush1.bf16.msra.mxu0 %v1087_v0 }
  0x6d   : > { %709 = vmatmul.mubr.bf16.vlgmr.msra.gmra.mrb[0].mxu0 %v1088_v1 }
 0x140   : > { %v710_v11 = vpop.f32.mrb[0].mxu0 }
 0x141   : > { %v746_v13 = vmul.f32 %v739_v8, %v710_v11  ;;  %v712_v14 = vpop.f32.mrb[1].mxu0 }
 0x142   : > { %v747_v15 = vmul.f32 %v743_v9, %v712_v14  ;;  %v714_v16 = vpop.f32.mrb[2].mxu0 }
 0x143   : > { %v762_v17 = vadd.f32 %v755_v10, %v746_v13  ;;  %v748_v18 = vmul.f32 %v739_v8, %v714_v16  ;;  %v716_v19 = vpop.f32.mrb[3].mxu0 }
 0x144   : > { %v763_v20 = vadd.f32 %v759_v12, %v747_v15  ;;  %v749_v21 = vmul.f32 %v743_v9, %v716_v19  ;;  %786 = sbr.rel (!%p1191_p6) target bundleno = 339 (0x153), region = 86 }
 0x145   : > { %v764_v22 = vadd.f32 %v755_v10, %v748_v18 }
 0x146   : > { %v997_v23 = vpack.c.bf16 %v763_v20, %v762_v17  ;;  %v765_v24 = vadd.f32 %v759_v12, %v749_v21 }
 0x148   : > { %778 = vst [vmem:[%s433_s30] sm:$0xff] %v997_v23  ;;  %v998_v25 = vpack.c.bf16 %v765_v24, %v764_v22 }
 0x14a   : > { %779 = vst [vmem:[%s433_s30 + $0x8] sm:$0xff] %v998_v25 }
 0x14f   : > { %v822_v26 = vld [vmem:[%s433_s30] sm:$0xff] }
 0x150   : > { %823 = vst [vmem:[%s792_s7] sm:$0xff] %v822_v26 }
 0x151   : > { %v824_v27 = vld [vmem:[%s433_s30 + $0x8] sm:$0xff] }
 0x152   : > { %825 = vst [vmem:[%s792_s7 + $0x10] sm:$0xff] %v824_v27 }
 0x153 PF: > { %s14_s19 = sadd.s32 1, %s1129_s19   ;;  %s1353_s15 = smov %s1117_s16 }
 0x154   : > { %p11_p12 = scmp.ge.s32.totalorder %s14_s19, 4   ;;  %s1354_s16 = smov %s1196_s25 }
 0x155   : > { %s1355_s17 = smov %s1125_s18  ;;  %s1356_s18 = smov %s1358_s20 }
 0x156   :  { %13 = sbr.rel (!%p11_p12) target bundleno = 3 (0x3), region = 164 }

// kernel: resnet_forward.37
= control target key start
LH: loop header
LB: loop body
LE: loop exit
PB: predicated region body
PF: predicated region fallthrough
CT: control target
= control target key end

     0   :  { %s2304_s0 = inlined_call_operand.vmem [shape: bf16[16,4608], index: 0, kind: input, shape index: {}]   ;;  %s2305_s1 = inlined_call_operand.vmem [shape: bf16[4608,512], index: 1, kind: input, shape index: {}]   ;;  %s2306_s2 = inlined_call_operand.vmem [shape: f32[1,512], index: 2, kind: input, shape index: {}]   ;;  %s2307_s3 = inlined_call_operand.vmem [shape: f32[1,512], index: 3, kind: input, shape index: {}]   ;;  %s2308_s4 = inlined_call_operand.vmem [shape: bf16[16,512], index: 4, kind: input, shape index: {}]   ;;  %s2309_s5 = inlined_call_operand.vmem [shape: bf16[16,512], index: 5, kind: output, shape index: {}]  }
   0x1   :  { %2313 = sst [smem:[#allocation11_spill]] %s2304_s0 }
   0x2   :  { %s1888_s18 = smov 0   ;;  %s1890_s19 = smov 0  }
   0x3   :  { %s1892_s20 = smov 0   ;;  %s1894_s21 = smov 0  }
   0x4   :  { %s1896_s22 = smov 0   ;;  %s1898_s23 = smov 0  }
   0x5   :  { %s1900_s24 = smov 0   ;;  %s1902_s25 = smov 0  }
   0x6   :  { %s1904_s26 = smov 0   ;;  %s1906_s27 = smov 0  }
   0x7   :  { %s1908_s28 = smov 0  }
   0x8 LB: > { %2314 = sst [smem:[#allocation7_spill]] %s1835_s23  ;;  %s1469_s29 = sadd.s32 4294967295, %s1855_s28   ;;  %s1855_s28 = sphi %s1908_s28, %s15_s28   ;;  %s1851_s27 = sphi %s1906_s27, %s2334_s27   ;;  %s1847_s26 = sphi %s1904_s26, %s2333_s26   ;;  %s1843_s25 = sphi %s1902_s25, %s2332_s25   ;;  %s1839_s24 = sphi %s1900_s24, %s2331_s24   ;;  %s1835_s23 = sphi %s1898_s23, %s2324_s23   ;;  %s1831_s22 = sphi %s1896_s22, %s2323_s22   ;;  %s1827_s21 = sphi %s1894_s21, %s2330_s21   ;;  %s1823_s20 = sphi %s1892_s20, %s2329_s20   ;;  %s1819_s19 = sphi %s1890_s19, %s2328_s19   ;;  %s1815_s18 = sphi %s1888_s18, %s2327_s18  }
   0x9   : > { %s27_s30 = sadd.s32 1, %s1847_s26  ;;  %s30_s6 = sadd.s32 1, %s1851_s27 }
   0xa   : > { %p28_p0 = scmp.ge.s32.totalorder %s27_s30, 9  ;;  %s43_s7 = sadd.s32 1, %s1835_s23 }
   0xb   : > { %p50_p1 = scmp.ne.s32.totalorder %s1835_s23, %s1831_s22  ;;  %p51_p2 = scmp.eq.s32.totalorder %s1855_s28, 0 }
   0xc   : > { %s2336_s30 = smov (%p28_p0, %s27_s30), 0  ;;  %s2338_s6 = smov (!%p28_p0, %s30_s6), %s1851_s27 }
   0xd   : > { %2315 = sst [smem:[#allocation8_spill]] %s2336_s30  ;;  %s39_s8 = ssub.s32 %s1847_s26, %s2336_s30 }
   0xe   : > { %p32_p3 = scmp.ge.s32.totalorder %s2338_s6, 2  ;;  %p41_p4 = scmp.eq.s32.totalorder %s39_s8, 0 }
   0xf   : > { %p1957_p5 = por %p51_p2, %p50_p1  ;;  %s71_s10 = sadd.s32 1, %s1827_s21 }
  0x10   : > { %s2340_s6 = smov (%p32_p3, %s2338_s6), 0  ;;  %p78_p6 = scmp.ne.s32.totalorder %s1827_s21, %s1823_s20 }
  0x11   : > { %2317 = sst [smem:[#allocation9_spill]] %s2340_s6  ;;  %s67_s12 = ssub.s32 %s1851_s27, %s2340_s6 }
  0x12   : > { %s1965_s11 = scalar_select %p41_p4, %s1835_s23, %s43_s7  }
  0x13   : > { %s68_s13 = sor.u32 %s67_s12, %s39_s8  ;;  %p149_p7 = scmp.eq.s32.totalorder %s67_s12, 0 }
  0x14   : > { %2318 = sst [smem:[#allocation10_spill]] %s1965_s11  ;;  %p69_p8 = scmp.eq.s32.totalorder %s68_s13, 0 }
  0x15   : > { %p1973_p9 = por %p78_p6, %p51_p2  ;;  %s151_s15 = sadd.s32 1, %s1819_s19 }
  0x16   : > { %p158_p10 = scmp.ne.s32.totalorder %s1819_s19, %s1815_s18  ;;  %p190_p12 = scmp.eq.s32.totalorder %s1469_s29, 17 }
  0x17   : > { %s1981_s16 = scalar_select %p69_p8, %s1827_s21, %s71_s10  }
  0x18   : > { %s1984_s17 = scalar_select %p149_p7, %s1819_s19, %s151_s15  }
  0x19   : > { %p1988_p11 = por %p158_p10, %p51_p2  ;;  %p1992_p13 = por %p190_p12, %p158_p10 }
  0x1a   : > { %p1472_p0 = scmp.ge.s32.totalorder %s1855_s28, 18 }
  0x1c   : > { %212 = sbr.rel (%p1472_p0) target bundleno = 93 (0x5d), region = 16 }
  0x23   : > { %215 = sbr.rel (!%p1957_p5) target bundleno = 47 (0x2f), region = 20  ;;  %s217_s10 = sand.u32 (%p1957_p5), 1, %s1835_s23  }
  0x24   : > { %s1568_s12 = sshll.u32 (%p1957_p5), %s1847_s26, 4  ;;  %s1473_s13 = sshll.u32 (%p1957_p5), %s217_s10, 5 }
  0x25   : > { %s2322_s0 = sld [smem:[#allocation11_spill]] (%p1957_p5)  ;;  %s219_s29 = scalar_lea.vmem (%p1957_p5), [#allocation3], %s1473_s13 }
  0x2b   : > { %s225_s30 = scalar_lea.vmem %s2322_s0, %s1568_s12 }
  0x2c   : > { %v238_v0 = vld [vmem:[%s225_s30] sm:$0xff]  ;;  %v240_v1 = vld [vmem:[%s225_s30 + $0x8] sm:$0xff]  ;;  %v242_v2 = vld [vmem:[%s225_s30 + $0x90] sm:$0xff] }
  0x2d   : > { %239 = vst [vmem:[%s219_s29] sm:$0xff] %v238_v0  ;;  %241 = vst [vmem:[%s219_s29 + $0x8] sm:$0xff] %v240_v1  ;;  %v244_v3 = vld [vmem:[%s225_s30 + $0x98] sm:$0xff] }
  0x2e   : > { %243 = vst [vmem:[%s219_s29 + $0x10] sm:$0xff] %v242_v2  ;;  %245 = vst [vmem:[%s219_s29 + $0x18] sm:$0xff] %v244_v3 }
  0x2f PF: > { %251 = sbr.rel (!%p1973_p9) target bundleno = 86 (0x56), region = 43  ;;  %s253_s9 = sand.u32 (%p1973_p9), 1, %s1827_s21  }
  0x30   : > { %s1478_s10 = sshll.u32 (%p1973_p9), %s1851_s27, 1  ;;  %s1476_s6 = sshll.u32 (%p1973_p9), %s253_s9, 9 }
  0x31   : > { %s1569_s12 = sshll.u32 (%p1973_p9), %s1847_s26, 8  ;;  %s2017_s30 = scalar_lea.vmem (%p1973_p9), [#allocation4], %s1476_s6 }
  0x32   : > { %s259_s15 = sadd.s32 (%p1973_p9), %s1569_s12, %s1478_s10 }
  0x33   : > { %s1480_s0 = sshll.u32 (%p1973_p9), %s259_s15, 2 }
  0x34   : > { %s2012_s23 = scalar_lea.vmem (%p1973_p9), %s2305_s1, %s1480_s0 }
  0x35   : > { %v415_v4 = vld [vmem:[%s2012_s23] sm:$0xff] (%p1973_p9)  ;;  %v417_v5 = vld [vmem:[%s2012_s23 + $0x10] sm:$0xff] (%p1973_p9) }
  0x36   : > { %v419_v6 = vld [vmem:[%s2012_s23 + $0x20] sm:$0xff]  ;;  %416 = vst [vmem:[%s2017_s30] sm:$0xff] %v415_v4  ;;  %418 = vst [vmem:[%s2017_s30 + $0x8] sm:$0xff] %v417_v5  ;;  %v421_v7 = vld [vmem:[%s2012_s23 + $0x30] sm:$0xff] }
  0x37   : > { %420 = vst [vmem:[%s2017_s30 + $0x10] sm:$0xff] %v419_v6  ;;  %v423_v8 = vld [vmem:[%s2012_s23 + $0x40] sm:$0xff]  ;;  %v425_v9 = vld [vmem:[%s2012_s23 + $0x50] sm:$0xff]  ;;  %422 = vst [vmem:[%s2017_s30 + $0x18] sm:$0xff] %v421_v7 }
  0x38   : > { %424 = vst [vmem:[%s2017_s30 + $0x20] sm:$0xff] %v423_v8  ;;  %426 = vst [vmem:[%s2017_s30 + $0x28] sm:$0xff] %v425_v9  ;;  %v427_v10 = vld [vmem:[%s2012_s23 + $0x60] sm:$0xff]  ;;  %v429_v11 = vld [vmem:[%s2012_s23 + $0x70] sm:$0xff] }
  0x39   : > { %v431_v12 = vld [vmem:[%s2012_s23 + $0x80] sm:$0xff]  ;;  %428 = vst [vmem:[%s2017_s30 + $0x30] sm:$0xff] %v427_v10  ;;  %430 = vst [vmem:[%s2017_s30 + $0x38] sm:$0xff] %v429_v11  ;;  %v433_v13 = vld [vmem:[%s2012_s23 + $0x90] sm:$0xff] }
  0x3a   : > { %432 = vst [vmem:[%s2017_s30 + $0x40] sm:$0xff] %v431_v12  ;;  %v435_v14 = vld [vmem:[%s2012_s23 + $0xa0] sm:$0xff]  ;;  %v437_v15 = vld [vmem:[%s2012_s23 + $0xb0] sm:$0xff]  ;;  %434 = vst [vmem:[%s2017_s30 + $0x48] sm:$0xff] %v433_v13 }
  0x3b   : > { %436 = vst [vmem:[%s2017_s30 + $0x50] sm:$0xff] %v435_v14  ;;  %438 = vst [vmem:[%s2017_s30 + $0x58] sm:$0xff] %v437_v15  ;;  %v439_v16 = vld [vmem:[%s2012_s23 + $0xc0] sm:$0xff]  ;;  %v441_v17 = vld [vmem:[%s2012_s23 + $0xd0] sm:$0xff] }
  0x3c   : > { %v443_v18 = vld [vmem:[%s2012_s23 + $0xe0] sm:$0xff]  ;;  %440 = vst [vmem:[%s2017_s30 + $0x60] sm:$0xff] %v439_v16  ;;  %442 = vst [vmem:[%s2017_s30 + $0x68] sm:$0xff] %v441_v17  ;;  %v445_v19 = vld [vmem:[%s2012_s23 + $0xf0] sm:$0xff] }
  0x3d   : > { %444 = vst [vmem:[%s2017_s30 + $0x70] sm:$0xff] %v443_v18  ;;  %v447_v20 = vld [vmem:[%s2012_s23 + $0x100] sm:$0xff]  ;;  %v449_v21 = vld [vmem:[%s2012_s23 + $0x110] sm:$0xff]  ;;  %446 = vst [vmem:[%s2017_s30 + $0x78] sm:$0xff] %v445_v19 }
  0x3e   : > { %448 = vst [vmem:[%s2017_s30 + $0x80] sm:$0xff] %v447_v20  ;;  %450 = vst [vmem:[%s2017_s30 + $0x88] sm:$0xff] %v449_v21  ;;  %v451_v22 = vld [vmem:[%s2012_s23 + $0x120] sm:$0xff]  ;;  %v453_v23 = vld [vmem:[%s2012_s23 + $0x130] sm:$0xff] }
  0x3f   : > { %v455_v24 = vld [vmem:[%s2012_s23 + $0x140] sm:$0xff]  ;;  %452 = vst [vmem:[%s2017_s30 + $0x90] sm:$0xff] %v451_v22  ;;  %454 = vst [vmem:[%s2017_s30 + $0x98] sm:$0xff] %v453_v23  ;;  %v457_v25 = vld [vmem:[%s2012_s23 + $0x150] sm:$0xff] }
  0x40   : > { %456 = vst [vmem:[%s2017_s30 + $0xa0] sm:$0xff] %v455_v24  ;;  %v459_v26 = vld [vmem:[%s2012_s23 + $0x160] sm:$0xff]  ;;  %v461_v27 = vld [vmem:[%s2012_s23 + $0x170] sm:$0xff]  ;;  %458 = vst [vmem:[%s2017_s30 + $0xa8] sm:$0xff] %v457_v25 }
  0x41   : > { %460 = vst [vmem:[%s2017_s30 + $0xb0] sm:$0xff] %v459_v26  ;;  %462 = vst [vmem:[%s2017_s30 + $0xb8] sm:$0xff] %v461_v27  ;;  %v463_v28 = vld [vmem:[%s2012_s23 + $0x180] sm:$0xff]  ;;  %v465_v29 = vld [vmem:[%s2012_s23 + $0x190] sm:$0xff] }
  0x42   : > { %v467_v30 = vld [vmem:[%s2012_s23 + $0x1a0] sm:$0xff]  ;;  %464 = vst [vmem:[%s2017_s30 + $0xc0] sm:$0xff] %v463_v28  ;;  %466 = vst [vmem:[%s2017_s30 + $0xc8] sm:$0xff] %v465_v29  ;;  %v469_v31 = vld [vmem:[%s2012_s23 + $0x1b0] sm:$0xff] }
  0x43   : > { %468 = vst [vmem:[%s2017_s30 + $0xd0] sm:$0xff] %v467_v30  ;;  %v471_v32 = vld [vmem:[%s2012_s23 + $0x1c0] sm:$0xff]  ;;  %v473_v33 = vld [vmem:[%s2012_s23 + $0x1d0] sm:$0xff]  ;;  %470 = vst [vmem:[%s2017_s30 + $0xd8] sm:$0xff] %v469_v31 }
  0x44   : > { %472 = vst [vmem:[%s2017_s30 + $0xe0] sm:$0xff] %v471_v32  ;;  %474 = vst [vmem:[%s2017_s30 + $0xe8] sm:$0xff] %v473_v33  ;;  %v475_v34 = vld [vmem:[%s2012_s23 + $0x1e0] sm:$0xff]  ;;  %v477_v35 = vld [vmem:[%s2012_s23 + $0x1f0] sm:$0xff] }
  0x45   : > { %v479_v36 = vld [vmem:[%s2012_s23 + $0x200] sm:$0xff]  ;;  %476 = vst [vmem:[%s2017_s30 + $0xf0] sm:$0xff] %v475_v34  ;;  %478 = vst [vmem:[%s2017_s30 + $0xf8] sm:$0xff] %v477_v35  ;;  %v481_v37 = vld [vmem:[%s2012_s23 + $0x210] sm:$0xff] }
  0x46   : > { %480 = vst [vmem:[%s2017_s30 + $0x100] sm:$0xff] %v479_v36  ;;  %v483_v38 = vld [vmem:[%s2012_s23 + $0x220] sm:$0xff]  ;;  %v485_v39 = vld [vmem:[%s2012_s23 + $0x230] sm:$0xff]  ;;  %482 = vst [vmem:[%s2017_s30 + $0x108] sm:$0xff] %v481_v37 }
  0x47   : > { %484 = vst [vmem:[%s2017_s30 + $0x110] sm:$0xff] %v483_v38  ;;  %486 = vst [vmem:[%s2017_s30 + $0x118] sm:$0xff] %v485_v39  ;;  %v487_v40 = vld [vmem:[%s2012_s23 + $0x240] sm:$0xff]  ;;  %v489_v41 = vld [vmem:[%s2012_s23 + $0x250] sm:$0xff] }
  0x48   : > { %v491_v42 = vld [vmem:[%s2012_s23 + $0x260] sm:$0xff]  ;;  %488 = vst [vmem:[%s2017_s30 + $0x120] sm:$0xff] %v487_v40  ;;  %490 = vst [vmem:[%s2017_s30 + $0x128] sm:$0xff] %v489_v41  ;;  %v493_v43 = vld [vmem:[%s2012_s23 + $0x270] sm:$0xff] }
  0x49   : > { %492 = vst [vmem:[%s2017_s30 + $0x130] sm:$0xff] %v491_v42  ;;  %v495_v44 = vld [vmem:[%s2012_s23 + $0x280] sm:$0xff]  ;;  %v497_v45 = vld [vmem:[%s2012_s23 + $0x290] sm:$0xff]  ;;  %494 = vst [vmem:[%s2017_s30 + $0x138] sm:$0xff] %v493_v43 }
  0x4a   : > { %496 = vst [vmem:[%s2017_s30 + $0x140] sm:$0xff] %v495_v44  ;;  %498 = vst [vmem:[%s2017_s30 + $0x148] sm:$0xff] %v497_v45  ;;  %v499_v46 = vld [vmem:[%s2012_s23 + $0x2a0] sm:$0xff]  ;;  %v501_v47 = vld [vmem:[%s2012_s23 + $0x2b0] sm:$0xff] }
  0x4b   : > { %v503_v48 = vld [vmem:[%s2012_s23 + $0x2c0] sm:$0xff]  ;;  %500 = vst [vmem:[%s2017_s30 + $0x150] sm:$0xff] %v499_v46  ;;  %502 = vst [vmem:[%s2017_s30 + $0x158] sm:$0xff] %v501_v47  ;;  %v505_v49 = vld [vmem:[%s2012_s23 + $0x2d0] sm:$0xff] }
  0x4c   : > { %504 = vst [vmem:[%s2017_s30 + $0x160] sm:$0xff] %v503_v48  ;;  %v507_v50 = vld [vmem:[%s2012_s23 + $0x2e0] sm:$0xff]  ;;  %v509_v51 = vld [vmem:[%s2012_s23 + $0x2f0] sm:$0xff]  ;;  %506 = vst [vmem:[%s2017_s30 + $0x168] sm:$0xff] %v505_v49 }
  0x4d   : > { %508 = vst [vmem:[%s2017_s30 + $0x170] sm:$0xff] %v507_v50  ;;  %510 = vst [vmem:[%s2017_s30 + $0x178] sm:$0xff] %v509_v51  ;;  %v511_v52 = vld [vmem:[%s2012_s23 + $0x300] sm:$0xff]  ;;  %v513_v53 = vld [vmem:[%s2012_s23 + $0x310] sm:$0xff] }
  0x4e   : > { %v515_v54 = vld [vmem:[%s2012_s23 + $0x320] sm:$0xff]  ;;  %512 = vst [vmem:[%s2017_s30 + $0x180] sm:$0xff] %v511_v52  ;;  %514 = vst [vmem:[%s2017_s30 + $0x188] sm:$0xff] %v513_v53  ;;  %v517_v55 = vld [vmem:[%s2012_s23 + $0x330] sm:$0xff] }
  0x4f   : > { %516 = vst [vmem:[%s2017_s30 + $0x190] sm:$0xff] %v515_v54  ;;  %v519_v56 = vld [vmem:[%s2012_s23 + $0x340] sm:$0xff]  ;;  %v521_v57 = vld [vmem:[%s2012_s23 + $0x350] sm:$0xff]  ;;  %518 = vst [vmem:[%s2017_s30 + $0x198] sm:$0xff] %v517_v55 }
  0x50   : > { %520 = vst [vmem:[%s2017_s30 + $0x1a0] sm:$0xff] %v519_v56  ;;  %522 = vst [vmem:[%s2017_s30 + $0x1a8] sm:$0xff] %v521_v57  ;;  %v523_v58 = vld [vmem:[%s2012_s23 + $0x360] sm:$0xff]  ;;  %v525_v59 = vld [vmem:[%s2012_s23 + $0x370] sm:$0xff] }
  0x51   : > { %v527_v60 = vld [vmem:[%s2012_s23 + $0x380] sm:$0xff]  ;;  %524 = vst [vmem:[%s2017_s30 + $0x1b0] sm:$0xff] %v523_v58  ;;  %526 = vst [vmem:[%s2017_s30 + $0x1b8] sm:$0xff] %v525_v59  ;;  %v529_v61 = vld [vmem:[%s2012_s23 + $0x390] sm:$0xff] }
  0x52   : > { %528 = vst [vmem:[%s2017_s30 + $0x1c0] sm:$0xff] %v527_v60  ;;  %v531_v62 = vld [vmem:[%s2012_s23 + $0x3a0] sm:$0xff]  ;;  %v533_v63 = vld [vmem:[%s2012_s23 + $0x3b0] sm:$0xff]  ;;  %530 = vst [vmem:[%s2017_s30 + $0x1c8] sm:$0xff] %v529_v61 }
  0x53   : > { %532 = vst [vmem:[%s2017_s30 + $0x1d0] sm:$0xff] %v531_v62  ;;  %534 = vst [vmem:[%s2017_s30 + $0x1d8] sm:$0xff] %v533_v63  ;;  %v535_v0 = vld [vmem:[%s2012_s23 + $0x3c0] sm:$0xff]  ;;  %v537_v1 = vld [vmem:[%s2012_s23 + $0x3d0] sm:$0xff] }
  0x54   : > { %v539_v2 = vld [vmem:[%s2012_s23 + $0x3e0] sm:$0xff]  ;;  %536 = vst [vmem:[%s2017_s30 + $0x1e0] sm:$0xff] %v535_v0  ;;  %538 = vst [vmem:[%s2017_s30 + $0x1e8] sm:$0xff] %v537_v1  ;;  %v541_v3 = vld [vmem:[%s2012_s23 + $0x3f0] sm:$0xff] }
  0x55   : > { %540 = vst [vmem:[%s2017_s30 + $0x1f0] sm:$0xff] %v539_v2  ;;  %542 = vst [vmem:[%s2017_s30 + $0x1f8] sm:$0xff] %v541_v3 }
  0x56 PF: > { %564 = sbr.rel (!%p1988_p11) target bundleno = 93 (0x5d), region = 89  ;;  %s566_s0 = sand.u32 (%p1988_p11), 1, %s1819_s19  }
  0x57   : > { %s1570_s11 = sshll.u32 (%p1988_p11), %s1851_s27, 3  ;;  %s1481_s14 = sshll.u32 (%p1988_p11), %s566_s0, 4 }
  0x58   : > { %s574_s10 = scalar_lea.vmem (%p1988_p11), %s2308_s4, %s1570_s11  ;;  %s568_s6 = scalar_lea.vmem (%p1988_p11), [#allocation5], %s1481_s14 }
  0x59   : > { %v604_v4 = vld [vmem:[%s574_s10] sm:$0xff] (%p1988_p11)  ;;  %v606_v5 = vld [vmem:[%s574_s10 + $0x10] sm:$0xff] (%p1988_p11) }
  0x5a   : > { %605 = vst [vmem:[%s568_s6] sm:$0xff] (%p1988_p11), %v604_v4  ;;  %607 = vst [vmem:[%s568_s6 + $0x8] sm:$0xff] (%p1988_p11), %v606_v5 }
  0x5d PF: > { %p1484_p1 = scmp.ge.s32.totalorder %s1855_s28, 1  ;;  %p612_p2 = scmp.lt.s32.totalorder %s1855_s28, 19 }
  0x5f   : > { %p613_p3 = pnand %p1484_p1, %p612_p2 }
  0x60   : > { %s619_s23 = sand.u32 (!%p613_p3), 1, %s1831_s22   ;;  %s626_s7 = sand.u32 (!%p613_p3), 1, %s1823_s20  }
  0x61   : > { %616 = sbr.rel (%p613_p3) target bundleno = 424 (0x1a8), region = 127  ;;  %s1485_s12 = sshll.u32 (!%p613_p3), %s619_s23, 5 }
  0x62   : > { %s1486_s15 = sshll.u32 (!%p613_p3), %s626_s7, 9  ;;  %s633_s13 = sand.u32 (!%p613_p3), 1, %s1815_s18  }
  0x63   : > { %s1489_s30 = sshll.u32 (!%p613_p3), %s1843_s25, 1  ;;  %s2157_s0 = sshll.u32 (!%p613_p3), %s633_s13, 4 }
  0x64   : > { %p680_p4 = scmp.lt.s32.totalorder (!%p613_p3), %s1489_s30, 3  ;;  %s2169_s10 = scalar_lea.vmem (!%p613_p3), [#allocation3], %s1485_s12 }
  0x65   : > { %s2171_s18 = scalar_lea.vmem (!%p613_p3), [#allocation4], %s1486_s15  ;;  %s635_s6 = scalar_lea.vmem (!%p613_p3), [#allocation5], %s2157_s0 }
  0x66   : > { %s2175_s23 = scalar_lea.vmem (!%p613_p3), [#allocation6], %s2157_s0  ;;  %p1491_p5 = scmp.ne.s32.totalorder (!%p613_p3), %s1839_s24, 0 }
  0x68   : > { %s2342_s30 = smov (!%p680_p4, %s1489_s30), 3  ;;  %696 = sbr.rel (%p1491_p5) target bundleno = 111 (0x6f), region = 143 }
  0x69   : > { %s682_s29 = scalar_lea.vmem %s2306_s2, %s2342_s30  ;;  %s687_s20 = scalar_lea.vmem %s2307_s3, %s2342_s30  ;;  %v1857_v6 = vmov (!%p1491_p5), 0.0  }
  0x6a   : > { %697 = vst [vmem:[#allocation2] sm:$0xff] (!%p1491_p5), %v1857_v6  ;;  %698 = vst [vmem:[#allocation2 + $0x8] sm:$0xff] (!%p1491_p5), %v1857_v6 }
  0x6b   : > { %699 = vst [vmem:[#allocation2 + $0x10] sm:$0xff] (!%p1491_p5), %v1857_v6  ;;  %700 = vst [vmem:[#allocation2 + $0x18] sm:$0xff] (!%p1491_p5), %v1857_v6 }
  0x6f PF: > { %v1667_v7 = vld [vmem:[%s2171_s18 + $0x4] ss:$8 sps:$4 sm:$0xff]   ;;  %v1671_v9 = vld [vmem:[%s2171_s18] ss:$8 sps:$4 sm:$0xff]   ;;  %v1673_v11 = vld [vmem:[%s2171_s18 + $0x14] ss:$8 sps:$4 sm:$0xff]  }
  0x70   : > { %v1669_v8 = vld [vmem:[%s2171_s18 + $0x104] ss:$8 sps:$4 sm:$0xff]   ;;  %1113 = vmatprep.subr.bf16.mxu1 %v1667_v7  ;;  %v1672_v10 = vld [vmem:[%s2171_s18 + $0x100] ss:$8 sps:$4 sm:$0xff]   ;;  %v1675_v12 = vld [vmem:[%s2171_s18 + $0x114] ss:$8 sps:$4 sm:$0xff]  }
  0x71   : > { %1156 = vmatprep.subr.bf16.mxu0 %v1669_v8  ;;  %1114 = vmatpush1.bf16.msra.mxu1 %v1671_v9  ;;  %v1677_v13 = vld [vmem:[%s2171_s18 + $0x10] ss:$8 sps:$4 sm:$0xff]   ;;  %v1679_v15 = vld [vmem:[%s2171_s18 + $0x24] ss:$8 sps:$4 sm:$0xff]   ;;  %v1683_v17 = vld [vmem:[%s2171_s18 + $0x20] ss:$8 sps:$4 sm:$0xff]  }
  0x72   : > { %1157 = vmatpush1.bf16.msra.mxu0 %v1672_v10  ;;  %1115 = vmatprep.subr.bf16.mxu1 %v1673_v11  ;;  %v1678_v14 = vld [vmem:[%s2171_s18 + $0x110] ss:$8 sps:$4 sm:$0xff]   ;;  %v1681_v16 = vld [vmem:[%s2171_s18 + $0x124] ss:$8 sps:$4 sm:$0xff]   ;;  %v1684_v18 = vld [vmem:[%s2171_s18 + $0x120] ss:$8 sps:$4 sm:$0xff]  }
  0x73   : > { %1158 = vmatprep.subr.bf16.mxu0 %v1675_v12  ;;  %v1685_v19 = vld [vmem:[%s2171_s18 + $0x34] ss:$8 sps:$4 sm:$0xff]   ;;  %v1689_v21 = vld [vmem:[%s2171_s18 + $0x30] ss:$8 sps:$4 sm:$0xff]   ;;  %v1691_v23 = vld [vmem:[%s2171_s18 + $0x44] ss:$8 sps:$4 sm:$0xff]  }
  0x74   : > { %v1687_v20 = vld [vmem:[%s2171_s18 + $0x134] ss:$8 sps:$4 sm:$0xff]   ;;  %v1690_v22 = vld [vmem:[%s2171_s18 + $0x130] ss:$8 sps:$4 sm:$0xff]   ;;  %v1693_v24 = vld [vmem:[%s2171_s18 + $0x144] ss:$8 sps:$4 sm:$0xff]  }
  0x75   : > { %1116 = vmatpush1.bf16.msra.mxu1 %v1677_v13  ;;  %v1695_v25 = vld [vmem:[%s2171_s18 + $0x40] ss:$8 sps:$4 sm:$0xff]   ;;  %v1697_v27 = vld [vmem:[%s2171_s18 + $0x54] ss:$8 sps:$4 sm:$0xff]   ;;  %v1701_v29 = vld [vmem:[%s2171_s18 + $0x50] ss:$8 sps:$4 sm:$0xff]  }
  0x76   : > { %1159 = vmatpush1.bf16.msra.mxu0 %v1678_v14  ;;  %1117 = vmatprep.subr.bf16.mxu1 %v1679_v15  ;;  %v1696_v26 = vld [vmem:[%s2171_s18 + $0x140] ss:$8 sps:$4 sm:$0xff]   ;;  %v1699_v28 = vld [vmem:[%s2171_s18 + $0x154] ss:$8 sps:$4 sm:$0xff]   ;;  %v1702_v30 = vld [vmem:[%s2171_s18 + $0x150] ss:$8 sps:$4 sm:$0xff]  }
  0x77   : > { %1160 = vmatprep.subr.bf16.mxu0 %v1681_v16  ;;  %v1703_v31 = vld [vmem:[%s2171_s18 + $0x64] ss:$8 sps:$4 sm:$0xff]   ;;  %v1707_v33 = vld [vmem:[%s2171_s18 + $0x60] ss:$8 sps:$4 sm:$0xff]   ;;  %v1709_v35 = vld [vmem:[%s2171_s18 + $0x74] ss:$8 sps:$4 sm:$0xff]  }
  0x78   : > { %v1705_v32 = vld [vmem:[%s2171_s18 + $0x164] ss:$8 sps:$4 sm:$0xff]   ;;  %v1708_v34 = vld [vmem:[%s2171_s18 + $0x160] ss:$8 sps:$4 sm:$0xff]   ;;  %v1711_v36 = vld [vmem:[%s2171_s18 + $0x174] ss:$8 sps:$4 sm:$0xff]  }
  0x79   : > { %1118 = vmatpush1.bf16.msra.mxu1 %v1683_v17  ;;  %v1713_v37 = vld [vmem:[%s2171_s18 + $0x70] ss:$8 sps:$4 sm:$0xff]   ;;  %v1715_v39 = vld [vmem:[%s2171_s18 + $0x84] ss:$8 sps:$4 sm:$0xff]   ;;  %v1719_v41 = vld [vmem:[%s2171_s18 + $0x80] ss:$8 sps:$4 sm:$0xff]  }
  0x7a   : > { %1161 = vmatpush1.bf16.msra.mxu0 %v1684_v18  ;;  %1119 = vmatprep.subr.bf16.mxu1 %v1685_v19  ;;  %v1714_v38 = vld [vmem:[%s2171_s18 + $0x170] ss:$8 sps:$4 sm:$0xff]   ;;  %v1717_v40 = vld [vmem:[%s2171_s18 + $0x184] ss:$8 sps:$4 sm:$0xff]   ;;  %v1720_v42 = vld [vmem:[%s2171_s18 + $0x180] ss:$8 sps:$4 sm:$0xff]  }
  0x7b   : > { %1162 = vmatprep.subr.bf16.mxu0 %v1687_v20  ;;  %v1721_v43 = vld [vmem:[%s2171_s18 + $0x94] ss:$8 sps:$4 sm:$0xff]   ;;  %v1725_v45 = vld [vmem:[%s2171_s18 + $0x90] ss:$8 sps:$4 sm:$0xff]   ;;  %v1727_v47 = vld [vmem:[%s2171_s18 + $0xa4] ss:$8 sps:$4 sm:$0xff]  }
  0x7c   : > { %v1723_v44 = vld [vmem:[%s2171_s18 + $0x194] ss:$8 sps:$4 sm:$0xff]   ;;  %v1726_v46 = vld [vmem:[%s2171_s18 + $0x190] ss:$8 sps:$4 sm:$0xff]   ;;  %v1729_v48 = vld [vmem:[%s2171_s18 + $0x1a4] ss:$8 sps:$4 sm:$0xff]  }
  0x7d   : > { %1120 = vmatpush1.bf16.msra.mxu1 %v1689_v21  ;;  %v1731_v49 = vld [vmem:[%s2171_s18 + $0xa0] ss:$8 sps:$4 sm:$0xff]   ;;  %v1733_v51 = vld [vmem:[%s2171_s18 + $0xb4] ss:$8 sps:$4 sm:$0xff]   ;;  %v1737_v53 = vld [vmem:[%s2171_s18 + $0xb0] ss:$8 sps:$4 sm:$0xff]  }
  0x7e   : > { %1163 = vmatpush1.bf16.msra.mxu0 %v1690_v22  ;;  %1121 = vmatprep.subr.bf16.mxu1 %v1691_v23  ;;  %v1732_v50 = vld [vmem:[%s2171_s18 + $0x1a0] ss:$8 sps:$4 sm:$0xff]   ;;  %v1735_v52 = vld [vmem:[%s2171_s18 + $0x1b4] ss:$8 sps:$4 sm:$0xff]   ;;  %v1738_v55 = vld [vmem:[%s2171_s18 + $0x1b0] ss:$8 sps:$4 sm:$0xff]  }
  0x7f   : > { %1164 = vmatprep.subr.bf16.mxu0 %v1693_v24  ;;  %v1765_v54 = vld [vmem:[%s2169_s10 + $0x4] ss:$16 sps:$4 sm:$0xff]   ;;  %v1768_v58 = vld [vmem:[%s2169_s10 + $0xc] ss:$16 sps:$4 sm:$0xff]   ;;  %v1743_v59 = vld [vmem:[%s2171_s18 + $0xc0] ss:$8 sps:$4 sm:$0xff]  }
  0x80   : > { %v1739_v56 = vld [vmem:[%s2171_s18 + $0xc4] ss:$8 sps:$4 sm:$0xff]   ;;  %1145 = vmatprep.mubr.bf16.mxu1 %v1765_v54  ;;  %1188 = vmatprep.mubr.bf16.mxu0 %v1768_v58  ;;  %v1744_v60 = vld [vmem:[%s2171_s18 + $0x1c0] ss:$8 sps:$4 sm:$0xff]   ;;  %v1745_v61 = vld [vmem:[%s2171_s18 + $0xd4] ss:$8 sps:$4 sm:$0xff]  }
  0x81   : > { %1122 = vmatpush1.bf16.msra.mxu1 %v1695_v25  ;;  %v1741_v57 = vld [vmem:[%s2171_s18 + $0x1c4] ss:$8 sps:$4 sm:$0xff]   ;;  %v1747_v62 = vld [vmem:[%s2171_s18 + $0x1d4] ss:$8 sps:$4 sm:$0xff]   ;;  %v1749_v63 = vld [vmem:[%s2171_s18 + $0xd0] ss:$8 sps:$4 sm:$0xff]  }
  0x82   : > { %1165 = vmatpush1.bf16.msra.mxu0 %v1696_v26  ;;  %1123 = vmatprep.subr.bf16.mxu1 %v1697_v27  ;;  %v1750_v0 = vld [vmem:[%s2171_s18 + $0x1d0] ss:$8 sps:$4 sm:$0xff]   ;;  %v1751_v1 = vld [vmem:[%s2171_s18 + $0xe4] ss:$8 sps:$4 sm:$0xff]   ;;  %v1755_v3 = vld [vmem:[%s2171_s18 + $0xe0] ss:$8 sps:$4 sm:$0xff]  }
  0x83   : > { %1166 = vmatprep.subr.bf16.mxu0 %v1699_v28  ;;  %v1753_v2 = vld [vmem:[%s2171_s18 + $0x1e4] ss:$8 sps:$4 sm:$0xff]   ;;  %v1756_v4 = vld [vmem:[%s2171_s18 + $0x1e0] ss:$8 sps:$4 sm:$0xff]   ;;  %v1757_v5 = vld [vmem:[%s2171_s18 + $0xf4] ss:$8 sps:$4 sm:$0xff]  }
  0x84   : > { %v1759_v6 = vld [vmem:[%s2171_s18 + $0x1f4] ss:$8 sps:$4 sm:$0xff]   ;;  %v1761_v7 = vld [vmem:[%s2171_s18 + $0xf0] ss:$8 sps:$4 sm:$0xff]   ;;  %v701_v12 = vld [vmem:[#allocation2] sm:$0xff]  ;;  %p1560_p6 = scmp.ne.s32.totalorder %s1839_s24, 8 }
  0x85   : > { %1124 = vmatpush1.bf16.msra.mxu1 %v1701_v29  ;;  %v1762_v8 = vld [vmem:[%s2171_s18 + $0x1f0] ss:$8 sps:$4 sm:$0xff]   ;;  %v702_v16 = vld [vmem:[#allocation2 + $0x8] sm:$0xff] }
  0x86   : > { %1167 = vmatpush1.bf16.msra.mxu0 %v1702_v30  ;;  %1125 = vmatprep.subr.bf16.mxu1 %v1703_v31  ;;  %v1763_v9 = vld [vmem:[%s2169_s10] ss:$16 sps:$4 sm:$0xff]   ;;  %v1766_v10 = vld [vmem:[%s2169_s10 + $0x8] ss:$16 sps:$4 sm:$0xff]   ;;  %v1217_v31 = vlaneseq (!%p1560_p6) }
  0x87   : > { %1168 = vmatprep.subr.bf16.mxu0 %v1705_v32  ;;  %v703_v20 = vld [vmem:[#allocation2 + $0x10] sm:$0xff]  ;;  %v704_v25 = vld [vmem:[#allocation2 + $0x18] sm:$0xff] }
  0x88   : > { %v1218_v32 = vshrl.u32 (!%p1560_p6), %v1217_v31, 7 }
  0x89   : > { %1126 = vmatpush1.bf16.msra.mxu1 %v1707_v33  ;;  %v1215_v33 = vld [vmem:[%s682_s29] sm:$0x3] (!%p1560_p6) }
  0x8a   : > { %1169 = vmatpush1.bf16.msra.mxu0 %v1708_v34  ;;  %1127 = vmatprep.subr.bf16.mxu1 %v1709_v35  ;;  %v1231_v34 = vld [vmem:[%s687_s20] sm:$0x3] (!%p1560_p6) }
  0x8b   : > { %1170 = vmatprep.subr.bf16.mxu0 %v1711_v36  ;;  %v1219_v36 = vsub.s32 (!%p1560_p6), 0, %v1218_v32 }
  0x8d   : > { %1128 = vmatpush1.bf16.msra.mxu1 %v1713_v37  ;;  %v1223_v37 = vsub.s32 (!%p1560_p6), 1, %v1218_v32 }
  0x8e   : > { %1171 = vmatpush1.bf16.msra.mxu0 %v1714_v38  ;;  %1129 = vmatprep.subr.bf16.mxu1 %v1715_v39  ;;  %v1247_v38 = vld [vmem:[%s635_s6] sm:$0xff] (!%p1560_p6)  ;;  %v1248_v39 = vld [vmem:[%s635_s6 + $0x8] sm:$0xff] (!%p1560_p6) }
  0x8f   : > { %1172 = vmatprep.subr.bf16.mxu0 %v1717_v40 }
  0x91   : > { %1130 = vmatpush1.bf16.msra.mxu1 %v1719_v41 }
  0x92   : > { %1173 = vmatpush1.bf16.msra.mxu0 %v1720_v42  ;;  %1131 = vmatprep.subr.bf16.mxu1 %v1721_v43  ;;  %v1220_v43 = vrot.slane (!%p1560_p6), %v1215_v33, %v1219_v36 }
  0x93   : > { %1174 = vmatprep.subr.bf16.mxu0 %v1723_v44  ;;  %v1224_v44 = vrot.slane (!%p1560_p6), %v1215_v33, %v1223_v37 }
  0x95   : > { %1132 = vmatpush1.bf16.msra.mxu1 %v1725_v45  ;;  %v1236_v45 = vrot.slane (!%p1560_p6), %v1231_v34, %v1219_v36 }
  0x96   : > { %1175 = vmatpush1.bf16.msra.mxu0 %v1726_v46  ;;  %1133 = vmatprep.subr.bf16.mxu1 %v1727_v47  ;;  %v1240_v46 = vrot.slane (!%p1560_p6), %v1231_v34, %v1223_v37  ;;  %v1249_v47 = vunpack.c.l.bf16 (!%p1560_p6), %v1247_v38 }
  0x97   : > { %1176 = vmatprep.subr.bf16.mxu0 %v1729_v48  ;;  %v1250_v48 = vunpack.c.h.bf16 (!%p1560_p6), %v1247_v38 }
  0x99   : > { %1134 = vmatpush1.bf16.msra.mxu1 %v1731_v49  ;;  %v1251_v49 = vunpack.c.l.bf16 (!%p1560_p6), %v1248_v39 }
  0x9a   : > { %1177 = vmatpush1.bf16.msra.mxu0 %v1732_v50  ;;  %1135 = vmatprep.subr.bf16.mxu1 %v1733_v51  ;;  %v1252_v50 = vunpack.c.h.bf16 (!%p1560_p6), %v1248_v39 }
  0x9b   : > { %1178 = vmatprep.subr.bf16.mxu0 %v1735_v52 }
  0x9d   : > { %1136 = vmatpush1.bf16.msra.mxu1 %v1737_v53 }
  0x9e   : > { %1179 = vmatpush1.bf16.msra.mxu0 %v1738_v55  ;;  %1137 = vmatprep.subr.bf16.mxu1 %v1739_v56 }
  0x9f   : > { %1180 = vmatprep.subr.bf16.mxu0 %v1741_v57 }
  0xa1   : > { %1138 = vmatpush1.bf16.msra.mxu1 %v1743_v59 }
  0xa2   : > { %1181 = vmatpush1.bf16.msra.mxu0 %v1744_v60  ;;  %1139 = vmatprep.subr.bf16.mxu1 %v1745_v61 }
  0xa3   : > { %1182 = vmatprep.subr.bf16.mxu0 %v1747_v62 }
  0xa5   : > { %1140 = vmatpush1.bf16.msra.mxu1 %v1749_v63 }
  0xa6   : > { %1183 = vmatpush1.bf16.msra.mxu0 %v1750_v0  ;;  %1141 = vmatprep.subr.bf16.mxu1 %v1751_v1 }
  0xa7   : > { %1184 = vmatprep.subr.bf16.mxu0 %v1753_v2 }
  0xa9   : > { %1142 = vmatpush1.bf16.msra.mxu1 %v1755_v3 }
  0xaa   : > { %1185 = vmatpush1.bf16.msra.mxu0 %v1756_v4  ;;  %1143 = vmatprep.subr.bf16.mxu1 %v1757_v5 }
  0xab   : > { %1186 = vmatprep.subr.bf16.mxu0 %v1759_v6 }
  0xad   : > { %1144 = vmatpush1.bf16.msra.mxu1 %v1761_v7 }
  0xae   : > { %1187 = vmatpush1.bf16.msra.mxu0 %v1762_v8 }
  0xb0   : > { %1146 = vmatmul.mubr.bf16.vlgmr.msra.gmra.mrb[0].mxu1 %v1763_v9 }
  0xb1   : > { %1189 = vmatmul.mubr.bf16.vlgmr.msra.gmra.mrb[0].mxu0 %v1766_v10 }
 0x183   : > { %v1147_v11 = vpop.f32.mrb[0].mxu1 }
 0x184   : > { %v1190_v13 = vpop.f32.mrb[0].mxu0  ;;  %v1149_v15 = vpop.f32.mrb[1].mxu1 }
 0x185   : > { %v1191_v14 = vadd.f32 %v1190_v13, %v1147_v11  ;;  %v1192_v17 = vpop.f32.mrb[1].mxu0  ;;  %v1151_v19 = vpop.f32.mrb[2].mxu1 }
 0x186   : > { %v1193_v18 = vadd.f32 %v1192_v17, %v1149_v15  ;;  %v1194_v21 = vpop.f32.mrb[2].mxu0  ;;  %v1153_v24 = vpop.f32.mrb[3].mxu1  ;;  %1210 = sbr.rel (%p1560_p6) target bundleno = 416 (0x1a0), region = 147 }
 0x187   : > { %v1199_v22 = vadd.f32 %v1191_v14, %v701_v12  ;;  %v1195_v23 = vadd.f32 %v1194_v21, %v1151_v19  ;;  %v1196_v26 = vpop.f32.mrb[3].mxu0 }
 0x188   : > { %v1200_v27 = vadd.f32 %v1193_v18, %v702_v16  ;;  %v1197_v28 = vadd.f32 %v1196_v26, %v1153_v24 }
 0x189   : > { %1203 = vst [vmem:[#allocation2] sm:$0xff] %v1199_v22  ;;  %v1201_v29 = vadd.f32 %v1195_v23, %v703_v20 }
 0x18a   : > { %1204 = vst [vmem:[#allocation2 + $0x8] sm:$0xff] %v1200_v27  ;;  %v1202_v30 = vadd.f32 %v1197_v28, %v704_v25 }
 0x18b   : > { %1205 = vst [vmem:[#allocation2 + $0x10] sm:$0xff] %v1201_v29 }
 0x18c   : > { %1206 = vst [vmem:[#allocation2 + $0x18] sm:$0xff] %v1202_v30 }
 0x190   : > { %v1211_v35 = vld [vmem:[#allocation2] sm:$0xff] }
 0x191   : > { %v1212_v40 = vld [vmem:[#allocation2 + $0x8] sm:$0xff]  ;;  %v1227_v51 = vmul.f32 %v1220_v43, %v1211_v35 }
 0x192   : > { %v1213_v41 = vld [vmem:[#allocation2 + $0x10] sm:$0xff]  ;;  %v1228_v52 = vmul.f32 %v1224_v44, %v1212_v40 }
 0x193   : > { %v1214_v42 = vld [vmem:[#allocation2 + $0x18] sm:$0xff]  ;;  %v1229_v53 = vmul.f32 %v1220_v43, %v1213_v41  ;;  %v1243_v55 = vadd.f32 %v1236_v45, %v1227_v51 }
 0x194   : > { %v1230_v54 = vmul.f32 %v1224_v44, %v1214_v42  ;;  %v1244_v56 = vadd.f32 %v1240_v46, %v1228_v52 }
 0x195   : > { %v1245_v57 = vadd.f32 %v1236_v45, %v1229_v53  ;;  %v1253_v59 = vadd.f32 %v1249_v47, %v1243_v55 }
 0x196   : > { %v1246_v58 = vadd.f32 %v1240_v46, %v1230_v54  ;;  %v1254_v60 = vadd.f32 %v1250_v48, %v1244_v56 }
 0x197   : > { %v1255_v61 = vadd.f32 %v1251_v49, %v1245_v57  ;;  %vm1257_vm0 = vcmp.ge.f32.partialorder %v1253_v59, 0.0  ;;  %v1261_v63 = vmul.f32 0.01, %v1253_v59 }
 0x198   : > { %v1256_v62 = vadd.f32 %v1252_v50, %v1246_v58  ;;  %vm1258_vm1 = vcmp.ge.f32.partialorder %v1254_v60, 0.0  ;;  %v1262_v0 = vmul.f32 0.01, %v1254_v60 }
 0x199   : > { %vm1259_vm2 = vcmp.ge.f32.partialorder %v1255_v61, 0.0  ;;  %v1263_v1 = vmul.f32 0.01, %v1255_v61  ;;  %v1265_v3 = vsel %vm1257_vm0, %v1253_v59, %v1261_v63 }
 0x19a   : > { %vm1260_vm3 = vcmp.ge.f32.partialorder %v1256_v62, 0.0  ;;  %v1264_v2 = vmul.f32 0.01, %v1256_v62  ;;  %v1266_v4 = vsel %vm1258_vm1, %v1254_v60, %v1262_v0 }
 0x19b   : > { %v1571_v5 = vpack.c.bf16 %v1266_v4, %v1265_v3  ;;  %v1267_v6 = vsel %vm1259_vm2, %v1255_v61, %v1263_v1 }
 0x19c   : > { %v1268_v7 = vsel %vm1260_vm3, %v1256_v62, %v1264_v2 }
 0x19d   : > { %v1572_v8 = vpack.c.bf16 %v1268_v7, %v1267_v6  ;;  %1281 = vst [vmem:[%s2175_s23] sm:$0xff] %v1571_v5 }
 0x19f   : > { %1282 = vst [vmem:[%s2175_s23 + $0x8] sm:$0xff] %v1572_v8 }
 0x1a0 PF: > { %1289 = sbr.rel (!%p1992_p13) target bundleno = 424 (0x1a8), region = 151  ;;  %s1573_s24 = sshll.u32 (%p1992_p13), %s1843_s25, 3 }
 0x1a1   : > { %s1295_s11 = scalar_lea.vmem (%p1992_p13), %s2309_s5, %s1573_s24 }
 0x1a4   : > { %v1325_v9 = vld [vmem:[%s2175_s23] sm:$0xff] (%p1992_p13) }
 0x1a5   : > { %1326 = vst [vmem:[%s1295_s11] sm:$0xff] (%p1992_p13), %v1325_v9 }
 0x1a6   : > { %v1327_v10 = vld [vmem:[%s2175_s23 + $0x8] sm:$0xff] (%p1992_p13) }
 0x1a7   : > { %1328 = vst [vmem:[%s1295_s11 + $0x10] sm:$0xff] %v1327_v10 }
 0x1a8 PF: > { %s15_s28 = sadd.s32 1, %s1855_s28   ;;  %s2323_s22 = sld [smem:[#allocation7_spill]] }
 0x1a9   : > { %p12_p7 = scmp.ge.s32.totalorder %s15_s28, 20   ;;  %s2324_s23 = sld [smem:[#allocation10_spill]] }
 0x1aa   : > { %s2325_s8 = sld [smem:[#allocation8_spill]]  ;;  %s2326_s14 = sld [smem:[#allocation9_spill]] }
 0x1ab   : > { %s2327_s18 = smov %s1819_s19  ;;  %s2328_s19 = smov %s1984_s17 }
 0x1ac   : > { %s2329_s20 = smov %s1827_s21  ;;  %s2330_s21 = smov %s1981_s16 }
 0x1ad   : > { %s2331_s24 = smov %s1847_s26  ;;  %s2332_s25 = smov %s1851_s27 }
 0x1ae   :  { %14 = sbr.rel (!%p12_p7) target bundleno = 8 (0x8), region = 242 }
 0x1b0   : > { %s2333_s26 = smov %s2325_s8  ;;  %s2334_s27 = smov %s2326_s14 }

// kernel: resnet_forward.38
= control target key start
LH: loop header
LB: loop body
LE: loop exit
PB: predicated region body
PF: predicated region fallthrough
CT: control target
= control target key end

     0   :  { %s2145_s0 = inlined_call_operand.vmem [shape: bf16[16,4608], index: 0, kind: input, shape index: {}]   ;;  %s2146_s1 = inlined_call_operand.vmem [shape: bf16[4608,512], index: 1, kind: input, shape index: {}]   ;;  %s2147_s2 = inlined_call_operand.vmem [shape: f32[1,512], index: 2, kind: input, shape index: {}]   ;;  %s2148_s3 = inlined_call_operand.vmem [shape: f32[1,512], index: 3, kind: input, shape index: {}]   ;;  %s2149_s4 = inlined_call_operand.vmem [shape: bf16[16,512], index: 4, kind: output, shape index: {}]  }
   0x1   :  { %2152 = sst [smem:[#allocation8_spill]] %s2145_s0 }
   0x2   :  { %2153 = sst [smem:[#allocation9_spill]] %s2146_s1 }
   0x3   :  { %s1754_s15 = smov 0   ;;  %s1756_s16 = smov 0  }
   0x4   :  { %s1758_s17 = smov 0   ;;  %s1760_s18 = smov 0  }
   0x5   :  { %s1762_s19 = smov 0   ;;  %s1764_s20 = smov 0  }
   0x6   :  { %s1766_s21 = smov 0   ;;  %s1768_s22 = smov 0  }
   0x7   :  { %s1770_s23 = smov 0   ;;  %s1772_s24 = smov 0  }
   0x8   :  { %s1774_s25 = smov 0  }
   0x9 LB: > { %s1345_s26 = sadd.s32 4294967295, %s1726_s25   ;;  %s26_s27 = sadd.s32 1, %s1718_s23  ;;  %s1726_s25 = sphi %s1774_s25, %s14_s25   ;;  %s1722_s24 = sphi %s1772_s24, %s2172_s24   ;;  %s1718_s23 = sphi %s1770_s23, %s2171_s23   ;;  %s1714_s22 = sphi %s1768_s22, %s2170_s22   ;;  %s1710_s21 = sphi %s1766_s21, %s2169_s21   ;;  %s1706_s20 = sphi %s1764_s20, %s2168_s20   ;;  %s1702_s19 = sphi %s1762_s19, %s2167_s19   ;;  %s1698_s18 = sphi %s1760_s18, %s2166_s18   ;;  %s1694_s17 = sphi %s1758_s17, %s2165_s17   ;;  %s1690_s16 = sphi %s1756_s16, %s2164_s16   ;;  %s1686_s15 = sphi %s1754_s15, %s2163_s15  }
   0xa   : > { %p27_p0 = scmp.ge.s32.totalorder %s26_s27, 9  ;;  %s29_s28 = sadd.s32 1, %s1722_s24 }
   0xb   : > { %s42_s29 = sadd.s32 1, %s1706_s20  ;;  %p49_p1 = scmp.ne.s32.totalorder %s1706_s20, %s1702_s19 }
   0xc   : > { %s2174_s27 = smov (%p27_p0, %s26_s27), 0  ;;  %s2176_s28 = smov (!%p27_p0, %s29_s28), %s1722_s24 }
   0xd   : > { %2154 = sst [smem:[#allocation6_spill]] %s2174_s27  ;;  %s38_s30 = ssub.s32 %s1718_s23, %s2174_s27 }
   0xe   : > { %p50_p2 = scmp.eq.s32.totalorder %s1726_s25, 0  ;;  %p31_p3 = scmp.ge.s32.totalorder %s2176_s28, 2 }
   0xf   : > { %p40_p4 = scmp.eq.s32.totalorder %s38_s30, 0  ;;  %s70_s6 = sadd.s32 1, %s1698_s18 }
  0x10   : > { %p1821_p5 = por %p50_p2, %p49_p1  ;;  %s2178_s28 = smov (%p31_p3, %s2176_s28), 0 }
  0x11   : > { %2156 = sst [smem:[#allocation7_spill]] %s2178_s28  ;;  %s66_s8 = ssub.s32 %s1722_s24, %s2178_s28 }
  0x12   : > { %s1829_s7 = scalar_select %p40_p4, %s1706_s20, %s42_s29  }
  0x13   : > { %p77_p6 = scmp.ne.s32.totalorder %s1698_s18, %s1694_s17  ;;  %s67_s9 = sor.u32 %s66_s8, %s38_s30 }
  0x14   : > { %p148_p7 = scmp.eq.s32.totalorder %s66_s8, 0  ;;  %p68_p8 = scmp.eq.s32.totalorder %s67_s9, 0 }
  0x15   : > { %p1835_p9 = por %p77_p6, %p50_p2  ;;  %s150_s11 = sadd.s32 1, %s1690_s16 }
  0x16   : > { %p160_p10 = scmp.ne.s32.totalorder %s1690_s16, %s1686_s15  ;;  %p161_p11 = scmp.eq.s32.totalorder %s1345_s26, 17 }
  0x17   : > { %s1843_s12 = scalar_select %p68_p8, %s1698_s18, %s70_s6  }
  0x18   : > { %s1846_s13 = scalar_select %p148_p7, %s1690_s16, %s150_s11  }
  0x19   : > { %p1848_p12 = por %p161_p11, %p160_p10  ;;  %p1348_p13 = scmp.ge.s32.totalorder %s1726_s25, 18 }
  0x1b   : > { %183 = sbr.rel (%p1348_p13) target bundleno = 88 (0x58), region = 16 }
  0x22   : > { %186 = sbr.rel (!%p1821_p5) target bundleno = 46 (0x2e), region = 20  ;;  %s188_s29 = sand.u32 (%p1821_p5), 1, %s1706_s20  }
  0x23   : > { %s1440_s30 = sshll.u32 (%p1821_p5), %s1718_s23, 4  ;;  %s1349_s8 = sshll.u32 (%p1821_p5), %s188_s29, 5 }
  0x24   : > { %s2159_s0 = sld [smem:[#allocation8_spill]] (%p1821_p5)  ;;  %s190_s26 = scalar_lea.vmem (%p1821_p5), [#allocation3], %s1349_s8 }
  0x2a   : > { %s196_s11 = scalar_lea.vmem %s2159_s0, %s1440_s30 }
  0x2b   : > { %v209_v0 = vld [vmem:[%s196_s11] sm:$0xff]  ;;  %v211_v1 = vld [vmem:[%s196_s11 + $0x8] sm:$0xff]  ;;  %v213_v2 = vld [vmem:[%s196_s11 + $0x90] sm:$0xff] }
  0x2c   : > { %210 = vst [vmem:[%s190_s26] sm:$0xff] %v209_v0  ;;  %212 = vst [vmem:[%s190_s26 + $0x8] sm:$0xff] %v211_v1  ;;  %v215_v3 = vld [vmem:[%s196_s11 + $0x98] sm:$0xff] }
  0x2d   : > { %214 = vst [vmem:[%s190_s26 + $0x10] sm:$0xff] %v213_v2  ;;  %216 = vst [vmem:[%s190_s26 + $0x18] sm:$0xff] %v215_v3 }
  0x2e PF: > { %222 = sbr.rel (!%p1835_p9) target bundleno = 88 (0x58), region = 43  ;;  %s224_s5 = sand.u32 (%p1835_p9), 1, %s1698_s18  }
  0x2f   : > { %s1354_s29 = sshll.u32 (%p1835_p9), %s1722_s24, 1  ;;  %s1352_s6 = sshll.u32 (%p1835_p9), %s224_s5, 9 }
  0x30   : > { %s1441_s30 = sshll.u32 (%p1835_p9), %s1718_s23, 8  ;;  %s2160_s1 = sld [smem:[#allocation9_spill]] (%p1835_p9) }
  0x31   : > { %s230_s9 = sadd.s32 (%p1835_p9), %s1441_s30, %s1354_s29  ;;  %s1873_s10 = scalar_lea.vmem (%p1835_p9), [#allocation4], %s1352_s6 }
  0x32   : > { %s1356_s0 = sshll.u32 (%p1835_p9), %s230_s9, 2 }
  0x36   : > { %s1868_s27 = scalar_lea.vmem %s2160_s1, %s1356_s0 }
  0x37   : > { %v386_v4 = vld [vmem:[%s1868_s27] sm:$0xff]  ;;  %v388_v5 = vld [vmem:[%s1868_s27 + $0x10] sm:$0xff] }
  0x38   : > { %v390_v6 = vld [vmem:[%s1868_s27 + $0x20] sm:$0xff]  ;;  %387 = vst [vmem:[%s1873_s10] sm:$0xff] %v386_v4  ;;  %389 = vst [vmem:[%s1873_s10 + $0x8] sm:$0xff] %v388_v5  ;;  %v392_v7 = vld [vmem:[%s1868_s27 + $0x30] sm:$0xff] }
  0x39   : > { %391 = vst [vmem:[%s1873_s10 + $0x10] sm:$0xff] %v390_v6  ;;  %v394_v8 = vld [vmem:[%s1868_s27 + $0x40] sm:$0xff]  ;;  %v396_v9 = vld [vmem:[%s1868_s27 + $0x50] sm:$0xff]  ;;  %393 = vst [vmem:[%s1873_s10 + $0x18] sm:$0xff] %v392_v7 }
  0x3a   : > { %395 = vst [vmem:[%s1873_s10 + $0x20] sm:$0xff] %v394_v8  ;;  %397 = vst [vmem:[%s1873_s10 + $0x28] sm:$0xff] %v396_v9  ;;  %v398_v10 = vld [vmem:[%s1868_s27 + $0x60] sm:$0xff]  ;;  %v400_v11 = vld [vmem:[%s1868_s27 + $0x70] sm:$0xff] }
  0x3b   : > { %v402_v12 = vld [vmem:[%s1868_s27 + $0x80] sm:$0xff]  ;;  %399 = vst [vmem:[%s1873_s10 + $0x30] sm:$0xff] %v398_v10  ;;  %401 = vst [vmem:[%s1873_s10 + $0x38] sm:$0xff] %v400_v11  ;;  %v404_v13 = vld [vmem:[%s1868_s27 + $0x90] sm:$0xff] }
  0x3c   : > { %403 = vst [vmem:[%s1873_s10 + $0x40] sm:$0xff] %v402_v12  ;;  %v406_v14 = vld [vmem:[%s1868_s27 + $0xa0] sm:$0xff]  ;;  %v408_v15 = vld [vmem:[%s1868_s27 + $0xb0] sm:$0xff]  ;;  %405 = vst [vmem:[%s1873_s10 + $0x48] sm:$0xff] %v404_v13 }
  0x3d   : > { %407 = vst [vmem:[%s1873_s10 + $0x50] sm:$0xff] %v406_v14  ;;  %409 = vst [vmem:[%s1873_s10 + $0x58] sm:$0xff] %v408_v15  ;;  %v410_v16 = vld [vmem:[%s1868_s27 + $0xc0] sm:$0xff]  ;;  %v412_v17 = vld [vmem:[%s1868_s27 + $0xd0] sm:$0xff] }
  0x3e   : > { %v414_v18 = vld [vmem:[%s1868_s27 + $0xe0] sm:$0xff]  ;;  %411 = vst [vmem:[%s1873_s10 + $0x60] sm:$0xff] %v410_v16  ;;  %413 = vst [vmem:[%s1873_s10 + $0x68] sm:$0xff] %v412_v17  ;;  %v416_v19 = vld [vmem:[%s1868_s27 + $0xf0] sm:$0xff] }
  0x3f   : > { %415 = vst [vmem:[%s1873_s10 + $0x70] sm:$0xff] %v414_v18  ;;  %v418_v20 = vld [vmem:[%s1868_s27 + $0x100] sm:$0xff]  ;;  %v420_v21 = vld [vmem:[%s1868_s27 + $0x110] sm:$0xff]  ;;  %417 = vst [vmem:[%s1873_s10 + $0x78] sm:$0xff] %v416_v19 }
  0x40   : > { %419 = vst [vmem:[%s1873_s10 + $0x80] sm:$0xff] %v418_v20  ;;  %421 = vst [vmem:[%s1873_s10 + $0x88] sm:$0xff] %v420_v21  ;;  %v422_v22 = vld [vmem:[%s1868_s27 + $0x120] sm:$0xff]  ;;  %v424_v23 = vld [vmem:[%s1868_s27 + $0x130] sm:$0xff] }
  0x41   : > { %v426_v24 = vld [vmem:[%s1868_s27 + $0x140] sm:$0xff]  ;;  %423 = vst [vmem:[%s1873_s10 + $0x90] sm:$0xff] %v422_v22  ;;  %425 = vst [vmem:[%s1873_s10 + $0x98] sm:$0xff] %v424_v23  ;;  %v428_v25 = vld [vmem:[%s1868_s27 + $0x150] sm:$0xff] }
  0x42   : > { %427 = vst [vmem:[%s1873_s10 + $0xa0] sm:$0xff] %v426_v24  ;;  %v430_v26 = vld [vmem:[%s1868_s27 + $0x160] sm:$0xff]  ;;  %v432_v27 = vld [vmem:[%s1868_s27 + $0x170] sm:$0xff]  ;;  %429 = vst [vmem:[%s1873_s10 + $0xa8] sm:$0xff] %v428_v25 }
  0x43   : > { %431 = vst [vmem:[%s1873_s10 + $0xb0] sm:$0xff] %v430_v26  ;;  %433 = vst [vmem:[%s1873_s10 + $0xb8] sm:$0xff] %v432_v27  ;;  %v434_v28 = vld [vmem:[%s1868_s27 + $0x180] sm:$0xff]  ;;  %v436_v29 = vld [vmem:[%s1868_s27 + $0x190] sm:$0xff] }
  0x44   : > { %v438_v30 = vld [vmem:[%s1868_s27 + $0x1a0] sm:$0xff]  ;;  %435 = vst [vmem:[%s1873_s10 + $0xc0] sm:$0xff] %v434_v28  ;;  %437 = vst [vmem:[%s1873_s10 + $0xc8] sm:$0xff] %v436_v29  ;;  %v440_v31 = vld [vmem:[%s1868_s27 + $0x1b0] sm:$0xff] }
  0x45   : > { %439 = vst [vmem:[%s1873_s10 + $0xd0] sm:$0xff] %v438_v30  ;;  %v442_v32 = vld [vmem:[%s1868_s27 + $0x1c0] sm:$0xff]  ;;  %v444_v33 = vld [vmem:[%s1868_s27 + $0x1d0] sm:$0xff]  ;;  %441 = vst [vmem:[%s1873_s10 + $0xd8] sm:$0xff] %v440_v31 }
  0x46   : > { %443 = vst [vmem:[%s1873_s10 + $0xe0] sm:$0xff] %v442_v32  ;;  %445 = vst [vmem:[%s1873_s10 + $0xe8] sm:$0xff] %v444_v33  ;;  %v446_v34 = vld [vmem:[%s1868_s27 + $0x1e0] sm:$0xff]  ;;  %v448_v35 = vld [vmem:[%s1868_s27 + $0x1f0] sm:$0xff] }
  0x47   : > { %v450_v36 = vld [vmem:[%s1868_s27 + $0x200] sm:$0xff]  ;;  %447 = vst [vmem:[%s1873_s10 + $0xf0] sm:$0xff] %v446_v34  ;;  %449 = vst [vmem:[%s1873_s10 + $0xf8] sm:$0xff] %v448_v35  ;;  %v452_v37 = vld [vmem:[%s1868_s27 + $0x210] sm:$0xff] }
  0x48   : > { %451 = vst [vmem:[%s1873_s10 + $0x100] sm:$0xff] %v450_v36  ;;  %v454_v38 = vld [vmem:[%s1868_s27 + $0x220] sm:$0xff]  ;;  %v456_v39 = vld [vmem:[%s1868_s27 + $0x230] sm:$0xff]  ;;  %453 = vst [vmem:[%s1873_s10 + $0x108] sm:$0xff] %v452_v37 }
  0x49   : > { %455 = vst [vmem:[%s1873_s10 + $0x110] sm:$0xff] %v454_v38  ;;  %457 = vst [vmem:[%s1873_s10 + $0x118] sm:$0xff] %v456_v39  ;;  %v458_v40 = vld [vmem:[%s1868_s27 + $0x240] sm:$0xff]  ;;  %v460_v41 = vld [vmem:[%s1868_s27 + $0x250] sm:$0xff] }
  0x4a   : > { %v462_v42 = vld [vmem:[%s1868_s27 + $0x260] sm:$0xff]  ;;  %459 = vst [vmem:[%s1873_s10 + $0x120] sm:$0xff] %v458_v40  ;;  %461 = vst [vmem:[%s1873_s10 + $0x128] sm:$0xff] %v460_v41  ;;  %v464_v43 = vld [vmem:[%s1868_s27 + $0x270] sm:$0xff] }
  0x4b   : > { %463 = vst [vmem:[%s1873_s10 + $0x130] sm:$0xff] %v462_v42  ;;  %v466_v44 = vld [vmem:[%s1868_s27 + $0x280] sm:$0xff]  ;;  %v468_v45 = vld [vmem:[%s1868_s27 + $0x290] sm:$0xff]  ;;  %465 = vst [vmem:[%s1873_s10 + $0x138] sm:$0xff] %v464_v43 }
  0x4c   : > { %467 = vst [vmem:[%s1873_s10 + $0x140] sm:$0xff] %v466_v44  ;;  %469 = vst [vmem:[%s1873_s10 + $0x148] sm:$0xff] %v468_v45  ;;  %v470_v46 = vld [vmem:[%s1868_s27 + $0x2a0] sm:$0xff]  ;;  %v472_v47 = vld [vmem:[%s1868_s27 + $0x2b0] sm:$0xff] }
  0x4d   : > { %v474_v48 = vld [vmem:[%s1868_s27 + $0x2c0] sm:$0xff]  ;;  %471 = vst [vmem:[%s1873_s10 + $0x150] sm:$0xff] %v470_v46  ;;  %473 = vst [vmem:[%s1873_s10 + $0x158] sm:$0xff] %v472_v47  ;;  %v476_v49 = vld [vmem:[%s1868_s27 + $0x2d0] sm:$0xff] }
  0x4e   : > { %475 = vst [vmem:[%s1873_s10 + $0x160] sm:$0xff] %v474_v48  ;;  %v478_v50 = vld [vmem:[%s1868_s27 + $0x2e0] sm:$0xff]  ;;  %v480_v51 = vld [vmem:[%s1868_s27 + $0x2f0] sm:$0xff]  ;;  %477 = vst [vmem:[%s1873_s10 + $0x168] sm:$0xff] %v476_v49 }
  0x4f   : > { %479 = vst [vmem:[%s1873_s10 + $0x170] sm:$0xff] %v478_v50  ;;  %481 = vst [vmem:[%s1873_s10 + $0x178] sm:$0xff] %v480_v51  ;;  %v482_v52 = vld [vmem:[%s1868_s27 + $0x300] sm:$0xff]  ;;  %v484_v53 = vld [vmem:[%s1868_s27 + $0x310] sm:$0xff] }
  0x50   : > { %v486_v54 = vld [vmem:[%s1868_s27 + $0x320] sm:$0xff]  ;;  %483 = vst [vmem:[%s1873_s10 + $0x180] sm:$0xff] %v482_v52  ;;  %485 = vst [vmem:[%s1873_s10 + $0x188] sm:$0xff] %v484_v53  ;;  %v488_v55 = vld [vmem:[%s1868_s27 + $0x330] sm:$0xff] }
  0x51   : > { %487 = vst [vmem:[%s1873_s10 + $0x190] sm:$0xff] %v486_v54  ;;  %v490_v56 = vld [vmem:[%s1868_s27 + $0x340] sm:$0xff]  ;;  %v492_v57 = vld [vmem:[%s1868_s27 + $0x350] sm:$0xff]  ;;  %489 = vst [vmem:[%s1873_s10 + $0x198] sm:$0xff] %v488_v55 }
  0x52   : > { %491 = vst [vmem:[%s1873_s10 + $0x1a0] sm:$0xff] %v490_v56  ;;  %493 = vst [vmem:[%s1873_s10 + $0x1a8] sm:$0xff] %v492_v57  ;;  %v494_v58 = vld [vmem:[%s1868_s27 + $0x360] sm:$0xff]  ;;  %v496_v59 = vld [vmem:[%s1868_s27 + $0x370] sm:$0xff] }
  0x53   : > { %v498_v60 = vld [vmem:[%s1868_s27 + $0x380] sm:$0xff]  ;;  %495 = vst [vmem:[%s1873_s10 + $0x1b0] sm:$0xff] %v494_v58  ;;  %497 = vst [vmem:[%s1873_s10 + $0x1b8] sm:$0xff] %v496_v59  ;;  %v500_v61 = vld [vmem:[%s1868_s27 + $0x390] sm:$0xff] }
  0x54   : > { %499 = vst [vmem:[%s1873_s10 + $0x1c0] sm:$0xff] %v498_v60  ;;  %v502_v62 = vld [vmem:[%s1868_s27 + $0x3a0] sm:$0xff]  ;;  %v504_v63 = vld [vmem:[%s1868_s27 + $0x3b0] sm:$0xff]  ;;  %501 = vst [vmem:[%s1873_s10 + $0x1c8] sm:$0xff] %v500_v61 }
  0x55   : > { %503 = vst [vmem:[%s1873_s10 + $0x1d0] sm:$0xff] %v502_v62  ;;  %505 = vst [vmem:[%s1873_s10 + $0x1d8] sm:$0xff] %v504_v63  ;;  %v506_v0 = vld [vmem:[%s1868_s27 + $0x3c0] sm:$0xff]  ;;  %v508_v1 = vld [vmem:[%s1868_s27 + $0x3d0] sm:$0xff] }
  0x56   : > { %v510_v2 = vld [vmem:[%s1868_s27 + $0x3e0] sm:$0xff]  ;;  %507 = vst [vmem:[%s1873_s10 + $0x1e0] sm:$0xff] %v506_v0  ;;  %509 = vst [vmem:[%s1873_s10 + $0x1e8] sm:$0xff] %v508_v1  ;;  %v512_v3 = vld [vmem:[%s1868_s27 + $0x3f0] sm:$0xff] }
  0x57   : > { %511 = vst [vmem:[%s1873_s10 + $0x1f0] sm:$0xff] %v510_v2  ;;  %513 = vst [vmem:[%s1873_s10 + $0x1f8] sm:$0xff] %v512_v3 }
  0x58 PF: > { %p1357_p0 = scmp.ge.s32.totalorder %s1726_s25, 1  ;;  %p534_p1 = scmp.lt.s32.totalorder %s1726_s25, 19 }
  0x5a   : > { %p535_p2 = pnand %p1357_p0, %p534_p1 }
  0x5b   : > { %s541_s0 = sand.u32 (!%p535_p2), 1, %s1702_s19   ;;  %s548_s28 = sand.u32 (!%p535_p2), 1, %s1694_s17  }
  0x5c   : > { %538 = sbr.rel (%p535_p2) target bundleno = 417 (0x1a1), region = 89  ;;  %s1358_s11 = sshll.u32 (!%p535_p2), %s541_s0, 5 }
  0x5d   : > { %s1359_s26 = sshll.u32 (!%p535_p2), %s548_s28, 9  ;;  %s581_s5 = sand.u32 (!%p535_p2), 1, %s1686_s15  }
  0x5e   : > { %s1361_s29 = sshll.u32 (!%p535_p2), %s1714_s22, 1  ;;  %s1360_s27 = sshll.u32 (!%p535_p2), %s581_s5, 4 }
  0x5f   : > { %p589_p3 = scmp.lt.s32.totalorder (!%p535_p2), %s1361_s29, 3  ;;  %s2016_s19 = scalar_lea.vmem (!%p535_p2), [#allocation3], %s1358_s11 }
  0x60   : > { %s2018_s17 = scalar_lea.vmem (!%p535_p2), [#allocation4], %s1359_s26  ;;  %s2020_s15 = scalar_lea.vmem (!%p535_p2), [#allocation5], %s1360_s27 }
  0x61   : > { %p1363_p4 = scmp.ne.s32.totalorder (!%p535_p2), %s1710_s21, 0 }
  0x63   : > { %s2180_s29 = smov (!%p589_p3, %s1361_s29), 3  ;;  %603 = sbr.rel (%p1363_p4) target bundleno = 106 (0x6a), region = 101 }
  0x64   : > { %s591_s9 = scalar_lea.vmem %s2147_s2, %s2180_s29  ;;  %s596_s1 = scalar_lea.vmem %s2148_s3, %s2180_s29  ;;  %v1728_v4 = vmov (!%p1363_p4), 0.0  }
  0x65   : > { %604 = vst [vmem:[#allocation2] sm:$0xff] (!%p1363_p4), %v1728_v4  ;;  %605 = vst [vmem:[#allocation2 + $0x8] sm:$0xff] (!%p1363_p4), %v1728_v4 }
  0x66   : > { %606 = vst [vmem:[#allocation2 + $0x10] sm:$0xff] (!%p1363_p4), %v1728_v4  ;;  %607 = vst [vmem:[#allocation2 + $0x18] sm:$0xff] (!%p1363_p4), %v1728_v4 }
  0x6a PF: > { %v1538_v5 = vld [vmem:[%s2018_s17 + $0x4] ss:$8 sps:$4 sm:$0xff]   ;;  %v1542_v7 = vld [vmem:[%s2018_s17] ss:$8 sps:$4 sm:$0xff]   ;;  %v1544_v9 = vld [vmem:[%s2018_s17 + $0x14] ss:$8 sps:$4 sm:$0xff]  }
  0x6b   : > { %v1540_v6 = vld [vmem:[%s2018_s17 + $0x104] ss:$8 sps:$4 sm:$0xff]   ;;  %1020 = vmatprep.subr.bf16.mxu1 %v1538_v5  ;;  %v1543_v8 = vld [vmem:[%s2018_s17 + $0x100] ss:$8 sps:$4 sm:$0xff]   ;;  %v1546_v10 = vld [vmem:[%s2018_s17 + $0x114] ss:$8 sps:$4 sm:$0xff]  }
  0x6c   : > { %1063 = vmatprep.subr.bf16.mxu0 %v1540_v6  ;;  %1021 = vmatpush1.bf16.msra.mxu1 %v1542_v7  ;;  %v1548_v11 = vld [vmem:[%s2018_s17 + $0x10] ss:$8 sps:$4 sm:$0xff]   ;;  %v1550_v13 = vld [vmem:[%s2018_s17 + $0x24] ss:$8 sps:$4 sm:$0xff]   ;;  %v1554_v15 = vld [vmem:[%s2018_s17 + $0x20] ss:$8 sps:$4 sm:$0xff]  }
  0x6d   : > { %1064 = vmatpush1.bf16.msra.mxu0 %v1543_v8  ;;  %1022 = vmatprep.subr.bf16.mxu1 %v1544_v9  ;;  %v1549_v12 = vld [vmem:[%s2018_s17 + $0x110] ss:$8 sps:$4 sm:$0xff]   ;;  %v1552_v14 = vld [vmem:[%s2018_s17 + $0x124] ss:$8 sps:$4 sm:$0xff]   ;;  %v1555_v16 = vld [vmem:[%s2018_s17 + $0x120] ss:$8 sps:$4 sm:$0xff]  }
  0x6e   : > { %1065 = vmatprep.subr.bf16.mxu0 %v1546_v10  ;;  %v1556_v17 = vld [vmem:[%s2018_s17 + $0x34] ss:$8 sps:$4 sm:$0xff]   ;;  %v1560_v19 = vld [vmem:[%s2018_s17 + $0x30] ss:$8 sps:$4 sm:$0xff]   ;;  %v1562_v21 = vld [vmem:[%s2018_s17 + $0x44] ss:$8 sps:$4 sm:$0xff]  }
  0x6f   : > { %v1558_v18 = vld [vmem:[%s2018_s17 + $0x134] ss:$8 sps:$4 sm:$0xff]   ;;  %v1561_v20 = vld [vmem:[%s2018_s17 + $0x130] ss:$8 sps:$4 sm:$0xff]   ;;  %v1564_v22 = vld [vmem:[%s2018_s17 + $0x144] ss:$8 sps:$4 sm:$0xff]  }
  0x70   : > { %1023 = vmatpush1.bf16.msra.mxu1 %v1548_v11  ;;  %v1566_v23 = vld [vmem:[%s2018_s17 + $0x40] ss:$8 sps:$4 sm:$0xff]   ;;  %v1568_v25 = vld [vmem:[%s2018_s17 + $0x54] ss:$8 sps:$4 sm:$0xff]   ;;  %v1572_v27 = vld [vmem:[%s2018_s17 + $0x50] ss:$8 sps:$4 sm:$0xff]  }
  0x71   : > { %1066 = vmatpush1.bf16.msra.mxu0 %v1549_v12  ;;  %1024 = vmatprep.subr.bf16.mxu1 %v1550_v13  ;;  %v1567_v24 = vld [vmem:[%s2018_s17 + $0x140] ss:$8 sps:$4 sm:$0xff]   ;;  %v1570_v26 = vld [vmem:[%s2018_s17 + $0x154] ss:$8 sps:$4 sm:$0xff]   ;;  %v1573_v28 = vld [vmem:[%s2018_s17 + $0x150] ss:$8 sps:$4 sm:$0xff]  }
  0x72   : > { %1067 = vmatprep.subr.bf16.mxu0 %v1552_v14  ;;  %v1574_v29 = vld [vmem:[%s2018_s17 + $0x64] ss:$8 sps:$4 sm:$0xff]   ;;  %v1578_v31 = vld [vmem:[%s2018_s17 + $0x60] ss:$8 sps:$4 sm:$0xff]   ;;  %v1580_v33 = vld [vmem:[%s2018_s17 + $0x74] ss:$8 sps:$4 sm:$0xff]  }
  0x73   : > { %v1576_v30 = vld [vmem:[%s2018_s17 + $0x164] ss:$8 sps:$4 sm:$0xff]   ;;  %v1579_v32 = vld [vmem:[%s2018_s17 + $0x160] ss:$8 sps:$4 sm:$0xff]   ;;  %v1582_v34 = vld [vmem:[%s2018_s17 + $0x174] ss:$8 sps:$4 sm:$0xff]  }
  0x74   : > { %1025 = vmatpush1.bf16.msra.mxu1 %v1554_v15  ;;  %v1584_v35 = vld [vmem:[%s2018_s17 + $0x70] ss:$8 sps:$4 sm:$0xff]   ;;  %v1586_v37 = vld [vmem:[%s2018_s17 + $0x84] ss:$8 sps:$4 sm:$0xff]   ;;  %v1590_v39 = vld [vmem:[%s2018_s17 + $0x80] ss:$8 sps:$4 sm:$0xff]  }
  0x75   : > { %1068 = vmatpush1.bf16.msra.mxu0 %v1555_v16  ;;  %1026 = vmatprep.subr.bf16.mxu1 %v1556_v17  ;;  %v1585_v36 = vld [vmem:[%s2018_s17 + $0x170] ss:$8 sps:$4 sm:$0xff]   ;;  %v1588_v38 = vld [vmem:[%s2018_s17 + $0x184] ss:$8 sps:$4 sm:$0xff]   ;;  %v1591_v40 = vld [vmem:[%s2018_s17 + $0x180] ss:$8 sps:$4 sm:$0xff]  }
  0x76   : > { %1069 = vmatprep.subr.bf16.mxu0 %v1558_v18  ;;  %v1592_v41 = vld [vmem:[%s2018_s17 + $0x94] ss:$8 sps:$4 sm:$0xff]   ;;  %v1596_v43 = vld [vmem:[%s2018_s17 + $0x90] ss:$8 sps:$4 sm:$0xff]   ;;  %v1598_v45 = vld [vmem:[%s2018_s17 + $0xa4] ss:$8 sps:$4 sm:$0xff]  }
  0x77   : > { %v1594_v42 = vld [vmem:[%s2018_s17 + $0x194] ss:$8 sps:$4 sm:$0xff]   ;;  %v1597_v44 = vld [vmem:[%s2018_s17 + $0x190] ss:$8 sps:$4 sm:$0xff]   ;;  %v1600_v46 = vld [vmem:[%s2018_s17 + $0x1a4] ss:$8 sps:$4 sm:$0xff]  }
  0x78   : > { %1027 = vmatpush1.bf16.msra.mxu1 %v1560_v19  ;;  %v1602_v47 = vld [vmem:[%s2018_s17 + $0xa0] ss:$8 sps:$4 sm:$0xff]   ;;  %v1604_v49 = vld [vmem:[%s2018_s17 + $0xb4] ss:$8 sps:$4 sm:$0xff]   ;;  %v1608_v51 = vld [vmem:[%s2018_s17 + $0xb0] ss:$8 sps:$4 sm:$0xff]  }
  0x79   : > { %1070 = vmatpush1.bf16.msra.mxu0 %v1561_v20  ;;  %1028 = vmatprep.subr.bf16.mxu1 %v1562_v21  ;;  %v1603_v48 = vld [vmem:[%s2018_s17 + $0x1a0] ss:$8 sps:$4 sm:$0xff]   ;;  %v1606_v50 = vld [vmem:[%s2018_s17 + $0x1b4] ss:$8 sps:$4 sm:$0xff]   ;;  %v1609_v53 = vld [vmem:[%s2018_s17 + $0x1b0] ss:$8 sps:$4 sm:$0xff]  }
  0x7a   : > { %1071 = vmatprep.subr.bf16.mxu0 %v1564_v22  ;;  %v1636_v52 = vld [vmem:[%s2016_s19 + $0x4] ss:$16 sps:$4 sm:$0xff]   ;;  %v1639_v56 = vld [vmem:[%s2016_s19 + $0xc] ss:$16 sps:$4 sm:$0xff]   ;;  %v1614_v57 = vld [vmem:[%s2018_s17 + $0xc0] ss:$8 sps:$4 sm:$0xff]  }
  0x7b   : > { %v1610_v54 = vld [vmem:[%s2018_s17 + $0xc4] ss:$8 sps:$4 sm:$0xff]   ;;  %1052 = vmatprep.mubr.bf16.mxu1 %v1636_v52  ;;  %1095 = vmatprep.mubr.bf16.mxu0 %v1639_v56  ;;  %v1615_v58 = vld [vmem:[%s2018_s17 + $0x1c0] ss:$8 sps:$4 sm:$0xff]   ;;  %v1616_v59 = vld [vmem:[%s2018_s17 + $0xd4] ss:$8 sps:$4 sm:$0xff]  }
  0x7c   : > { %1029 = vmatpush1.bf16.msra.mxu1 %v1566_v23  ;;  %v1612_v55 = vld [vmem:[%s2018_s17 + $0x1c4] ss:$8 sps:$4 sm:$0xff]   ;;  %v1618_v60 = vld [vmem:[%s2018_s17 + $0x1d4] ss:$8 sps:$4 sm:$0xff]   ;;  %v1620_v61 = vld [vmem:[%s2018_s17 + $0xd0] ss:$8 sps:$4 sm:$0xff]  }
  0x7d   : > { %1072 = vmatpush1.bf16.msra.mxu0 %v1567_v24  ;;  %1030 = vmatprep.subr.bf16.mxu1 %v1568_v25  ;;  %v1621_v62 = vld [vmem:[%s2018_s17 + $0x1d0] ss:$8 sps:$4 sm:$0xff]   ;;  %v1622_v63 = vld [vmem:[%s2018_s17 + $0xe4] ss:$8 sps:$4 sm:$0xff]   ;;  %v1626_v1 = vld [vmem:[%s2018_s17 + $0xe0] ss:$8 sps:$4 sm:$0xff]  }
  0x7e   : > { %1073 = vmatprep.subr.bf16.mxu0 %v1570_v26  ;;  %v1624_v0 = vld [vmem:[%s2018_s17 + $0x1e4] ss:$8 sps:$4 sm:$0xff]   ;;  %v1627_v2 = vld [vmem:[%s2018_s17 + $0x1e0] ss:$8 sps:$4 sm:$0xff]   ;;  %v1628_v3 = vld [vmem:[%s2018_s17 + $0xf4] ss:$8 sps:$4 sm:$0xff]  }
  0x7f   : > { %v1630_v4 = vld [vmem:[%s2018_s17 + $0x1f4] ss:$8 sps:$4 sm:$0xff]   ;;  %v1632_v5 = vld [vmem:[%s2018_s17 + $0xf0] ss:$8 sps:$4 sm:$0xff]   ;;  %v608_v10 = vld [vmem:[#allocation2] sm:$0xff]  ;;  %p1432_p5 = scmp.ne.s32.totalorder %s1710_s21, 8 }
  0x80   : > { %1031 = vmatpush1.bf16.msra.mxu1 %v1572_v27  ;;  %v1633_v6 = vld [vmem:[%s2018_s17 + $0x1f0] ss:$8 sps:$4 sm:$0xff]   ;;  %v609_v14 = vld [vmem:[#allocation2 + $0x8] sm:$0xff] }
  0x81   : > { %1074 = vmatpush1.bf16.msra.mxu0 %v1573_v28  ;;  %1032 = vmatprep.subr.bf16.mxu1 %v1574_v29  ;;  %v1634_v7 = vld [vmem:[%s2016_s19] ss:$16 sps:$4 sm:$0xff]   ;;  %v1637_v8 = vld [vmem:[%s2016_s19 + $0x8] ss:$16 sps:$4 sm:$0xff]   ;;  %v1124_v29 = vlaneseq (!%p1432_p5) }
  0x82   : > { %1075 = vmatprep.subr.bf16.mxu0 %v1576_v30  ;;  %v610_v18 = vld [vmem:[#allocation2 + $0x10] sm:$0xff]  ;;  %v611_v23 = vld [vmem:[#allocation2 + $0x18] sm:$0xff] }
  0x83   : > { %v1125_v30 = vshrl.u32 (!%p1432_p5), %v1124_v29, 7 }
  0x84   : > { %1033 = vmatpush1.bf16.msra.mxu1 %v1578_v31  ;;  %v1122_v31 = vld [vmem:[%s591_s9] sm:$0x3] (!%p1432_p5) }
  0x85   : > { %1076 = vmatpush1.bf16.msra.mxu0 %v1579_v32  ;;  %1034 = vmatprep.subr.bf16.mxu1 %v1580_v33  ;;  %v1138_v32 = vld [vmem:[%s596_s1] sm:$0x3] (!%p1432_p5) }
  0x86   : > { %1077 = vmatprep.subr.bf16.mxu0 %v1582_v34  ;;  %v1126_v34 = vsub.s32 (!%p1432_p5), 0, %v1125_v30 }
  0x88   : > { %1035 = vmatpush1.bf16.msra.mxu1 %v1584_v35  ;;  %v1130_v35 = vsub.s32 (!%p1432_p5), 1, %v1125_v30 }
  0x89   : > { %1078 = vmatpush1.bf16.msra.mxu0 %v1585_v36  ;;  %1036 = vmatprep.subr.bf16.mxu1 %v1586_v37 }
  0x8a   : > { %1079 = vmatprep.subr.bf16.mxu0 %v1588_v38 }
  0x8c   : > { %1037 = vmatpush1.bf16.msra.mxu1 %v1590_v39  ;;  %v1127_v39 = vrot.slane (!%p1432_p5), %v1122_v31, %v1126_v34 }
  0x8d   : > { %1080 = vmatpush1.bf16.msra.mxu0 %v1591_v40  ;;  %1038 = vmatprep.subr.bf16.mxu1 %v1592_v41  ;;  %v1131_v40 = vrot.slane (!%p1432_p5), %v1122_v31, %v1130_v35  ;;  %v1143_v41 = vrot.slane (!%p1432_p5), %v1138_v32, %v1126_v34 }
  0x8e   : > { %1081 = vmatprep.subr.bf16.mxu0 %v1594_v42  ;;  %v1147_v42 = vrot.slane (!%p1432_p5), %v1138_v32, %v1130_v35 }
  0x90   : > { %1039 = vmatpush1.bf16.msra.mxu1 %v1596_v43 }
  0x91   : > { %1082 = vmatpush1.bf16.msra.mxu0 %v1597_v44  ;;  %1040 = vmatprep.subr.bf16.mxu1 %v1598_v45 }
  0x92   : > { %1083 = vmatprep.subr.bf16.mxu0 %v1600_v46 }
  0x94   : > { %1041 = vmatpush1.bf16.msra.mxu1 %v1602_v47 }
  0x95   : > { %1084 = vmatpush1.bf16.msra.mxu0 %v1603_v48  ;;  %1042 = vmatprep.subr.bf16.mxu1 %v1604_v49 }
  0x96   : > { %1085 = vmatprep.subr.bf16.mxu0 %v1606_v50 }
  0x98   : > { %1043 = vmatpush1.bf16.msra.mxu1 %v1608_v51 }
  0x99   : > { %1086 = vmatpush1.bf16.msra.mxu0 %v1609_v53  ;;  %1044 = vmatprep.subr.bf16.mxu1 %v1610_v54 }
  0x9a   : > { %1087 = vmatprep.subr.bf16.mxu0 %v1612_v55 }
  0x9c   : > { %1045 = vmatpush1.bf16.msra.mxu1 %v1614_v57 }
  0x9d   : > { %1088 = vmatpush1.bf16.msra.mxu0 %v1615_v58  ;;  %1046 = vmatprep.subr.bf16.mxu1 %v1616_v59 }
  0x9e   : > { %1089 = vmatprep.subr.bf16.mxu0 %v1618_v60 }
  0xa0   : > { %1047 = vmatpush1.bf16.msra.mxu1 %v1620_v61 }
  0xa1   : > { %1090 = vmatpush1.bf16.msra.mxu0 %v1621_v62  ;;  %1048 = vmatprep.subr.bf16.mxu1 %v1622_v63 }
  0xa2   : > { %1091 = vmatprep.subr.bf16.mxu0 %v1624_v0 }
  0xa4   : > { %1049 = vmatpush1.bf16.msra.mxu1 %v1626_v1 }
  0xa5   : > { %1092 = vmatpush1.bf16.msra.mxu0 %v1627_v2  ;;  %1050 = vmatprep.subr.bf16.mxu1 %v1628_v3 }
  0xa6   : > { %1093 = vmatprep.subr.bf16.mxu0 %v1630_v4 }
  0xa8   : > { %1051 = vmatpush1.bf16.msra.mxu1 %v1632_v5 }
  0xa9   : > { %1094 = vmatpush1.bf16.msra.mxu0 %v1633_v6 }
  0xab   : > { %1053 = vmatmul.mubr.bf16.vlgmr.msra.gmra.mrb[0].mxu1 %v1634_v7 }
  0xac   : > { %1096 = vmatmul.mubr.bf16.vlgmr.msra.gmra.mrb[0].mxu0 %v1637_v8 }
 0x17e   : > { %v1054_v9 = vpop.f32.mrb[0].mxu1 }
 0x17f   : > { %v1097_v11 = vpop.f32.mrb[0].mxu0  ;;  %v1056_v13 = vpop.f32.mrb[1].mxu1 }
 0x180   : > { %v1098_v12 = vadd.f32 %v1097_v11, %v1054_v9  ;;  %v1099_v15 = vpop.f32.mrb[1].mxu0  ;;  %v1058_v17 = vpop.f32.mrb[2].mxu1 }
 0x181   : > { %v1100_v16 = vadd.f32 %v1099_v15, %v1056_v13  ;;  %v1101_v19 = vpop.f32.mrb[2].mxu0  ;;  %v1060_v22 = vpop.f32.mrb[3].mxu1  ;;  %1117 = sbr.rel (%p1432_p5) target bundleno = 409 (0x199), region = 105 }
 0x182   : > { %v1106_v20 = vadd.f32 %v1098_v12, %v608_v10  ;;  %v1102_v21 = vadd.f32 %v1101_v19, %v1058_v17  ;;  %v1103_v24 = vpop.f32.mrb[3].mxu0 }
 0x183   : > { %v1107_v25 = vadd.f32 %v1100_v16, %v609_v14  ;;  %v1104_v26 = vadd.f32 %v1103_v24, %v1060_v22 }
 0x184   : > { %1110 = vst [vmem:[#allocation2] sm:$0xff] %v1106_v20  ;;  %v1108_v27 = vadd.f32 %v1102_v21, %v610_v18 }
 0x185   : > { %1111 = vst [vmem:[#allocation2 + $0x8] sm:$0xff] %v1107_v25  ;;  %v1109_v28 = vadd.f32 %v1104_v26, %v611_v23 }
 0x186   : > { %1112 = vst [vmem:[#allocation2 + $0x10] sm:$0xff] %v1108_v27 }
 0x187   : > { %1113 = vst [vmem:[#allocation2 + $0x18] sm:$0xff] %v1109_v28 }
 0x18b   : > { %v1118_v33 = vld [vmem:[#allocation2] sm:$0xff] }
 0x18c   : > { %v1119_v36 = vld [vmem:[#allocation2 + $0x8] sm:$0xff]  ;;  %v1134_v43 = vmul.f32 %v1127_v39, %v1118_v33 }
 0x18d   : > { %v1120_v37 = vld [vmem:[#allocation2 + $0x10] sm:$0xff]  ;;  %v1135_v44 = vmul.f32 %v1131_v40, %v1119_v36 }
 0x18e   : > { %v1121_v38 = vld [vmem:[#allocation2 + $0x18] sm:$0xff]  ;;  %v1136_v45 = vmul.f32 %v1127_v39, %v1120_v37  ;;  %v1150_v47 = vadd.f32 %v1143_v41, %v1134_v43 }
 0x18f   : > { %v1137_v46 = vmul.f32 %v1131_v40, %v1121_v38  ;;  %v1151_v48 = vadd.f32 %v1147_v42, %v1135_v44 }
 0x190   : > { %v1152_v49 = vadd.f32 %v1143_v41, %v1136_v45  ;;  %vm1154_vm0 = vcmp.ge.f32.partialorder %v1150_v47, 0.0  ;;  %v1158_v51 = vmul.f32 0.01, %v1150_v47 }
 0x191   : > { %v1153_v50 = vadd.f32 %v1147_v42, %v1137_v46  ;;  %vm1155_vm1 = vcmp.ge.f32.partialorder %v1151_v48, 0.0  ;;  %v1159_v52 = vmul.f32 0.01, %v1151_v48 }
 0x192   : > { %vm1156_vm2 = vcmp.ge.f32.partialorder %v1152_v49, 0.0  ;;  %v1160_v53 = vmul.f32 0.01, %v1152_v49  ;;  %v1162_v55 = vsel %vm1154_vm0, %v1150_v47, %v1158_v51 }
 0x193   : > { %vm1157_vm3 = vcmp.ge.f32.partialorder %v1153_v50, 0.0  ;;  %v1161_v54 = vmul.f32 0.01, %v1153_v50  ;;  %v1163_v56 = vsel %vm1155_vm1, %v1151_v48, %v1159_v52 }
 0x194   : > { %v1442_v57 = vpack.c.bf16 %v1163_v56, %v1162_v55  ;;  %v1164_v58 = vsel %vm1156_vm2, %v1152_v49, %v1160_v53 }
 0x195   : > { %v1165_v59 = vsel %vm1157_vm3, %v1153_v50, %v1161_v54 }
 0x196   : > { %v1443_v60 = vpack.c.bf16 %v1165_v59, %v1164_v58  ;;  %1178 = vst [vmem:[%s2020_s15] sm:$0xff] %v1442_v57 }
 0x198   : > { %1179 = vst [vmem:[%s2020_s15 + $0x8] sm:$0xff] %v1443_v60 }
 0x199 PF: > { %1186 = sbr.rel (!%p1848_p12) target bundleno = 417 (0x1a1), region = 109  ;;  %s1444_s1 = sshll.u32 (%p1848_p12), %s1714_s22, 3 }
 0x19a   : > { %s1192_s29 = scalar_lea.vmem (%p1848_p12), %s2149_s4, %s1444_s1 }
 0x19d   : > { %v1222_v61 = vld [vmem:[%s2020_s15] sm:$0xff] (%p1848_p12) }
 0x19e   : > { %1223 = vst [vmem:[%s1192_s29] sm:$0xff] (%p1848_p12), %v1222_v61 }
 0x19f   : > { %v1224_v62 = vld [vmem:[%s2020_s15 + $0x8] sm:$0xff] (%p1848_p12) }
 0x1a0   : > { %1225 = vst [vmem:[%s1192_s29 + $0x10] sm:$0xff] %v1224_v62 }
 0x1a1 PF: > { %s14_s25 = sadd.s32 1, %s1726_s25   ;;  %s2161_s14 = sld [smem:[#allocation6_spill]] }
 0x1a2   : > { %p11_p6 = scmp.ge.s32.totalorder %s14_s25, 20   ;;  %s2162_s27 = sld [smem:[#allocation7_spill]] }
 0x1a3   : > { %s2163_s15 = smov %s1690_s16  ;;  %s2164_s16 = smov %s1846_s13 }
 0x1a4   : > { %s2165_s17 = smov %s1698_s18  ;;  %s2166_s18 = smov %s1843_s12 }
 0x1a5   : > { %s2167_s19 = smov %s1706_s20  ;;  %s2168_s20 = smov %s1829_s7 }
 0x1a6   : > { %s2169_s21 = smov %s1718_s23  ;;  %s2170_s22 = smov %s1722_s24 }
 0x1a7   : > { %s2171_s23 = smov %s2161_s14  ;;  %13 = sbr.rel (!%p11_p6) target bundleno = 9 (0x9), region = 192 }
 0x1a8   : > { %s2172_s24 = smov %s2162_s27 }

</bundles_post_ra>
